<compile_context>
chip_gen: v6e
topology: v6e:2x2x1
jax: 0.10.0
libtpu: 0.0.40
codegen_flags: <defaults>
</compile_context>

<pallas_src>
import functools

import jax
import jax.numpy as jnp
from jax import lax
from jax.experimental import pallas as pl
from jax.experimental.pallas import tpu as pltpu


def _round_up(x, m):
    return (x + m - 1) // m * m


# ----------------------------- Pallas kernel ------------------------------ #
def _conv_slab_kernel(a_ref, w_ref, bias_ref, o_ref, *, To, kt, act, alpha):
    """Grid = (B, R_tiles).

    a_ref:    (Tp, r_tile, K1p) bf16 — every padded-T plane of one batch's
              spatial im2col patches for this R tile (fetched once).
    w_ref:    (kT, K1p, Np)     bf16 — all temporal taps; constant block
              index -> DMA'd once, VMEM-resident afterwards.
    bias_ref: (1, Np)           f32  — folded-BN bias.
    o_ref:    (To, r_tile, Np)        — all output planes of this batch/tile.
    """
    bias = bias_ref[...]
    rt, np_ = a_ref.shape[1], w_ref.shape[2]

    def t_body(t, carry):
        # kT-tap reduction kept in vregs (f32 MXU accumulation).
        acc = jnp.zeros((rt, np_), jnp.float32)
        for dt in range(kt):                       # static unroll over taps
            acc += jnp.dot(a_ref[t + dt], w_ref[dt],
                           preferred_element_type=jnp.float32)
        y = acc + bias
        if act == "relu":
            y = jnp.maximum(y, 0.0)
        elif act == "prelu":
            y = jnp.where(y >= 0.0, y, alpha * y)
        elif act == "sigmoid":
            y = 1.0 / (1.0 + jnp.exp(-y))          # exact: stays in [0, 1]
        o_ref[t] = y.astype(o_ref.dtype)
        return carry

    lax.fori_loop(0, To, t_body, 0)


def _pick_r_tile(R, Tp, To, K1p, Np, kt, out_itemsize,
                 budget=32 * 1024 * 1024):
    """Largest multiple-of-16 row tile whose double-buffered working set
    (A slab + output slab + resident W + bias) fits the VMEM budget."""
    fixed = 2 * kt * K1p * Np * 2 + 2 * Np * 4
    per_row = 2 * (Tp * K1p * 2 + To * Np * out_itemsize)
    r_max = max(16, ((budget - fixed) // per_row // 16) * 16)
    return max(16, min(512, _round_up(R, 16), r_max))


def _conv_slab_gemm(patches, weights, bias, *, act, alpha, B, To, Tp, r_tile,
                    out_dtype):
    """patches: [B*Tp, Rp, K1p] bf16  (spatial-only im2col, padded-T planes)
       weights: [kT, K1p, Np]   bf16  (per-tap weight slabs, BN scale folded)
       bias:    [1, Np]         f32
       returns: [B*To, Rp, Np]  out_dtype
    """
    _, Rp, K1p = patches.shape
    kt, _, Np = weights.shape
    grid = (B, Rp // r_tile)                        # larger axis (B) first

    kernel = functools.partial(_conv_slab_kernel, To=To, kt=kt, act=act,
                               alpha=alpha)

    out_itemsize = jnp.dtype(out_dtype).itemsize
    cost = pl.CostEstimate(
        flops=int(2 * B * To * Rp * K1p * Np * kt),
        transcendentals=int(B * To * Rp * Np) if act == "sigmoid" else 0,
        bytes_accessed=int(patches.size * 2 + weights.size * 2 + bias.size * 4
                           + B * To * Rp * Np * out_itemsize))

    return pl.pallas_call(
        kernel,
        out_shape=jax.ShapeDtypeStruct((B * To, Rp, Np), out_dtype),
        grid_spec=pltpu.PrefetchScalarGridSpec(
            num_scalar_prefetch=0,
            grid=grid,
            in_specs=[
                # A: the whole padded-T slab of batch b for this R tile —
                # every plane is fetched exactly once (no per-tap re-fetch).
                pl.BlockSpec((Tp, r_tile, K1p), lambda b, r: (b, r, 0)),
                # W: all kT taps with a constant block index -> fetched once,
                # then the copy is elided (VMEM-resident weight slab).
                pl.BlockSpec((kt, K1p, Np), lambda b, r: (0, 0, 0)),
                pl.BlockSpec((1, Np), lambda b, r: (0, 0)),
            ],
            out_specs=pl.BlockSpec((To, r_tile, Np), lambda b, r: (b, r, 0)),
        ),
        compiler_params=pltpu.CompilerParams(
            # Both axes parallel: shards across v7x's 2 TensorCores.
            dimension_semantics=("parallel", "parallel"),
            # Safe on v7x (64 MiB physical VMEM); comfortable on v5e/v6e.
            vmem_limit_bytes=40 * 1024 * 1024,
        ),
        cost_estimate=cost,
    )(patches, weights, bias)


# ------------------------------- JAX glue --------------------------------- #
def conv3d_tap(x, w, stride_hw, padding, scale, bias, act, alpha=0.25,
               out_dtype=jnp.bfloat16):
    """Conv3d (T-stride 1, bias=False) + folded eval-mode BN + activation.

    x: [B, T, H, W, C] channels-last;  w: [Cout, Cin, kT, kH, kW] (PyTorch).
    Lowered to a spatial-only im2col (kH*kW blowup only) plus a Pallas GEMM
    that loops t_out and reduces the kT taps inside the kernel.
    """
    cout, cin, kt, kh, kw = w.shape
    sh, sw = stride_hw
    pt, ph, pw = padding
    B, T, H, W, C = x.shape
    assert cin == C
    To = T + 2 * pt - kt + 1
    Tp = T + 2 * pt                                  # = To + kt - 1
    Ho = (H + 2 * ph - kh) // sh + 1
    Wo = (W + 2 * pw - kw) // sw + 1
    R, K1 = Ho * Wo, C * kh * kw

    # ---- spatial-only im2col, channels-last (no 6-D transpose) ------------
    xp = jnp.pad(x, ((0, 0), (pt, pt), (ph, ph), (pw, pw), (0, 0)))
    cols = []
    for dh in range(kh):
        for dw in range(kw):
            cols.append(xp[:, :, dh:dh + sh * Ho:sh, dw:dw + sw * Wo:sw, :])
    p = jnp.concatenate(cols, axis=-1)               # [B, Tp, Ho, Wo, kh*kw*C]
    p = p.reshape(B * Tp, R, K1)

    # ---- pad to TPU tiles, cast to bf16 (MXU native) -----------------------
    K1p = _round_up(K1, 128)
    Np = _round_up(cout, 128)
    out_itemsize = jnp.dtype(out_dtype).itemsize
    r_tile = _pick_r_tile(R, Tp, To, K1p, Np, kt, out_itemsize)
    Rp = _round_up(R, r_tile)
    p = jnp.pad(p, ((0, 0), (0, Rp - R), (0, K1p - K1))).astype(jnp.bfloat16)

    # Fold BN scale into the weight columns; K order = (dh, dw, cin), matching
    # the lane-axis concat order of the patches above.
    w_f = (w * scale[:, None, None, None, None]).transpose(2, 3, 4, 1, 0)
    wk = w_f.reshape(kt, K1, cout)
    wk = jnp.pad(wk, ((0, 0), (0, K1p - K1), (0, Np - cout))).astype(jnp.bfloat16)
    bias_p = jnp.pad(bias, (0, Np - cout)).reshape(1, Np).astype(jnp.float32)

    out = _conv_slab_gemm(p, wk, bias_p, act=act, alpha=alpha, B=B, To=To,
                          Tp=Tp, r_tile=r_tile, out_dtype=out_dtype)
    return out[:, :R, :cout].reshape(B, To, Ho, Wo, cout)   # channels-last


def conv_transpose3d(x, w_t, act, alpha=0.25, out_dtype=jnp.bfloat16):
    """ConvTranspose3d kernel (3,6,6), stride (1,2,2), padding (0,2,2),
    bias=False.  The four H/W sub-pixel phases are fused into one conv-GEMM
    (phase weights stacked along Cout) + a single depth-to-space reshape."""
    cin, cout, kt, kh, kw = w_t.shape
    assert (kt, kh, kw) == (3, 6, 6)                 # phase split assumes this
    B, T, H, W, C = x.shape
    assert C == cin
    To = T + kt - 1
    # stride-1 transposed conv in T == conv with flipped kT and full T padding
    w_eq = jnp.flip(w_t, axis=2).transpose(1, 0, 2, 3, 4)   # [Cout,Cin,kT,kH,kW]
    phase_ws = []
    for ph in range(2):
        for pw in range(2):
            phase_ws.append(w_eq[:, :, :, ph::2, pw::2][:, :, :, ::-1, ::-1])
    w_fused = jnp.concatenate(phase_ws, axis=0)      # [4*Cout, Cin, kT, 3, 3]
    ones_s = jnp.ones((4 * cout,), jnp.float32)
    zero_b = jnp.zeros((4 * cout,), jnp.float32)
    y = conv3d_tap(x, w_fused, (1, 1), (kt - 1, 1, 1), ones_s, zero_b, act,
                   alpha=alpha, out_dtype=out_dtype)  # [B, To, H, W, 4*Cout]
    # depth-to-space: fused channel (ph*2+pw)*cout + c  ->  (2h+ph, 2w+pw, c)
    y = y.reshape(B, To, H, W, 2, 2, cout)
    y = y.transpose(0, 1, 2, 4, 3, 5, 6)
    return y.reshape(B, To, 2 * H, 2 * W, cout)


# ------------------------------ parameters -------------------------------- #
def init_params(key, nf, num_keypoints, use_velocity=False):
    in_ch = 3 if use_velocity else 2
    enc_list = [[in_ch, nf], [nf, nf * 2], [nf * 2, nf * 4], [nf * 4, nf * 8]]
    dec_list = [[nf * 8 * 2, nf * 4], [nf * 4, nf * 2], [nf * 2, nf],
                [nf, num_keypoints]]
    keys = iter(jax.random.split(key, 64))

    def conv_w(cout, cin, k):
        return (jax.random.normal(next(keys), (cout, cin) + k, jnp.float32)
                * (0.05 / (cin ** 0.5)))

    def bn_fold(c):
        # eval-mode BatchNorm3d, default init: gamma=1, beta=0, mean=0, var=1
        eps = 1e-5
        return (jnp.ones((c,), jnp.float32) / jnp.sqrt(1.0 + eps),
                jnp.zeros((c,), jnp.float32))

    params = {"hori": [], "vert": [], "dec": []}
    for branch in ("hori", "vert"):
        for cin, cout in enc_list:
            w1 = conv_w(cout, cin, (9, 5, 5))
            w2 = conv_w(cout, cout, (9, 3, 3))
            params[branch].append((w1, bn_fold(cout), w2, bn_fold(cout)))
    for cin, cout in dec_list:
        wt = (jax.random.normal(next(keys), (cin, cout, 3, 6, 6), jnp.float32)
              * (0.05 / (cin ** 0.5)))
        params["dec"].append(wt)
    return params


# ------------------------------ forward pass ------------------------------ #
def _encode(x, layers):
    for w1, (s1, b1), w2, (s2, b2) in layers:
        x = conv3d_tap(x, w1, (2, 2), (3, 2, 2), s1, b1, "relu")
        x = conv3d_tap(x, w2, (1, 1), (4, 1, 1), s2, b2, "relu")
    return x


def rfpose_forward(params, hori_map, vert_map):
    # PyTorch: [B,T,1,C,H,W] -> NCDHW; here -> channels-last [B,T,H,W,C]
    def pre(x):
        return jnp.transpose(jnp.squeeze(x, axis=2), (0, 1, 3, 4, 2))

    h = _encode(pre(hori_map), params["hori"])
    v = _encode(pre(vert_map), params["vert"])
    x = jnp.concatenate([h, v], axis=-1)             # channel concat
    n_dec = len(params["dec"])
    for i, wt in enumerate(params["dec"]):
        last = i == n_dec - 1
        x = conv_transpose3d(x, wt, "sigmoid" if last else "prelu",
                             alpha=0.25,
                             out_dtype=jnp.float32 if last else jnp.bfloat16)
    # [B, T, H, W, K] -> [B, K, T, H, W] to match the PyTorch output layout
    return jnp.transpose(x, (0, 4, 1, 2, 3))


if __name__ == "__main__":
    key = jax.random.PRNGKey(0)
    k_params, k_hori, k_vert = jax.random.split(key, 3)

    # small but valid shapes: T must exceed 8 (encoder shrinks T by 8),
    # spatial must be divisible by 16 (encoder downsamples 16x).
    # B=2 so the "parallel" batch grid axis feeds both v7x TensorCores.
    B, T, C, H, W = 2, 12, 2, 16, 16
    nf, num_keypoints = 4, 4

    params = init_params(k_params, nf, num_keypoints, use_velocity=False)
    hori = jax.random.normal(k_hori, (B, T, 1, C, H, W), jnp.float32)
    vert = jax.random.normal(k_vert, (B, T, 1, C, H, W), jnp.float32)

    fwd = jax.jit(rfpose_forward)
    out = jax.block_until_ready(fwd(params, hori, vert))

    assert out.shape == (B, num_keypoints, T, H, W), out.shape
    assert bool(jnp.isfinite(out).all())
    assert bool((out >= 0.0).all()) and bool((out <= 1.0 + 1e-6).all())
    print("KERNEL_OK")
</pallas_src>

<mosaic_0001>
module attributes {stable_mosaic.version = 11 : i64} {
  func.func @_conv_slab_kernel(%arg0: i32, %arg1: i32, %arg2: memref<18x64x128xbf16, #tpu.memory_space<vmem>>, %arg3: memref<9x128x128xbf16, #tpu.memory_space<vmem>>, %arg4: memref<1x128xf32, #tpu.memory_space<vmem>>, %arg5: memref<10x64x128xbf16, #tpu.memory_space<vmem>>) attributes {dimension_semantics = [#tpu.dimension_semantics<parallel>, #tpu.dimension_semantics<parallel>], iteration_bounds = array<i64: 2, 1>, scalar_prefetch = 0 : i64, scratch_operands = 0 : i64, tpu.core_type = #tpu.core_type<tc>, window_params = [{transform_indices = @transform_0, window_bounds = array<i64: 18, 64, 128>}, {pipeline_mode = #tpu.pipeline_mode<synchronous>, transform_indices = @transform_1, window_bounds = array<i64: 9, 128, 128>}, {pipeline_mode = #tpu.pipeline_mode<synchronous>, transform_indices = @transform_2, window_bounds = array<i64: 1, 128>}, {transform_indices = @transform_3, window_bounds = array<i64: 10, 64, 128>}]} {
    %c0 = arith.constant 0 : index
    %c0_0 = arith.constant 0 : index
    %0 = vector.load %arg4[%c0, %c0_0] : memref<1x128xf32, #tpu.memory_space<vmem>>, vector<1x128xf32>
    %c0_i32 = arith.constant 0 : i32
    %c10_i32 = arith.constant 10 : i32
    %1 = arith.addi %c0_i32, %c10_i32 : i32
    %c1_i32 = arith.constant 1 : i32
    scf.for %arg6 = %c0_i32 to %1 step %c1_i32  : i32 {
      %cst = arith.constant 0.000000e+00 : f32
      %2 = vector.broadcast %cst : f32 to vector<64x128xf32>
      %c0_i32_2 = arith.constant 0 : i32
      %3 = arith.addi %arg6, %c0_i32_2 : i32
      %4 = arith.index_cast %3 : i32 to index
      %c0_3 = arith.constant 0 : index
      %c0_4 = arith.constant 0 : index
      %5 = vector.load %arg2[%4, %c0_3, %c0_4] : memref<18x64x128xbf16, #tpu.memory_space<vmem>>, vector<1x64x128xbf16>
      %6 = vector.shape_cast %5 : vector<1x64x128xbf16> to vector<64x128xbf16>
      %c0_5 = arith.constant 0 : index
      %c0_6 = arith.constant 0 : index
      %c0_7 = arith.constant 0 : index
      %7 = vector.load %arg3[%c0_5, %c0_6, %c0_7] : memref<9x128x128xbf16, #tpu.memory_space<vmem>>, vector<1x128x128xbf16>
      %8 = vector.shape_cast %7 : vector<1x128x128xbf16> to vector<128x128xbf16>
      %cst_8 = arith.constant dense<0.000000e+00> : vector<64x128xf32>
      %9 = tpu.matmul %6, %8, %cst_8 {dimension_numbers = #tpu.dot_dimension_numbers<[1], [0], [0], [1], [0, 0, 1, 1], [], []>} : vector<64x128xbf16>, vector<128x128xbf16>, vector<64x128xf32> -> vector<64x128xf32>
      %10 = arith.addf %2, %9 : vector<64x128xf32>
      %c1_i32_9 = arith.constant 1 : i32
      %11 = arith.addi %arg6, %c1_i32_9 : i32
      %12 = arith.index_cast %11 : i32 to index
      %c0_10 = arith.constant 0 : index
      %c0_11 = arith.constant 0 : index
      %13 = vector.load %arg2[%12, %c0_10, %c0_11] : memref<18x64x128xbf16, #tpu.memory_space<vmem>>, vector<1x64x128xbf16>
      %14 = vector.shape_cast %13 : vector<1x64x128xbf16> to vector<64x128xbf16>
      %c1 = arith.constant 1 : index
      %c0_12 = arith.constant 0 : index
      %c0_13 = arith.constant 0 : index
      %15 = vector.load %arg3[%c1, %c0_12, %c0_13] : memref<9x128x128xbf16, #tpu.memory_space<vmem>>, vector<1x128x128xbf16>
      %16 = vector.shape_cast %15 : vector<1x128x128xbf16> to vector<128x128xbf16>
      %cst_14 = arith.constant dense<0.000000e+00> : vector<64x128xf32>
      %17 = tpu.matmul %14, %16, %cst_14 {dimension_numbers = #tpu.dot_dimension_numbers<[1], [0], [0], [1], [0, 0, 1, 1], [], []>} : vector<64x128xbf16>, vector<128x128xbf16>, vector<64x128xf32> -> vector<64x128xf32>
      %18 = arith.addf %10, %17 : vector<64x128xf32>
      %c2_i32 = arith.constant 2 : i32
      %19 = arith.addi %arg6, %c2_i32 : i32
      %20 = arith.index_cast %19 : i32 to index
      %c0_15 = arith.constant 0 : index
      %c0_16 = arith.constant 0 : index
      %21 = vector.load %arg2[%20, %c0_15, %c0_16] : memref<18x64x128xbf16, #tpu.memory_space<vmem>>, vector<1x64x128xbf16>
      %22 = vector.shape_cast %21 : vector<1x64x128xbf16> to vector<64x128xbf16>
      %c2 = arith.constant 2 : index
      %c0_17 = arith.constant 0 : index
      %c0_18 = arith.constant 0 : index
      %23 = vector.load %arg3[%c2, %c0_17, %c0_18] : memref<9x128x128xbf16, #tpu.memory_space<vmem>>, vector<1x128x128xbf16>
      %24 = vector.shape_cast %23 : vector<1x128x128xbf16> to vector<128x128xbf16>
      %cst_19 = arith.constant dense<0.000000e+00> : vector<64x128xf32>
      %25 = tpu.matmul %22, %24, %cst_19 {dimension_numbers = #tpu.dot_dimension_numbers<[1], [0], [0], [1], [0, 0, 1, 1], [], []>} : vector<64x128xbf16>, vector<128x128xbf16>, vector<64x128xf32> -> vector<64x128xf32>
      %26 = arith.addf %18, %25 : vector<64x128xf32>
      %c3_i32 = arith.constant 3 : i32
      %27 = arith.addi %arg6, %c3_i32 : i32
      %28 = arith.index_cast %27 : i32 to index
      %c0_20 = arith.constant 0 : index
      %c0_21 = arith.constant 0 : index
      %29 = vector.load %arg2[%28, %c0_20, %c0_21] : memref<18x64x128xbf16, #tpu.memory_space<vmem>>, vector<1x64x128xbf16>
      %30 = vector.shape_cast %29 : vector<1x64x128xbf16> to vector<64x128xbf16>
      %c3 = arith.constant 3 : index
      %c0_22 = arith.constant 0 : index
      %c0_23 = arith.constant 0 : index
      %31 = vector.load %arg3[%c3, %c0_22, %c0_23] : memref<9x128x128xbf16, #tpu.memory_space<vmem>>, vector<1x128x128xbf16>
      %32 = vector.shape_cast %31 : vector<1x128x128xbf16> to vector<128x128xbf16>
      %cst_24 = arith.constant dense<0.000000e+00> : vector<64x128xf32>
      %33 = tpu.matmul %30, %32, %cst_24 {dimension_numbers = #tpu.dot_dimension_numbers<[1], [0], [0], [1], [0, 0, 1, 1], [], []>} : vector<64x128xbf16>, vector<128x128xbf16>, vector<64x128xf32> -> vector<64x128xf32>
      %34 = arith.addf %26, %33 : vector<64x128xf32>
      %c4_i32 = arith.constant 4 : i32
      %35 = arith.addi %arg6, %c4_i32 : i32
      %36 = arith.index_cast %35 : i32 to index
      %c0_25 = arith.constant 0 : index
      %c0_26 = arith.constant 0 : index
      %37 = vector.load %arg2[%36, %c0_25, %c0_26] : memref<18x64x128xbf16, #tpu.memory_space<vmem>>, vector<1x64x128xbf16>
      %38 = vector.shape_cast %37 : vector<1x64x128xbf16> to vector<64x128xbf16>
      %c4 = arith.constant 4 : index
      %c0_27 = arith.constant 0 : index
      %c0_28 = arith.constant 0 : index
      %39 = vector.load %arg3[%c4, %c0_27, %c0_28] : memref<9x128x128xbf16, #tpu.memory_space<vmem>>, vector<1x128x128xbf16>
      %40 = vector.shape_cast %39 : vector<1x128x128xbf16> to vector<128x128xbf16>
      %cst_29 = arith.constant dense<0.000000e+00> : vector<64x128xf32>
      %41 = tpu.matmul %38, %40, %cst_29 {dimension_numbers = #tpu.dot_dimension_numbers<[1], [0], [0], [1], [0, 0, 1, 1], [], []>} : vector<64x128xbf16>, vector<128x128xbf16>, vector<64x128xf32> -> vector<64x128xf32>
      %42 = arith.addf %34, %41 : vector<64x128xf32>
      %c5_i32 = arith.constant 5 : i32
      %43 = arith.addi %arg6, %c5_i32 : i32
      %44 = arith.index_cast %43 : i32 to index
      %c0_30 = arith.constant 0 : index
      %c0_31 = arith.constant 0 : index
      %45 = vector.load %arg2[%44, %c0_30, %c0_31] : memref<18x64x128xbf16, #tpu.memory_space<vmem>>, vector<1x64x128xbf16>
      %46 = vector.shape_cast %45 : vector<1x64x128xbf16> to vector<64x128xbf16>
      %c5 = arith.constant 5 : index
      %c0_32 = arith.constant 0 : index
      %c0_33 = arith.constant 0 : index
      %47 = vector.load %arg3[%c5, %c0_32, %c0_33] : memref<9x128x128xbf16, #tpu.memory_space<vmem>>, vector<1x128x128xbf16>
      %48 = vector.shape_cast %47 : vector<1x128x128xbf16> to vector<128x128xbf16>
      %cst_34 = arith.constant dense<0.000000e+00> : vector<64x128xf32>
      %49 = tpu.matmul %46, %48, %cst_34 {dimension_numbers = #tpu.dot_dimension_numbers<[1], [0], [0], [1], [0, 0, 1, 1], [], []>} : vector<64x128xbf16>, vector<128x128xbf16>, vector<64x128xf32> -> vector<64x128xf32>
      %50 = arith.addf %42, %49 : vector<64x128xf32>
      %c6_i32 = arith.constant 6 : i32
      %51 = arith.addi %arg6, %c6_i32 : i32
      %52 = arith.index_cast %51 : i32 to index
      %c0_35 = arith.constant 0 : index
      %c0_36 = arith.constant 0 : index
      %53 = vector.load %arg2[%52, %c0_35, %c0_36] : memref<18x64x128xbf16, #tpu.memory_space<vmem>>, vector<1x64x128xbf16>
      %54 = vector.shape_cast %53 : vector<1x64x128xbf16> to vector<64x128xbf16>
      %c6 = arith.constant 6 : index
      %c0_37 = arith.constant 0 : index
      %c0_38 = arith.constant 0 : index
      %55 = vector.load %arg3[%c6, %c0_37, %c0_38] : memref<9x128x128xbf16, #tpu.memory_space<vmem>>, vector<1x128x128xbf16>
      %56 = vector.shape_cast %55 : vector<1x128x128xbf16> to vector<128x128xbf16>
      %cst_39 = arith.constant dense<0.000000e+00> : vector<64x128xf32>
      %57 = tpu.matmul %54, %56, %cst_39 {dimension_numbers = #tpu.dot_dimension_numbers<[1], [0], [0], [1], [0, 0, 1, 1], [], []>} : vector<64x128xbf16>, vector<128x128xbf16>, vector<64x128xf32> -> vector<64x128xf32>
      %58 = arith.addf %50, %57 : vector<64x128xf32>
      %c7_i32 = arith.constant 7 : i32
      %59 = arith.addi %arg6, %c7_i32 : i32
      %60 = arith.index_cast %59 : i32 to index
      %c0_40 = arith.constant 0 : index
      %c0_41 = arith.constant 0 : index
      %61 = vector.load %arg2[%60, %c0_40, %c0_41] : memref<18x64x128xbf16, #tpu.memory_space<vmem>>, vector<1x64x128xbf16>
      %62 = vector.shape_cast %61 : vector<1x64x128xbf16> to vector<64x128xbf16>
      %c7 = arith.constant 7 : index
      %c0_42 = arith.constant 0 : index
      %c0_43 = arith.constant 0 : index
      %63 = vector.load %arg3[%c7, %c0_42, %c0_43] : memref<9x128x128xbf16, #tpu.memory_space<vmem>>, vector<1x128x128xbf16>
      %64 = vector.shape_cast %63 : vector<1x128x128xbf16> to vector<128x128xbf16>
      %cst_44 = arith.constant dense<0.000000e+00> : vector<64x128xf32>
      %65 = tpu.matmul %62, %64, %cst_44 {dimension_numbers = #tpu.dot_dimension_numbers<[1], [0], [0], [1], [0, 0, 1, 1], [], []>} : vector<64x128xbf16>, vector<128x128xbf16>, vector<64x128xf32> -> vector<64x128xf32>
      %66 = arith.addf %58, %65 : vector<64x128xf32>
      %c8_i32 = arith.constant 8 : i32
      %67 = arith.addi %arg6, %c8_i32 : i32
      %68 = arith.index_cast %67 : i32 to index
      %c0_45 = arith.constant 0 : index
      %c0_46 = arith.constant 0 : index
      %69 = vector.load %arg2[%68, %c0_45, %c0_46] : memref<18x64x128xbf16, #tpu.memory_space<vmem>>, vector<1x64x128xbf16>
      %70 = vector.shape_cast %69 : vector<1x64x128xbf16> to vector<64x128xbf16>
      %c8 = arith.constant 8 : index
      %c0_47 = arith.constant 0 : index
      %c0_48 = arith.constant 0 : index
      %71 = vector.load %arg3[%c8, %c0_47, %c0_48] : memref<9x128x128xbf16, #tpu.memory_space<vmem>>, vector<1x128x128xbf16>
      %72 = vector.shape_cast %71 : vector<1x128x128xbf16> to vector<128x128xbf16>
      %cst_49 = arith.constant dense<0.000000e+00> : vector<64x128xf32>
      %73 = tpu.matmul %70, %72, %cst_49 {dimension_numbers = #tpu.dot_dimension_numbers<[1], [0], [0], [1], [0, 0, 1, 1], [], []>} : vector<64x128xbf16>, vector<128x128xbf16>, vector<64x128xf32> -> vector<64x128xf32>
      %74 = arith.addf %66, %73 : vector<64x128xf32>
      %75 = vector.broadcast %0 : vector<1x128xf32> to vector<64x128xf32>
      %76 = arith.addf %74, %75 : vector<64x128xf32>
      %cst_50 = arith.constant 0.000000e+00 : f32
      %77 = vector.broadcast %cst_50 : f32 to vector<64x128xf32>
      %78 = arith.maximumf %76, %77 : vector<64x128xf32>
      %79 = arith.truncf %78 : vector<64x128xf32> to vector<64x128xbf16>
      %80 = arith.index_cast %arg6 : i32 to index
      %c0_51 = arith.constant 0 : index
      %c0_52 = arith.constant 0 : index
      %81 = vector.load %arg5[%80, %c0_51, %c0_52] : memref<10x64x128xbf16, #tpu.memory_space<vmem>>, vector<1x64x128xbf16>
      %82 = vector.shape_cast %81 : vector<1x64x128xbf16> to vector<64x128xbf16>
      %83 = vector.shape_cast %79 : vector<64x128xbf16> to vector<1x64x128xbf16>
      tpu.vector_store %arg5[%80, %c0_51, %c0_52], %83 {strides = array<i32>} : memref<10x64x128xbf16, #tpu.memory_space<vmem>>, vector<1x64x128xbf16>,
    }
    %c10_i32_1 = arith.constant 10 : i32
    return
  }
  func.func @transform_0(%arg0: i32, %arg1: i32) -> (i32, i32, i32) {
    %c0_i32 = arith.constant 0 : i32
    %c0_i32_0 = arith.constant 0 : i32
    return %arg0, %arg1, %c0_i32 : i32, i32, i32
  }
  func.func @transform_1(%arg0: i32, %arg1: i32) -> (i32, i32, i32) {
    %c0_i32 = arith.constant 0 : i32
    %c0_i32_0 = arith.constant 0 : i32
    %c0_i32_1 = arith.constant 0 : i32
    %c0_i32_2 = arith.constant 0 : i32
    return %c0_i32, %c0_i32_0, %c0_i32_1 : i32, i32, i32
  }
  func.func @transform_2(%arg0: i32, %arg1: i32) -> (i32, i32) {
    %c0_i32 = arith.constant 0 : i32
    %c0_i32_0 = arith.constant 0 : i32
    %c0_i32_1 = arith.constant 0 : i32
    return %c0_i32, %c0_i32_0 : i32, i32
  }
  func.func @transform_3(%arg0: i32, %arg1: i32) -> (i32, i32, i32) {
    %c0_i32 = arith.constant 0 : i32
    %c0_i32_0 = arith.constant 0 : i32
    return %arg0, %arg1, %c0_i32 : i32, i32, i32
  }
}

module attributes {stable_mosaic.version = 11 : i64} {
  func.func @_conv_slab_kernel(%arg0: i32, %arg1: i32, %arg2: memref<16x16x128xbf16, #tpu.memory_space<vmem>>, %arg3: memref<9x128x128xbf16, #tpu.memory_space<vmem>>, %arg4: memref<1x128xf32, #tpu.memory_space<vmem>>, %arg5: memref<8x16x128xbf16, #tpu.memory_space<vmem>>) attributes {dimension_semantics = [#tpu.dimension_semantics<parallel>, #tpu.dimension_semantics<parallel>], iteration_bounds = array<i64: 2, 1>, scalar_prefetch = 0 : i64, scratch_operands = 0 : i64, tpu.core_type = #tpu.core_type<tc>, window_params = [{transform_indices = @transform_0, window_bounds = array<i64: 16, 16, 128>}, {pipeline_mode = #tpu.pipeline_mode<synchronous>, transform_indices = @transform_1, window_bounds = array<i64: 9, 128, 128>}, {pipeline_mode = #tpu.pipeline_mode<synchronous>, transform_indices = @transform_2, window_bounds = array<i64: 1, 128>}, {transform_indices = @transform_3, window_bounds = array<i64: 8, 16, 128>}]} {
    %c0 = arith.constant 0 : index
    %c0_0 = arith.constant 0 : index
    %0 = vector.load %arg4[%c0, %c0_0] : memref<1x128xf32, #tpu.memory_space<vmem>>, vector<1x128xf32>
    %c0_i32 = arith.constant 0 : i32
    %c8_i32 = arith.constant 8 : i32
    %1 = arith.addi %c0_i32, %c8_i32 : i32
    %c1_i32 = arith.constant 1 : i32
    scf.for %arg6 = %c0_i32 to %1 step %c1_i32  : i32 {
      %cst = arith.constant 0.000000e+00 : f32
      %2 = vector.broadcast %cst : f32 to vector<16x128xf32>
      %c0_i32_2 = arith.constant 0 : i32
      %3 = arith.addi %arg6, %c0_i32_2 : i32
      %4 = arith.index_cast %3 : i32 to index
      %c0_3 = arith.constant 0 : index
      %c0_4 = arith.constant 0 : index
      %5 = vector.load %arg2[%4, %c0_3, %c0_4] : memref<16x16x128xbf16, #tpu.memory_space<vmem>>, vector<1x16x128xbf16>
      %6 = vector.shape_cast %5 : vector<1x16x128xbf16> to vector<16x128xbf16>
      %c0_5 = arith.constant 0 : index
      %c0_6 = arith.constant 0 : index
      %c0_7 = arith.constant 0 : index
      %7 = vector.load %arg3[%c0_5, %c0_6, %c0_7] : memref<9x128x128xbf16, #tpu.memory_space<vmem>>, vector<1x128x128xbf16>
      %8 = vector.shape_cast %7 : vector<1x128x128xbf16> to vector<128x128xbf16>
      %cst_8 = arith.constant dense<0.000000e+00> : vector<16x128xf32>
      %9 = tpu.matmul %6, %8, %cst_8 {dimension_numbers = #tpu.dot_dimension_numbers<[1], [0], [0], [1], [0, 0, 1, 1], [], []>} : vector<16x128xbf16>, vector<128x128xbf16>, vector<16x128xf32> -> vector<16x128xf32>
      %10 = arith.addf %2, %9 : vector<16x128xf32>
      %c1_i32_9 = arith.constant 1 : i32
      %11 = arith.addi %arg6, %c1_i32_9 : i32
      %12 = arith.index_cast %11 : i32 to index
      %c0_10 = arith.constant 0 : index
      %c0_11 = arith.constant 0 : index
      %13 = vector.load %arg2[%12, %c0_10, %c0_11] : memref<16x16x128xbf16, #tpu.memory_space<vmem>>, vector<1x16x128xbf16>
      %14 = vector.shape_cast %13 : vector<1x16x128xbf16> to vector<16x128xbf16>
      %c1 = arith.constant 1 : index
      %c0_12 = arith.constant 0 : index
      %c0_13 = arith.constant 0 : index
      %15 = vector.load %arg3[%c1, %c0_12, %c0_13] : memref<9x128x128xbf16, #tpu.memory_space<vmem>>, vector<1x128x128xbf16>
      %16 = vector.shape_cast %15 : vector<1x128x128xbf16> to vector<128x128xbf16>
      %cst_14 = arith.constant dense<0.000000e+00> : vector<16x128xf32>
      %17 = tpu.matmul %14, %16, %cst_14 {dimension_numbers = #tpu.dot_dimension_numbers<[1], [0], [0], [1], [0, 0, 1, 1], [], []>} : vector<16x128xbf16>, vector<128x128xbf16>, vector<16x128xf32> -> vector<16x128xf32>
      %18 = arith.addf %10, %17 : vector<16x128xf32>
      %c2_i32 = arith.constant 2 : i32
      %19 = arith.addi %arg6, %c2_i32 : i32
      %20 = arith.index_cast %19 : i32 to index
      %c0_15 = arith.constant 0 : index
      %c0_16 = arith.constant 0 : index
      %21 = vector.load %arg2[%20, %c0_15, %c0_16] : memref<16x16x128xbf16, #tpu.memory_space<vmem>>, vector<1x16x128xbf16>
      %22 = vector.shape_cast %21 : vector<1x16x128xbf16> to vector<16x128xbf16>
      %c2 = arith.constant 2 : index
      %c0_17 = arith.constant 0 : index
      %c0_18 = arith.constant 0 : index
      %23 = vector.load %arg3[%c2, %c0_17, %c0_18] : memref<9x128x128xbf16, #tpu.memory_space<vmem>>, vector<1x128x128xbf16>
      %24 = vector.shape_cast %23 : vector<1x128x128xbf16> to vector<128x128xbf16>
      %cst_19 = arith.constant dense<0.000000e+00> : vector<16x128xf32>
      %25 = tpu.matmul %22, %24, %cst_19 {dimension_numbers = #tpu.dot_dimension_numbers<[1], [0], [0], [1], [0, 0, 1, 1], [], []>} : vector<16x128xbf16>, vector<128x128xbf16>, vector<16x128xf32> -> vector<16x128xf32>
      %26 = arith.addf %18, %25 : vector<16x128xf32>
      %c3_i32 = arith.constant 3 : i32
      %27 = arith.addi %arg6, %c3_i32 : i32
      %28 = arith.index_cast %27 : i32 to index
      %c0_20 = arith.constant 0 : index
      %c0_21 = arith.constant 0 : index
      %29 = vector.load %arg2[%28, %c0_20, %c0_21] : memref<16x16x128xbf16, #tpu.memory_space<vmem>>, vector<1x16x128xbf16>
      %30 = vector.shape_cast %29 : vector<1x16x128xbf16> to vector<16x128xbf16>
      %c3 = arith.constant 3 : index
      %c0_22 = arith.constant 0 : index
      %c0_23 = arith.constant 0 : index
      %31 = vector.load %arg3[%c3, %c0_22, %c0_23] : memref<9x128x128xbf16, #tpu.memory_space<vmem>>, vector<1x128x128xbf16>
      %32 = vector.shape_cast %31 : vector<1x128x128xbf16> to vector<128x128xbf16>
      %cst_24 = arith.constant dense<0.000000e+00> : vector<16x128xf32>
      %33 = tpu.matmul %30, %32, %cst_24 {dimension_numbers = #tpu.dot_dimension_numbers<[1], [0], [0], [1], [0, 0, 1, 1], [], []>} : vector<16x128xbf16>, vector<128x128xbf16>, vector<16x128xf32> -> vector<16x128xf32>
      %34 = arith.addf %26, %33 : vector<16x128xf32>
      %c4_i32 = arith.constant 4 : i32
      %35 = arith.addi %arg6, %c4_i32 : i32
      %36 = arith.index_cast %35 : i32 to index
      %c0_25 = arith.constant 0 : index
      %c0_26 = arith.constant 0 : index
      %37 = vector.load %arg2[%36, %c0_25, %c0_26] : memref<16x16x128xbf16, #tpu.memory_space<vmem>>, vector<1x16x128xbf16>
      %38 = vector.shape_cast %37 : vector<1x16x128xbf16> to vector<16x128xbf16>
      %c4 = arith.constant 4 : index
      %c0_27 = arith.constant 0 : index
      %c0_28 = arith.constant 0 : index
      %39 = vector.load %arg3[%c4, %c0_27, %c0_28] : memref<9x128x128xbf16, #tpu.memory_space<vmem>>, vector<1x128x128xbf16>
      %40 = vector.shape_cast %39 : vector<1x128x128xbf16> to vector<128x128xbf16>
      %cst_29 = arith.constant dense<0.000000e+00> : vector<16x128xf32>
      %41 = tpu.matmul %38, %40, %cst_29 {dimension_numbers = #tpu.dot_dimension_numbers<[1], [0], [0], [1], [0, 0, 1, 1], [], []>} : vector<16x128xbf16>, vector<128x128xbf16>, vector<16x128xf32> -> vector<16x128xf32>
      %42 = arith.addf %34, %41 : vector<16x128xf32>
      %c5_i32 = arith.constant 5 : i32
      %43 = arith.addi %arg6, %c5_i32 : i32
      %44 = arith.index_cast %43 : i32 to index
      %c0_30 = arith.constant 0 : index
      %c0_31 = arith.constant 0 : index
      %45 = vector.load %arg2[%44, %c0_30, %c0_31] : memref<16x16x128xbf16, #tpu.memory_space<vmem>>, vector<1x16x128xbf16>
      %46 = vector.shape_cast %45 : vector<1x16x128xbf16> to vector<16x128xbf16>
      %c5 = arith.constant 5 : index
      %c0_32 = arith.constant 0 : index
      %c0_33 = arith.constant 0 : index
      %47 = vector.load %arg3[%c5, %c0_32, %c0_33] : memref<9x128x128xbf16, #tpu.memory_space<vmem>>, vector<1x128x128xbf16>
      %48 = vector.shape_cast %47 : vector<1x128x128xbf16> to vector<128x128xbf16>
      %cst_34 = arith.constant dense<0.000000e+00> : vector<16x128xf32>
      %49 = tpu.matmul %46, %48, %cst_34 {dimension_numbers = #tpu.dot_dimension_numbers<[1], [0], [0], [1], [0, 0, 1, 1], [], []>} : vector<16x128xbf16>, vector<128x128xbf16>, vector<16x128xf32> -> vector<16x128xf32>
      %50 = arith.addf %42, %49 : vector<16x128xf32>
      %c6_i32 = arith.constant 6 : i32
      %51 = arith.addi %arg6, %c6_i32 : i32
      %52 = arith.index_cast %51 : i32 to index
      %c0_35 = arith.constant 0 : index
      %c0_36 = arith.constant 0 : index
      %53 = vector.load %arg2[%52, %c0_35, %c0_36] : memref<16x16x128xbf16, #tpu.memory_space<vmem>>, vector<1x16x128xbf16>
      %54 = vector.shape_cast %53 : vector<1x16x128xbf16> to vector<16x128xbf16>
      %c6 = arith.constant 6 : index
      %c0_37 = arith.constant 0 : index
      %c0_38 = arith.constant 0 : index
      %55 = vector.load %arg3[%c6, %c0_37, %c0_38] : memref<9x128x128xbf16, #tpu.memory_space<vmem>>, vector<1x128x128xbf16>
      %56 = vector.shape_cast %55 : vector<1x128x128xbf16> to vector<128x128xbf16>
      %cst_39 = arith.constant dense<0.000000e+00> : vector<16x128xf32>
      %57 = tpu.matmul %54, %56, %cst_39 {dimension_numbers = #tpu.dot_dimension_numbers<[1], [0], [0], [1], [0, 0, 1, 1], [], []>} : vector<16x128xbf16>, vector<128x128xbf16>, vector<16x128xf32> -> vector<16x128xf32>
      %58 = arith.addf %50, %57 : vector<16x128xf32>
      %c7_i32 = arith.constant 7 : i32
      %59 = arith.addi %arg6, %c7_i32 : i32
      %60 = arith.index_cast %59 : i32 to index
      %c0_40 = arith.constant 0 : index
      %c0_41 = arith.constant 0 : index
      %61 = vector.load %arg2[%60, %c0_40, %c0_41] : memref<16x16x128xbf16, #tpu.memory_space<vmem>>, vector<1x16x128xbf16>
      %62 = vector.shape_cast %61 : vector<1x16x128xbf16> to vector<16x128xbf16>
      %c7 = arith.constant 7 : index
      %c0_42 = arith.constant 0 : index
      %c0_43 = arith.constant 0 : index
      %63 = vector.load %arg3[%c7, %c0_42, %c0_43] : memref<9x128x128xbf16, #tpu.memory_space<vmem>>, vector<1x128x128xbf16>
      %64 = vector.shape_cast %63 : vector<1x128x128xbf16> to vector<128x128xbf16>
      %cst_44 = arith.constant dense<0.000000e+00> : vector<16x128xf32>
      %65 = tpu.matmul %62, %64, %cst_44 {dimension_numbers = #tpu.dot_dimension_numbers<[1], [0], [0], [1], [0, 0, 1, 1], [], []>} : vector<16x128xbf16>, vector<128x128xbf16>, vector<16x128xf32> -> vector<16x128xf32>
      %66 = arith.addf %58, %65 : vector<16x128xf32>
      %c8_i32_45 = arith.constant 8 : i32
      %67 = arith.addi %arg6, %c8_i32_45 : i32
      %68 = arith.index_cast %67 : i32 to index
      %c0_46 = arith.constant 0 : index
      %c0_47 = arith.constant 0 : index
      %69 = vector.load %arg2[%68, %c0_46, %c0_47] : memref<16x16x128xbf16, #tpu.memory_space<vmem>>, vector<1x16x128xbf16>
      %70 = vector.shape_cast %69 : vector<1x16x128xbf16> to vector<16x128xbf16>
      %c8 = arith.constant 8 : index
      %c0_48 = arith.constant 0 : index
      %c0_49 = arith.constant 0 : index
      %71 = vector.load %arg3[%c8, %c0_48, %c0_49] : memref<9x128x128xbf16, #tpu.memory_space<vmem>>, vector<1x128x128xbf16>
      %72 = vector.shape_cast %71 : vector<1x128x128xbf16> to vector<128x128xbf16>
      %cst_50 = arith.constant dense<0.000000e+00> : vector<16x128xf32>
      %73 = tpu.matmul %70, %72, %cst_50 {dimension_numbers = #tpu.dot_dimension_numbers<[1], [0], [0], [1], [0, 0, 1, 1], [], []>} : vector<16x128xbf16>, vector<128x128xbf16>, vector<16x128xf32> -> vector<16x128xf32>
      %74 = arith.addf %66, %73 : vector<16x128xf32>
      %75 = vector.broadcast %0 : vector<1x128xf32> to vector<16x128xf32>
      %76 = arith.addf %74, %75 : vector<16x128xf32>
      %cst_51 = arith.constant 0.000000e+00 : f32
      %77 = vector.broadcast %cst_51 : f32 to vector<16x128xf32>
      %78 = arith.maximumf %76, %77 : vector<16x128xf32>
      %79 = arith.truncf %78 : vector<16x128xf32> to vector<16x128xbf16>
      %80 = arith.index_cast %arg6 : i32 to index
      %c0_52 = arith.constant 0 : index
      %c0_53 = arith.constant 0 : index
      %81 = vector.load %arg5[%80, %c0_52, %c0_53] : memref<8x16x128xbf16, #tpu.memory_space<vmem>>, vector<1x16x128xbf16>
      %82 = vector.shape_cast %81 : vector<1x16x128xbf16> to vector<16x128xbf16>
      %83 = vector.shape_cast %79 : vector<16x128xbf16> to vector<1x16x128xbf16>
      tpu.vector_store %arg5[%80, %c0_52, %c0_53], %83 {strides = array<i32>} : memref<8x16x128xbf16, #tpu.memory_space<vmem>>, vector<1x16x128xbf16>,
    }
    %c8_i32_1 = arith.constant 8 : i32
    return
  }
  func.func @transform_0(%arg0: i32, %arg1: i32) -> (i32, i32, i32) {
    %c0_i32 = arith.constant 0 : i32
    %c0_i32_0 = arith.constant 0 : i32
    return %arg0, %arg1, %c0_i32 : i32, i32, i32
  }
  func.func @transform_1(%arg0: i32, %arg1: i32) -> (i32, i32, i32) {
    %c0_i32 = arith.constant 0 : i32
    %c0_i32_0 = arith.constant 0 : i32
    %c0_i32_1 = arith.constant 0 : i32
    %c0_i32_2 = arith.constant 0 : i32
    return %c0_i32, %c0_i32_0, %c0_i32_1 : i32, i32, i32
  }
  func.func @transform_2(%arg0: i32, %arg1: i32) -> (i32, i32) {
    %c0_i32 = arith.constant 0 : i32
    %c0_i32_0 = arith.constant 0 : i32
    %c0_i32_1 = arith.constant 0 : i32
    return %c0_i32, %c0_i32_0 : i32, i32
  }
  func.func @transform_3(%arg0: i32, %arg1: i32) -> (i32, i32, i32) {
    %c0_i32 = arith.constant 0 : i32
    %c0_i32_0 = arith.constant 0 : i32
    return %arg0, %arg1, %c0_i32 : i32, i32, i32
  }
}

module attributes {stable_mosaic.version = 11 : i64} {
  func.func @_conv_slab_kernel(%arg0: i32, %arg1: i32, %arg2: memref<14x16x256xbf16, #tpu.memory_space<vmem>>, %arg3: memref<9x256x128xbf16, #tpu.memory_space<vmem>>, %arg4: memref<1x128xf32, #tpu.memory_space<vmem>>, %arg5: memref<6x16x128xbf16, #tpu.memory_space<vmem>>) attributes {dimension_semantics = [#tpu.dimension_semantics<parallel>, #tpu.dimension_semantics<parallel>], iteration_bounds = array<i64: 2, 1>, scalar_prefetch = 0 : i64, scratch_operands = 0 : i64, tpu.core_type = #tpu.core_type<tc>, window_params = [{transform_indices = @transform_0, window_bounds = array<i64: 14, 16, 256>}, {pipeline_mode = #tpu.pipeline_mode<synchronous>, transform_indices = @transform_1, window_bounds = array<i64: 9, 256, 128>}, {pipeline_mode = #tpu.pipeline_mode<synchronous>, transform_indices = @transform_2, window_bounds = array<i64: 1, 128>}, {transform_indices = @transform_3, window_bounds = array<i64: 6, 16, 128>}]} {
    %c0 = arith.constant 0 : index
    %c0_0 = arith.constant 0 : index
    %0 = vector.load %arg4[%c0, %c0_0] : memref<1x128xf32, #tpu.memory_space<vmem>>, vector<1x128xf32>
    %c0_i32 = arith.constant 0 : i32
    %c6_i32 = arith.constant 6 : i32
    %1 = arith.addi %c0_i32, %c6_i32 : i32
    %c1_i32 = arith.constant 1 : i32
    scf.for %arg6 = %c0_i32 to %1 step %c1_i32  : i32 {
      %cst = arith.constant 0.000000e+00 : f32
      %2 = vector.broadcast %cst : f32 to vector<16x128xf32>
      %c0_i32_2 = arith.constant 0 : i32
      %3 = arith.addi %arg6, %c0_i32_2 : i32
      %4 = arith.index_cast %3 : i32 to index
      %c0_3 = arith.constant 0 : index
      %c0_4 = arith.constant 0 : index
      %5 = vector.load %arg2[%4, %c0_3, %c0_4] : memref<14x16x256xbf16, #tpu.memory_space<vmem>>, vector<1x16x256xbf16>
      %6 = vector.shape_cast %5 : vector<1x16x256xbf16> to vector<16x256xbf16>
      %c0_5 = arith.constant 0 : index
      %c0_6 = arith.constant 0 : index
      %c0_7 = arith.constant 0 : index
      %7 = vector.load %arg3[%c0_5, %c0_6, %c0_7] : memref<9x256x128xbf16, #tpu.memory_space<vmem>>, vector<1x256x128xbf16>
      %8 = vector.shape_cast %7 : vector<1x256x128xbf16> to vector<256x128xbf16>
      %cst_8 = arith.constant dense<0.000000e+00> : vector<16x128xf32>
      %9 = tpu.matmul %6, %8, %cst_8 {dimension_numbers = #tpu.dot_dimension_numbers<[1], [0], [0], [1], [0, 0, 1, 1], [], []>} : vector<16x256xbf16>, vector<256x128xbf16>, vector<16x128xf32> -> vector<16x128xf32>
      %10 = arith.addf %2, %9 : vector<16x128xf32>
      %c1_i32_9 = arith.constant 1 : i32
      %11 = arith.addi %arg6, %c1_i32_9 : i32
      %12 = arith.index_cast %11 : i32 to index
      %c0_10 = arith.constant 0 : index
      %c0_11 = arith.constant 0 : index
      %13 = vector.load %arg2[%12, %c0_10, %c0_11] : memref<14x16x256xbf16, #tpu.memory_space<vmem>>, vector<1x16x256xbf16>
      %14 = vector.shape_cast %13 : vector<1x16x256xbf16> to vector<16x256xbf16>
      %c1 = arith.constant 1 : index
      %c0_12 = arith.constant 0 : index
      %c0_13 = arith.constant 0 : index
      %15 = vector.load %arg3[%c1, %c0_12, %c0_13] : memref<9x256x128xbf16, #tpu.memory_space<vmem>>, vector<1x256x128xbf16>
      %16 = vector.shape_cast %15 : vector<1x256x128xbf16> to vector<256x128xbf16>
      %cst_14 = arith.constant dense<0.000000e+00> : vector<16x128xf32>
      %17 = tpu.matmul %14, %16, %cst_14 {dimension_numbers = #tpu.dot_dimension_numbers<[1], [0], [0], [1], [0, 0, 1, 1], [], []>} : vector<16x256xbf16>, vector<256x128xbf16>, vector<16x128xf32> -> vector<16x128xf32>
      %18 = arith.addf %10, %17 : vector<16x128xf32>
      %c2_i32 = arith.constant 2 : i32
      %19 = arith.addi %arg6, %c2_i32 : i32
      %20 = arith.index_cast %19 : i32 to index
      %c0_15 = arith.constant 0 : index
      %c0_16 = arith.constant 0 : index
      %21 = vector.load %arg2[%20, %c0_15, %c0_16] : memref<14x16x256xbf16, #tpu.memory_space<vmem>>, vector<1x16x256xbf16>
      %22 = vector.shape_cast %21 : vector<1x16x256xbf16> to vector<16x256xbf16>
      %c2 = arith.constant 2 : index
      %c0_17 = arith.constant 0 : index
      %c0_18 = arith.constant 0 : index
      %23 = vector.load %arg3[%c2, %c0_17, %c0_18] : memref<9x256x128xbf16, #tpu.memory_space<vmem>>, vector<1x256x128xbf16>
      %24 = vector.shape_cast %23 : vector<1x256x128xbf16> to vector<256x128xbf16>
      %cst_19 = arith.constant dense<0.000000e+00> : vector<16x128xf32>
      %25 = tpu.matmul %22, %24, %cst_19 {dimension_numbers = #tpu.dot_dimension_numbers<[1], [0], [0], [1], [0, 0, 1, 1], [], []>} : vector<16x256xbf16>, vector<256x128xbf16>, vector<16x128xf32> -> vector<16x128xf32>
      %26 = arith.addf %18, %25 : vector<16x128xf32>
      %c3_i32 = arith.constant 3 : i32
      %27 = arith.addi %arg6, %c3_i32 : i32
      %28 = arith.index_cast %27 : i32 to index
      %c0_20 = arith.constant 0 : index
      %c0_21 = arith.constant 0 : index
      %29 = vector.load %arg2[%28, %c0_20, %c0_21] : memref<14x16x256xbf16, #tpu.memory_space<vmem>>, vector<1x16x256xbf16>
      %30 = vector.shape_cast %29 : vector<1x16x256xbf16> to vector<16x256xbf16>
      %c3 = arith.constant 3 : index
      %c0_22 = arith.constant 0 : index
      %c0_23 = arith.constant 0 : index
      %31 = vector.load %arg3[%c3, %c0_22, %c0_23] : memref<9x256x128xbf16, #tpu.memory_space<vmem>>, vector<1x256x128xbf16>
      %32 = vector.shape_cast %31 : vector<1x256x128xbf16> to vector<256x128xbf16>
      %cst_24 = arith.constant dense<0.000000e+00> : vector<16x128xf32>
      %33 = tpu.matmul %30, %32, %cst_24 {dimension_numbers = #tpu.dot_dimension_numbers<[1], [0], [0], [1], [0, 0, 1, 1], [], []>} : vector<16x256xbf16>, vector<256x128xbf16>, vector<16x128xf32> -> vector<16x128xf32>
      %34 = arith.addf %26, %33 : vector<16x128xf32>
      %c4_i32 = arith.constant 4 : i32
      %35 = arith.addi %arg6, %c4_i32 : i32
      %36 = arith.index_cast %35 : i32 to index
      %c0_25 = arith.constant 0 : index
      %c0_26 = arith.constant 0 : index
      %37 = vector.load %arg2[%36, %c0_25, %c0_26] : memref<14x16x256xbf16, #tpu.memory_space<vmem>>, vector<1x16x256xbf16>
      %38 = vector.shape_cast %37 : vector<1x16x256xbf16> to vector<16x256xbf16>
      %c4 = arith.constant 4 : index
      %c0_27 = arith.constant 0 : index
      %c0_28 = arith.constant 0 : index
      %39 = vector.load %arg3[%c4, %c0_27, %c0_28] : memref<9x256x128xbf16, #tpu.memory_space<vmem>>, vector<1x256x128xbf16>
      %40 = vector.shape_cast %39 : vector<1x256x128xbf16> to vector<256x128xbf16>
      %cst_29 = arith.constant dense<0.000000e+00> : vector<16x128xf32>
      %41 = tpu.matmul %38, %40, %cst_29 {dimension_numbers = #tpu.dot_dimension_numbers<[1], [0], [0], [1], [0, 0, 1, 1], [], []>} : vector<16x256xbf16>, vector<256x128xbf16>, vector<16x128xf32> -> vector<16x128xf32>
      %42 = arith.addf %34, %41 : vector<16x128xf32>
      %c5_i32 = arith.constant 5 : i32
      %43 = arith.addi %arg6, %c5_i32 : i32
      %44 = arith.index_cast %43 : i32 to index
      %c0_30 = arith.constant 0 : index
      %c0_31 = arith.constant 0 : index
      %45 = vector.load %arg2[%44, %c0_30, %c0_31] : memref<14x16x256xbf16, #tpu.memory_space<vmem>>, vector<1x16x256xbf16>
      %46 = vector.shape_cast %45 : vector<1x16x256xbf16> to vector<16x256xbf16>
      %c5 = arith.constant 5 : index
      %c0_32 = arith.constant 0 : index
      %c0_33 = arith.constant 0 : index
      %47 = vector.load %arg3[%c5, %c0_32, %c0_33] : memref<9x256x128xbf16, #tpu.memory_space<vmem>>, vector<1x256x128xbf16>
      %48 = vector.shape_cast %47 : vector<1x256x128xbf16> to vector<256x128xbf16>
      %cst_34 = arith.constant dense<0.000000e+00> : vector<16x128xf32>
      %49 = tpu.matmul %46, %48, %cst_34 {dimension_numbers = #tpu.dot_dimension_numbers<[1], [0], [0], [1], [0, 0, 1, 1], [], []>} : vector<16x256xbf16>, vector<256x128xbf16>, vector<16x128xf32> -> vector<16x128xf32>
      %50 = arith.addf %42, %49 : vector<16x128xf32>
      %c6_i32_35 = arith.constant 6 : i32
      %51 = arith.addi %arg6, %c6_i32_35 : i32
      %52 = arith.index_cast %51 : i32 to index
      %c0_36 = arith.constant 0 : index
      %c0_37 = arith.constant 0 : index
      %53 = vector.load %arg2[%52, %c0_36, %c0_37] : memref<14x16x256xbf16, #tpu.memory_space<vmem>>, vector<1x16x256xbf16>
      %54 = vector.shape_cast %53 : vector<1x16x256xbf16> to vector<16x256xbf16>
      %c6 = arith.constant 6 : index
      %c0_38 = arith.constant 0 : index
      %c0_39 = arith.constant 0 : index
      %55 = vector.load %arg3[%c6, %c0_38, %c0_39] : memref<9x256x128xbf16, #tpu.memory_space<vmem>>, vector<1x256x128xbf16>
      %56 = vector.shape_cast %55 : vector<1x256x128xbf16> to vector<256x128xbf16>
      %cst_40 = arith.constant dense<0.000000e+00> : vector<16x128xf32>
      %57 = tpu.matmul %54, %56, %cst_40 {dimension_numbers = #tpu.dot_dimension_numbers<[1], [0], [0], [1], [0, 0, 1, 1], [], []>} : vector<16x256xbf16>, vector<256x128xbf16>, vector<16x128xf32> -> vector<16x128xf32>
      %58 = arith.addf %50, %57 : vector<16x128xf32>
      %c7_i32 = arith.constant 7 : i32
      %59 = arith.addi %arg6, %c7_i32 : i32
      %60 = arith.index_cast %59 : i32 to index
      %c0_41 = arith.constant 0 : index
      %c0_42 = arith.constant 0 : index
      %61 = vector.load %arg2[%60, %c0_41, %c0_42] : memref<14x16x256xbf16, #tpu.memory_space<vmem>>, vector<1x16x256xbf16>
      %62 = vector.shape_cast %61 : vector<1x16x256xbf16> to vector<16x256xbf16>
      %c7 = arith.constant 7 : index
      %c0_43 = arith.constant 0 : index
      %c0_44 = arith.constant 0 : index
      %63 = vector.load %arg3[%c7, %c0_43, %c0_44] : memref<9x256x128xbf16, #tpu.memory_space<vmem>>, vector<1x256x128xbf16>
      %64 = vector.shape_cast %63 : vector<1x256x128xbf16> to vector<256x128xbf16>
      %cst_45 = arith.constant dense<0.000000e+00> : vector<16x128xf32>
      %65 = tpu.matmul %62, %64, %cst_45 {dimension_numbers = #tpu.dot_dimension_numbers<[1], [0], [0], [1], [0, 0, 1, 1], [], []>} : vector<16x256xbf16>, vector<256x128xbf16>, vector<16x128xf32> -> vector<16x128xf32>
      %66 = arith.addf %58, %65 : vector<16x128xf32>
      %c8_i32 = arith.constant 8 : i32
      %67 = arith.addi %arg6, %c8_i32 : i32
      %68 = arith.index_cast %67 : i32 to index
      %c0_46 = arith.constant 0 : index
      %c0_47 = arith.constant 0 : index
      %69 = vector.load %arg2[%68, %c0_46, %c0_47] : memref<14x16x256xbf16, #tpu.memory_space<vmem>>, vector<1x16x256xbf16>
      %70 = vector.shape_cast %69 : vector<1x16x256xbf16> to vector<16x256xbf16>
      %c8 = arith.constant 8 : index
      %c0_48 = arith.constant 0 : index
      %c0_49 = arith.constant 0 : index
      %71 = vector.load %arg3[%c8, %c0_48, %c0_49] : memref<9x256x128xbf16, #tpu.memory_space<vmem>>, vector<1x256x128xbf16>
      %72 = vector.shape_cast %71 : vector<1x256x128xbf16> to vector<256x128xbf16>
      %cst_50 = arith.constant dense<0.000000e+00> : vector<16x128xf32>
      %73 = tpu.matmul %70, %72, %cst_50 {dimension_numbers = #tpu.dot_dimension_numbers<[1], [0], [0], [1], [0, 0, 1, 1], [], []>} : vector<16x256xbf16>, vector<256x128xbf16>, vector<16x128xf32> -> vector<16x128xf32>
      %74 = arith.addf %66, %73 : vector<16x128xf32>
      %75 = vector.broadcast %0 : vector<1x128xf32> to vector<16x128xf32>
      %76 = arith.addf %74, %75 : vector<16x128xf32>
      %cst_51 = arith.constant 0.000000e+00 : f32
      %77 = vector.broadcast %cst_51 : f32 to vector<16x128xf32>
      %78 = arith.maximumf %76, %77 : vector<16x128xf32>
      %79 = arith.truncf %78 : vector<16x128xf32> to vector<16x128xbf16>
      %80 = arith.index_cast %arg6 : i32 to index
      %c0_52 = arith.constant 0 : index
      %c0_53 = arith.constant 0 : index
      %81 = vector.load %arg5[%80, %c0_52, %c0_53] : memref<6x16x128xbf16, #tpu.memory_space<vmem>>, vector<1x16x128xbf16>
      %82 = vector.shape_cast %81 : vector<1x16x128xbf16> to vector<16x128xbf16>
      %83 = vector.shape_cast %79 : vector<16x128xbf16> to vector<1x16x128xbf16>
      tpu.vector_store %arg5[%80, %c0_52, %c0_53], %83 {strides = array<i32>} : memref<6x16x128xbf16, #tpu.memory_space<vmem>>, vector<1x16x128xbf16>,
    }
    %c6_i32_1 = arith.constant 6 : i32
    return
  }
  func.func @transform_0(%arg0: i32, %arg1: i32) -> (i32, i32, i32) {
    %c0_i32 = arith.constant 0 : i32
    %c0_i32_0 = arith.constant 0 : i32
    return %arg0, %arg1, %c0_i32 : i32, i32, i32
  }
  func.func @transform_1(%arg0: i32, %arg1: i32) -> (i32, i32, i32) {
    %c0_i32 = arith.constant 0 : i32
    %c0_i32_0 = arith.constant 0 : i32
    %c0_i32_1 = arith.constant 0 : i32
    %c0_i32_2 = arith.constant 0 : i32
    return %c0_i32, %c0_i32_0, %c0_i32_1 : i32, i32, i32
  }
  func.func @transform_2(%arg0: i32, %arg1: i32) -> (i32, i32) {
    %c0_i32 = arith.constant 0 : i32
    %c0_i32_0 = arith.constant 0 : i32
    %c0_i32_1 = arith.constant 0 : i32
    return %c0_i32, %c0_i32_0 : i32, i32
  }
  func.func @transform_3(%arg0: i32, %arg1: i32) -> (i32, i32, i32) {
    %c0_i32 = arith.constant 0 : i32
    %c0_i32_0 = arith.constant 0 : i32
    return %arg0, %arg1, %c0_i32 : i32, i32, i32
  }
}

module attributes {stable_mosaic.version = 11 : i64} {
  func.func @_conv_slab_kernel(%arg0: i32, %arg1: i32, %arg2: memref<12x16x512xbf16, #tpu.memory_space<vmem>>, %arg3: memref<9x512x128xbf16, #tpu.memory_space<vmem>>, %arg4: memref<1x128xf32, #tpu.memory_space<vmem>>, %arg5: memref<4x16x128xbf16, #tpu.memory_space<vmem>>) attributes {dimension_semantics = [#tpu.dimension_semantics<parallel>, #tpu.dimension_semantics<parallel>], iteration_bounds = array<i64: 2, 1>, scalar_prefetch = 0 : i64, scratch_operands = 0 : i64, tpu.core_type = #tpu.core_type<tc>, window_params = [{transform_indices = @transform_0, window_bounds = array<i64: 12, 16, 512>}, {pipeline_mode = #tpu.pipeline_mode<synchronous>, transform_indices = @transform_1, window_bounds = array<i64: 9, 512, 128>}, {pipeline_mode = #tpu.pipeline_mode<synchronous>, transform_indices = @transform_2, window_bounds = array<i64: 1, 128>}, {transform_indices = @transform_3, window_bounds = array<i64: 4, 16, 128>}]} {
    %c0 = arith.constant 0 : index
    %c0_0 = arith.constant 0 : index
    %0 = vector.load %arg4[%c0, %c0_0] : memref<1x128xf32, #tpu.memory_space<vmem>>, vector<1x128xf32>
    %c0_i32 = arith.constant 0 : i32
    %c4_i32 = arith.constant 4 : i32
    %1 = arith.addi %c0_i32, %c4_i32 : i32
    %c1_i32 = arith.constant 1 : i32
    scf.for %arg6 = %c0_i32 to %1 step %c1_i32  : i32 {
      %cst = arith.constant 0.000000e+00 : f32
      %2 = vector.broadcast %cst : f32 to vector<16x128xf32>
      %c0_i32_2 = arith.constant 0 : i32
      %3 = arith.addi %arg6, %c0_i32_2 : i32
      %4 = arith.index_cast %3 : i32 to index
      %c0_3 = arith.constant 0 : index
      %c0_4 = arith.constant 0 : index
      %5 = vector.load %arg2[%4, %c0_3, %c0_4] : memref<12x16x512xbf16, #tpu.memory_space<vmem>>, vector<1x16x512xbf16>
      %6 = vector.shape_cast %5 : vector<1x16x512xbf16> to vector<16x512xbf16>
      %c0_5 = arith.constant 0 : index
      %c0_6 = arith.constant 0 : index
      %c0_7 = arith.constant 0 : index
      %7 = vector.load %arg3[%c0_5, %c0_6, %c0_7] : memref<9x512x128xbf16, #tpu.memory_space<vmem>>, vector<1x512x128xbf16>
      %8 = vector.shape_cast %7 : vector<1x512x128xbf16> to vector<512x128xbf16>
      %cst_8 = arith.constant dense<0.000000e+00> : vector<16x128xf32>
      %9 = tpu.matmul %6, %8, %cst_8 {dimension_numbers = #tpu.dot_dimension_numbers<[1], [0], [0], [1], [0, 0, 1, 1], [], []>} : vector<16x512xbf16>, vector<512x128xbf16>, vector<16x128xf32> -> vector<16x128xf32>
      %10 = arith.addf %2, %9 : vector<16x128xf32>
      %c1_i32_9 = arith.constant 1 : i32
      %11 = arith.addi %arg6, %c1_i32_9 : i32
      %12 = arith.index_cast %11 : i32 to index
      %c0_10 = arith.constant 0 : index
      %c0_11 = arith.constant 0 : index
      %13 = vector.load %arg2[%12, %c0_10, %c0_11] : memref<12x16x512xbf16, #tpu.memory_space<vmem>>, vector<1x16x512xbf16>
      %14 = vector.shape_cast %13 : vector<1x16x512xbf16> to vector<16x512xbf16>
      %c1 = arith.constant 1 : index
      %c0_12 = arith.constant 0 : index
      %c0_13 = arith.constant 0 : index
      %15 = vector.load %arg3[%c1, %c0_12, %c0_13] : memref<9x512x128xbf16, #tpu.memory_space<vmem>>, vector<1x512x128xbf16>
      %16 = vector.shape_cast %15 : vector<1x512x128xbf16> to vector<512x128xbf16>
      %cst_14 = arith.constant dense<0.000000e+00> : vector<16x128xf32>
      %17 = tpu.matmul %14, %16, %cst_14 {dimension_numbers = #tpu.dot_dimension_numbers<[1], [0], [0], [1], [0, 0, 1, 1], [], []>} : vector<16x512xbf16>, vector<512x128xbf16>, vector<16x128xf32> -> vector<16x128xf32>
      %18 = arith.addf %10, %17 : vector<16x128xf32>
      %c2_i32 = arith.constant 2 : i32
      %19 = arith.addi %arg6, %c2_i32 : i32
      %20 = arith.index_cast %19 : i32 to index
      %c0_15 = arith.constant 0 : index
      %c0_16 = arith.constant 0 : index
      %21 = vector.load %arg2[%20, %c0_15, %c0_16] : memref<12x16x512xbf16, #tpu.memory_space<vmem>>, vector<1x16x512xbf16>
      %22 = vector.shape_cast %21 : vector<1x16x512xbf16> to vector<16x512xbf16>
      %c2 = arith.constant 2 : index
      %c0_17 = arith.constant 0 : index
      %c0_18 = arith.constant 0 : index
      %23 = vector.load %arg3[%c2, %c0_17, %c0_18] : memref<9x512x128xbf16, #tpu.memory_space<vmem>>, vector<1x512x128xbf16>
      %24 = vector.shape_cast %23 : vector<1x512x128xbf16> to vector<512x128xbf16>
      %cst_19 = arith.constant dense<0.000000e+00> : vector<16x128xf32>
      %25 = tpu.matmul %22, %24, %cst_19 {dimension_numbers = #tpu.dot_dimension_numbers<[1], [0], [0], [1], [0, 0, 1, 1], [], []>} : vector<16x512xbf16>, vector<512x128xbf16>, vector<16x128xf32> -> vector<16x128xf32>
      %26 = arith.addf %18, %25 : vector<16x128xf32>
      %c3_i32 = arith.constant 3 : i32
      %27 = arith.addi %arg6, %c3_i32 : i32
      %28 = arith.index_cast %27 : i32 to index
      %c0_20 = arith.constant 0 : index
      %c0_21 = arith.constant 0 : index
      %29 = vector.load %arg2[%28, %c0_20, %c0_21] : memref<12x16x512xbf16, #tpu.memory_space<vmem>>, vector<1x16x512xbf16>
      %30 = vector.shape_cast %29 : vector<1x16x512xbf16> to vector<16x512xbf16>
      %c3 = arith.constant 3 : index
      %c0_22 = arith.constant 0 : index
      %c0_23 = arith.constant 0 : index
      %31 = vector.load %arg3[%c3, %c0_22, %c0_23] : memref<9x512x128xbf16, #tpu.memory_space<vmem>>, vector<1x512x128xbf16>
      %32 = vector.shape_cast %31 : vector<1x512x128xbf16> to vector<512x128xbf16>
      %cst_24 = arith.constant dense<0.000000e+00> : vector<16x128xf32>
      %33 = tpu.matmul %30, %32, %cst_24 {dimension_numbers = #tpu.dot_dimension_numbers<[1], [0], [0], [1], [0, 0, 1, 1], [], []>} : vector<16x512xbf16>, vector<512x128xbf16>, vector<16x128xf32> -> vector<16x128xf32>
      %34 = arith.addf %26, %33 : vector<16x128xf32>
      %c4_i32_25 = arith.constant 4 : i32
      %35 = arith.addi %arg6, %c4_i32_25 : i32
      %36 = arith.index_cast %35 : i32 to index
      %c0_26 = arith.constant 0 : index
      %c0_27 = arith.constant 0 : index
      %37 = vector.load %arg2[%36, %c0_26, %c0_27] : memref<12x16x512xbf16, #tpu.memory_space<vmem>>, vector<1x16x512xbf16>
      %38 = vector.shape_cast %37 : vector<1x16x512xbf16> to vector<16x512xbf16>
      %c4 = arith.constant 4 : index
      %c0_28 = arith.constant 0 : index
      %c0_29 = arith.constant 0 : index
      %39 = vector.load %arg3[%c4, %c0_28, %c0_29] : memref<9x512x128xbf16, #tpu.memory_space<vmem>>, vector<1x512x128xbf16>
      %40 = vector.shape_cast %39 : vector<1x512x128xbf16> to vector<512x128xbf16>
      %cst_30 = arith.constant dense<0.000000e+00> : vector<16x128xf32>
      %41 = tpu.matmul %38, %40, %cst_30 {dimension_numbers = #tpu.dot_dimension_numbers<[1], [0], [0], [1], [0, 0, 1, 1], [], []>} : vector<16x512xbf16>, vector<512x128xbf16>, vector<16x128xf32> -> vector<16x128xf32>
      %42 = arith.addf %34, %41 : vector<16x128xf32>
      %c5_i32 = arith.constant 5 : i32
      %43 = arith.addi %arg6, %c5_i32 : i32
      %44 = arith.index_cast %43 : i32 to index
      %c0_31 = arith.constant 0 : index
      %c0_32 = arith.constant 0 : index
      %45 = vector.load %arg2[%44, %c0_31, %c0_32] : memref<12x16x512xbf16, #tpu.memory_space<vmem>>, vector<1x16x512xbf16>
      %46 = vector.shape_cast %45 : vector<1x16x512xbf16> to vector<16x512xbf16>
      %c5 = arith.constant 5 : index
      %c0_33 = arith.constant 0 : index
      %c0_34 = arith.constant 0 : index
      %47 = vector.load %arg3[%c5, %c0_33, %c0_34] : memref<9x512x128xbf16, #tpu.memory_space<vmem>>, vector<1x512x128xbf16>
      %48 = vector.shape_cast %47 : vector<1x512x128xbf16> to vector<512x128xbf16>
      %cst_35 = arith.constant dense<0.000000e+00> : vector<16x128xf32>
      %49 = tpu.matmul %46, %48, %cst_35 {dimension_numbers = #tpu.dot_dimension_numbers<[1], [0], [0], [1], [0, 0, 1, 1], [], []>} : vector<16x512xbf16>, vector<512x128xbf16>, vector<16x128xf32> -> vector<16x128xf32>
      %50 = arith.addf %42, %49 : vector<16x128xf32>
      %c6_i32 = arith.constant 6 : i32
      %51 = arith.addi %arg6, %c6_i32 : i32
      %52 = arith.index_cast %51 : i32 to index
      %c0_36 = arith.constant 0 : index
      %c0_37 = arith.constant 0 : index
      %53 = vector.load %arg2[%52, %c0_36, %c0_37] : memref<12x16x512xbf16, #tpu.memory_space<vmem>>, vector<1x16x512xbf16>
      %54 = vector.shape_cast %53 : vector<1x16x512xbf16> to vector<16x512xbf16>
      %c6 = arith.constant 6 : index
      %c0_38 = arith.constant 0 : index
      %c0_39 = arith.constant 0 : index
      %55 = vector.load %arg3[%c6, %c0_38, %c0_39] : memref<9x512x128xbf16, #tpu.memory_space<vmem>>, vector<1x512x128xbf16>
      %56 = vector.shape_cast %55 : vector<1x512x128xbf16> to vector<512x128xbf16>
      %cst_40 = arith.constant dense<0.000000e+00> : vector<16x128xf32>
      %57 = tpu.matmul %54, %56, %cst_40 {dimension_numbers = #tpu.dot_dimension_numbers<[1], [0], [0], [1], [0, 0, 1, 1], [], []>} : vector<16x512xbf16>, vector<512x128xbf16>, vector<16x128xf32> -> vector<16x128xf32>
      %58 = arith.addf %50, %57 : vector<16x128xf32>
      %c7_i32 = arith.constant 7 : i32
      %59 = arith.addi %arg6, %c7_i32 : i32
      %60 = arith.index_cast %59 : i32 to index
      %c0_41 = arith.constant 0 : index
      %c0_42 = arith.constant 0 : index
      %61 = vector.load %arg2[%60, %c0_41, %c0_42] : memref<12x16x512xbf16, #tpu.memory_space<vmem>>, vector<1x16x512xbf16>
      %62 = vector.shape_cast %61 : vector<1x16x512xbf16> to vector<16x512xbf16>
      %c7 = arith.constant 7 : index
      %c0_43 = arith.constant 0 : index
      %c0_44 = arith.constant 0 : index
      %63 = vector.load %arg3[%c7, %c0_43, %c0_44] : memref<9x512x128xbf16, #tpu.memory_space<vmem>>, vector<1x512x128xbf16>
      %64 = vector.shape_cast %63 : vector<1x512x128xbf16> to vector<512x128xbf16>
      %cst_45 = arith.constant dense<0.000000e+00> : vector<16x128xf32>
      %65 = tpu.matmul %62, %64, %cst_45 {dimension_numbers = #tpu.dot_dimension_numbers<[1], [0], [0], [1], [0, 0, 1, 1], [], []>} : vector<16x512xbf16>, vector<512x128xbf16>, vector<16x128xf32> -> vector<16x128xf32>
      %66 = arith.addf %58, %65 : vector<16x128xf32>
      %c8_i32 = arith.constant 8 : i32
      %67 = arith.addi %arg6, %c8_i32 : i32
      %68 = arith.index_cast %67 : i32 to index
      %c0_46 = arith.constant 0 : index
      %c0_47 = arith.constant 0 : index
      %69 = vector.load %arg2[%68, %c0_46, %c0_47] : memref<12x16x512xbf16, #tpu.memory_space<vmem>>, vector<1x16x512xbf16>
      %70 = vector.shape_cast %69 : vector<1x16x512xbf16> to vector<16x512xbf16>
      %c8 = arith.constant 8 : index
      %c0_48 = arith.constant 0 : index
      %c0_49 = arith.constant 0 : index
      %71 = vector.load %arg3[%c8, %c0_48, %c0_49] : memref<9x512x128xbf16, #tpu.memory_space<vmem>>, vector<1x512x128xbf16>
      %72 = vector.shape_cast %71 : vector<1x512x128xbf16> to vector<512x128xbf16>
      %cst_50 = arith.constant dense<0.000000e+00> : vector<16x128xf32>
      %73 = tpu.matmul %70, %72, %cst_50 {dimension_numbers = #tpu.dot_dimension_numbers<[1], [0], [0], [1], [0, 0, 1, 1], [], []>} : vector<16x512xbf16>, vector<512x128xbf16>, vector<16x128xf32> -> vector<16x128xf32>
      %74 = arith.addf %66, %73 : vector<16x128xf32>
      %75 = vector.broadcast %0 : vector<1x128xf32> to vector<16x128xf32>
      %76 = arith.addf %74, %75 : vector<16x128xf32>
      %cst_51 = arith.constant 0.000000e+00 : f32
      %77 = vector.broadcast %cst_51 : f32 to vector<16x128xf32>
      %78 = arith.maximumf %76, %77 : vector<16x128xf32>
      %79 = arith.truncf %78 : vector<16x128xf32> to vector<16x128xbf16>
      %80 = arith.index_cast %arg6 : i32 to index
      %c0_52 = arith.constant 0 : index
      %c0_53 = arith.constant 0 : index
      %81 = vector.load %arg5[%80, %c0_52, %c0_53] : memref<4x16x128xbf16, #tpu.memory_space<vmem>>, vector<1x16x128xbf16>
      %82 = vector.shape_cast %81 : vector<1x16x128xbf16> to vector<16x128xbf16>
      %83 = vector.shape_cast %79 : vector<16x128xbf16> to vector<1x16x128xbf16>
      tpu.vector_store %arg5[%80, %c0_52, %c0_53], %83 {strides = array<i32>} : memref<4x16x128xbf16, #tpu.memory_space<vmem>>, vector<1x16x128xbf16>,
    }
    %c4_i32_1 = arith.constant 4 : i32
    return
  }
  func.func @transform_0(%arg0: i32, %arg1: i32) -> (i32, i32, i32) {
    %c0_i32 = arith.constant 0 : i32
    %c0_i32_0 = arith.constant 0 : i32
    return %arg0, %arg1, %c0_i32 : i32, i32, i32
  }
  func.func @transform_1(%arg0: i32, %arg1: i32) -> (i32, i32, i32) {
    %c0_i32 = arith.constant 0 : i32
    %c0_i32_0 = arith.constant 0 : i32
    %c0_i32_1 = arith.constant 0 : i32
    %c0_i32_2 = arith.constant 0 : i32
    return %c0_i32, %c0_i32_0, %c0_i32_1 : i32, i32, i32
  }
  func.func @transform_2(%arg0: i32, %arg1: i32) -> (i32, i32) {
    %c0_i32 = arith.constant 0 : i32
    %c0_i32_0 = arith.constant 0 : i32
    %c0_i32_1 = arith.constant 0 : i32
    return %c0_i32, %c0_i32_0 : i32, i32
  }
  func.func @transform_3(%arg0: i32, %arg1: i32) -> (i32, i32, i32) {
    %c0_i32 = arith.constant 0 : i32
    %c0_i32_0 = arith.constant 0 : i32
    return %arg0, %arg1, %c0_i32 : i32, i32, i32
  }
}

module attributes {stable_mosaic.version = 11 : i64} {
  func.func @_conv_slab_kernel(%arg0: i32, %arg1: i32, %arg2: memref<12x16x384xbf16, #tpu.memory_space<vmem>>, %arg3: memref<9x384x128xbf16, #tpu.memory_space<vmem>>, %arg4: memref<1x128xf32, #tpu.memory_space<vmem>>, %arg5: memref<4x16x128xbf16, #tpu.memory_space<vmem>>) attributes {dimension_semantics = [#tpu.dimension_semantics<parallel>, #tpu.dimension_semantics<parallel>], iteration_bounds = array<i64: 2, 1>, scalar_prefetch = 0 : i64, scratch_operands = 0 : i64, tpu.core_type = #tpu.core_type<tc>, window_params = [{transform_indices = @transform_0, window_bounds = array<i64: 12, 16, 384>}, {pipeline_mode = #tpu.pipeline_mode<synchronous>, transform_indices = @transform_1, window_bounds = array<i64: 9, 384, 128>}, {pipeline_mode = #tpu.pipeline_mode<synchronous>, transform_indices = @transform_2, window_bounds = array<i64: 1, 128>}, {transform_indices = @transform_3, window_bounds = array<i64: 4, 16, 128>}]} {
    %c0 = arith.constant 0 : index
    %c0_0 = arith.constant 0 : index
    %0 = vector.load %arg4[%c0, %c0_0] : memref<1x128xf32, #tpu.memory_space<vmem>>, vector<1x128xf32>
    %c0_i32 = arith.constant 0 : i32
    %c4_i32 = arith.constant 4 : i32
    %1 = arith.addi %c0_i32, %c4_i32 : i32
    %c1_i32 = arith.constant 1 : i32
    scf.for %arg6 = %c0_i32 to %1 step %c1_i32  : i32 {
      %cst = arith.constant 0.000000e+00 : f32
      %2 = vector.broadcast %cst : f32 to vector<16x128xf32>
      %c0_i32_2 = arith.constant 0 : i32
      %3 = arith.addi %arg6, %c0_i32_2 : i32
      %4 = arith.index_cast %3 : i32 to index
      %c0_3 = arith.constant 0 : index
      %c0_4 = arith.constant 0 : index
      %5 = vector.load %arg2[%4, %c0_3, %c0_4] : memref<12x16x384xbf16, #tpu.memory_space<vmem>>, vector<1x16x384xbf16>
      %6 = vector.shape_cast %5 : vector<1x16x384xbf16> to vector<16x384xbf16>
      %c0_5 = arith.constant 0 : index
      %c0_6 = arith.constant 0 : index
      %c0_7 = arith.constant 0 : index
      %7 = vector.load %arg3[%c0_5, %c0_6, %c0_7] : memref<9x384x128xbf16, #tpu.memory_space<vmem>>, vector<1x384x128xbf16>
      %8 = vector.shape_cast %7 : vector<1x384x128xbf16> to vector<384x128xbf16>
      %cst_8 = arith.constant dense<0.000000e+00> : vector<16x128xf32>
      %9 = tpu.matmul %6, %8, %cst_8 {dimension_numbers = #tpu.dot_dimension_numbers<[1], [0], [0], [1], [0, 0, 1, 1], [], []>} : vector<16x384xbf16>, vector<384x128xbf16>, vector<16x128xf32> -> vector<16x128xf32>
      %10 = arith.addf %2, %9 : vector<16x128xf32>
      %c1_i32_9 = arith.constant 1 : i32
      %11 = arith.addi %arg6, %c1_i32_9 : i32
      %12 = arith.index_cast %11 : i32 to index
      %c0_10 = arith.constant 0 : index
      %c0_11 = arith.constant 0 : index
      %13 = vector.load %arg2[%12, %c0_10, %c0_11] : memref<12x16x384xbf16, #tpu.memory_space<vmem>>, vector<1x16x384xbf16>
      %14 = vector.shape_cast %13 : vector<1x16x384xbf16> to vector<16x384xbf16>
      %c1 = arith.constant 1 : index
      %c0_12 = arith.constant 0 : index
      %c0_13 = arith.constant 0 : index
      %15 = vector.load %arg3[%c1, %c0_12, %c0_13] : memref<9x384x128xbf16, #tpu.memory_space<vmem>>, vector<1x384x128xbf16>
      %16 = vector.shape_cast %15 : vector<1x384x128xbf16> to vector<384x128xbf16>
      %cst_14 = arith.constant dense<0.000000e+00> : vector<16x128xf32>
      %17 = tpu.matmul %14, %16, %cst_14 {dimension_numbers = #tpu.dot_dimension_numbers<[1], [0], [0], [1], [0, 0, 1, 1], [], []>} : vector<16x384xbf16>, vector<384x128xbf16>, vector<16x128xf32> -> vector<16x128xf32>
      %18 = arith.addf %10, %17 : vector<16x128xf32>
      %c2_i32 = arith.constant 2 : i32
      %19 = arith.addi %arg6, %c2_i32 : i32
      %20 = arith.index_cast %19 : i32 to index
      %c0_15 = arith.constant 0 : index
      %c0_16 = arith.constant 0 : index
      %21 = vector.load %arg2[%20, %c0_15, %c0_16] : memref<12x16x384xbf16, #tpu.memory_space<vmem>>, vector<1x16x384xbf16>
      %22 = vector.shape_cast %21 : vector<1x16x384xbf16> to vector<16x384xbf16>
      %c2 = arith.constant 2 : index
      %c0_17 = arith.constant 0 : index
      %c0_18 = arith.constant 0 : index
      %23 = vector.load %arg3[%c2, %c0_17, %c0_18] : memref<9x384x128xbf16, #tpu.memory_space<vmem>>, vector<1x384x128xbf16>
      %24 = vector.shape_cast %23 : vector<1x384x128xbf16> to vector<384x128xbf16>
      %cst_19 = arith.constant dense<0.000000e+00> : vector<16x128xf32>
      %25 = tpu.matmul %22, %24, %cst_19 {dimension_numbers = #tpu.dot_dimension_numbers<[1], [0], [0], [1], [0, 0, 1, 1], [], []>} : vector<16x384xbf16>, vector<384x128xbf16>, vector<16x128xf32> -> vector<16x128xf32>
      %26 = arith.addf %18, %25 : vector<16x128xf32>
      %c3_i32 = arith.constant 3 : i32
      %27 = arith.addi %arg6, %c3_i32 : i32
      %28 = arith.index_cast %27 : i32 to index
      %c0_20 = arith.constant 0 : index
      %c0_21 = arith.constant 0 : index
      %29 = vector.load %arg2[%28, %c0_20, %c0_21] : memref<12x16x384xbf16, #tpu.memory_space<vmem>>, vector<1x16x384xbf16>
      %30 = vector.shape_cast %29 : vector<1x16x384xbf16> to vector<16x384xbf16>
      %c3 = arith.constant 3 : index
      %c0_22 = arith.constant 0 : index
      %c0_23 = arith.constant 0 : index
      %31 = vector.load %arg3[%c3, %c0_22, %c0_23] : memref<9x384x128xbf16, #tpu.memory_space<vmem>>, vector<1x384x128xbf16>
      %32 = vector.shape_cast %31 : vector<1x384x128xbf16> to vector<384x128xbf16>
      %cst_24 = arith.constant dense<0.000000e+00> : vector<16x128xf32>
      %33 = tpu.matmul %30, %32, %cst_24 {dimension_numbers = #tpu.dot_dimension_numbers<[1], [0], [0], [1], [0, 0, 1, 1], [], []>} : vector<16x384xbf16>, vector<384x128xbf16>, vector<16x128xf32> -> vector<16x128xf32>
      %34 = arith.addf %26, %33 : vector<16x128xf32>
      %c4_i32_25 = arith.constant 4 : i32
      %35 = arith.addi %arg6, %c4_i32_25 : i32
      %36 = arith.index_cast %35 : i32 to index
      %c0_26 = arith.constant 0 : index
      %c0_27 = arith.constant 0 : index
      %37 = vector.load %arg2[%36, %c0_26, %c0_27] : memref<12x16x384xbf16, #tpu.memory_space<vmem>>, vector<1x16x384xbf16>
      %38 = vector.shape_cast %37 : vector<1x16x384xbf16> to vector<16x384xbf16>
      %c4 = arith.constant 4 : index
      %c0_28 = arith.constant 0 : index
      %c0_29 = arith.constant 0 : index
      %39 = vector.load %arg3[%c4, %c0_28, %c0_29] : memref<9x384x128xbf16, #tpu.memory_space<vmem>>, vector<1x384x128xbf16>
      %40 = vector.shape_cast %39 : vector<1x384x128xbf16> to vector<384x128xbf16>
      %cst_30 = arith.constant dense<0.000000e+00> : vector<16x128xf32>
      %41 = tpu.matmul %38, %40, %cst_30 {dimension_numbers = #tpu.dot_dimension_numbers<[1], [0], [0], [1], [0, 0, 1, 1], [], []>} : vector<16x384xbf16>, vector<384x128xbf16>, vector<16x128xf32> -> vector<16x128xf32>
      %42 = arith.addf %34, %41 : vector<16x128xf32>
      %c5_i32 = arith.constant 5 : i32
      %43 = arith.addi %arg6, %c5_i32 : i32
      %44 = arith.index_cast %43 : i32 to index
      %c0_31 = arith.constant 0 : index
      %c0_32 = arith.constant 0 : index
      %45 = vector.load %arg2[%44, %c0_31, %c0_32] : memref<12x16x384xbf16, #tpu.memory_space<vmem>>, vector<1x16x384xbf16>
      %46 = vector.shape_cast %45 : vector<1x16x384xbf16> to vector<16x384xbf16>
      %c5 = arith.constant 5 : index
      %c0_33 = arith.constant 0 : index
      %c0_34 = arith.constant 0 : index
      %47 = vector.load %arg3[%c5, %c0_33, %c0_34] : memref<9x384x128xbf16, #tpu.memory_space<vmem>>, vector<1x384x128xbf16>
      %48 = vector.shape_cast %47 : vector<1x384x128xbf16> to vector<384x128xbf16>
      %cst_35 = arith.constant dense<0.000000e+00> : vector<16x128xf32>
      %49 = tpu.matmul %46, %48, %cst_35 {dimension_numbers = #tpu.dot_dimension_numbers<[1], [0], [0], [1], [0, 0, 1, 1], [], []>} : vector<16x384xbf16>, vector<384x128xbf16>, vector<16x128xf32> -> vector<16x128xf32>
      %50 = arith.addf %42, %49 : vector<16x128xf32>
      %c6_i32 = arith.constant 6 : i32
      %51 = arith.addi %arg6, %c6_i32 : i32
      %52 = arith.index_cast %51 : i32 to index
      %c0_36 = arith.constant 0 : index
      %c0_37 = arith.constant 0 : index
      %53 = vector.load %arg2[%52, %c0_36, %c0_37] : memref<12x16x384xbf16, #tpu.memory_space<vmem>>, vector<1x16x384xbf16>
      %54 = vector.shape_cast %53 : vector<1x16x384xbf16> to vector<16x384xbf16>
      %c6 = arith.constant 6 : index
      %c0_38 = arith.constant 0 : index
      %c0_39 = arith.constant 0 : index
      %55 = vector.load %arg3[%c6, %c0_38, %c0_39] : memref<9x384x128xbf16, #tpu.memory_space<vmem>>, vector<1x384x128xbf16>
      %56 = vector.shape_cast %55 : vector<1x384x128xbf16> to vector<384x128xbf16>
      %cst_40 = arith.constant dense<0.000000e+00> : vector<16x128xf32>
      %57 = tpu.matmul %54, %56, %cst_40 {dimension_numbers = #tpu.dot_dimension_numbers<[1], [0], [0], [1], [0, 0, 1, 1], [], []>} : vector<16x384xbf16>, vector<384x128xbf16>, vector<16x128xf32> -> vector<16x128xf32>
      %58 = arith.addf %50, %57 : vector<16x128xf32>
      %c7_i32 = arith.constant 7 : i32
      %59 = arith.addi %arg6, %c7_i32 : i32
      %60 = arith.index_cast %59 : i32 to index
      %c0_41 = arith.constant 0 : index
      %c0_42 = arith.constant 0 : index
      %61 = vector.load %arg2[%60, %c0_41, %c0_42] : memref<12x16x384xbf16, #tpu.memory_space<vmem>>, vector<1x16x384xbf16>
      %62 = vector.shape_cast %61 : vector<1x16x384xbf16> to vector<16x384xbf16>
      %c7 = arith.constant 7 : index
      %c0_43 = arith.constant 0 : index
      %c0_44 = arith.constant 0 : index
      %63 = vector.load %arg3[%c7, %c0_43, %c0_44] : memref<9x384x128xbf16, #tpu.memory_space<vmem>>, vector<1x384x128xbf16>
      %64 = vector.shape_cast %63 : vector<1x384x128xbf16> to vector<384x128xbf16>
      %cst_45 = arith.constant dense<0.000000e+00> : vector<16x128xf32>
      %65 = tpu.matmul %62, %64, %cst_45 {dimension_numbers = #tpu.dot_dimension_numbers<[1], [0], [0], [1], [0, 0, 1, 1], [], []>} : vector<16x384xbf16>, vector<384x128xbf16>, vector<16x128xf32> -> vector<16x128xf32>
      %66 = arith.addf %58, %65 : vector<16x128xf32>
      %c8_i32 = arith.constant 8 : i32
      %67 = arith.addi %arg6, %c8_i32 : i32
      %68 = arith.index_cast %67 : i32 to index
      %c0_46 = arith.constant 0 : index
      %c0_47 = arith.constant 0 : index
      %69 = vector.load %arg2[%68, %c0_46, %c0_47] : memref<12x16x384xbf16, #tpu.memory_space<vmem>>, vector<1x16x384xbf16>
      %70 = vector.shape_cast %69 : vector<1x16x384xbf16> to vector<16x384xbf16>
      %c8 = arith.constant 8 : index
      %c0_48 = arith.constant 0 : index
      %c0_49 = arith.constant 0 : index
      %71 = vector.load %arg3[%c8, %c0_48, %c0_49] : memref<9x384x128xbf16, #tpu.memory_space<vmem>>, vector<1x384x128xbf16>
      %72 = vector.shape_cast %71 : vector<1x384x128xbf16> to vector<384x128xbf16>
      %cst_50 = arith.constant dense<0.000000e+00> : vector<16x128xf32>
      %73 = tpu.matmul %70, %72, %cst_50 {dimension_numbers = #tpu.dot_dimension_numbers<[1], [0], [0], [1], [0, 0, 1, 1], [], []>} : vector<16x384xbf16>, vector<384x128xbf16>, vector<16x128xf32> -> vector<16x128xf32>
      %74 = arith.addf %66, %73 : vector<16x128xf32>
      %75 = vector.broadcast %0 : vector<1x128xf32> to vector<16x128xf32>
      %76 = arith.addf %74, %75 : vector<16x128xf32>
      %cst_51 = arith.constant 0.000000e+00 : f32
      %77 = vector.broadcast %cst_51 : f32 to vector<16x128xf32>
      %78 = arith.maximumf %76, %77 : vector<16x128xf32>
      %79 = arith.truncf %78 : vector<16x128xf32> to vector<16x128xbf16>
      %80 = arith.index_cast %arg6 : i32 to index
      %c0_52 = arith.constant 0 : index
      %c0_53 = arith.constant 0 : index
      %81 = vector.load %arg5[%80, %c0_52, %c0_53] : memref<4x16x128xbf16, #tpu.memory_space<vmem>>, vector<1x16x128xbf16>
      %82 = vector.shape_cast %81 : vector<1x16x128xbf16> to vector<16x128xbf16>
      %83 = vector.shape_cast %79 : vector<16x128xbf16> to vector<1x16x128xbf16>
      tpu.vector_store %arg5[%80, %c0_52, %c0_53], %83 {strides = array<i32>} : memref<4x16x128xbf16, #tpu.memory_space<vmem>>, vector<1x16x128xbf16>,
    }
    %c4_i32_1 = arith.constant 4 : i32
    return
  }
  func.func @transform_0(%arg0: i32, %arg1: i32) -> (i32, i32, i32) {
    %c0_i32 = arith.constant 0 : i32
    %c0_i32_0 = arith.constant 0 : i32
    return %arg0, %arg1, %c0_i32 : i32, i32, i32
  }
  func.func @transform_1(%arg0: i32, %arg1: i32) -> (i32, i32, i32) {
    %c0_i32 = arith.constant 0 : i32
    %c0_i32_0 = arith.constant 0 : i32
    %c0_i32_1 = arith.constant 0 : i32
    %c0_i32_2 = arith.constant 0 : i32
    return %c0_i32, %c0_i32_0, %c0_i32_1 : i32, i32, i32
  }
  func.func @transform_2(%arg0: i32, %arg1: i32) -> (i32, i32) {
    %c0_i32 = arith.constant 0 : i32
    %c0_i32_0 = arith.constant 0 : i32
    %c0_i32_1 = arith.constant 0 : i32
    return %c0_i32, %c0_i32_0 : i32, i32
  }
  func.func @transform_3(%arg0: i32, %arg1: i32) -> (i32, i32, i32) {
    %c0_i32 = arith.constant 0 : i32
    %c0_i32_0 = arith.constant 0 : i32
    return %arg0, %arg1, %c0_i32 : i32, i32, i32
  }
}

module attributes {stable_mosaic.version = 11 : i64} {
  func.func @_conv_slab_kernel(%arg0: i32, %arg1: i32, %arg2: memref<8x16x640xbf16, #tpu.memory_space<vmem>>, %arg3: memref<3x640x128xbf16, #tpu.memory_space<vmem>>, %arg4: memref<1x128xf32, #tpu.memory_space<vmem>>, %arg5: memref<6x16x128xbf16, #tpu.memory_space<vmem>>) attributes {dimension_semantics = [#tpu.dimension_semantics<parallel>, #tpu.dimension_semantics<parallel>], iteration_bounds = array<i64: 2, 1>, scalar_prefetch = 0 : i64, scratch_operands = 0 : i64, tpu.core_type = #tpu.core_type<tc>, window_params = [{transform_indices = @transform_0, window_bounds = array<i64: 8, 16, 640>}, {pipeline_mode = #tpu.pipeline_mode<synchronous>, transform_indices = @transform_1, window_bounds = array<i64: 3, 640, 128>}, {pipeline_mode = #tpu.pipeline_mode<synchronous>, transform_indices = @transform_2, window_bounds = array<i64: 1, 128>}, {transform_indices = @transform_3, window_bounds = array<i64: 6, 16, 128>}]} {
    %c0 = arith.constant 0 : index
    %c0_0 = arith.constant 0 : index
    %0 = vector.load %arg4[%c0, %c0_0] : memref<1x128xf32, #tpu.memory_space<vmem>>, vector<1x128xf32>
    %c0_i32 = arith.constant 0 : i32
    %c6_i32 = arith.constant 6 : i32
    %1 = arith.addi %c0_i32, %c6_i32 : i32
    %c1_i32 = arith.constant 1 : i32
    scf.for %arg6 = %c0_i32 to %1 step %c1_i32  : i32 {
      %cst = arith.constant 0.000000e+00 : f32
      %2 = vector.broadcast %cst : f32 to vector<16x128xf32>
      %c0_i32_2 = arith.constant 0 : i32
      %3 = arith.addi %arg6, %c0_i32_2 : i32
      %4 = arith.index_cast %3 : i32 to index
      %c0_3 = arith.constant 0 : index
      %c0_4 = arith.constant 0 : index
      %5 = vector.load %arg2[%4, %c0_3, %c0_4] : memref<8x16x640xbf16, #tpu.memory_space<vmem>>, vector<1x16x640xbf16>
      %6 = vector.shape_cast %5 : vector<1x16x640xbf16> to vector<16x640xbf16>
      %c0_5 = arith.constant 0 : index
      %c0_6 = arith.constant 0 : index
      %c0_7 = arith.constant 0 : index
      %7 = vector.load %arg3[%c0_5, %c0_6, %c0_7] : memref<3x640x128xbf16, #tpu.memory_space<vmem>>, vector<1x640x128xbf16>
      %8 = vector.shape_cast %7 : vector<1x640x128xbf16> to vector<640x128xbf16>
      %cst_8 = arith.constant dense<0.000000e+00> : vector<16x128xf32>
      %9 = tpu.matmul %6, %8, %cst_8 {dimension_numbers = #tpu.dot_dimension_numbers<[1], [0], [0], [1], [0, 0, 1, 1], [], []>} : vector<16x640xbf16>, vector<640x128xbf16>, vector<16x128xf32> -> vector<16x128xf32>
      %10 = arith.addf %2, %9 : vector<16x128xf32>
      %c1_i32_9 = arith.constant 1 : i32
      %11 = arith.addi %arg6, %c1_i32_9 : i32
      %12 = arith.index_cast %11 : i32 to index
      %c0_10 = arith.constant 0 : index
      %c0_11 = arith.constant 0 : index
      %13 = vector.load %arg2[%12, %c0_10, %c0_11] : memref<8x16x640xbf16, #tpu.memory_space<vmem>>, vector<1x16x640xbf16>
      %14 = vector.shape_cast %13 : vector<1x16x640xbf16> to vector<16x640xbf16>
      %c1 = arith.constant 1 : index
      %c0_12 = arith.constant 0 : index
      %c0_13 = arith.constant 0 : index
      %15 = vector.load %arg3[%c1, %c0_12, %c0_13] : memref<3x640x128xbf16, #tpu.memory_space<vmem>>, vector<1x640x128xbf16>
      %16 = vector.shape_cast %15 : vector<1x640x128xbf16> to vector<640x128xbf16>
      %cst_14 = arith.constant dense<0.000000e+00> : vector<16x128xf32>
      %17 = tpu.matmul %14, %16, %cst_14 {dimension_numbers = #tpu.dot_dimension_numbers<[1], [0], [0], [1], [0, 0, 1, 1], [], []>} : vector<16x640xbf16>, vector<640x128xbf16>, vector<16x128xf32> -> vector<16x128xf32>
      %18 = arith.addf %10, %17 : vector<16x128xf32>
      %c2_i32 = arith.constant 2 : i32
      %19 = arith.addi %arg6, %c2_i32 : i32
      %20 = arith.index_cast %19 : i32 to index
      %c0_15 = arith.constant 0 : index
      %c0_16 = arith.constant 0 : index
      %21 = vector.load %arg2[%20, %c0_15, %c0_16] : memref<8x16x640xbf16, #tpu.memory_space<vmem>>, vector<1x16x640xbf16>
      %22 = vector.shape_cast %21 : vector<1x16x640xbf16> to vector<16x640xbf16>
      %c2 = arith.constant 2 : index
      %c0_17 = arith.constant 0 : index
      %c0_18 = arith.constant 0 : index
      %23 = vector.load %arg3[%c2, %c0_17, %c0_18] : memref<3x640x128xbf16, #tpu.memory_space<vmem>>, vector<1x640x128xbf16>
      %24 = vector.shape_cast %23 : vector<1x640x128xbf16> to vector<640x128xbf16>
      %cst_19 = arith.constant dense<0.000000e+00> : vector<16x128xf32>
      %25 = tpu.matmul %22, %24, %cst_19 {dimension_numbers = #tpu.dot_dimension_numbers<[1], [0], [0], [1], [0, 0, 1, 1], [], []>} : vector<16x640xbf16>, vector<640x128xbf16>, vector<16x128xf32> -> vector<16x128xf32>
      %26 = arith.addf %18, %25 : vector<16x128xf32>
      %27 = vector.broadcast %0 : vector<1x128xf32> to vector<16x128xf32>
      %28 = arith.addf %26, %27 : vector<16x128xf32>
      %cst_20 = arith.constant 0.000000e+00 : f32
      %29 = vector.broadcast %cst_20 : f32 to vector<16x128xf32>
      %30 = arith.cmpf oge, %28, %29 : vector<16x128xf32>
      %cst_21 = arith.constant 2.500000e-01 : f32
      %31 = vector.broadcast %cst_21 : f32 to vector<16x128xf32>
      %32 = arith.mulf %31, %28 : vector<16x128xf32>
      %33 = arith.select %30, %28, %32 : vector<16x128xi1>, vector<16x128xf32>
      %34 = arith.truncf %33 : vector<16x128xf32> to vector<16x128xbf16>
      %35 = arith.index_cast %arg6 : i32 to index
      %c0_22 = arith.constant 0 : index
      %c0_23 = arith.constant 0 : index
      %36 = vector.load %arg5[%35, %c0_22, %c0_23] : memref<6x16x128xbf16, #tpu.memory_space<vmem>>, vector<1x16x128xbf16>
      %37 = vector.shape_cast %36 : vector<1x16x128xbf16> to vector<16x128xbf16>
      %38 = vector.shape_cast %34 : vector<16x128xbf16> to vector<1x16x128xbf16>
      tpu.vector_store %arg5[%35, %c0_22, %c0_23], %38 {strides = array<i32>} : memref<6x16x128xbf16, #tpu.memory_space<vmem>>, vector<1x16x128xbf16>,
    }
    %c6_i32_1 = arith.constant 6 : i32
    return
  }
  func.func @transform_0(%arg0: i32, %arg1: i32) -> (i32, i32, i32) {
    %c0_i32 = arith.constant 0 : i32
    %c0_i32_0 = arith.constant 0 : i32
    return %arg0, %arg1, %c0_i32 : i32, i32, i32
  }
  func.func @transform_1(%arg0: i32, %arg1: i32) -> (i32, i32, i32) {
    %c0_i32 = arith.constant 0 : i32
    %c0_i32_0 = arith.constant 0 : i32
    %c0_i32_1 = arith.constant 0 : i32
    %c0_i32_2 = arith.constant 0 : i32
    return %c0_i32, %c0_i32_0, %c0_i32_1 : i32, i32, i32
  }
  func.func @transform_2(%arg0: i32, %arg1: i32) -> (i32, i32) {
    %c0_i32 = arith.constant 0 : i32
    %c0_i32_0 = arith.constant 0 : i32
    %c0_i32_1 = arith.constant 0 : i32
    return %c0_i32, %c0_i32_0 : i32, i32
  }
  func.func @transform_3(%arg0: i32, %arg1: i32) -> (i32, i32, i32) {
    %c0_i32 = arith.constant 0 : i32
    %c0_i32_0 = arith.constant 0 : i32
    return %arg0, %arg1, %c0_i32 : i32, i32, i32
  }
}

module attributes {stable_mosaic.version = 11 : i64} {
  func.func @_conv_slab_kernel(%arg0: i32, %arg1: i32, %arg2: memref<10x16x256xbf16, #tpu.memory_space<vmem>>, %arg3: memref<3x256x128xbf16, #tpu.memory_space<vmem>>, %arg4: memref<1x128xf32, #tpu.memory_space<vmem>>, %arg5: memref<8x16x128xbf16, #tpu.memory_space<vmem>>) attributes {dimension_semantics = [#tpu.dimension_semantics<parallel>, #tpu.dimension_semantics<parallel>], iteration_bounds = array<i64: 2, 1>, scalar_prefetch = 0 : i64, scratch_operands = 0 : i64, tpu.core_type = #tpu.core_type<tc>, window_params = [{transform_indices = @transform_0, window_bounds = array<i64: 10, 16, 256>}, {pipeline_mode = #tpu.pipeline_mode<synchronous>, transform_indices = @transform_1, window_bounds = array<i64: 3, 256, 128>}, {pipeline_mode = #tpu.pipeline_mode<synchronous>, transform_indices = @transform_2, window_bounds = array<i64: 1, 128>}, {transform_indices = @transform_3, window_bounds = array<i64: 8, 16, 128>}]} {
    %c0 = arith.constant 0 : index
    %c0_0 = arith.constant 0 : index
    %0 = vector.load %arg4[%c0, %c0_0] : memref<1x128xf32, #tpu.memory_space<vmem>>, vector<1x128xf32>
    %c0_i32 = arith.constant 0 : i32
    %c8_i32 = arith.constant 8 : i32
    %1 = arith.addi %c0_i32, %c8_i32 : i32
    %c1_i32 = arith.constant 1 : i32
    scf.for %arg6 = %c0_i32 to %1 step %c1_i32  : i32 {
      %cst = arith.constant 0.000000e+00 : f32
      %2 = vector.broadcast %cst : f32 to vector<16x128xf32>
      %c0_i32_2 = arith.constant 0 : i32
      %3 = arith.addi %arg6, %c0_i32_2 : i32
      %4 = arith.index_cast %3 : i32 to index
      %c0_3 = arith.constant 0 : index
      %c0_4 = arith.constant 0 : index
      %5 = vector.load %arg2[%4, %c0_3, %c0_4] : memref<10x16x256xbf16, #tpu.memory_space<vmem>>, vector<1x16x256xbf16>
      %6 = vector.shape_cast %5 : vector<1x16x256xbf16> to vector<16x256xbf16>
      %c0_5 = arith.constant 0 : index
      %c0_6 = arith.constant 0 : index
      %c0_7 = arith.constant 0 : index
      %7 = vector.load %arg3[%c0_5, %c0_6, %c0_7] : memref<3x256x128xbf16, #tpu.memory_space<vmem>>, vector<1x256x128xbf16>
      %8 = vector.shape_cast %7 : vector<1x256x128xbf16> to vector<256x128xbf16>
      %cst_8 = arith.constant dense<0.000000e+00> : vector<16x128xf32>
      %9 = tpu.matmul %6, %8, %cst_8 {dimension_numbers = #tpu.dot_dimension_numbers<[1], [0], [0], [1], [0, 0, 1, 1], [], []>} : vector<16x256xbf16>, vector<256x128xbf16>, vector<16x128xf32> -> vector<16x128xf32>
      %10 = arith.addf %2, %9 : vector<16x128xf32>
      %c1_i32_9 = arith.constant 1 : i32
      %11 = arith.addi %arg6, %c1_i32_9 : i32
      %12 = arith.index_cast %11 : i32 to index
      %c0_10 = arith.constant 0 : index
      %c0_11 = arith.constant 0 : index
      %13 = vector.load %arg2[%12, %c0_10, %c0_11] : memref<10x16x256xbf16, #tpu.memory_space<vmem>>, vector<1x16x256xbf16>
      %14 = vector.shape_cast %13 : vector<1x16x256xbf16> to vector<16x256xbf16>
      %c1 = arith.constant 1 : index
      %c0_12 = arith.constant 0 : index
      %c0_13 = arith.constant 0 : index
      %15 = vector.load %arg3[%c1, %c0_12, %c0_13] : memref<3x256x128xbf16, #tpu.memory_space<vmem>>, vector<1x256x128xbf16>
      %16 = vector.shape_cast %15 : vector<1x256x128xbf16> to vector<256x128xbf16>
      %cst_14 = arith.constant dense<0.000000e+00> : vector<16x128xf32>
      %17 = tpu.matmul %14, %16, %cst_14 {dimension_numbers = #tpu.dot_dimension_numbers<[1], [0], [0], [1], [0, 0, 1, 1], [], []>} : vector<16x256xbf16>, vector<256x128xbf16>, vector<16x128xf32> -> vector<16x128xf32>
      %18 = arith.addf %10, %17 : vector<16x128xf32>
      %c2_i32 = arith.constant 2 : i32
      %19 = arith.addi %arg6, %c2_i32 : i32
      %20 = arith.index_cast %19 : i32 to index
      %c0_15 = arith.constant 0 : index
      %c0_16 = arith.constant 0 : index
      %21 = vector.load %arg2[%20, %c0_15, %c0_16] : memref<10x16x256xbf16, #tpu.memory_space<vmem>>, vector<1x16x256xbf16>
      %22 = vector.shape_cast %21 : vector<1x16x256xbf16> to vector<16x256xbf16>
      %c2 = arith.constant 2 : index
      %c0_17 = arith.constant 0 : index
      %c0_18 = arith.constant 0 : index
      %23 = vector.load %arg3[%c2, %c0_17, %c0_18] : memref<3x256x128xbf16, #tpu.memory_space<vmem>>, vector<1x256x128xbf16>
      %24 = vector.shape_cast %23 : vector<1x256x128xbf16> to vector<256x128xbf16>
      %cst_19 = arith.constant dense<0.000000e+00> : vector<16x128xf32>
      %25 = tpu.matmul %22, %24, %cst_19 {dimension_numbers = #tpu.dot_dimension_numbers<[1], [0], [0], [1], [0, 0, 1, 1], [], []>} : vector<16x256xbf16>, vector<256x128xbf16>, vector<16x128xf32> -> vector<16x128xf32>
      %26 = arith.addf %18, %25 : vector<16x128xf32>
      %27 = vector.broadcast %0 : vector<1x128xf32> to vector<16x128xf32>
      %28 = arith.addf %26, %27 : vector<16x128xf32>
      %cst_20 = arith.constant 0.000000e+00 : f32
      %29 = vector.broadcast %cst_20 : f32 to vector<16x128xf32>
      %30 = arith.cmpf oge, %28, %29 : vector<16x128xf32>
      %cst_21 = arith.constant 2.500000e-01 : f32
      %31 = vector.broadcast %cst_21 : f32 to vector<16x128xf32>
      %32 = arith.mulf %31, %28 : vector<16x128xf32>
      %33 = arith.select %30, %28, %32 : vector<16x128xi1>, vector<16x128xf32>
      %34 = arith.truncf %33 : vector<16x128xf32> to vector<16x128xbf16>
      %35 = arith.index_cast %arg6 : i32 to index
      %c0_22 = arith.constant 0 : index
      %c0_23 = arith.constant 0 : index
      %36 = vector.load %arg5[%35, %c0_22, %c0_23] : memref<8x16x128xbf16, #tpu.memory_space<vmem>>, vector<1x16x128xbf16>
      %37 = vector.shape_cast %36 : vector<1x16x128xbf16> to vector<16x128xbf16>
      %38 = vector.shape_cast %34 : vector<16x128xbf16> to vector<1x16x128xbf16>
      tpu.vector_store %arg5[%35, %c0_22, %c0_23], %38 {strides = array<i32>} : memref<8x16x128xbf16, #tpu.memory_space<vmem>>, vector<1x16x128xbf16>,
    }
    %c8_i32_1 = arith.constant 8 : i32
    return
  }
  func.func @transform_0(%arg0: i32, %arg1: i32) -> (i32, i32, i32) {
    %c0_i32 = arith.constant 0 : i32
    %c0_i32_0 = arith.constant 0 : i32
    return %arg0, %arg1, %c0_i32 : i32, i32, i32
  }
  func.func @transform_1(%arg0: i32, %arg1: i32) -> (i32, i32, i32) {
    %c0_i32 = arith.constant 0 : i32
    %c0_i32_0 = arith.constant 0 : i32
    %c0_i32_1 = arith.constant 0 : i32
    %c0_i32_2 = arith.constant 0 : i32
    return %c0_i32, %c0_i32_0, %c0_i32_1 : i32, i32, i32
  }
  func.func @transform_2(%arg0: i32, %arg1: i32) -> (i32, i32) {
    %c0_i32 = arith.constant 0 : i32
    %c0_i32_0 = arith.constant 0 : i32
    %c0_i32_1 = arith.constant 0 : i32
    return %c0_i32, %c0_i32_0 : i32, i32
  }
  func.func @transform_3(%arg0: i32, %arg1: i32) -> (i32, i32, i32) {
    %c0_i32 = arith.constant 0 : i32
    %c0_i32_0 = arith.constant 0 : i32
    return %arg0, %arg1, %c0_i32 : i32, i32, i32
  }
}

module attributes {stable_mosaic.version = 11 : i64} {
  func.func @_conv_slab_kernel(%arg0: i32, %arg1: i32, %arg2: memref<12x16x128xbf16, #tpu.memory_space<vmem>>, %arg3: memref<3x128x128xbf16, #tpu.memory_space<vmem>>, %arg4: memref<1x128xf32, #tpu.memory_space<vmem>>, %arg5: memref<10x16x128xbf16, #tpu.memory_space<vmem>>) attributes {dimension_semantics = [#tpu.dimension_semantics<parallel>, #tpu.dimension_semantics<parallel>], iteration_bounds = array<i64: 2, 1>, scalar_prefetch = 0 : i64, scratch_operands = 0 : i64, tpu.core_type = #tpu.core_type<tc>, window_params = [{transform_indices = @transform_0, window_bounds = array<i64: 12, 16, 128>}, {pipeline_mode = #tpu.pipeline_mode<synchronous>, transform_indices = @transform_1, window_bounds = array<i64: 3, 128, 128>}, {pipeline_mode = #tpu.pipeline_mode<synchronous>, transform_indices = @transform_2, window_bounds = array<i64: 1, 128>}, {transform_indices = @transform_3, window_bounds = array<i64: 10, 16, 128>}]} {
    %c0 = arith.constant 0 : index
    %c0_0 = arith.constant 0 : index
    %0 = vector.load %arg4[%c0, %c0_0] : memref<1x128xf32, #tpu.memory_space<vmem>>, vector<1x128xf32>
    %c0_i32 = arith.constant 0 : i32
    %c10_i32 = arith.constant 10 : i32
    %1 = arith.addi %c0_i32, %c10_i32 : i32
    %c1_i32 = arith.constant 1 : i32
    scf.for %arg6 = %c0_i32 to %1 step %c1_i32  : i32 {
      %cst = arith.constant 0.000000e+00 : f32
      %2 = vector.broadcast %cst : f32 to vector<16x128xf32>
      %c0_i32_2 = arith.constant 0 : i32
      %3 = arith.addi %arg6, %c0_i32_2 : i32
      %4 = arith.index_cast %3 : i32 to index
      %c0_3 = arith.constant 0 : index
      %c0_4 = arith.constant 0 : index
      %5 = vector.load %arg2[%4, %c0_3, %c0_4] : memref<12x16x128xbf16, #tpu.memory_space<vmem>>, vector<1x16x128xbf16>
      %6 = vector.shape_cast %5 : vector<1x16x128xbf16> to vector<16x128xbf16>
      %c0_5 = arith.constant 0 : index
      %c0_6 = arith.constant 0 : index
      %c0_7 = arith.constant 0 : index
      %7 = vector.load %arg3[%c0_5, %c0_6, %c0_7] : memref<3x128x128xbf16, #tpu.memory_space<vmem>>, vector<1x128x128xbf16>
      %8 = vector.shape_cast %7 : vector<1x128x128xbf16> to vector<128x128xbf16>
      %cst_8 = arith.constant dense<0.000000e+00> : vector<16x128xf32>
      %9 = tpu.matmul %6, %8, %cst_8 {dimension_numbers = #tpu.dot_dimension_numbers<[1], [0], [0], [1], [0, 0, 1, 1], [], []>} : vector<16x128xbf16>, vector<128x128xbf16>, vector<16x128xf32> -> vector<16x128xf32>
      %10 = arith.addf %2, %9 : vector<16x128xf32>
      %c1_i32_9 = arith.constant 1 : i32
      %11 = arith.addi %arg6, %c1_i32_9 : i32
      %12 = arith.index_cast %11 : i32 to index
      %c0_10 = arith.constant 0 : index
      %c0_11 = arith.constant 0 : index
      %13 = vector.load %arg2[%12, %c0_10, %c0_11] : memref<12x16x128xbf16, #tpu.memory_space<vmem>>, vector<1x16x128xbf16>
      %14 = vector.shape_cast %13 : vector<1x16x128xbf16> to vector<16x128xbf16>
      %c1 = arith.constant 1 : index
      %c0_12 = arith.constant 0 : index
      %c0_13 = arith.constant 0 : index
      %15 = vector.load %arg3[%c1, %c0_12, %c0_13] : memref<3x128x128xbf16, #tpu.memory_space<vmem>>, vector<1x128x128xbf16>
      %16 = vector.shape_cast %15 : vector<1x128x128xbf16> to vector<128x128xbf16>
      %cst_14 = arith.constant dense<0.000000e+00> : vector<16x128xf32>
      %17 = tpu.matmul %14, %16, %cst_14 {dimension_numbers = #tpu.dot_dimension_numbers<[1], [0], [0], [1], [0, 0, 1, 1], [], []>} : vector<16x128xbf16>, vector<128x128xbf16>, vector<16x128xf32> -> vector<16x128xf32>
      %18 = arith.addf %10, %17 : vector<16x128xf32>
      %c2_i32 = arith.constant 2 : i32
      %19 = arith.addi %arg6, %c2_i32 : i32
      %20 = arith.index_cast %19 : i32 to index
      %c0_15 = arith.constant 0 : index
      %c0_16 = arith.constant 0 : index
      %21 = vector.load %arg2[%20, %c0_15, %c0_16] : memref<12x16x128xbf16, #tpu.memory_space<vmem>>, vector<1x16x128xbf16>
      %22 = vector.shape_cast %21 : vector<1x16x128xbf16> to vector<16x128xbf16>
      %c2 = arith.constant 2 : index
      %c0_17 = arith.constant 0 : index
      %c0_18 = arith.constant 0 : index
      %23 = vector.load %arg3[%c2, %c0_17, %c0_18] : memref<3x128x128xbf16, #tpu.memory_space<vmem>>, vector<1x128x128xbf16>
      %24 = vector.shape_cast %23 : vector<1x128x128xbf16> to vector<128x128xbf16>
      %cst_19 = arith.constant dense<0.000000e+00> : vector<16x128xf32>
      %25 = tpu.matmul %22, %24, %cst_19 {dimension_numbers = #tpu.dot_dimension_numbers<[1], [0], [0], [1], [0, 0, 1, 1], [], []>} : vector<16x128xbf16>, vector<128x128xbf16>, vector<16x128xf32> -> vector<16x128xf32>
      %26 = arith.addf %18, %25 : vector<16x128xf32>
      %27 = vector.broadcast %0 : vector<1x128xf32> to vector<16x128xf32>
      %28 = arith.addf %26, %27 : vector<16x128xf32>
      %cst_20 = arith.constant 0.000000e+00 : f32
      %29 = vector.broadcast %cst_20 : f32 to vector<16x128xf32>
      %30 = arith.cmpf oge, %28, %29 : vector<16x128xf32>
      %cst_21 = arith.constant 2.500000e-01 : f32
      %31 = vector.broadcast %cst_21 : f32 to vector<16x128xf32>
      %32 = arith.mulf %31, %28 : vector<16x128xf32>
      %33 = arith.select %30, %28, %32 : vector<16x128xi1>, vector<16x128xf32>
      %34 = arith.truncf %33 : vector<16x128xf32> to vector<16x128xbf16>
      %35 = arith.index_cast %arg6 : i32 to index
      %c0_22 = arith.constant 0 : index
      %c0_23 = arith.constant 0 : index
      %36 = vector.load %arg5[%35, %c0_22, %c0_23] : memref<10x16x128xbf16, #tpu.memory_space<vmem>>, vector<1x16x128xbf16>
      %37 = vector.shape_cast %36 : vector<1x16x128xbf16> to vector<16x128xbf16>
      %38 = vector.shape_cast %34 : vector<16x128xbf16> to vector<1x16x128xbf16>
      tpu.vector_store %arg5[%35, %c0_22, %c0_23], %38 {strides = array<i32>} : memref<10x16x128xbf16, #tpu.memory_space<vmem>>, vector<1x16x128xbf16>,
    }
    %c10_i32_1 = arith.constant 10 : i32
    return
  }
  func.func @transform_0(%arg0: i32, %arg1: i32) -> (i32, i32, i32) {
    %c0_i32 = arith.constant 0 : i32
    %c0_i32_0 = arith.constant 0 : i32
    return %arg0, %arg1, %c0_i32 : i32, i32, i32
  }
  func.func @transform_1(%arg0: i32, %arg1: i32) -> (i32, i32, i32) {
    %c0_i32 = arith.constant 0 : i32
    %c0_i32_0 = arith.constant 0 : i32
    %c0_i32_1 = arith.constant 0 : i32
    %c0_i32_2 = arith.constant 0 : i32
    return %c0_i32, %c0_i32_0, %c0_i32_1 : i32, i32, i32
  }
  func.func @transform_2(%arg0: i32, %arg1: i32) -> (i32, i32) {
    %c0_i32 = arith.constant 0 : i32
    %c0_i32_0 = arith.constant 0 : i32
    %c0_i32_1 = arith.constant 0 : i32
    return %c0_i32, %c0_i32_0 : i32, i32
  }
  func.func @transform_3(%arg0: i32, %arg1: i32) -> (i32, i32, i32) {
    %c0_i32 = arith.constant 0 : i32
    %c0_i32_0 = arith.constant 0 : i32
    return %arg0, %arg1, %c0_i32 : i32, i32, i32
  }
}

module attributes {stable_mosaic.version = 11 : i64} {
  func.func @_conv_slab_kernel(%arg0: i32, %arg1: i32, %arg2: memref<14x64x128xbf16, #tpu.memory_space<vmem>>, %arg3: memref<3x128x128xbf16, #tpu.memory_space<vmem>>, %arg4: memref<1x128xf32, #tpu.memory_space<vmem>>, %arg5: memref<12x64x128xf32, #tpu.memory_space<vmem>>) attributes {dimension_semantics = [#tpu.dimension_semantics<parallel>, #tpu.dimension_semantics<parallel>], iteration_bounds = array<i64: 2, 1>, scalar_prefetch = 0 : i64, scratch_operands = 0 : i64, tpu.core_type = #tpu.core_type<tc>, window_params = [{transform_indices = @transform_0, window_bounds = array<i64: 14, 64, 128>}, {pipeline_mode = #tpu.pipeline_mode<synchronous>, transform_indices = @transform_1, window_bounds = array<i64: 3, 128, 128>}, {pipeline_mode = #tpu.pipeline_mode<synchronous>, transform_indices = @transform_2, window_bounds = array<i64: 1, 128>}, {transform_indices = @transform_3, window_bounds = array<i64: 12, 64, 128>}]} {
    %c0 = arith.constant 0 : index
    %c0_0 = arith.constant 0 : index
    %0 = vector.load %arg4[%c0, %c0_0] : memref<1x128xf32, #tpu.memory_space<vmem>>, vector<1x128xf32>
    %c0_i32 = arith.constant 0 : i32
    %c12_i32 = arith.constant 12 : i32
    %1 = arith.addi %c0_i32, %c12_i32 : i32
    %c1_i32 = arith.constant 1 : i32
    scf.for %arg6 = %c0_i32 to %1 step %c1_i32  : i32 {
      %cst = arith.constant 0.000000e+00 : f32
      %2 = vector.broadcast %cst : f32 to vector<64x128xf32>
      %c0_i32_2 = arith.constant 0 : i32
      %3 = arith.addi %arg6, %c0_i32_2 : i32
      %4 = arith.index_cast %3 : i32 to index
      %c0_3 = arith.constant 0 : index
      %c0_4 = arith.constant 0 : index
      %5 = vector.load %arg2[%4, %c0_3, %c0_4] : memref<14x64x128xbf16, #tpu.memory_space<vmem>>, vector<1x64x128xbf16>
      %6 = vector.shape_cast %5 : vector<1x64x128xbf16> to vector<64x128xbf16>
      %c0_5 = arith.constant 0 : index
      %c0_6 = arith.constant 0 : index
      %c0_7 = arith.constant 0 : index
      %7 = vector.load %arg3[%c0_5, %c0_6, %c0_7] : memref<3x128x128xbf16, #tpu.memory_space<vmem>>, vector<1x128x128xbf16>
      %8 = vector.shape_cast %7 : vector<1x128x128xbf16> to vector<128x128xbf16>
      %cst_8 = arith.constant dense<0.000000e+00> : vector<64x128xf32>
      %9 = tpu.matmul %6, %8, %cst_8 {dimension_numbers = #tpu.dot_dimension_numbers<[1], [0], [0], [1], [0, 0, 1, 1], [], []>} : vector<64x128xbf16>, vector<128x128xbf16>, vector<64x128xf32> -> vector<64x128xf32>
      %10 = arith.addf %2, %9 : vector<64x128xf32>
      %c1_i32_9 = arith.constant 1 : i32
      %11 = arith.addi %arg6, %c1_i32_9 : i32
      %12 = arith.index_cast %11 : i32 to index
      %c0_10 = arith.constant 0 : index
      %c0_11 = arith.constant 0 : index
      %13 = vector.load %arg2[%12, %c0_10, %c0_11] : memref<14x64x128xbf16, #tpu.memory_space<vmem>>, vector<1x64x128xbf16>
      %14 = vector.shape_cast %13 : vector<1x64x128xbf16> to vector<64x128xbf16>
      %c1 = arith.constant 1 : index
      %c0_12 = arith.constant 0 : index
      %c0_13 = arith.constant 0 : index
      %15 = vector.load %arg3[%c1, %c0_12, %c0_13] : memref<3x128x128xbf16, #tpu.memory_space<vmem>>, vector<1x128x128xbf16>
      %16 = vector.shape_cast %15 : vector<1x128x128xbf16> to vector<128x128xbf16>
      %cst_14 = arith.constant dense<0.000000e+00> : vector<64x128xf32>
      %17 = tpu.matmul %14, %16, %cst_14 {dimension_numbers = #tpu.dot_dimension_numbers<[1], [0], [0], [1], [0, 0, 1, 1], [], []>} : vector<64x128xbf16>, vector<128x128xbf16>, vector<64x128xf32> -> vector<64x128xf32>
      %18 = arith.addf %10, %17 : vector<64x128xf32>
      %c2_i32 = arith.constant 2 : i32
      %19 = arith.addi %arg6, %c2_i32 : i32
      %20 = arith.index_cast %19 : i32 to index
      %c0_15 = arith.constant 0 : index
      %c0_16 = arith.constant 0 : index
      %21 = vector.load %arg2[%20, %c0_15, %c0_16] : memref<14x64x128xbf16, #tpu.memory_space<vmem>>, vector<1x64x128xbf16>
      %22 = vector.shape_cast %21 : vector<1x64x128xbf16> to vector<64x128xbf16>
      %c2 = arith.constant 2 : index
      %c0_17 = arith.constant 0 : index
      %c0_18 = arith.constant 0 : index
      %23 = vector.load %arg3[%c2, %c0_17, %c0_18] : memref<3x128x128xbf16, #tpu.memory_space<vmem>>, vector<1x128x128xbf16>
      %24 = vector.shape_cast %23 : vector<1x128x128xbf16> to vector<128x128xbf16>
      %cst_19 = arith.constant dense<0.000000e+00> : vector<64x128xf32>
      %25 = tpu.matmul %22, %24, %cst_19 {dimension_numbers = #tpu.dot_dimension_numbers<[1], [0], [0], [1], [0, 0, 1, 1], [], []>} : vector<64x128xbf16>, vector<128x128xbf16>, vector<64x128xf32> -> vector<64x128xf32>
      %26 = arith.addf %18, %25 : vector<64x128xf32>
      %27 = vector.broadcast %0 : vector<1x128xf32> to vector<64x128xf32>
      %28 = arith.addf %26, %27 : vector<64x128xf32>
      %cst_20 = arith.constant 0.000000e+00 : f32
      %29 = vector.broadcast %cst_20 : f32 to vector<64x128xf32>
      %30 = arith.subf %29, %28 : vector<64x128xf32>
      %31 = math.exp %30 : vector<64x128xf32>
      %cst_21 = arith.constant 1.000000e+00 : f32
      %32 = vector.broadcast %cst_21 : f32 to vector<64x128xf32>
      %33 = arith.addf %32, %31 : vector<64x128xf32>
      %cst_22 = arith.constant 1.000000e+00 : f32
      %34 = vector.broadcast %cst_22 : f32 to vector<64x128xf32>
      %35 = arith.divf %34, %33 : vector<64x128xf32>
      %36 = arith.index_cast %arg6 : i32 to index
      %c0_23 = arith.constant 0 : index
      %c0_24 = arith.constant 0 : index
      %37 = vector.load %arg5[%36, %c0_23, %c0_24] : memref<12x64x128xf32, #tpu.memory_space<vmem>>, vector<1x64x128xf32>
      %38 = vector.shape_cast %37 : vector<1x64x128xf32> to vector<64x128xf32>
      %39 = vector.shape_cast %35 : vector<64x128xf32> to vector<1x64x128xf32>
      tpu.vector_store %arg5[%36, %c0_23, %c0_24], %39 {strides = array<i32>} : memref<12x64x128xf32, #tpu.memory_space<vmem>>, vector<1x64x128xf32>,
    }
    %c12_i32_1 = arith.constant 12 : i32
    return
  }
  func.func @transform_0(%arg0: i32, %arg1: i32) -> (i32, i32, i32) {
    %c0_i32 = arith.constant 0 : i32
    %c0_i32_0 = arith.constant 0 : i32
    return %arg0, %arg1, %c0_i32 : i32, i32, i32
  }
  func.func @transform_1(%arg0: i32, %arg1: i32) -> (i32, i32, i32) {
    %c0_i32 = arith.constant 0 : i32
    %c0_i32_0 = arith.constant 0 : i32
    %c0_i32_1 = arith.constant 0 : i32
    %c0_i32_2 = arith.constant 0 : i32
    return %c0_i32, %c0_i32_0, %c0_i32_1 : i32, i32, i32
  }
  func.func @transform_2(%arg0: i32, %arg1: i32) -> (i32, i32) {
    %c0_i32 = arith.constant 0 : i32
    %c0_i32_0 = arith.constant 0 : i32
    %c0_i32_1 = arith.constant 0 : i32
    return %c0_i32, %c0_i32_0 : i32, i32
  }
  func.func @transform_3(%arg0: i32, %arg1: i32) -> (i32, i32, i32) {
    %c0_i32 = arith.constant 0 : i32
    %c0_i32_0 = arith.constant 0 : i32
    return %arg0, %arg1, %c0_i32 : i32, i32, i32
  }
}

</mosaic_0001>

<bundles_post_ra>
// kernel: rfpose_forward.20
= control target key start
LH: loop header
LB: loop body
LE: loop exit
PB: predicated region body
PF: predicated region fallthrough
CT: control target
= control target key end

     0   :  { %s2859_s12 = smov 0   ;;  %s2861_s13 = smov 0   ;;  %s3187_s0 = inlined_call_operand.vmem [shape: bf16[36,64,128], index: 0, kind: input, shape index: {}]   ;;  %s3188_s1 = inlined_call_operand.vmem [shape: bf16[9,128,128], index: 1, kind: input, shape index: {}]   ;;  %s3189_s2 = inlined_call_operand.vmem [shape: f32[1,128], index: 2, kind: input, shape index: {}]   ;;  %s3190_s3 = inlined_call_operand.vmem [shape: bf16[20,64,128], index: 3, kind: output, shape index: {}]  }
   0x1   :  { %s2863_s14 = smov 0  }
   0x2 LB: > { %s25_s15 = sadd.s32 1, %s2829_s13  ;;  %p1965_p0 = scmp.ge.s32.totalorder %s2833_s14, 1  ;;  %s2833_s14 = sphi %s2863_s14, %s13_s14   ;;  %s2829_s13 = sphi %s2861_s13, %s3201_s13   ;;  %s2825_s12 = sphi %s2859_s12, %s3200_s12  }
   0x3   : > { %p27_p1 = scmp.ge.s32.totalorder %s25_s15, 2  ;;  %p160_p2 = scmp.lt.s32.totalorder %s2833_s14, 3 }
   0x5   : > { %s3203_s15 = smov (%p27_p1, %s25_s15), 0  ;;  %p161_p3 = pnand %p1965_p0, %p160_p2 }
   0x6   : > { %s194_s16 = smul.u32 (!%p161_p3), 18, %s2825_s12  ;;  %s2892_s28 = smov (!%p161_p3), 0  }
   0x7   : > { %164 = sbr.rel (%p161_p3) target bundleno = 385 (0x181), region = 32 }
   0x8   : > { %s206_s19 = smul.u32 (!%p161_p3), 10, %s2825_s12  ;;  %p196_p4 = scmp.lt.s32.totalorder (!%p161_p3), %s194_s16, 35 }
   0xa   : > { %p208_p5 = scmp.lt.s32.totalorder (!%p161_p3), %s206_s19, 19 }
   0xc   : > { %v2880_v0 = vld [vmem:[%s3189_s2] ss:$0 sm:$0xff]  ;;  %s3205_s16 = smov (!%p196_p4, %s194_s16), 35  ;;  %s3207_s19 = smov (!%p208_p5, %s206_s19), 19 }
   0xd   : > { %3192 = vst [vmem:[#allocation2_spill] sm:$0xff] %v2880_v0  ;;  %s2292_s20 = sshll.u32 %s3205_s16, 5  ;;  %s2293_s24 = sshll.u32 %s3207_s19, 5 }
   0xe   : > { %s2885_s23 = scalar_lea.vmem %s3187_s0, %s2292_s20  ;;  %s2890_s27 = scalar_lea.vmem %s3190_s3, %s2293_s24 }
   0xf LB: >> { %v2699_v1 = vld [vmem:[%s3188_s1 + $0x78] sm:$0xff]   ;;  %v2701_v3 = vld [vmem:[%s3188_s1 + $0x70] sm:$0xff]   ;;  %v2703_v5 = vld [vmem:[%s3188_s1 + $0x68] sm:$0xff]   ;;  %s2294_s21 = sshll.u32 %s2837_s28, 5  ;;  %s225_s28 = sadd.s32 1, %s2837_s28   ;;  %s2837_s28 = sphi %s2892_s28, %s225_s28  }
  0x10   : >> { %v2700_v2 = vld [vmem:[%s3188_s1 + $0x38] sm:$0xff]   ;;  %2435 = vmatprep.subr.bf16.mxu0 %v2699_v1  ;;  %v2702_v4 = vld [vmem:[%s3188_s1 + $0x30] sm:$0xff]   ;;  %v2704_v6 = vld [vmem:[%s3188_s1 + $0x28] sm:$0xff]   ;;  %s2931_s29 = scalar_lea.vmem %s2885_s23, %s2294_s21  ;;  %p222_p6 = scmp.ge.s32.totalorder %s225_s28, 10  }
  0x11   : >> { %2459 = vmatprep.subr.bf16.mxu1 %v2700_v2  ;;  %2436 = vmatpush3.bf16.msra.mxu0 %v2699_v1  ;;  %v2705_v7 = vld [vmem:[%s3188_s1 + $0x60] sm:$0xff]   ;;  %v2707_v9 = vld [vmem:[%s3188_s1 + $0x58] sm:$0xff]   ;;  %v2709_v11 = vld [vmem:[%s3188_s1 + $0x50] sm:$0xff]  }
  0x12   : >> { %2460 = vmatpush3.bf16.msra.mxu1 %v2700_v2  ;;  %2437 = vmatprep.subr.bf16.mxu0 %v2701_v3  ;;  %v2706_v8 = vld [vmem:[%s3188_s1 + $0x20] sm:$0xff]   ;;  %v2708_v10 = vld [vmem:[%s3188_s1 + $0x18] sm:$0xff]   ;;  %v2710_v12 = vld [vmem:[%s3188_s1 + $0x10] sm:$0xff]  }
  0x13   : >> { %2461 = vmatprep.subr.bf16.mxu1 %v2702_v4  ;;  %v2715_v13 = vld [vmem:[%s2931_s29 + $0x20] sm:$0xff]   ;;  %v2711_v15 = vld [vmem:[%s3188_s1 + $0x48] sm:$0xff]   ;;  %v2719_v20 = vld [vmem:[%s3188_s1 + $0xb8] sm:$0xff]  }
  0x14   : >> { %v2716_v14 = vld [vmem:[%s2931_s29] sm:$0xff]   ;;  %2451 = vmatprep.mubr.bf16.mxu0 %v2715_v13  ;;  %v2712_v16 = vld [vmem:[%s3188_s1 + $0x8] sm:$0xff]   ;;  %v2720_v21 = vld [vmem:[%s3188_s1 + $0xf8] sm:$0xff]  }
  0x15   : >> { %2438 = vmatpush3.bf16.msra.mxu0 %v2701_v3  ;;  %2475 = vmatprep.mubr.bf16.mxu1 %v2716_v14  ;;  %v2713_v17 = vld [vmem:[%s3188_s1 + $0x40] sm:$0xff]   ;;  %v2717_v19 = vld [vmem:[%s2931_s29 + $0x28] sm:$0xff]   ;;  %v2721_v23 = vld [vmem:[%s3188_s1 + $0xb0] sm:$0xff]  }
  0x16   : >> { %2462 = vmatpush3.bf16.msra.mxu1 %v2702_v4  ;;  %2439 = vmatprep.subr.bf16.mxu0 %v2703_v5  ;;  %v2714_v18 = vld [vmem:[%s3188_s1] sm:$0xff]   ;;  %v2718_v22 = vld [vmem:[%s2931_s29 + $0x8] sm:$0xff]   ;;  %v2722_v24 = vld [vmem:[%s3188_s1 + $0xf0] sm:$0xff]  }
  0x17   : >> { %2463 = vmatprep.subr.bf16.mxu1 %v2704_v6  ;;  %v2729_v25 = vld [vmem:[%s2931_s29 + $0x30] sm:$0xff]   ;;  %v2723_v27 = vld [vmem:[%s3188_s1 + $0xa8] sm:$0xff]   ;;  %v2725_v29 = vld [vmem:[%s3188_s1 + $0xa0] sm:$0xff]  }
  0x18   : >> { %v2730_v26 = vld [vmem:[%s2931_s29 + $0x10] sm:$0xff]   ;;  %v2724_v28 = vld [vmem:[%s3188_s1 + $0xe8] sm:$0xff]   ;;  %v2731_v30 = vld [vmem:[%s2931_s29 + $0x38] sm:$0xff]  }
  0x19   : >> { %2440 = vmatpush3.bf16.msra.mxu0 %v2703_v5  ;;  %v2732_v31 = vld [vmem:[%s2931_s29 + $0x18] sm:$0xff]   ;;  %v2726_v32 = vld [vmem:[%s3188_s1 + $0xe0] sm:$0xff]   ;;  %v2733_v37 = vld [vmem:[%s3188_s1 + $0x90] sm:$0xff]  }
  0x1a   : >> { %2464 = vmatpush3.bf16.msra.mxu1 %v2704_v6  ;;  %2441 = vmatprep.subr.bf16.mxu0 %v2705_v7  ;;  %v2739_v33 = vld [vmem:[%s2931_s29 + $0x40] sm:$0xff]   ;;  %v2727_v35 = vld [vmem:[%s3188_s1 + $0x98] sm:$0xff]   ;;  %v2734_v38 = vld [vmem:[%s3188_s1 + $0xd0] sm:$0xff]  }
  0x1b   : >> { %2465 = vmatprep.subr.bf16.mxu1 %v2706_v8  ;;  %v2740_v34 = vld [vmem:[%s2931_s29 + $0x60] sm:$0xff]   ;;  %v2728_v36 = vld [vmem:[%s3188_s1 + $0xd8] sm:$0xff]   ;;  %v2735_v39 = vld [vmem:[%s3188_s1 + $0x88] sm:$0xff]  }
  0x1c   : >> { %v2736_v40 = vld [vmem:[%s3188_s1 + $0xc8] sm:$0xff]   ;;  %v2737_v41 = vld [vmem:[%s3188_s1 + $0x80] sm:$0xff]   ;;  %v2743_v44 = vld [vmem:[%s3188_s1 + $0x138] sm:$0xff]  }
  0x1d   : >> { %2442 = vmatpush3.bf16.msra.mxu0 %v2705_v7  ;;  %v2738_v42 = vld [vmem:[%s3188_s1 + $0xc0] sm:$0xff]   ;;  %v2741_v43 = vld [vmem:[%s2931_s29 + $0x48] sm:$0xff]   ;;  %v2744_v45 = vld [vmem:[%s3188_s1 + $0x178] sm:$0xff]  }
  0x1e   : >> { %2466 = vmatpush3.bf16.msra.mxu1 %v2706_v8  ;;  %2443 = vmatprep.subr.bf16.mxu0 %v2707_v9  ;;  %v2742_v46 = vld [vmem:[%s2931_s29 + $0x68] sm:$0xff]   ;;  %v2745_v47 = vld [vmem:[%s3188_s1 + $0x130] sm:$0xff]   ;;  %v2748_v51 = vld [vmem:[%s2931_s29 + $0x58] sm:$0xff]  }
  0x1f   : >> { %2467 = vmatprep.subr.bf16.mxu1 %v2708_v10  ;;  %v2746_v48 = vld [vmem:[%s3188_s1 + $0x170] sm:$0xff]   ;;  %v2749_v52 = vld [vmem:[%s3188_s1 + $0x128] sm:$0xff]   ;;  %v2752_v54 = vld [vmem:[%s2931_s29 + $0x78] sm:$0xff]  }
  0x20   : >> { %v2747_v49 = vld [vmem:[%s2931_s29 + $0x50] sm:$0xff]   ;;  %v2750_v53 = vld [vmem:[%s3188_s1 + $0x168] sm:$0xff]   ;;  %v2753_v55 = vld [vmem:[%s3188_s1 + $0x120] sm:$0xff]  }
  0x21   : >> { %2444 = vmatpush3.bf16.msra.mxu0 %v2707_v9  ;;  %v2751_v50 = vld [vmem:[%s2931_s29 + $0x70] sm:$0xff]   ;;  %v2754_v56 = vld [vmem:[%s3188_s1 + $0x160] sm:$0xff]   ;;  %v2755_v59 = vld [vmem:[%s3188_s1 + $0x118] sm:$0xff]  }
  0x22   : >> { %2468 = vmatpush3.bf16.msra.mxu1 %v2708_v10  ;;  %2445 = vmatprep.subr.bf16.mxu0 %v2709_v11  ;;  %v2763_v57 = vld [vmem:[%s2931_s29 + $0x80] sm:$0xff]   ;;  %v2756_v60 = vld [vmem:[%s3188_s1 + $0x158] sm:$0xff]   ;;  %v2757_v61 = vld [vmem:[%s3188_s1 + $0x110] sm:$0xff]  }
  0x23   : >> { %2469 = vmatprep.subr.bf16.mxu1 %v2710_v12  ;;  %v2764_v58 = vld [vmem:[%s2931_s29 + $0xa0] sm:$0xff]   ;;  %v2758_v62 = vld [vmem:[%s3188_s1 + $0x150] sm:$0xff]   ;;  %v2759_v63 = vld [vmem:[%s3188_s1 + $0x108] sm:$0xff]  }
  0x24   : >> { %v2760_v1 = vld [vmem:[%s3188_s1 + $0x148] sm:$0xff]   ;;  %v2761_v2 = vld [vmem:[%s3188_s1 + $0x100] sm:$0xff]   ;;  %v2767_v5 = vld [vmem:[%s3188_s1 + $0x1b8] sm:$0xff]  }
  0x25   : >> { %2446 = vmatpush3.bf16.msra.mxu0 %v2709_v11  ;;  %v2762_v3 = vld [vmem:[%s3188_s1 + $0x140] sm:$0xff]   ;;  %v2765_v4 = vld [vmem:[%s2931_s29 + $0x88] sm:$0xff]   ;;  %v2768_v6 = vld [vmem:[%s3188_s1 + $0x1f8] sm:$0xff]  }
  0x26   : >> { %2470 = vmatpush3.bf16.msra.mxu1 %v2710_v12  ;;  %2447 = vmatprep.subr.bf16.mxu0 %v2711_v15  ;;  %v2766_v7 = vld [vmem:[%s2931_s29 + $0xa8] sm:$0xff]   ;;  %v2769_v8 = vld [vmem:[%s3188_s1 + $0x1b0] sm:$0xff]   ;;  %v2772_v12 = vld [vmem:[%s2931_s29 + $0x98] sm:$0xff]  }
  0x27   : >> { %2471 = vmatprep.subr.bf16.mxu1 %v2712_v16  ;;  %v2770_v9 = vld [vmem:[%s3188_s1 + $0x1f0] sm:$0xff]   ;;  %v2773_v13 = vld [vmem:[%s3188_s1 + $0x1a8] sm:$0xff]  }
  0x28   : >> { %v2771_v10 = vld [vmem:[%s2931_s29 + $0x90] sm:$0xff]   ;;  %v2774_v14 = vld [vmem:[%s3188_s1 + $0x1e8] sm:$0xff]  }
  0x29   : >> { %2448 = vmatpush3.bf16.msra.mxu0 %v2711_v15  ;;  %v2775_v11 = vld [vmem:[%s2931_s29 + $0xb0] sm:$0xff]   ;;  %v2776_v15 = vld [vmem:[%s2931_s29 + $0xb8] sm:$0xff]  }
  0x2a   : >> { %2472 = vmatpush3.bf16.msra.mxu1 %v2712_v16  ;;  %2449 = vmatprep.subr.bf16.mxu0 %v2713_v17  ;;  %v2777_v16 = vld [vmem:[%s3188_s1 + $0x1a0] sm:$0xff]  }
  0x2b   : >> { %2473 = vmatprep.subr.bf16.mxu1 %v2714_v18 }
  0x2d   : >> { %2450 = vmatpush3.bf16.msra.mxu0 %v2713_v17  ;;  %v2778_v17 = vld [vmem:[%s3188_s1 + $0x1e0] sm:$0xff]  }
  0x2e   : >> { %2474 = vmatpush3.bf16.msra.mxu1 %v2714_v18  ;;  %2483 = vmatprep.subr.bf16.mxu0 %v2719_v20  ;;  %v2787_v18 = vld [vmem:[%s2931_s29 + $0xc0] sm:$0xff]  }
  0x2f   : >> { %2507 = vmatprep.subr.bf16.mxu1 %v2720_v21 }
  0x30   : >> { %2452 = vmatmul.mubr.bf16.vlgmr.msra.gmra.mxu0 %v2717_v19  ;;  %v2788_v19 = vld [vmem:[%s2931_s29 + $0xe0] sm:$0xff]  }
  0x31   : >> { %2476 = vmatmul.mubr.bf16.vlgmr.msra.gmra.mxu1 %v2718_v22  ;;  %2484 = vmatpush3.bf16.msra.mxu0 %v2719_v20  ;;  %v2779_v20 = vld [vmem:[%s3188_s1 + $0x198] sm:$0xff]   ;;  %v2781_v22 = vld [vmem:[%s3188_s1 + $0x190] sm:$0xff]  }
  0x32   : >> { %2508 = vmatpush3.bf16.msra.mxu1 %v2720_v21  ;;  %2485 = vmatprep.subr.bf16.mxu0 %v2721_v23  ;;  %v2780_v21 = vld [vmem:[%s3188_s1 + $0x1d8] sm:$0xff]  }
  0x33   : >> { %2509 = vmatprep.subr.bf16.mxu1 %v2722_v24  ;;  %2455 = vmatprep.mubr.bf16.mxu0 %v2729_v25  ;;  %v2784_v25 = vld [vmem:[%s3188_s1 + $0x1c8] sm:$0xff]  }
  0x34   : >> { %2479 = vmatprep.mubr.bf16.mxu1 %v2730_v26  ;;  %v2785_v26 = vld [vmem:[%s3188_s1 + $0x180] sm:$0xff]  }
  0x35   : >> { %2486 = vmatpush3.bf16.msra.mxu0 %v2721_v23  ;;  %v2782_v23 = vld [vmem:[%s3188_s1 + $0x1d0] sm:$0xff]  }
  0x36   : >> { %2510 = vmatpush3.bf16.msra.mxu1 %v2722_v24  ;;  %2487 = vmatprep.subr.bf16.mxu0 %v2723_v27  ;;  %v2783_v24 = vld [vmem:[%s3188_s1 + $0x188] sm:$0xff]  }
  0x37   : >> { %2511 = vmatprep.subr.bf16.mxu1 %v2724_v28 }
  0x38   : >> { %2456 = vmatmul.mubr.bf16.gmra.mxu0 %v2731_v30  ;;  %v2790_v30 = vld [vmem:[%s2931_s29 + $0xe8] sm:$0xff]  }
  0x39   : >> { %2488 = vmatpush3.bf16.msra.mxu0 %v2723_v27  ;;  %2480 = vmatmul.mubr.bf16.gmra.mxu1 %v2732_v31  ;;  %v2786_v27 = vld [vmem:[%s3188_s1 + $0x1c0] sm:$0xff]   ;;  %v2792_v31 = vld [vmem:[%s3188_s1 + $0x230] sm:$0xff]  }
  0x3a   : >> { %2512 = vmatpush3.bf16.msra.mxu1 %v2724_v28  ;;  %2489 = vmatprep.subr.bf16.mxu0 %v2725_v29  ;;  %v2791_v28 = vld [vmem:[%s3188_s1 + $0x238] sm:$0xff]  }
  0x3b   : >> { %2513 = vmatprep.subr.bf16.mxu1 %v2726_v32  ;;  %2499 = vmatprep.mubr.bf16.mxu0 %v2739_v33  ;;  %v2796_v33 = vld [vmem:[%s2931_s29 + $0xf0] sm:$0xff]  }
  0x3c   : >> { %2523 = vmatprep.mubr.bf16.mxu1 %v2740_v34  ;;  %v2795_v34 = vld [vmem:[%s3188_s1 + $0x228] sm:$0xff]  }
  0x3d   : >> { %2490 = vmatpush3.bf16.msra.mxu0 %v2725_v29  ;;  %v2789_v29 = vld [vmem:[%s2931_s29 + $0xc8] sm:$0xff]  }
  0x3e   : >> { %2514 = vmatpush3.bf16.msra.mxu1 %v2726_v32  ;;  %2491 = vmatprep.subr.bf16.mxu0 %v2727_v35  ;;  %v2793_v32 = vld [vmem:[%s2931_s29 + $0xd0] sm:$0xff]  }
  0x3f   : >> { %2515 = vmatprep.subr.bf16.mxu1 %v2728_v36 }
  0x41   : >> { %2492 = vmatpush3.bf16.msra.mxu0 %v2727_v35  ;;  %v2794_v35 = vld [vmem:[%s2931_s29 + $0xd8] sm:$0xff]  }
  0x42   : >> { %2516 = vmatpush3.bf16.msra.mxu1 %v2728_v36  ;;  %2493 = vmatprep.subr.bf16.mxu0 %v2733_v37  ;;  %v2797_v36 = vld [vmem:[%s2931_s29 + $0xf8] sm:$0xff]  }
  0x43   : >> { %2517 = vmatprep.subr.bf16.mxu1 %v2734_v38 }
  0x45   : >> { %2494 = vmatpush3.bf16.msra.mxu0 %v2733_v37  ;;  %v2798_v37 = vld [vmem:[%s3188_s1 + $0x220] sm:$0xff]  }
  0x46   : >> { %2518 = vmatpush3.bf16.msra.mxu1 %v2734_v38  ;;  %2495 = vmatprep.subr.bf16.mxu0 %v2735_v39  ;;  %v2803_v38 = vld [vmem:[%s2931_s29 + $0x100] sm:$0xff]  }
  0x47   : >> { %2519 = vmatprep.subr.bf16.mxu1 %v2736_v40 }
  0x49   : >> { %2496 = vmatpush3.bf16.msra.mxu0 %v2735_v39  ;;  %v2804_v39 = vld [vmem:[%s2931_s29 + $0x110] sm:$0xff]  }
  0x4a   : >> { %2520 = vmatpush3.bf16.msra.mxu1 %v2736_v40  ;;  %2497 = vmatprep.subr.bf16.mxu0 %v2737_v41  ;;  %v2799_v40 = vld [vmem:[%s3188_s1 + $0x218] sm:$0xff]  }
  0x4b   : >> { %2521 = vmatprep.subr.bf16.mxu1 %v2738_v42 }
  0x4d   : >> { %2498 = vmatpush3.bf16.msra.mxu0 %v2737_v41  ;;  %v2800_v41 = vld [vmem:[%s3188_s1 + $0x210] sm:$0xff]  }
  0x4e   : >> { %2522 = vmatpush3.bf16.msra.mxu1 %v2738_v42  ;;  %2531 = vmatprep.subr.bf16.mxu0 %v2743_v44  ;;  %v2801_v42 = vld [vmem:[%s3188_s1 + $0x208] sm:$0xff]  }
  0x4f   : >> { %2555 = vmatprep.subr.bf16.mxu1 %v2744_v45 }
  0x50   : >> { %2500 = vmatmul.mubr.bf16.vlgmr.msra.gmra.mxu0 %v2741_v43  ;;  %v2802_v43 = vld [vmem:[%s3188_s1 + $0x200] sm:$0xff]  }
  0x51   : >> { %2524 = vmatmul.mubr.bf16.vlgmr.msra.gmra.mxu1 %v2742_v46  ;;  %2532 = vmatpush3.bf16.msra.mxu0 %v2743_v44  ;;  %v2805_v44 = vld [vmem:[%s2931_s29 + $0x108] sm:$0xff]  }
  0x52   : >> { %2556 = vmatpush3.bf16.msra.mxu1 %v2744_v45  ;;  %2533 = vmatprep.subr.bf16.mxu0 %v2745_v47  ;;  %v2806_v45 = vld [vmem:[%s2931_s29 + $0x118] sm:$0xff]   ;;  %s1829_s29 = scalar_lea.vmem %s2890_s27, %s2294_s21 }
  0x53   : >> { %2557 = vmatprep.subr.bf16.mxu1 %v2746_v48  ;;  %2503 = vmatprep.mubr.bf16.mxu0 %v2747_v49 }
  0x54   : >> { %2527 = vmatprep.mubr.bf16.mxu1 %v2751_v50 }
  0x55   : >> { %2534 = vmatpush3.bf16.msra.mxu0 %v2745_v47 }
  0x56   : >> { %2558 = vmatpush3.bf16.msra.mxu1 %v2746_v48  ;;  %2535 = vmatprep.subr.bf16.mxu0 %v2749_v52 }
  0x57   : >> { %2559 = vmatprep.subr.bf16.mxu1 %v2750_v53 }
  0x58   : >> { %2504 = vmatmul.mubr.bf16.gmra.mxu0 %v2748_v51 }
  0x59   : >> { %2536 = vmatpush3.bf16.msra.mxu0 %v2749_v52  ;;  %2528 = vmatmul.mubr.bf16.gmra.mxu1 %v2752_v54 }
  0x5a   : >> { %2560 = vmatpush3.bf16.msra.mxu1 %v2750_v53  ;;  %2537 = vmatprep.subr.bf16.mxu0 %v2753_v55 }
  0x5b   : >> { %2561 = vmatprep.subr.bf16.mxu1 %v2754_v56  ;;  %2547 = vmatprep.mubr.bf16.mxu0 %v2763_v57 }
  0x5c   : >> { %2571 = vmatprep.mubr.bf16.mxu1 %v2764_v58 }
  0x5d   : >> { %2538 = vmatpush3.bf16.msra.mxu0 %v2753_v55 }
  0x5e   : >> { %2562 = vmatpush3.bf16.msra.mxu1 %v2754_v56  ;;  %2539 = vmatprep.subr.bf16.mxu0 %v2755_v59 }
  0x5f   : >> { %2563 = vmatprep.subr.bf16.mxu1 %v2756_v60 }
  0x61   : >> { %2540 = vmatpush3.bf16.msra.mxu0 %v2755_v59 }
  0x62   : >> { %2564 = vmatpush3.bf16.msra.mxu1 %v2756_v60  ;;  %2541 = vmatprep.subr.bf16.mxu0 %v2757_v61 }
  0x63   : >> { %2565 = vmatprep.subr.bf16.mxu1 %v2758_v62 }
  0x65   : >> { %2542 = vmatpush3.bf16.msra.mxu0 %v2757_v61 }
  0x66   : >> { %2566 = vmatpush3.bf16.msra.mxu1 %v2758_v62  ;;  %2543 = vmatprep.subr.bf16.mxu0 %v2759_v63 }
  0x67   : >> { %2567 = vmatprep.subr.bf16.mxu1 %v2760_v1 }
  0x69   : >> { %2544 = vmatpush3.bf16.msra.mxu0 %v2759_v63 }
  0x6a   : >> { %2568 = vmatpush3.bf16.msra.mxu1 %v2760_v1  ;;  %2545 = vmatprep.subr.bf16.mxu0 %v2761_v2 }
  0x6b   : >> { %2569 = vmatprep.subr.bf16.mxu1 %v2762_v3 }
  0x6d   : >> { %2546 = vmatpush3.bf16.msra.mxu0 %v2761_v2 }
  0x6e   : >> { %2570 = vmatpush3.bf16.msra.mxu1 %v2762_v3  ;;  %2579 = vmatprep.subr.bf16.mxu0 %v2767_v5 }
  0x6f   : >> { %2603 = vmatprep.subr.bf16.mxu1 %v2768_v6 }
  0x70   : >> { %2548 = vmatmul.mubr.bf16.vlgmr.msra.gmra.mxu0 %v2765_v4 }
  0x71   : >> { %2572 = vmatmul.mubr.bf16.vlgmr.msra.gmra.mxu1 %v2766_v7  ;;  %2580 = vmatpush3.bf16.msra.mxu0 %v2767_v5 }
  0x72   : >> { %2604 = vmatpush3.bf16.msra.mxu1 %v2768_v6  ;;  %2581 = vmatprep.subr.bf16.mxu0 %v2769_v8 }
  0x73   : >> { %2605 = vmatprep.subr.bf16.mxu1 %v2770_v9  ;;  %2551 = vmatprep.mubr.bf16.mxu0 %v2771_v10 }
  0x74   : >> { %2575 = vmatprep.mubr.bf16.mxu1 %v2775_v11 }
  0x75   : >> { %2582 = vmatpush3.bf16.msra.mxu0 %v2769_v8 }
  0x76   : >> { %2606 = vmatpush3.bf16.msra.mxu1 %v2770_v9  ;;  %2583 = vmatprep.subr.bf16.mxu0 %v2773_v13 }
  0x77   : >> { %2607 = vmatprep.subr.bf16.mxu1 %v2774_v14 }
  0x78   : >> { %2552 = vmatmul.mubr.bf16.gmra.mxu0 %v2772_v12 }
  0x79   : >> { %2584 = vmatpush3.bf16.msra.mxu0 %v2773_v13  ;;  %2576 = vmatmul.mubr.bf16.gmra.mxu1 %v2776_v15 }
  0x7a   : >> { %2608 = vmatpush3.bf16.msra.mxu1 %v2774_v14  ;;  %2585 = vmatprep.subr.bf16.mxu0 %v2777_v16 }
  0x7b   : >> { %2609 = vmatprep.subr.bf16.mxu1 %v2778_v17  ;;  %2595 = vmatprep.mubr.bf16.mxu0 %v2787_v18 }
  0x7c   : >> { %2619 = vmatprep.mubr.bf16.mxu1 %v2788_v19 }
  0x7d   : >> { %2586 = vmatpush3.bf16.msra.mxu0 %v2777_v16 }
  0x7e   : >> { %2610 = vmatpush3.bf16.msra.mxu1 %v2778_v17  ;;  %2587 = vmatprep.subr.bf16.mxu0 %v2779_v20 }
  0x7f   : >> { %2611 = vmatprep.subr.bf16.mxu1 %v2780_v21 }
  0x81   : >> { %2588 = vmatpush3.bf16.msra.mxu0 %v2779_v20 }
  0x82   : >> { %2612 = vmatpush3.bf16.msra.mxu1 %v2780_v21  ;;  %2589 = vmatprep.subr.bf16.mxu0 %v2781_v22 }
  0x83   : >> { %2613 = vmatprep.subr.bf16.mxu1 %v2782_v23 }
  0x85   : >> { %2590 = vmatpush3.bf16.msra.mxu0 %v2781_v22 }
  0x86   : >> { %2614 = vmatpush3.bf16.msra.mxu1 %v2782_v23  ;;  %2591 = vmatprep.subr.bf16.mxu0 %v2783_v24 }
  0x87   : >> { %2615 = vmatprep.subr.bf16.mxu1 %v2784_v25 }
  0x89   : >> { %2592 = vmatpush3.bf16.msra.mxu0 %v2783_v24 }
  0x8a   : >> { %2616 = vmatpush3.bf16.msra.mxu1 %v2784_v25  ;;  %2593 = vmatprep.subr.bf16.mxu0 %v2785_v26 }
  0x8b   : >> { %2617 = vmatprep.subr.bf16.mxu1 %v2786_v27 }
  0x8d   : >> { %2594 = vmatpush3.bf16.msra.mxu0 %v2785_v26 }
  0x8e   : >> { %2618 = vmatpush3.bf16.msra.mxu1 %v2786_v27  ;;  %2627 = vmatprep.subr.bf16.mxu0 %v2791_v28 }
  0x8f   : >> { %2651 = vmatprep.subr.bf16.mxu1 %v2791_v28 }
  0x90   : >> { %2596 = vmatmul.mubr.bf16.vlgmr.msra.gmra.mxu0 %v2789_v29 }
  0x91   : >> { %2620 = vmatmul.mubr.bf16.vlgmr.msra.gmra.mxu1 %v2790_v30  ;;  %2628 = vmatpush3.bf16.msra.mxu0 %v2791_v28 }
  0x92   : >> { %2659 = vmatpush3.bf16.msra.mxu1 %v2791_v28  ;;  %2629 = vmatprep.subr.bf16.mxu0 %v2792_v31 }
  0x93   : >> { %2652 = vmatprep.subr.bf16.mxu1 %v2792_v31  ;;  %2599 = vmatprep.mubr.bf16.mxu0 %v2793_v32 }
  0x94   : >> { %2623 = vmatprep.mubr.bf16.mxu1 %v2796_v33 }
  0x95   : >> { %2630 = vmatpush3.bf16.msra.mxu0 %v2792_v31 }
  0x96   : >> { %2660 = vmatpush3.bf16.msra.mxu1 %v2792_v31  ;;  %2631 = vmatprep.subr.bf16.mxu0 %v2795_v34 }
  0x97   : >> { %2653 = vmatprep.subr.bf16.mxu1 %v2795_v34 }
  0x98   : >> { %2600 = vmatmul.mubr.bf16.gmra.mxu0 %v2794_v35 }
  0x99   : >> { %2632 = vmatpush3.bf16.msra.mxu0 %v2795_v34  ;;  %2624 = vmatmul.mubr.bf16.gmra.mxu1 %v2797_v36 }
  0x9a   : >> { %2661 = vmatpush3.bf16.msra.mxu1 %v2795_v34  ;;  %2633 = vmatprep.subr.bf16.mxu0 %v2798_v37 }
  0x9b   : >> { %2654 = vmatprep.subr.bf16.mxu1 %v2798_v37  ;;  %2643 = vmatprep.mubr.bf16.mxu0 %v2803_v38 }
  0x9c   : >> { %2647 = vmatprep.mubr.bf16.mxu1 %v2804_v39 }
  0x9d   : >> { %2634 = vmatpush3.bf16.msra.mxu0 %v2798_v37 }
  0x9e   : >> { %2662 = vmatpush3.bf16.msra.mxu1 %v2798_v37  ;;  %2635 = vmatprep.subr.bf16.mxu0 %v2799_v40 }
  0x9f   : >> { %2655 = vmatprep.subr.bf16.mxu1 %v2799_v40 }
  0xa1   : >> { %2636 = vmatpush3.bf16.msra.mxu0 %v2799_v40 }
  0xa2   : >> { %2663 = vmatpush3.bf16.msra.mxu1 %v2799_v40  ;;  %2637 = vmatprep.subr.bf16.mxu0 %v2800_v41 }
  0xa3   : >> { %2656 = vmatprep.subr.bf16.mxu1 %v2800_v41 }
  0xa5   : >> { %2638 = vmatpush3.bf16.msra.mxu0 %v2800_v41 }
  0xa6   : >> { %2664 = vmatpush3.bf16.msra.mxu1 %v2800_v41  ;;  %2639 = vmatprep.subr.bf16.mxu0 %v2801_v42 }
  0xa7   : >> { %2657 = vmatprep.subr.bf16.mxu1 %v2801_v42 }
  0xa9   : >> { %2640 = vmatpush3.bf16.msra.mxu0 %v2801_v42 }
  0xaa   : >> { %2665 = vmatpush3.bf16.msra.mxu1 %v2801_v42  ;;  %2641 = vmatprep.subr.bf16.mxu0 %v2802_v43 }
  0xab   : >> { %2658 = vmatprep.subr.bf16.mxu1 %v2802_v43 }
  0xad   : >> { %2642 = vmatpush3.bf16.msra.mxu0 %v2802_v43 }
  0xae   : >> { %2666 = vmatpush3.bf16.msra.mxu1 %v2802_v43 }
  0xb0   : >> { %2644 = vmatmul.mubr.bf16.vlgmr.msra.gmra.mxu0 %v2805_v44 }
  0xb1   : >> { %2648 = vmatmul.mubr.bf16.vlgmr.msra.gmra.mxu1 %v2806_v45 }
  0xf0   : >> { %v2453_v46 = vpop.f32.mrf.mxu0 }
  0xf1   : >> { %v2477_v48 = vpop.f32.mrf.mxu1 }
  0xf2   : >> { %v388_v47 = vpop.f32.mrf.mxu0  ;;  %v534_v36 = vadd.f32 %v2477_v48, %v2453_v46 }
  0xf3   : >> { %v525_v50 = vpop.f32.mrf.mxu1 }
  0xf4   : >> { %v2454_v49 = vpop.f32.mrf.mxu0  ;;  %v526_v40 = vadd.f32 %v525_v50, %v388_v47 }
  0xf5   : >> { %v2478_v53 = vpop.f32.mrf.mxu1 }
  0xf6   : >> { %v391_v51 = vpop.f32.mrf.mxu0  ;;  %v537_v44 = vadd.f32 %v2478_v53, %v2454_v49 }
  0xf7   : >> { %v528_v55 = vpop.f32.mrf.mxu1 }
  0xf8   : >> { %v2457_v52 = vpop.f32.mrf.mxu0 }
  0xf9   : >> { %v2481_v56 = vpop.f32.mrf.mxu1 }
  0xfa   : >> { %v404_v54 = vpop.f32.mrf.mxu0  ;;  %v550_v38 = vadd.f32 %v2481_v56, %v2457_v52 }
  0xfb   : >> { %v541_v58 = vpop.f32.mrf.mxu1 }
  0xfc   : >> { %v2458_v57 = vpop.f32.mrf.mxu0  ;;  %v542_v42 = vadd.f32 %v541_v58, %v404_v54 }
  0xfd   : >> { %v2482_v61 = vpop.f32.mrf.mxu1 }
  0xfe   : >> { %v407_v59 = vpop.f32.mrf.mxu0 }
  0xff   : >> { %v544_v63 = vpop.f32.mrf.mxu1 }
 0x100   : >> { %v545_v50 = vadd.f32 %v544_v63, %v407_v59 }
 0x110   : >> { %v2501_v60 = vpop.f32.mrf.mxu0 }
 0x111   : >> { %v2525_v1 = vpop.f32.mrf.mxu1  ;;  %v724_v41 = vadd.f32 %v2501_v60, %v534_v36 }
 0x112   : >> { %v691_v62 = vpop.f32.mrf.mxu0 }
 0x113   : >> { %v865_v3 = vpop.f32.mrf.mxu1  ;;  %v722_v45 = vadd.f32 %v691_v62, %v526_v40  ;;  %v898_v52 = vadd.f32 %v2525_v1, %v724_v41 }
 0x114   : >> { %v2502_v2 = vpop.f32.mrf.mxu0 }
 0x115   : >> { %v2526_v5 = vpop.f32.mrf.mxu1  ;;  %v725_v56 = vadd.f32 %v2502_v2, %v537_v44  ;;  %v896_v54 = vadd.f32 %v865_v3, %v722_v45 }
 0x116   : >> { %v694_v4 = vpop.f32.mrf.mxu0 }
 0x117   : >> { %v868_v7 = vpop.f32.mrf.mxu1  ;;  %v899_v62 = vadd.f32 %v2526_v5, %v725_v56 }
 0x118   : >> { %v2505_v6 = vpop.f32.mrf.mxu0 }
 0x119   : >> { %v2529_v9 = vpop.f32.mrf.mxu1  ;;  %v728_v43 = vadd.f32 %v2505_v6, %v550_v38 }
 0x11a   : >> { %v707_v8 = vpop.f32.mrf.mxu0 }
 0x11b   : >> { %v881_v11 = vpop.f32.mrf.mxu1  ;;  %v726_v46 = vadd.f32 %v707_v8, %v542_v42  ;;  %v902_v36 = vadd.f32 %v2529_v9, %v728_v43 }
 0x11c   : >> { %v2506_v10 = vpop.f32.mrf.mxu0 }
 0x11d   : >> { %v2530_v13 = vpop.f32.mrf.mxu1  ;;  %v900_v38 = vadd.f32 %v881_v11, %v726_v46 }
 0x11e   : >> { %v710_v12 = vpop.f32.mrf.mxu0 }
 0x11f   : >> { %v884_v15 = vpop.f32.mrf.mxu1  ;;  %v727_v49 = vadd.f32 %v710_v12, %v545_v50 }
 0x121   : >> { %v901_v1 = vadd.f32 %v884_v15, %v727_v49 }
 0x130   : >> { %v2549_v14 = vpop.f32.mrf.mxu0 }
 0x131   : >> { %v2573_v17 = vpop.f32.mrf.mxu1  ;;  %v1072_v6 = vadd.f32 %v2549_v14, %v898_v52  ;;  %v3199_v52 = vld [vmem:[#allocation2_spill] sm:$0xff] }
 0x132   : >> { %v1039_v16 = vpop.f32.mrf.mxu0 }
 0x133   : >> { %v1213_v19 = vpop.f32.mrf.mxu1 }
 0x134   : >> { %v2550_v18 = vpop.f32.mrf.mxu0 }
 0x135   : >> { %v2574_v21 = vpop.f32.mrf.mxu1 }
 0x136   : >> { %v1042_v20 = vpop.f32.mrf.mxu0 }
 0x137   : >> { %v3155_v23 = vpop.f32.mrf.mxu1 }
 0x138   : >> { %v2553_v22 = vpop.f32.mrf.mxu0  ;;  %3193 = vst [vmem:[#allocation3_spill] sm:$0xff] %v3155_v23  ;;  %v553_v23 = vadd.f32 %v2482_v61, %v2458_v57 }
 0x139   : >> { %v2577_v24 = vpop.f32.mrf.mxu1  ;;  %v1076_v53 = vadd.f32 %v2553_v22, %v902_v36 }
 0x13a   : >> { %v1055_v25 = vpop.f32.mrf.mxu0  ;;  %v729_v60 = vadd.f32 %v2506_v10, %v553_v23 }
 0x13b   : >> { %v1229_v26 = vpop.f32.mrf.mxu1  ;;  %v1074_v8 = vadd.f32 %v1055_v25, %v900_v38  ;;  %v1250_v2 = vadd.f32 %v2577_v24, %v1076_v53 }
 0x13c   : >> { %v2554_v27 = vpop.f32.mrf.mxu0  ;;  %v903_v61 = vadd.f32 %v2530_v13, %v729_v60 }
 0x13d   : >> { %v2578_v28 = vpop.f32.mrf.mxu1  ;;  %v1248_v11 = vadd.f32 %v1229_v26, %v1074_v8 }
 0x13e   : >> { %v1058_v29 = vpop.f32.mrf.mxu0  ;;  %v1077_v59 = vadd.f32 %v2554_v27, %v903_v61 }
 0x13f   : >> { %v1232_v31 = vpop.f32.mrf.mxu1  ;;  %v1075_v12 = vadd.f32 %v1058_v29, %v901_v1  ;;  %v3196_v25 = vld [vmem:[#allocation3_spill] sm:$0xff] }
 0x141   : >> { %v1249_v24 = vadd.f32 %v1232_v31, %v1075_v12 }
 0x150   : >> { %v2597_v30 = vpop.f32.mrf.mxu0 }
 0x151   : >> { %v2621_v32 = vpop.f32.mrf.mxu1 }
 0x152   : >> { %v1387_v33 = vpop.f32.mrf.mxu0 }
 0x153   : >> { %v1561_v34 = vpop.f32.mrf.mxu1 }
 0x154   : >> { %v2598_v35 = vpop.f32.mrf.mxu0 }
 0x155   : >> { %v3157_v37 = vpop.f32.mrf.mxu1 }
 0x156   : >> { %3194 = vst [vmem:[#allocation4_spill] sm:$0xff] %v3157_v37  ;;  %v1390_v39 = vpop.f32.mrf.mxu0  ;;  %v529_v37 = vadd.f32 %v528_v55, %v391_v51  ;;  %v1246_v51 = vadd.f32 %v2573_v17, %v1072_v6  ;;  %v1073_v55 = vadd.f32 %v2550_v18, %v899_v62 }
 0x157   : >> { %v3159_v0 = vpop.f32.mrf.mxu1 }
 0x158   : >> { %3195 = vst [vmem:[#allocation5_spill] sm:$0xff] %v3159_v0  ;;  %v2601_v48 = vpop.f32.mrf.mxu0  ;;  %v723_v58 = vadd.f32 %v694_v4, %v529_v37  ;;  %v1070_v0 = vadd.f32 %v1039_v16, %v896_v54  ;;  %v1420_v4 = vadd.f32 %v2597_v30, %v1246_v51  ;;  %v1247_v22 = vadd.f32 %v2574_v21, %v1073_v55 }
 0x159   : >> { %v2625_v47 = vpop.f32.mrf.mxu1  ;;  %v1424_v14 = vadd.f32 %v2601_v48, %v1250_v2  ;;  %v1251_v16 = vadd.f32 %v2578_v28, %v1077_v59 }
 0x15a   : >> { %v1403_v40 = vpop.f32.mrf.mxu0  ;;  %v897_v42 = vadd.f32 %v868_v7, %v723_v58  ;;  %v1244_v9 = vadd.f32 %v1213_v19, %v1070_v0  ;;  %v1594_v17 = vadd.f32 %v2621_v32, %v1420_v4  ;;  %v1421_v18 = vadd.f32 %v2598_v35, %v1247_v22 }
 0x15b   : >> { %v1577_v57 = vpop.f32.mrf.mxu1  ;;  %v1422_v23 = vadd.f32 %v1403_v40, %v1248_v11  ;;  %v1598_v27 = vadd.f32 %v2625_v47, %v1424_v14 }
 0x15c   : >> { %v2602_v63 = vpop.f32.mrf.mxu0  ;;  %v1071_v3 = vadd.f32 %v1042_v20, %v897_v42  ;;  %v1418_v5 = vadd.f32 %v1387_v33, %v1244_v9 }
 0x15d   : >> { %v2626_v10 = vpop.f32.mrf.mxu1  ;;  %v1425_v37 = vadd.f32 %v2602_v63, %v1251_v16  ;;  %v1596_v29 = vadd.f32 %v1577_v57, %v1422_v23  ;;  %v3197_v28 = vld [vmem:[#allocation4_spill] sm:$0xff] }
 0x15e   : >> { %v1406_v13 = vpop.f32.mrf.mxu0  ;;  %v1245_v7 = vadd.f32 %v3196_v25, %v1071_v3  ;;  %v1592_v19 = vadd.f32 %v1561_v34, %v1418_v5  ;;  %v1595_v43 = vadd.f32 %v3197_v28, %v1421_v18 }
 0x15f   : >> { %v1580_v15 = vpop.f32.mrf.mxu1  ;;  %v1423_v41 = vadd.f32 %v1406_v13, %v1249_v24  ;;  %v1599_v46 = vadd.f32 %v2626_v10, %v1425_v37  ;;  %v3198_v48 = vld [vmem:[#allocation5_spill] sm:$0xff] }
 0x160   : >> { %v1419_v20 = vadd.f32 %v1390_v39, %v1245_v7 }
 0x161   : >> { %v1597_v39 = vadd.f32 %v1580_v15, %v1423_v41 }
 0x162   : >> { %v1593_v31 = vadd.f32 %v3198_v48, %v1419_v20 }
 0x170   : >> { %v2645_v0 = vpop.f32.mrf.mxu0 }
 0x171   : >> { %v1768_v30 = vadd.f32 %v2645_v0, %v1594_v17  ;;  %v2649_v26 = vpop.f32.mrf.mxu1 }
 0x172   : >> { %v1772_v21 = vadd.f32 %v2649_v26, %v1598_v27  ;;  %v1735_v33 = vpop.f32.mrf.mxu0 }
 0x173   : >> { %v1766_v44 = vadd.f32 %v1735_v33, %v1592_v19  ;;  %v1751_v45 = vpop.f32.mrf.mxu1  ;;  %v1782_v56 = vadd.f32 %v3199_v52, %v1768_v30 }
 0x174   : >> { %v1770_v32 = vadd.f32 %v1751_v45, %v1596_v29  ;;  %v2646_v35 = vpop.f32.mrf.mxu0  ;;  %v1786_v50 = vadd.f32 %v3199_v52, %v1772_v21 }
 0x175   : >> { %v1769_v47 = vadd.f32 %v2646_v35, %v1595_v43  ;;  %v2650_v34 = vpop.f32.mrf.mxu1  ;;  %v1780_v54 = vadd.f32 %v3199_v52, %v1766_v44  ;;  %v1790_v62 = vmax.f32 %v1782_v56, 0.0 }
 0x176   : >> { %v1773_v36 = vadd.f32 %v2650_v34, %v1599_v46  ;;  %v1738_v60 = vpop.f32.mrf.mxu0  ;;  %v1784_v49 = vadd.f32 %v3199_v52, %v1770_v32  ;;  %v1794_v8 = vmax.f32 %v1786_v50, 0.0 }
 0x177   : >> { %v1783_v58 = vadd.f32 %v3199_v52, %v1769_v47  ;;  %v1767_v6 = vadd.f32 %v1738_v60, %v1593_v31  ;;  %v1754_v38 = vpop.f32.mrf.mxu1  ;;  %v1788_v55 = vmax.f32 %v1780_v54, 0.0 }
 0x178   : >> { %v1787_v53 = vadd.f32 %v3199_v52, %v1773_v36  ;;  %v1771_v40 = vadd.f32 %v1754_v38, %v1597_v39  ;;  %v1792_v59 = vmax.f32 %v1784_v49, 0.0 }
 0x179   : >> { %v1791_v57 = vmax.f32 %v1783_v58, 0.0  ;;  %v1781_v61 = vadd.f32 %v3199_v52, %v1767_v6 }
 0x17a   : >> { %v1795_v42 = vmax.f32 %v1787_v53, 0.0  ;;  %v1785_v51 = vadd.f32 %v3199_v52, %v1771_v40 }
 0x17b   : >> { %v2312_v1 = vpack.c.bf16 %v1791_v57, %v1790_v62  ;;  %v1789_v2 = vmax.f32 %v1781_v61, 0.0 }
 0x17c   : >> { %v2322_v63 = vpack.c.bf16 %v1795_v42, %v1794_v8  ;;  %v1793_v9 = vmax.f32 %v1785_v51, 0.0  ;;  %224 = sbr.rel (!%p222_p6) target bundleno = 15 (0xf), region = 87 }
 0x17d   : >> { %2324 = vst [vmem:[%s1829_s29 + $0x8] sm:$0xff] %v2312_v1   ;;  %v2307_v3 = vpack.c.bf16 %v1789_v2, %v1788_v55 }
 0x17e   : >> { %2326 = vst [vmem:[%s1829_s29 + $0x18] sm:$0xff] %v2322_v63   ;;  %v2317_v4 = vpack.c.bf16 %v1793_v9, %v1792_v59 }
 0x17f   : >> { %2308 = vst [vmem:[%s1829_s29] sm:$0xff] %v2307_v3  }
 0x180   : >> { %2325 = vst [vmem:[%s1829_s29 + $0x10] sm:$0xff] %v2317_v4  }
 0x181 PF: > { %s13_s14 = sadd.s32 1, %s2833_s14   ;;  %s3200_s12 = smov %s2829_s13 }
 0x182   : > { %p10_p7 = scmp.ge.s32.totalorder %s13_s14, 4   ;;  %s3201_s13 = smov %s3203_s15 }
 0x184   :  { %12 = sbr.rel (!%p10_p7) target bundleno = 2 (0x2), region = 98 }

// kernel: rfpose_forward.22
= control target key start
LH: loop header
LB: loop body
LE: loop exit
PB: predicated region body
PF: predicated region fallthrough
CT: control target
= control target key end

     0   :  { %s2138_s12 = smov 0   ;;  %s2140_s13 = smov 0   ;;  %s2514_s0 = inlined_call_operand.vmem [shape: bf16[32,16,128], index: 0, kind: input, shape index: {}]   ;;  %s2515_s1 = inlined_call_operand.vmem [shape: bf16[9,128,128], index: 1, kind: input, shape index: {}]   ;;  %s2516_s2 = inlined_call_operand.vmem [shape: f32[1,128], index: 2, kind: input, shape index: {}]   ;;  %s2517_s3 = inlined_call_operand.vmem [shape: bf16[16,16,128], index: 3, kind: output, shape index: {}]  }
   0x1   :  { %s2142_s14 = smov 0  }
   0x2 LB: > { %s25_s15 = sadd.s32 1, %s2106_s13  ;;  %p1449_p0 = scmp.ge.s32.totalorder %s2110_s14, 1  ;;  %s2110_s14 = sphi %s2142_s14, %s13_s14   ;;  %s2106_s13 = sphi %s2140_s13, %s2519_s13   ;;  %s2102_s12 = sphi %s2138_s12, %s2518_s12  }
   0x3   : > { %p27_p1 = scmp.ge.s32.totalorder %s25_s15, 2  ;;  %p160_p2 = scmp.lt.s32.totalorder %s2110_s14, 3 }
   0x5   : > { %s2521_s15 = smov (%p27_p1, %s25_s15), 0  ;;  %p161_p3 = pnand %p1449_p0, %p160_p2 }
   0x6   : > { %s1450_s16 = sshll.u32 (!%p161_p3), %s2102_s12, 4  ;;  %s1453_s17 = sshll.u32 (!%p161_p3), %s2102_s12, 3 }
   0x7   : > { %164 = sbr.rel (%p161_p3) target bundleno = 382 (0x17e), region = 32  ;;  %p196_p4 = scmp.lt.s32.totalorder (!%p161_p3), %s1450_s16, 31 }
   0x8   : > { %p208_p5 = scmp.lt.s32.totalorder (!%p161_p3), %s1453_s17, 15  ;;  %s2171_s28 = smov (!%p161_p3), 0  }
   0xc   : > { %v2159_v0 = vld [vmem:[%s2516_s2] ss:$0 sm:$0xff]  ;;  %s2523_s16 = smov (!%p196_p4, %s1450_s16), 31  ;;  %s2525_s17 = smov (!%p208_p5, %s1453_s17), 15 }
   0xd   : > { %s1697_s20 = sshll.u32 %s2523_s16, 3  ;;  %s1698_s24 = sshll.u32 %s2525_s17, 3 }
   0xe   : > { %s2164_s23 = scalar_lea.vmem %s2514_s0, %s1697_s20  ;;  %s2169_s27 = scalar_lea.vmem %s2517_s3, %s1698_s24 }
   0xf LB: >> { %v2003_v1 = vld [vmem:[%s2515_s1 + $0x78] sm:$0xff]   ;;  %v2116_v2 = vmov 0.0   ;;  %v2005_v4 = vld [vmem:[%s2515_s1 + $0x70] sm:$0xff]   ;;  %vm2117_vm0 = vmmov 0   ;;  %v2007_v6 = vld [vmem:[%s2515_s1 + $0x68] sm:$0xff]   ;;  %s1699_s21 = sshll.u32 %s2114_s28, 3  ;;  %s2114_s28 = sphi %s2171_s28, %s225_s28  }
  0x10   : >> { %1789 = vmatprep.subr.bf16.mxu0 %v2116_v2  ;;  %1809 = vmatprep.subr.bf16.mxu1 %v2116_v2  ;;  %v2004_v3 = vld [vmem:[%s2515_s1 + $0x38] sm:$0xff]   ;;  %v2006_v5 = vld [vmem:[%s2515_s1 + $0x30] sm:$0xff]   ;;  %v2008_v7 = vld [vmem:[%s2515_s1 + $0x28] sm:$0xff]   ;;  %s2223_s29 = scalar_lea.vmem %s2164_s23, %s1699_s21  ;;  %s225_s28 = sadd.s32 1, %s2114_s28  }
  0x11   : >> { %1790 = vmatpush3.bf16.msra.mxu0 %v2003_v1  ;;  %1805 = vmatprep.mubr.msk.bf16.mxu0 %vm2117_vm0, %v2116_v2  ;;  %v2009_v8 = vld [vmem:[%s2515_s1 + $0x60] sm:$0xff]   ;;  %v2011_v10 = vld [vmem:[%s2515_s1 + $0x58] sm:$0xff]   ;;  %v2013_v12 = vld [vmem:[%s2515_s1 + $0x50] sm:$0xff]   ;;  %p222_p6 = scmp.ge.s32.totalorder %s225_s28, 8  }
  0x12   : >> { %1810 = vmatpush3.bf16.msra.mxu1 %v2004_v3  ;;  %1791 = vmatprep.subr.bf16.mxu0 %v2116_v2  ;;  %v2010_v9 = vld [vmem:[%s2515_s1 + $0x20] sm:$0xff]   ;;  %v2012_v11 = vld [vmem:[%s2515_s1 + $0x18] sm:$0xff]   ;;  %v2014_v13 = vld [vmem:[%s2515_s1 + $0x10] sm:$0xff]  }
  0x13   : >> { %1811 = vmatprep.subr.bf16.mxu1 %v2116_v2  ;;  %1825 = vmatprep.mubr.msk.bf16.mxu1 %vm2117_vm0, %v2116_v2  ;;  %v2015_v14 = vld [vmem:[%s2515_s1 + $0x48] sm:$0xff]   ;;  %v2017_v16 = vld [vmem:[%s2515_s1 + $0x40] sm:$0xff]   ;;  %v2021_v20 = vld [vmem:[%s2515_s1 + $0xb8] sm:$0xff]  }
  0x14   : >> { %v2016_v15 = vld [vmem:[%s2515_s1 + $0x8] sm:$0xff]   ;;  %v2018_v17 = vld [vmem:[%s2515_s1] sm:$0xff]   ;;  %v2022_v21 = vld [vmem:[%s2515_s1 + $0xf8] sm:$0xff]  }
  0x15   : >> { %1792 = vmatpush3.bf16.msra.mxu0 %v2005_v4  ;;  %v2019_v18 = vld [vmem:[%s2223_s29 + $0x8] sm:$0xff]   ;;  %v2020_v19 = vld [vmem:[%s2223_s29] sm:$0xff]   ;;  %v2023_v22 = vld [vmem:[%s2515_s1 + $0xb0] sm:$0xff]  }
  0x16   : >> { %1812 = vmatpush3.bf16.msra.mxu1 %v2006_v5  ;;  %1793 = vmatprep.subr.bf16.mxu0 %v2116_v2  ;;  %v2024_v23 = vld [vmem:[%s2515_s1 + $0xf0] sm:$0xff]   ;;  %v2025_v24 = vld [vmem:[%s2515_s1 + $0xa8] sm:$0xff]   ;;  %v2027_v26 = vld [vmem:[%s2515_s1 + $0xa0] sm:$0xff]  }
  0x17   : >> { %1813 = vmatprep.subr.bf16.mxu1 %v2116_v2  ;;  %v2026_v25 = vld [vmem:[%s2515_s1 + $0xe8] sm:$0xff]   ;;  %v2028_v27 = vld [vmem:[%s2515_s1 + $0xe0] sm:$0xff]   ;;  %v2029_v28 = vld [vmem:[%s2515_s1 + $0x98] sm:$0xff]  }
  0x18   : >> { %v2030_v29 = vld [vmem:[%s2515_s1 + $0xd8] sm:$0xff]   ;;  %v2031_v30 = vld [vmem:[%s2515_s1 + $0x90] sm:$0xff]   ;;  %v2033_v32 = vld [vmem:[%s2515_s1 + $0x88] sm:$0xff]  }
  0x19   : >> { %1794 = vmatpush3.bf16.msra.mxu0 %v2007_v6  ;;  %v2032_v31 = vld [vmem:[%s2515_s1 + $0xd0] sm:$0xff]   ;;  %v2034_v33 = vld [vmem:[%s2515_s1 + $0xc8] sm:$0xff]   ;;  %v2035_v34 = vld [vmem:[%s2515_s1 + $0x80] sm:$0xff]  }
  0x1a   : >> { %1814 = vmatpush3.bf16.msra.mxu1 %v2008_v7  ;;  %1795 = vmatprep.subr.bf16.mxu0 %v2116_v2  ;;  %v2036_v35 = vld [vmem:[%s2515_s1 + $0xc0] sm:$0xff]   ;;  %v2037_v36 = vld [vmem:[%s2223_s29 + $0x10] sm:$0xff]   ;;  %v2038_v37 = vld [vmem:[%s2515_s1 + $0x138] sm:$0xff]  }
  0x1b   : >> { %1815 = vmatprep.subr.bf16.mxu1 %v2116_v2  ;;  %v2039_v38 = vld [vmem:[%s2223_s29 + $0x18] sm:$0xff]   ;;  %v2041_v40 = vld [vmem:[%s2515_s1 + $0x130] sm:$0xff]   ;;  %v2043_v42 = vld [vmem:[%s2515_s1 + $0x128] sm:$0xff]  }
  0x1c   : >> { %v2040_v39 = vld [vmem:[%s2515_s1 + $0x178] sm:$0xff]   ;;  %v2042_v41 = vld [vmem:[%s2515_s1 + $0x170] sm:$0xff]   ;;  %v2044_v43 = vld [vmem:[%s2515_s1 + $0x168] sm:$0xff]  }
  0x1d   : >> { %1796 = vmatpush3.bf16.msra.mxu0 %v2009_v8  ;;  %v2045_v44 = vld [vmem:[%s2515_s1 + $0x120] sm:$0xff]   ;;  %v2047_v46 = vld [vmem:[%s2515_s1 + $0x118] sm:$0xff]   ;;  %v2049_v48 = vld [vmem:[%s2515_s1 + $0x110] sm:$0xff]  }
  0x1e   : >> { %1816 = vmatpush3.bf16.msra.mxu1 %v2010_v9  ;;  %1797 = vmatprep.subr.bf16.mxu0 %v2116_v2  ;;  %v2046_v45 = vld [vmem:[%s2515_s1 + $0x160] sm:$0xff]   ;;  %v2048_v47 = vld [vmem:[%s2515_s1 + $0x158] sm:$0xff]   ;;  %v2050_v49 = vld [vmem:[%s2515_s1 + $0x150] sm:$0xff]  }
  0x1f   : >> { %1817 = vmatprep.subr.bf16.mxu1 %v2116_v2  ;;  %v2051_v50 = vld [vmem:[%s2515_s1 + $0x108] sm:$0xff]   ;;  %v2053_v52 = vld [vmem:[%s2515_s1 + $0x100] sm:$0xff]   ;;  %v2056_v55 = vld [vmem:[%s2515_s1 + $0x1b8] sm:$0xff]  }
  0x20   : >> { %v2052_v51 = vld [vmem:[%s2515_s1 + $0x148] sm:$0xff]   ;;  %v2054_v53 = vld [vmem:[%s2515_s1 + $0x140] sm:$0xff]   ;;  %v2058_v57 = vld [vmem:[%s2515_s1 + $0x1f8] sm:$0xff]  }
  0x21   : >> { %1798 = vmatpush3.bf16.msra.mxu0 %v2011_v10  ;;  %v2055_v54 = vld [vmem:[%s2223_s29 + $0x20] sm:$0xff]   ;;  %v2057_v56 = vld [vmem:[%s2223_s29 + $0x28] sm:$0xff]   ;;  %v2059_v58 = vld [vmem:[%s2515_s1 + $0x1b0] sm:$0xff]  }
  0x22   : >> { %1818 = vmatpush3.bf16.msra.mxu1 %v2012_v11  ;;  %1799 = vmatprep.subr.bf16.mxu0 %v2116_v2  ;;  %v2060_v59 = vld [vmem:[%s2515_s1 + $0x1f0] sm:$0xff]   ;;  %v2061_v60 = vld [vmem:[%s2515_s1 + $0x1a8] sm:$0xff]   ;;  %v2063_v62 = vld [vmem:[%s2515_s1 + $0x1a0] sm:$0xff]  }
  0x23   : >> { %1819 = vmatprep.subr.bf16.mxu1 %v2116_v2  ;;  %v2062_v61 = vld [vmem:[%s2515_s1 + $0x1e8] sm:$0xff]   ;;  %v2064_v63 = vld [vmem:[%s2515_s1 + $0x1e0] sm:$0xff]   ;;  %v2065_v1 = vld [vmem:[%s2515_s1 + $0x198] sm:$0xff]  }
  0x24   : >> { %v2066_v3 = vld [vmem:[%s2515_s1 + $0x1d8] sm:$0xff]   ;;  %v2067_v4 = vld [vmem:[%s2515_s1 + $0x190] sm:$0xff]   ;;  %v2069_v6 = vld [vmem:[%s2515_s1 + $0x188] sm:$0xff]  }
  0x25   : >> { %1800 = vmatpush3.bf16.msra.mxu0 %v2013_v12  ;;  %v2068_v5 = vld [vmem:[%s2515_s1 + $0x1d0] sm:$0xff]   ;;  %v2070_v7 = vld [vmem:[%s2515_s1 + $0x1c8] sm:$0xff]   ;;  %v2071_v8 = vld [vmem:[%s2515_s1 + $0x180] sm:$0xff]  }
  0x26   : >> { %1820 = vmatpush3.bf16.msra.mxu1 %v2014_v13  ;;  %1801 = vmatprep.subr.bf16.mxu0 %v2116_v2  ;;  %v2072_v9 = vld [vmem:[%s2515_s1 + $0x1c0] sm:$0xff]   ;;  %v2073_v10 = vld [vmem:[%s2223_s29 + $0x30] sm:$0xff]   ;;  %v2074_v11 = vld [vmem:[%s2515_s1 + $0x238] sm:$0xff]  }
  0x27   : >> { %1821 = vmatprep.subr.bf16.mxu1 %v2116_v2  ;;  %v2075_v12 = vld [vmem:[%s2223_s29 + $0x38] sm:$0xff]   ;;  %v2076_v13 = vld [vmem:[%s2515_s1 + $0x230] sm:$0xff]  }
  0x29   : >> { %1802 = vmatpush3.bf16.msra.mxu0 %v2015_v14  ;;  %v2077_v14 = vld [vmem:[%s2515_s1 + $0x228] sm:$0xff]  }
  0x2a   : >> { %1822 = vmatpush3.bf16.msra.mxu1 %v2016_v15  ;;  %1803 = vmatprep.subr.bf16.mxu0 %v2116_v2  ;;  %v2078_v15 = vld [vmem:[%s2515_s1 + $0x220] sm:$0xff]  }
  0x2b   : >> { %1823 = vmatprep.subr.bf16.mxu1 %v2116_v2 }
  0x2d   : >> { %1804 = vmatpush3.bf16.msra.mxu0 %v2017_v16  ;;  %v2079_v16 = vld [vmem:[%s2515_s1 + $0x218] sm:$0xff]  }
  0x2e   : >> { %1824 = vmatpush3.bf16.msra.mxu1 %v2018_v17  ;;  %1829 = vmatprep.subr.bf16.mxu0 %v2116_v2  ;;  %v2080_v17 = vld [vmem:[%s2515_s1 + $0x210] sm:$0xff]  }
  0x2f   : >> { %1849 = vmatprep.subr.bf16.mxu1 %v2116_v2 }
  0x30   : >> { %1806 = vmatmul.mubr.bf16.vlgmr.msra.gmra.mxu0 %v2019_v18  ;;  %v2081_v18 = vld [vmem:[%s2515_s1 + $0x208] sm:$0xff]  }
  0x31   : >> { %1826 = vmatmul.mubr.bf16.vlgmr.msra.gmra.mxu1 %v2020_v19  ;;  %1830 = vmatpush3.bf16.msra.mxu0 %v2021_v20  ;;  %v2082_v19 = vld [vmem:[%s2515_s1 + $0x200] sm:$0xff]  }
  0x32   : >> { %1850 = vmatpush3.bf16.msra.mxu1 %v2022_v21  ;;  %1831 = vmatprep.subr.bf16.mxu0 %v2116_v2  ;;  %v2083_v20 = vld [vmem:[%s2223_s29 + $0x40] sm:$0xff]   ;;  %s1319_s29 = scalar_lea.vmem %s2169_s27, %s1699_s21 }
  0x33   : >> { %1851 = vmatprep.subr.bf16.mxu1 %v2116_v2  ;;  %1845 = vmatprep.mubr.msk.bf16.mxu0 %vm2117_vm0, %v2116_v2 }
  0x34   : >> { %1865 = vmatprep.mubr.msk.bf16.mxu1 %vm2117_vm0, %v2116_v2 }
  0x35   : >> { %1832 = vmatpush3.bf16.msra.mxu0 %v2023_v22 }
  0x36   : >> { %1852 = vmatpush3.bf16.msra.mxu1 %v2024_v23  ;;  %1833 = vmatprep.subr.bf16.mxu0 %v2116_v2 }
  0x37   : >> { %1853 = vmatprep.subr.bf16.mxu1 %v2116_v2 }
  0x39   : >> { %1834 = vmatpush3.bf16.msra.mxu0 %v2025_v24 }
  0x3a   : >> { %1854 = vmatpush3.bf16.msra.mxu1 %v2026_v25  ;;  %1835 = vmatprep.subr.bf16.mxu0 %v2116_v2 }
  0x3b   : >> { %1855 = vmatprep.subr.bf16.mxu1 %v2116_v2 }
  0x3d   : >> { %1836 = vmatpush3.bf16.msra.mxu0 %v2027_v26 }
  0x3e   : >> { %1856 = vmatpush3.bf16.msra.mxu1 %v2028_v27  ;;  %1837 = vmatprep.subr.bf16.mxu0 %v2116_v2 }
  0x3f   : >> { %1857 = vmatprep.subr.bf16.mxu1 %v2116_v2 }
  0x41   : >> { %1838 = vmatpush3.bf16.msra.mxu0 %v2029_v28 }
  0x42   : >> { %1858 = vmatpush3.bf16.msra.mxu1 %v2030_v29  ;;  %1839 = vmatprep.subr.bf16.mxu0 %v2116_v2 }
  0x43   : >> { %1859 = vmatprep.subr.bf16.mxu1 %v2116_v2 }
  0x45   : >> { %1840 = vmatpush3.bf16.msra.mxu0 %v2031_v30 }
  0x46   : >> { %1860 = vmatpush3.bf16.msra.mxu1 %v2032_v31  ;;  %1841 = vmatprep.subr.bf16.mxu0 %v2116_v2 }
  0x47   : >> { %1861 = vmatprep.subr.bf16.mxu1 %v2116_v2 }
  0x49   : >> { %1842 = vmatpush3.bf16.msra.mxu0 %v2033_v32 }
  0x4a   : >> { %1862 = vmatpush3.bf16.msra.mxu1 %v2034_v33  ;;  %1843 = vmatprep.subr.bf16.mxu0 %v2116_v2 }
  0x4b   : >> { %1863 = vmatprep.subr.bf16.mxu1 %v2116_v2 }
  0x4d   : >> { %1844 = vmatpush3.bf16.msra.mxu0 %v2035_v34 }
  0x4e   : >> { %1864 = vmatpush3.bf16.msra.mxu1 %v2036_v35  ;;  %1869 = vmatprep.subr.bf16.mxu0 %v2116_v2 }
  0x4f   : >> { %1889 = vmatprep.subr.bf16.mxu1 %v2116_v2 }
  0x50   : >> { %1846 = vmatmul.mubr.bf16.vlgmr.msra.gmra.mxu0 %v2037_v36 }
  0x51   : >> { %1870 = vmatpush3.bf16.msra.mxu0 %v2038_v37  ;;  %1866 = vmatmul.mubr.bf16.vlgmr.msra.gmra.mxu1 %v2039_v38 }
  0x52   : >> { %1890 = vmatpush3.bf16.msra.mxu1 %v2040_v39  ;;  %1871 = vmatprep.subr.bf16.mxu0 %v2116_v2 }
  0x53   : >> { %1891 = vmatprep.subr.bf16.mxu1 %v2116_v2  ;;  %1885 = vmatprep.mubr.msk.bf16.mxu0 %vm2117_vm0, %v2116_v2 }
  0x54   : >> { %1905 = vmatprep.mubr.msk.bf16.mxu1 %vm2117_vm0, %v2116_v2 }
  0x55   : >> { %1872 = vmatpush3.bf16.msra.mxu0 %v2041_v40 }
  0x56   : >> { %1892 = vmatpush3.bf16.msra.mxu1 %v2042_v41  ;;  %1873 = vmatprep.subr.bf16.mxu0 %v2116_v2 }
  0x57   : >> { %1893 = vmatprep.subr.bf16.mxu1 %v2116_v2 }
  0x59   : >> { %1874 = vmatpush3.bf16.msra.mxu0 %v2043_v42 }
  0x5a   : >> { %1894 = vmatpush3.bf16.msra.mxu1 %v2044_v43  ;;  %1875 = vmatprep.subr.bf16.mxu0 %v2116_v2 }
  0x5b   : >> { %1895 = vmatprep.subr.bf16.mxu1 %v2116_v2 }
  0x5d   : >> { %1876 = vmatpush3.bf16.msra.mxu0 %v2045_v44 }
  0x5e   : >> { %1896 = vmatpush3.bf16.msra.mxu1 %v2046_v45  ;;  %1877 = vmatprep.subr.bf16.mxu0 %v2116_v2 }
  0x5f   : >> { %1897 = vmatprep.subr.bf16.mxu1 %v2116_v2 }
  0x61   : >> { %1878 = vmatpush3.bf16.msra.mxu0 %v2047_v46 }
  0x62   : >> { %1898 = vmatpush3.bf16.msra.mxu1 %v2048_v47  ;;  %1879 = vmatprep.subr.bf16.mxu0 %v2116_v2 }
  0x63   : >> { %1899 = vmatprep.subr.bf16.mxu1 %v2116_v2 }
  0x65   : >> { %1880 = vmatpush3.bf16.msra.mxu0 %v2049_v48 }
  0x66   : >> { %1900 = vmatpush3.bf16.msra.mxu1 %v2050_v49  ;;  %1881 = vmatprep.subr.bf16.mxu0 %v2116_v2 }
  0x67   : >> { %1901 = vmatprep.subr.bf16.mxu1 %v2116_v2 }
  0x69   : >> { %1882 = vmatpush3.bf16.msra.mxu0 %v2051_v50 }
  0x6a   : >> { %1902 = vmatpush3.bf16.msra.mxu1 %v2052_v51  ;;  %1883 = vmatprep.subr.bf16.mxu0 %v2116_v2 }
  0x6b   : >> { %1903 = vmatprep.subr.bf16.mxu1 %v2116_v2 }
  0x6d   : >> { %1884 = vmatpush3.bf16.msra.mxu0 %v2053_v52 }
  0x6e   : >> { %1904 = vmatpush3.bf16.msra.mxu1 %v2054_v53  ;;  %1909 = vmatprep.subr.bf16.mxu0 %v2116_v2 }
  0x6f   : >> { %1929 = vmatprep.subr.bf16.mxu1 %v2116_v2 }
  0x70   : >> { %1886 = vmatmul.mubr.bf16.vlgmr.msra.gmra.mxu0 %v2055_v54 }
  0x71   : >> { %1910 = vmatpush3.bf16.msra.mxu0 %v2056_v55  ;;  %1906 = vmatmul.mubr.bf16.vlgmr.msra.gmra.mxu1 %v2057_v56 }
  0x72   : >> { %1930 = vmatpush3.bf16.msra.mxu1 %v2058_v57  ;;  %1911 = vmatprep.subr.bf16.mxu0 %v2116_v2 }
  0x73   : >> { %1931 = vmatprep.subr.bf16.mxu1 %v2116_v2  ;;  %1925 = vmatprep.mubr.msk.bf16.mxu0 %vm2117_vm0, %v2116_v2 }
  0x74   : >> { %1945 = vmatprep.mubr.msk.bf16.mxu1 %vm2117_vm0, %v2116_v2 }
  0x75   : >> { %1912 = vmatpush3.bf16.msra.mxu0 %v2059_v58 }
  0x76   : >> { %1932 = vmatpush3.bf16.msra.mxu1 %v2060_v59  ;;  %1913 = vmatprep.subr.bf16.mxu0 %v2116_v2 }
  0x77   : >> { %1933 = vmatprep.subr.bf16.mxu1 %v2116_v2 }
  0x79   : >> { %1914 = vmatpush3.bf16.msra.mxu0 %v2061_v60 }
  0x7a   : >> { %1934 = vmatpush3.bf16.msra.mxu1 %v2062_v61  ;;  %1915 = vmatprep.subr.bf16.mxu0 %v2116_v2 }
  0x7b   : >> { %1935 = vmatprep.subr.bf16.mxu1 %v2116_v2 }
  0x7d   : >> { %1916 = vmatpush3.bf16.msra.mxu0 %v2063_v62 }
  0x7e   : >> { %1936 = vmatpush3.bf16.msra.mxu1 %v2064_v63  ;;  %1917 = vmatprep.subr.bf16.mxu0 %v2116_v2 }
  0x7f   : >> { %1937 = vmatprep.subr.bf16.mxu1 %v2116_v2 }
  0x81   : >> { %1918 = vmatpush3.bf16.msra.mxu0 %v2065_v1 }
  0x82   : >> { %1938 = vmatpush3.bf16.msra.mxu1 %v2066_v3  ;;  %1919 = vmatprep.subr.bf16.mxu0 %v2116_v2 }
  0x83   : >> { %1939 = vmatprep.subr.bf16.mxu1 %v2116_v2 }
  0x85   : >> { %1920 = vmatpush3.bf16.msra.mxu0 %v2067_v4 }
  0x86   : >> { %1940 = vmatpush3.bf16.msra.mxu1 %v2068_v5  ;;  %1921 = vmatprep.subr.bf16.mxu0 %v2116_v2 }
  0x87   : >> { %1941 = vmatprep.subr.bf16.mxu1 %v2116_v2 }
  0x89   : >> { %1922 = vmatpush3.bf16.msra.mxu0 %v2069_v6 }
  0x8a   : >> { %1942 = vmatpush3.bf16.msra.mxu1 %v2070_v7  ;;  %1923 = vmatprep.subr.bf16.mxu0 %v2116_v2 }
  0x8b   : >> { %1943 = vmatprep.subr.bf16.mxu1 %v2116_v2 }
  0x8d   : >> { %1924 = vmatpush3.bf16.msra.mxu0 %v2071_v8 }
  0x8e   : >> { %1944 = vmatpush3.bf16.msra.mxu1 %v2072_v9  ;;  %1949 = vmatprep.subr.bf16.mxu0 %v2116_v2 }
  0x90   : >> { %1926 = vmatmul.mubr.bf16.vlgmr.msra.gmra.mxu0 %v2073_v10 }
  0x91   : >> { %1950 = vmatpush3.bf16.msra.mxu0 %v2074_v11  ;;  %1946 = vmatmul.mubr.bf16.vlgmr.msra.gmra.mxu1 %v2075_v12 }
  0x92   : >> { %1951 = vmatprep.subr.bf16.mxu0 %v2116_v2  ;;  %1965 = vmatprep.mubr.msk.bf16.mxu0 %vm2117_vm0, %v2116_v2 }
  0x95   : >> { %1952 = vmatpush3.bf16.msra.mxu0 %v2076_v13 }
  0x96   : >> { %1953 = vmatprep.subr.bf16.mxu0 %v2116_v2 }
  0x99   : >> { %1954 = vmatpush3.bf16.msra.mxu0 %v2077_v14 }
  0x9a   : >> { %1955 = vmatprep.subr.bf16.mxu0 %v2116_v2 }
  0x9d   : >> { %1956 = vmatpush3.bf16.msra.mxu0 %v2078_v15 }
  0x9e   : >> { %1957 = vmatprep.subr.bf16.mxu0 %v2116_v2 }
  0xa1   : >> { %1958 = vmatpush3.bf16.msra.mxu0 %v2079_v16 }
  0xa2   : >> { %1959 = vmatprep.subr.bf16.mxu0 %v2116_v2 }
  0xa5   : >> { %1960 = vmatpush3.bf16.msra.mxu0 %v2080_v17 }
  0xa6   : >> { %1961 = vmatprep.subr.bf16.mxu0 %v2116_v2 }
  0xa9   : >> { %1962 = vmatpush3.bf16.msra.mxu0 %v2081_v18 }
  0xaa   : >> { %1963 = vmatprep.subr.bf16.mxu0 %v2116_v2 }
  0xad   : >> { %1964 = vmatpush3.bf16.msra.mxu0 %v2082_v19 }
  0xb0   : >> { %1966 = vmatmul.mubr.bf16.vlgmr.msra.gmra.mxu0 %v2083_v20 }
  0xf0   : >> { %v358_v21 = vpop.f32.mrf.mxu0 }
  0xf1   : >> { %v453_v22 = vpop.f32.mrf.mxu1 }
  0xf2   : >> { %v454_v23 = vadd.f32 %v453_v22, %v358_v21  ;;  %v1807_v24 = vpop.f32.mrf.mxu0 }
  0xf3   : >> { %v1827_v25 = vpop.f32.mrf.mxu1 }
  0xf4   : >> { %v361_v26 = vpop.f32.mrf.mxu0 }
  0xf5   : >> { %v456_v27 = vpop.f32.mrf.mxu1 }
  0xf6   : >> { %v457_v28 = vadd.f32 %v456_v27, %v361_v26  ;;  %v1808_v29 = vpop.f32.mrf.mxu0 }
  0xf7   : >> { %v1828_v30 = vpop.f32.mrf.mxu1 }
 0x110   : >> { %v571_v31 = vpop.f32.mrf.mxu0 }
 0x111   : >> { %v578_v32 = vadd.f32 %v571_v31, %v454_v23  ;;  %v691_v33 = vpop.f32.mrf.mxu1 }
 0x112   : >> { %v1847_v34 = vpop.f32.mrf.mxu0 }
 0x113   : >> { %v698_v35 = vadd.f32 %v691_v33, %v578_v32  ;;  %v1867_v36 = vpop.f32.mrf.mxu1 }
 0x114   : >> { %v574_v2 = vpop.f32.mrf.mxu0 }
 0x115   : >> { %v579_v37 = vadd.f32 %v574_v2, %v457_v28  ;;  %v694_v38 = vpop.f32.mrf.mxu1 }
 0x116   : >> { %v1848_v39 = vpop.f32.mrf.mxu0 }
 0x117   : >> { %v699_v40 = vadd.f32 %v694_v38, %v579_v37  ;;  %v1868_v41 = vpop.f32.mrf.mxu1 }
 0x130   : >> { %v811_v42 = vpop.f32.mrf.mxu0 }
 0x131   : >> { %v931_v43 = vpop.f32.mrf.mxu1  ;;  %v818_v58 = vadd.f32 %v811_v42, %v698_v35 }
 0x132   : >> { %v1887_v44 = vpop.f32.mrf.mxu0 }
 0x133   : >> { %v1907_v45 = vpop.f32.mrf.mxu1  ;;  %v938_v59 = vadd.f32 %v931_v43, %v818_v58 }
 0x134   : >> { %v814_v46 = vpop.f32.mrf.mxu0 }
 0x135   : >> { %v934_v47 = vpop.f32.mrf.mxu1  ;;  %v819_v60 = vadd.f32 %v814_v46, %v699_v40 }
 0x136   : >> { %v1888_v48 = vpop.f32.mrf.mxu0 }
 0x137   : >> { %v1908_v49 = vpop.f32.mrf.mxu1  ;;  %v939_v62 = vadd.f32 %v934_v47, %v819_v60 }
 0x150   : >> { %v1051_v50 = vpop.f32.mrf.mxu0 }
 0x151   : >> { %v1171_v51 = vpop.f32.mrf.mxu1  ;;  %v1058_v61 = vadd.f32 %v1051_v50, %v938_v59 }
 0x152   : >> { %v1927_v52 = vpop.f32.mrf.mxu0 }
 0x153   : >> { %v1947_v53 = vpop.f32.mrf.mxu1  ;;  %v1178_v63 = vadd.f32 %v1171_v51, %v1058_v61 }
 0x154   : >> { %v1054_v54 = vpop.f32.mrf.mxu0 }
 0x155   : >> { %v1174_v55 = vpop.f32.mrf.mxu1  ;;  %v1059_v1 = vadd.f32 %v1054_v54, %v939_v62 }
 0x156   : >> { %v1928_v56 = vpop.f32.mrf.mxu0 }
 0x157   : >> { %v1948_v57 = vpop.f32.mrf.mxu1  ;;  %v1179_v6 = vadd.f32 %v1174_v55, %v1059_v1 }
 0x170   : >> { %v1291_v3 = vpop.f32.mrf.mxu0 }
 0x171   : >> { %v1298_v4 = vadd.f32 %v1291_v3, %v1178_v63 }
 0x172   : >> { %v1967_v5 = vpop.f32.mrf.mxu0 }
 0x173   : >> { %v1306_v8 = vadd.f32 %v2159_v0, %v1298_v4 }
 0x174   : >> { %v1294_v7 = vpop.f32.mrf.mxu0 }
 0x175   : >> { %v1299_v9 = vadd.f32 %v1294_v7, %v1179_v6  ;;  %v1308_v12 = vmax.f32 %v1306_v8, 0.0 }
 0x176   : >> { %v1968_v10 = vpop.f32.mrf.mxu0 }
 0x177   : >> { %v1307_v11 = vadd.f32 %v2159_v0, %v1299_v9 }
 0x179   : >> { %v1309_v13 = vmax.f32 %v1307_v11, 0.0  ;;  %224 = sbr.rel (!%p222_p6) target bundleno = 15 (0xf), region = 87 }
 0x17b   : >> { %v1706_v14 = vpack.c.bf16 %v1309_v13, %v1308_v12 }
 0x17d   : >> { %1707 = vst [vmem:[%s1319_s29] sm:$0xff] %v1706_v14  }
 0x17e PF: > { %s13_s14 = sadd.s32 1, %s2110_s14   ;;  %s2518_s12 = smov %s2106_s13 }
 0x17f   : > { %p10_p7 = scmp.ge.s32.totalorder %s13_s14, 4   ;;  %s2519_s13 = smov %s2521_s15 }
 0x181   :  { %12 = sbr.rel (!%p10_p7) target bundleno = 2 (0x2), region = 98 }

// kernel: rfpose_forward.24
= control target key start
LH: loop header
LB: loop body
LE: loop exit
PB: predicated region body
PF: predicated region fallthrough
CT: control target
= control target key end

     0   :  { %s2988_s12 = smov 0   ;;  %s2990_s13 = smov 0   ;;  %s3496_s0 = inlined_call_operand.vmem [shape: bf16[28,16,256], index: 0, kind: input, shape index: {}]   ;;  %s3497_s1 = inlined_call_operand.vmem [shape: bf16[9,256,128], index: 1, kind: input, shape index: {}]   ;;  %s3498_s2 = inlined_call_operand.vmem [shape: f32[1,128], index: 2, kind: input, shape index: {}]   ;;  %s3499_s3 = inlined_call_operand.vmem [shape: bf16[12,16,128], index: 3, kind: output, shape index: {}]  }
   0x1   :  { %s2992_s14 = smov 0  }
   0x2 LB: > { %s25_s15 = sadd.s32 1, %s2958_s13  ;;  %p2068_p0 = scmp.ge.s32.totalorder %s2962_s14, 1  ;;  %s2962_s14 = sphi %s2992_s14, %s13_s14   ;;  %s2958_s13 = sphi %s2990_s13, %s3501_s13   ;;  %s2954_s12 = sphi %s2988_s12, %s3500_s12  }
   0x3   : > { %p27_p1 = scmp.ge.s32.totalorder %s25_s15, 2  ;;  %p161_p2 = scmp.lt.s32.totalorder %s2962_s14, 3 }
   0x5   : > { %s3503_s15 = smov (%p27_p1, %s25_s15), 0  ;;  %p162_p3 = pnand %p2068_p0, %p161_p2 }
   0x6   : > { %s196_s16 = smul.u32 (!%p162_p3), 14, %s2954_s12  ;;  %s3021_s28 = smov (!%p162_p3), 0  }
   0x7   : > { %165 = sbr.rel (%p162_p3) target bundleno = 387 (0x183), region = 32 }
   0x8   : > { %s209_s19 = smul.u32 (!%p162_p3), 6, %s2954_s12  ;;  %p198_p4 = scmp.lt.s32.totalorder (!%p162_p3), %s196_s16, 27 }
   0xa   : > { %p211_p5 = scmp.lt.s32.totalorder (!%p162_p3), %s209_s19, 11 }
   0xc   : > { %v3009_v0 = vld [vmem:[%s3498_s2] ss:$0 sm:$0xff]  ;;  %s3505_s16 = smov (!%p198_p4, %s196_s16), 27  ;;  %s3507_s19 = smov (!%p211_p5, %s209_s19), 11 }
   0xd   : > { %s2524_s20 = sshll.u32 %s3505_s16, 4  ;;  %s2525_s24 = sshll.u32 %s3507_s19, 3 }
   0xe   : > { %s3014_s23 = scalar_lea.vmem %s3496_s0, %s2524_s20  ;;  %s3019_s27 = scalar_lea.vmem %s3499_s3, %s2525_s24 }
   0xf LB: >> { %v2765_v1 = vld [vmem:[%s3497_s1 + $0xf8] sm:$0xff]   ;;  %v2769_v5 = vld [vmem:[%s3497_s1 + $0xf0] sm:$0xff]   ;;  %v2773_v9 = vld [vmem:[%s3497_s1 + $0xe8] sm:$0xff]   ;;  %s2526_s17 = sshll.u32 %s2966_s28, 4  ;;  %s2966_s28 = sphi %s3021_s28, %s228_s28  }
  0x10   : >> { %v2766_v2 = vld [vmem:[%s3497_s1 + $0x78] sm:$0xff]   ;;  %2535 = vmatprep.subr.bf16.mxu0 %v2765_v1  ;;  %v2770_v6 = vld [vmem:[%s3497_s1 + $0x70] sm:$0xff]   ;;  %v2774_v10 = vld [vmem:[%s3497_s1 + $0x68] sm:$0xff]   ;;  %s3118_s25 = scalar_lea.vmem %s3014_s23, %s2526_s17 }
  0x11   : >> { %v2767_v3 = vld [vmem:[%s3497_s1 + $0xb8] sm:$0xff]   ;;  %2557 = vmatprep.subr.bf16.mxu1 %v2766_v2  ;;  %v2771_v7 = vld [vmem:[%s3497_s1 + $0xb0] sm:$0xff]   ;;  %v2775_v11 = vld [vmem:[%s3497_s1 + $0xa8] sm:$0xff]  }
  0x12   : >> { %v2768_v4 = vld [vmem:[%s3497_s1 + $0x38] sm:$0xff]   ;;  %2536 = vmatpush3.bf16.msra.mxu0 %v2767_v3  ;;  %v2772_v8 = vld [vmem:[%s3497_s1 + $0x30] sm:$0xff]   ;;  %v2776_v12 = vld [vmem:[%s3497_s1 + $0x28] sm:$0xff]  }
  0x13   : >> { %2558 = vmatpush3.bf16.msra.mxu1 %v2768_v4  ;;  %2537 = vmatprep.subr.bf16.mxu0 %v2769_v5  ;;  %v2777_v13 = vld [vmem:[%s3497_s1 + $0xe0] sm:$0xff]   ;;  %v2781_v17 = vld [vmem:[%s3497_s1 + $0xd8] sm:$0xff]   ;;  %v2785_v21 = vld [vmem:[%s3497_s1 + $0xd0] sm:$0xff]  }
  0x14   : >> { %2559 = vmatprep.subr.bf16.mxu1 %v2770_v6  ;;  %v2778_v14 = vld [vmem:[%s3497_s1 + $0x60] sm:$0xff]   ;;  %v2782_v18 = vld [vmem:[%s3497_s1 + $0x58] sm:$0xff]   ;;  %v2786_v22 = vld [vmem:[%s3497_s1 + $0x50] sm:$0xff]  }
  0x15   : >> { %v2779_v15 = vld [vmem:[%s3497_s1 + $0xa0] sm:$0xff]   ;;  %v2783_v19 = vld [vmem:[%s3497_s1 + $0x98] sm:$0xff]   ;;  %v2787_v23 = vld [vmem:[%s3497_s1 + $0x90] sm:$0xff]  }
  0x16   : >> { %2538 = vmatpush3.bf16.msra.mxu0 %v2771_v7  ;;  %v2780_v16 = vld [vmem:[%s3497_s1 + $0x20] sm:$0xff]   ;;  %v2784_v20 = vld [vmem:[%s3497_s1 + $0x18] sm:$0xff]   ;;  %v2788_v24 = vld [vmem:[%s3497_s1 + $0x10] sm:$0xff]  }
  0x17   : >> { %2560 = vmatpush3.bf16.msra.mxu1 %v2772_v8  ;;  %2539 = vmatprep.subr.bf16.mxu0 %v2773_v9  ;;  %v2789_v25 = vld [vmem:[%s3497_s1 + $0xc8] sm:$0xff]   ;;  %v2793_v29 = vld [vmem:[%s3497_s1 + $0xc0] sm:$0xff]   ;;  %v2797_v33 = vld [vmem:[%s3118_s25 + $0x10] ss:$8 sps:$4 sm:$0xff]  }
  0x18   : >> { %2561 = vmatprep.subr.bf16.mxu1 %v2774_v10  ;;  %v2790_v26 = vld [vmem:[%s3497_s1 + $0x48] sm:$0xff]   ;;  %v2794_v30 = vld [vmem:[%s3497_s1 + $0x40] sm:$0xff]   ;;  %v2799_v34 = vld [vmem:[%s3118_s25 + $0x14] ss:$8 sps:$4 sm:$0xff]  }
  0x19   : >> { %v2791_v27 = vld [vmem:[%s3497_s1 + $0x88] sm:$0xff]   ;;  %v2795_v31 = vld [vmem:[%s3497_s1 + $0x80] sm:$0xff]   ;;  %443 = vmatprep.mubr.bf16.mxu0 %v2799_v34  ;;  %v2803_v37 = vld [vmem:[%s3497_s1 + $0x178] sm:$0xff]  }
  0x1a   : >> { %2540 = vmatpush3.bf16.msra.mxu0 %v2775_v11  ;;  %v2792_v28 = vld [vmem:[%s3497_s1 + $0x8] sm:$0xff]   ;;  %v2796_v32 = vld [vmem:[%s3497_s1] sm:$0xff]   ;;  %v2804_v38 = vld [vmem:[%s3497_s1 + $0x138] sm:$0xff]  }
  0x1b   : >> { %2562 = vmatpush3.bf16.msra.mxu1 %v2776_v12  ;;  %2541 = vmatprep.subr.bf16.mxu0 %v2777_v13  ;;  %v2800_v35 = vld [vmem:[%s3118_s25] ss:$8 sps:$4 sm:$0xff]   ;;  %v2802_v36 = vld [vmem:[%s3118_s25 + $0x4] ss:$8 sps:$4 sm:$0xff]   ;;  %v2805_v39 = vld [vmem:[%s3497_s1 + $0x1f8] sm:$0xff]  }
  0x1c   : >> { %2563 = vmatprep.subr.bf16.mxu1 %v2778_v14  ;;  %590 = vmatprep.mubr.bf16.mxu1 %v2802_v36  ;;  %v2806_v40 = vld [vmem:[%s3497_s1 + $0x1b8] sm:$0xff]   ;;  %v2807_v41 = vld [vmem:[%s3497_s1 + $0x170] sm:$0xff]   ;;  %v2811_v45 = vld [vmem:[%s3497_s1 + $0x168] sm:$0xff]  }
  0x1d   : >> { %v2808_v42 = vld [vmem:[%s3497_s1 + $0x130] sm:$0xff]   ;;  %v2812_v46 = vld [vmem:[%s3497_s1 + $0x128] sm:$0xff]   ;;  %v2815_v49 = vld [vmem:[%s3497_s1 + $0x160] sm:$0xff]  }
  0x1e   : >> { %2542 = vmatpush3.bf16.msra.mxu0 %v2779_v15  ;;  %v2809_v43 = vld [vmem:[%s3497_s1 + $0x1f0] sm:$0xff]   ;;  %v2813_v47 = vld [vmem:[%s3497_s1 + $0x1e8] sm:$0xff]   ;;  %v2816_v50 = vld [vmem:[%s3497_s1 + $0x120] sm:$0xff]  }
  0x1f   : >> { %2564 = vmatpush3.bf16.msra.mxu1 %v2780_v16  ;;  %2543 = vmatprep.subr.bf16.mxu0 %v2781_v17  ;;  %v2810_v44 = vld [vmem:[%s3497_s1 + $0x1b0] sm:$0xff]   ;;  %v2814_v48 = vld [vmem:[%s3497_s1 + $0x1a8] sm:$0xff]   ;;  %v2817_v51 = vld [vmem:[%s3497_s1 + $0x1e0] sm:$0xff]  }
  0x20   : >> { %2565 = vmatprep.subr.bf16.mxu1 %v2782_v18  ;;  %v2818_v52 = vld [vmem:[%s3497_s1 + $0x1a0] sm:$0xff]   ;;  %v2819_v53 = vld [vmem:[%s3497_s1 + $0x158] sm:$0xff]   ;;  %v2823_v57 = vld [vmem:[%s3497_s1 + $0x150] sm:$0xff]  }
  0x21   : >> { %v2820_v54 = vld [vmem:[%s3497_s1 + $0x118] sm:$0xff]   ;;  %v2824_v58 = vld [vmem:[%s3497_s1 + $0x110] sm:$0xff]   ;;  %v2827_v61 = vld [vmem:[%s3497_s1 + $0x148] sm:$0xff]  }
  0x22   : >> { %2544 = vmatpush3.bf16.msra.mxu0 %v2783_v19  ;;  %v2821_v55 = vld [vmem:[%s3497_s1 + $0x1d8] sm:$0xff]   ;;  %v2825_v59 = vld [vmem:[%s3497_s1 + $0x1d0] sm:$0xff]   ;;  %v2828_v62 = vld [vmem:[%s3497_s1 + $0x108] sm:$0xff]  }
  0x23   : >> { %2566 = vmatpush3.bf16.msra.mxu1 %v2784_v20  ;;  %2545 = vmatprep.subr.bf16.mxu0 %v2785_v21  ;;  %v2822_v56 = vld [vmem:[%s3497_s1 + $0x198] sm:$0xff]   ;;  %v2826_v60 = vld [vmem:[%s3497_s1 + $0x190] sm:$0xff]   ;;  %v2829_v63 = vld [vmem:[%s3497_s1 + $0x1c8] sm:$0xff]  }
  0x24   : >> { %2567 = vmatprep.subr.bf16.mxu1 %v2786_v22  ;;  %v2830_v1 = vld [vmem:[%s3497_s1 + $0x188] sm:$0xff]   ;;  %v2831_v2 = vld [vmem:[%s3497_s1 + $0x140] sm:$0xff]   ;;  %v2838_v8 = vld [vmem:[%s3497_s1 + $0x278] sm:$0xff]  }
  0x25   : >> { %v2832_v3 = vld [vmem:[%s3497_s1 + $0x100] sm:$0xff]   ;;  %v2839_v9 = vld [vmem:[%s3118_s25 + $0x30] ss:$8 sps:$4 sm:$0xff]   ;;  %v2841_v10 = vld [vmem:[%s3118_s25 + $0x34] ss:$8 sps:$4 sm:$0xff]  }
  0x26   : >> { %2546 = vmatpush3.bf16.msra.mxu0 %v2787_v23  ;;  %v2833_v4 = vld [vmem:[%s3497_s1 + $0x1c0] sm:$0xff]   ;;  %v2842_v11 = vld [vmem:[%s3497_s1 + $0x238] sm:$0xff]   ;;  %v2845_v14 = vld [vmem:[%s3497_s1 + $0x270] sm:$0xff]  }
  0x27   : >> { %2568 = vmatpush3.bf16.msra.mxu1 %v2788_v24  ;;  %2547 = vmatprep.subr.bf16.mxu0 %v2789_v25  ;;  %v2834_v5 = vld [vmem:[%s3118_s25 + $0x20] ss:$8 sps:$4 sm:$0xff]   ;;  %v2836_v6 = vld [vmem:[%s3118_s25 + $0x24] ss:$8 sps:$4 sm:$0xff]   ;;  %v2843_v12 = vld [vmem:[%s3497_s1 + $0x2f8] sm:$0xff]  }
  0x28   : >> { %2569 = vmatprep.subr.bf16.mxu1 %v2790_v26  ;;  %v2837_v7 = vld [vmem:[%s3497_s1 + $0x180] sm:$0xff]   ;;  %v2844_v13 = vld [vmem:[%s3497_s1 + $0x2b8] sm:$0xff]   ;;  %v2846_v15 = vld [vmem:[%s3497_s1 + $0x230] sm:$0xff]  }
  0x29   : >> { %v2847_v16 = vld [vmem:[%s3497_s1 + $0x2f0] sm:$0xff]   ;;  %v2849_v18 = vld [vmem:[%s3497_s1 + $0x268] sm:$0xff]   ;;  %v2853_v22 = vld [vmem:[%s3497_s1 + $0x260] sm:$0xff]  }
  0x2a   : >> { %2548 = vmatpush3.bf16.msra.mxu0 %v2791_v27  ;;  %v2848_v17 = vld [vmem:[%s3497_s1 + $0x2b0] sm:$0xff]   ;;  %v2850_v19 = vld [vmem:[%s3497_s1 + $0x228] sm:$0xff]   ;;  %v2854_v23 = vld [vmem:[%s3497_s1 + $0x220] sm:$0xff]  }
  0x2b   : >> { %2570 = vmatpush3.bf16.msra.mxu1 %v2792_v28  ;;  %2549 = vmatprep.subr.bf16.mxu0 %v2793_v29  ;;  %v2851_v20 = vld [vmem:[%s3497_s1 + $0x2e8] sm:$0xff]   ;;  %v2855_v24 = vld [vmem:[%s3497_s1 + $0x2e0] sm:$0xff]   ;;  %v2857_v26 = vld [vmem:[%s3497_s1 + $0x258] sm:$0xff]  }
  0x2c   : >> { %2571 = vmatprep.subr.bf16.mxu1 %v2794_v30  ;;  %v2852_v21 = vld [vmem:[%s3497_s1 + $0x2a8] sm:$0xff]   ;;  %v2856_v25 = vld [vmem:[%s3497_s1 + $0x2a0] sm:$0xff]   ;;  %v2858_v27 = vld [vmem:[%s3497_s1 + $0x218] sm:$0xff]  }
  0x2d   : >> { %v2859_v28 = vld [vmem:[%s3497_s1 + $0x2d8] sm:$0xff]   ;;  %v2861_v30 = vld [vmem:[%s3497_s1 + $0x250] sm:$0xff]   ;;  %v2865_v34 = vld [vmem:[%s3497_s1 + $0x248] sm:$0xff]  }
  0x2e   : >> { %2550 = vmatpush3.bf16.msra.mxu0 %v2795_v31  ;;  %v2860_v29 = vld [vmem:[%s3497_s1 + $0x298] sm:$0xff]   ;;  %v2862_v31 = vld [vmem:[%s3497_s1 + $0x210] sm:$0xff]   ;;  %v2867_v36 = vld [vmem:[%s3497_s1 + $0x2c8] sm:$0xff]  }
  0x2f   : >> { %2572 = vmatpush3.bf16.msra.mxu1 %v2796_v32  ;;  %2579 = vmatprep.subr.bf16.mxu0 %v2803_v37  ;;  %v2863_v32 = vld [vmem:[%s3497_s1 + $0x2d0] sm:$0xff]   ;;  %v2868_v37 = vld [vmem:[%s3497_s1 + $0x288] sm:$0xff]  }
  0x30   : >> { %2601 = vmatprep.subr.bf16.mxu1 %v2805_v39  ;;  %v2870_v39 = vld [vmem:[%s3497_s1 + $0x200] sm:$0xff]  }
  0x31   : >> { %444 = vmatmul.mubr.bf16.vlgmr.msra.gmra.mxu0 %v2797_v33  ;;  %v2864_v33 = vld [vmem:[%s3497_s1 + $0x290] sm:$0xff]  }
  0x32   : >> { %591 = vmatmul.mubr.bf16.vlgmr.msra.gmra.mxu1 %v2800_v35  ;;  %2580 = vmatpush3.bf16.msra.mxu0 %v2804_v38  ;;  %v2866_v35 = vld [vmem:[%s3497_s1 + $0x208] sm:$0xff]   ;;  %v2869_v38 = vld [vmem:[%s3497_s1 + $0x240] sm:$0xff]  }
  0x33   : >> { %2602 = vmatpush3.bf16.msra.mxu1 %v2806_v40  ;;  %2581 = vmatprep.subr.bf16.mxu0 %v2807_v41  ;;  %v2871_v40 = vld [vmem:[%s3497_s1 + $0x2c0] sm:$0xff]  }
  0x34   : >> { %2603 = vmatprep.subr.bf16.mxu1 %v2809_v43  ;;  %776 = vmatprep.mubr.bf16.mxu0 %v2836_v6  ;;  %v2872_v41 = vld [vmem:[%s3118_s25 + $0x40] ss:$8 sps:$4 sm:$0xff]   ;;  %v2902_v6 = vld [vmem:[%s3497_s1 + $0x390] sm:$0xff]  }
  0x35   : >> { %964 = vmatprep.mubr.bf16.mxu1 %v2841_v10  ;;  %v2875_v43 = vld [vmem:[%s3497_s1 + $0x280] sm:$0xff]   ;;  %v2906_v10 = vld [vmem:[%s3497_s1 + $0x388] sm:$0xff]  }
  0x36   : >> { %2582 = vmatpush3.bf16.msra.mxu0 %v2808_v42  ;;  %v2874_v42 = vld [vmem:[%s3118_s25 + $0x44] ss:$8 sps:$4 sm:$0xff]  }
  0x37   : >> { %2604 = vmatpush3.bf16.msra.mxu1 %v2810_v44  ;;  %2583 = vmatprep.subr.bf16.mxu0 %v2811_v45  ;;  %v2876_v44 = vld [vmem:[%s3497_s1 + $0x378] sm:$0xff]  }
  0x38   : >> { %2605 = vmatprep.subr.bf16.mxu1 %v2813_v47  ;;  %v2877_v45 = vld [vmem:[%s3118_s25 + $0x50] ss:$8 sps:$4 sm:$0xff]  }
  0x39   : >> { %v2880_v47 = vld [vmem:[%s3497_s1 + $0x338] sm:$0xff]  }
  0x3a   : >> { %2584 = vmatpush3.bf16.msra.mxu0 %v2812_v46  ;;  %v2879_v46 = vld [vmem:[%s3118_s25 + $0x54] ss:$8 sps:$4 sm:$0xff]  }
  0x3b   : >> { %2606 = vmatpush3.bf16.msra.mxu1 %v2814_v48  ;;  %2585 = vmatprep.subr.bf16.mxu0 %v2815_v49  ;;  %v2881_v48 = vld [vmem:[%s3497_s1 + $0x3f8] sm:$0xff]  }
  0x3c   : >> { %2607 = vmatprep.subr.bf16.mxu1 %v2817_v51  ;;  %v2882_v49 = vld [vmem:[%s3497_s1 + $0x3b8] sm:$0xff]   ;;  %v2884_v51 = vld [vmem:[%s3497_s1 + $0x330] sm:$0xff]  }
  0x3e   : >> { %2586 = vmatpush3.bf16.msra.mxu0 %v2816_v50  ;;  %v2883_v50 = vld [vmem:[%s3497_s1 + $0x370] sm:$0xff]  }
  0x3f   : >> { %2608 = vmatpush3.bf16.msra.mxu1 %v2818_v52  ;;  %2587 = vmatprep.subr.bf16.mxu0 %v2819_v53  ;;  %v2885_v52 = vld [vmem:[%s3497_s1 + $0x3f0] sm:$0xff]  }
  0x40   : >> { %2609 = vmatprep.subr.bf16.mxu1 %v2821_v55  ;;  %v2886_v53 = vld [vmem:[%s3497_s1 + $0x3b0] sm:$0xff]   ;;  %v2888_v55 = vld [vmem:[%s3497_s1 + $0x328] sm:$0xff]  }
  0x42   : >> { %2588 = vmatpush3.bf16.msra.mxu0 %v2820_v54  ;;  %v2887_v54 = vld [vmem:[%s3497_s1 + $0x368] sm:$0xff]  }
  0x43   : >> { %2610 = vmatpush3.bf16.msra.mxu1 %v2822_v56  ;;  %2589 = vmatprep.subr.bf16.mxu0 %v2823_v57  ;;  %v2889_v56 = vld [vmem:[%s3497_s1 + $0x3e8] sm:$0xff]  }
  0x44   : >> { %2611 = vmatprep.subr.bf16.mxu1 %v2825_v59  ;;  %v2890_v57 = vld [vmem:[%s3497_s1 + $0x3a8] sm:$0xff]   ;;  %v2892_v59 = vld [vmem:[%s3497_s1 + $0x320] sm:$0xff]  }
  0x46   : >> { %2590 = vmatpush3.bf16.msra.mxu0 %v2824_v58  ;;  %v2891_v58 = vld [vmem:[%s3497_s1 + $0x360] sm:$0xff]  }
  0x47   : >> { %2612 = vmatpush3.bf16.msra.mxu1 %v2826_v60  ;;  %2591 = vmatprep.subr.bf16.mxu0 %v2827_v61  ;;  %v2893_v60 = vld [vmem:[%s3497_s1 + $0x3e0] sm:$0xff]  }
  0x48   : >> { %2613 = vmatprep.subr.bf16.mxu1 %v2829_v63  ;;  %v2894_v61 = vld [vmem:[%s3497_s1 + $0x3a0] sm:$0xff]   ;;  %v2896_v63 = vld [vmem:[%s3497_s1 + $0x318] sm:$0xff]  }
  0x4a   : >> { %2592 = vmatpush3.bf16.msra.mxu0 %v2828_v62  ;;  %v2895_v62 = vld [vmem:[%s3497_s1 + $0x358] sm:$0xff]  }
  0x4b   : >> { %2614 = vmatpush3.bf16.msra.mxu1 %v2830_v1  ;;  %2593 = vmatprep.subr.bf16.mxu0 %v2831_v2  ;;  %v2897_v1 = vld [vmem:[%s3497_s1 + $0x3d8] sm:$0xff]  }
  0x4c   : >> { %2615 = vmatprep.subr.bf16.mxu1 %v2833_v4  ;;  %v2898_v2 = vld [vmem:[%s3497_s1 + $0x398] sm:$0xff]   ;;  %v2900_v4 = vld [vmem:[%s3497_s1 + $0x310] sm:$0xff]  }
  0x4e   : >> { %2594 = vmatpush3.bf16.msra.mxu0 %v2832_v3  ;;  %v2899_v3 = vld [vmem:[%s3497_s1 + $0x350] sm:$0xff]  }
  0x4f   : >> { %2616 = vmatpush3.bf16.msra.mxu1 %v2837_v7  ;;  %2623 = vmatprep.subr.bf16.mxu0 %v2838_v8  ;;  %v2903_v7 = vld [vmem:[%s3497_s1 + $0x348] sm:$0xff]  }
  0x50   : >> { %2645 = vmatprep.subr.bf16.mxu1 %v2843_v12  ;;  %v2904_v8 = vld [vmem:[%s3497_s1 + $0x308] sm:$0xff]   ;;  %v2908_v12 = vld [vmem:[%s3497_s1 + $0x300] sm:$0xff]  }
  0x51   : >> { %777 = vmatmul.mubr.bf16.vlgmr.msra.gmra.mxu0 %v2834_v5  ;;  %v2901_v5 = vld [vmem:[%s3497_s1 + $0x3d0] sm:$0xff]  }
  0x52   : >> { %2624 = vmatpush3.bf16.msra.mxu0 %v2842_v11  ;;  %965 = vmatmul.mubr.bf16.vlgmr.msra.gmra.mxu1 %v2839_v9  ;;  %v2905_v9 = vld [vmem:[%s3497_s1 + $0x3c8] sm:$0xff]   ;;  %v2907_v11 = vld [vmem:[%s3497_s1 + $0x340] sm:$0xff]  }
  0x53   : >> { %2646 = vmatpush3.bf16.msra.mxu1 %v2844_v13  ;;  %2625 = vmatprep.subr.bf16.mxu0 %v2845_v14  ;;  %v2909_v13 = vld [vmem:[%s3497_s1 + $0x3c0] sm:$0xff]  }
  0x54   : >> { %2647 = vmatprep.subr.bf16.mxu1 %v2847_v16  ;;  %1152 = vmatprep.mubr.bf16.mxu0 %v2874_v42  ;;  %v2910_v14 = vld [vmem:[%s3118_s25 + $0x60] ss:$8 sps:$4 sm:$0xff]  }
  0x55   : >> { %1340 = vmatprep.mubr.bf16.mxu1 %v2879_v46  ;;  %v2913_v16 = vld [vmem:[%s3497_s1 + $0x380] sm:$0xff]  }
  0x56   : >> { %2626 = vmatpush3.bf16.msra.mxu0 %v2846_v15  ;;  %v2912_v15 = vld [vmem:[%s3118_s25 + $0x64] ss:$8 sps:$4 sm:$0xff]  }
  0x57   : >> { %2648 = vmatpush3.bf16.msra.mxu1 %v2848_v17  ;;  %2627 = vmatprep.subr.bf16.mxu0 %v2849_v18  ;;  %v2914_v17 = vld [vmem:[%s3497_s1 + $0x478] sm:$0xff]  }
  0x58   : >> { %2649 = vmatprep.subr.bf16.mxu1 %v2851_v20  ;;  %v2915_v18 = vld [vmem:[%s3118_s25 + $0x70] ss:$8 sps:$4 sm:$0xff]  }
  0x59   : >> { %v2918_v20 = vld [vmem:[%s3497_s1 + $0x438] sm:$0xff]  }
  0x5a   : >> { %2628 = vmatpush3.bf16.msra.mxu0 %v2850_v19  ;;  %v2917_v19 = vld [vmem:[%s3118_s25 + $0x74] ss:$8 sps:$4 sm:$0xff]  }
  0x5b   : >> { %2650 = vmatpush3.bf16.msra.mxu1 %v2852_v21  ;;  %2629 = vmatprep.subr.bf16.mxu0 %v2853_v22  ;;  %v2919_v21 = vld [vmem:[%s3497_s1 + $0x470] sm:$0xff]  }
  0x5c   : >> { %2651 = vmatprep.subr.bf16.mxu1 %v2855_v24  ;;  %v2920_v22 = vld [vmem:[%s3497_s1 + $0x430] sm:$0xff]   ;;  %v2922_v24 = vld [vmem:[%s3497_s1 + $0x428] sm:$0xff]  }
  0x5e   : >> { %2630 = vmatpush3.bf16.msra.mxu0 %v2854_v23  ;;  %v2921_v23 = vld [vmem:[%s3497_s1 + $0x468] sm:$0xff]  }
  0x5f   : >> { %2652 = vmatpush3.bf16.msra.mxu1 %v2856_v25  ;;  %2631 = vmatprep.subr.bf16.mxu0 %v2857_v26  ;;  %v2923_v25 = vld [vmem:[%s3497_s1 + $0x460] sm:$0xff]  }
  0x60   : >> { %2653 = vmatprep.subr.bf16.mxu1 %v2859_v28  ;;  %v2924_v26 = vld [vmem:[%s3497_s1 + $0x420] sm:$0xff]   ;;  %v2926_v28 = vld [vmem:[%s3497_s1 + $0x418] sm:$0xff]  }
  0x62   : >> { %2632 = vmatpush3.bf16.msra.mxu0 %v2858_v27  ;;  %v2925_v27 = vld [vmem:[%s3497_s1 + $0x458] sm:$0xff]  }
  0x63   : >> { %2654 = vmatpush3.bf16.msra.mxu1 %v2860_v29  ;;  %2633 = vmatprep.subr.bf16.mxu0 %v2861_v30  ;;  %v2927_v29 = vld [vmem:[%s3497_s1 + $0x450] sm:$0xff]   ;;  %v2935_v30 = vld [vmem:[%s3118_s25 + $0x84] ss:$8 sps:$4 sm:$0xff]  }
  0x64   : >> { %2655 = vmatprep.subr.bf16.mxu1 %v2863_v32  ;;  %v2929_v32 = vld [vmem:[%s3497_s1 + $0x448] sm:$0xff]  }
  0x66   : >> { %2634 = vmatpush3.bf16.msra.mxu0 %v2862_v31  ;;  %v2928_v31 = vld [vmem:[%s3497_s1 + $0x410] sm:$0xff]  }
  0x67   : >> { %2656 = vmatpush3.bf16.msra.mxu1 %v2864_v33  ;;  %2635 = vmatprep.subr.bf16.mxu0 %v2865_v34  ;;  %v2930_v33 = vld [vmem:[%s3497_s1 + $0x408] sm:$0xff]   ;;  %v2931_v34 = vld [vmem:[%s3497_s1 + $0x440] sm:$0xff]  }
  0x68   : >> { %2657 = vmatprep.subr.bf16.mxu1 %v2867_v36  ;;  %v2933_v36 = vld [vmem:[%s3118_s25 + $0x80] ss:$8 sps:$4 sm:$0xff]   ;;  %s2529_s25 = sshll.u32 %s2966_s28, 3  ;;  %s228_s28 = sadd.s32 1, %s2966_s28  }
  0x69   : >> { %s1935_s9 = scalar_lea.vmem %s3019_s27, %s2529_s25  ;;  %p225_p6 = scmp.ge.s32.totalorder %s228_s28, 6  }
  0x6a   : >> { %2636 = vmatpush3.bf16.msra.mxu0 %v2866_v35  ;;  %v2932_v35 = vld [vmem:[%s3497_s1 + $0x400] sm:$0xff]  }
  0x6b   : >> { %2658 = vmatpush3.bf16.msra.mxu1 %v2868_v37  ;;  %2637 = vmatprep.subr.bf16.mxu0 %v2869_v38 }
  0x6c   : >> { %2659 = vmatprep.subr.bf16.mxu1 %v2871_v40 }
  0x6e   : >> { %2638 = vmatpush3.bf16.msra.mxu0 %v2870_v39 }
  0x6f   : >> { %2660 = vmatpush3.bf16.msra.mxu1 %v2875_v43  ;;  %2667 = vmatprep.subr.bf16.mxu0 %v2876_v44 }
  0x70   : >> { %2689 = vmatprep.subr.bf16.mxu1 %v2881_v48 }
  0x71   : >> { %1153 = vmatmul.mubr.bf16.vlgmr.msra.gmra.mxu0 %v2872_v41 }
  0x72   : >> { %2668 = vmatpush3.bf16.msra.mxu0 %v2880_v47  ;;  %1341 = vmatmul.mubr.bf16.vlgmr.msra.gmra.mxu1 %v2877_v45 }
  0x73   : >> { %2690 = vmatpush3.bf16.msra.mxu1 %v2882_v49  ;;  %2669 = vmatprep.subr.bf16.mxu0 %v2883_v50 }
  0x74   : >> { %2691 = vmatprep.subr.bf16.mxu1 %v2885_v52  ;;  %1528 = vmatprep.mubr.bf16.mxu0 %v2912_v15 }
  0x75   : >> { %1716 = vmatprep.mubr.bf16.mxu1 %v2917_v19 }
  0x76   : >> { %2670 = vmatpush3.bf16.msra.mxu0 %v2884_v51 }
  0x77   : >> { %2692 = vmatpush3.bf16.msra.mxu1 %v2886_v53  ;;  %2671 = vmatprep.subr.bf16.mxu0 %v2887_v54 }
  0x78   : >> { %2693 = vmatprep.subr.bf16.mxu1 %v2889_v56 }
  0x7a   : >> { %2672 = vmatpush3.bf16.msra.mxu0 %v2888_v55 }
  0x7b   : >> { %2694 = vmatpush3.bf16.msra.mxu1 %v2890_v57  ;;  %2673 = vmatprep.subr.bf16.mxu0 %v2891_v58 }
  0x7c   : >> { %2695 = vmatprep.subr.bf16.mxu1 %v2893_v60 }
  0x7e   : >> { %2674 = vmatpush3.bf16.msra.mxu0 %v2892_v59 }
  0x7f   : >> { %2696 = vmatpush3.bf16.msra.mxu1 %v2894_v61  ;;  %2675 = vmatprep.subr.bf16.mxu0 %v2895_v62 }
  0x80   : >> { %2697 = vmatprep.subr.bf16.mxu1 %v2897_v1 }
  0x82   : >> { %2676 = vmatpush3.bf16.msra.mxu0 %v2896_v63 }
  0x83   : >> { %2698 = vmatpush3.bf16.msra.mxu1 %v2898_v2  ;;  %2677 = vmatprep.subr.bf16.mxu0 %v2899_v3 }
  0x84   : >> { %2699 = vmatprep.subr.bf16.mxu1 %v2901_v5 }
  0x86   : >> { %2678 = vmatpush3.bf16.msra.mxu0 %v2900_v4 }
  0x87   : >> { %2700 = vmatpush3.bf16.msra.mxu1 %v2902_v6  ;;  %2679 = vmatprep.subr.bf16.mxu0 %v2903_v7 }
  0x88   : >> { %2701 = vmatprep.subr.bf16.mxu1 %v2905_v9 }
  0x8a   : >> { %2680 = vmatpush3.bf16.msra.mxu0 %v2904_v8 }
  0x8b   : >> { %2702 = vmatpush3.bf16.msra.mxu1 %v2906_v10  ;;  %2681 = vmatprep.subr.bf16.mxu0 %v2907_v11 }
  0x8c   : >> { %2703 = vmatprep.subr.bf16.mxu1 %v2909_v13 }
  0x8e   : >> { %2682 = vmatpush3.bf16.msra.mxu0 %v2908_v12 }
  0x8f   : >> { %2704 = vmatpush3.bf16.msra.mxu1 %v2913_v16  ;;  %2711 = vmatprep.subr.bf16.mxu0 %v2914_v17 }
  0x91   : >> { %1529 = vmatmul.mubr.bf16.vlgmr.msra.gmra.mxu0 %v2910_v14 }
  0x92   : >> { %2712 = vmatpush3.bf16.msra.mxu0 %v2918_v20  ;;  %1717 = vmatmul.mubr.bf16.vlgmr.msra.gmra.mxu1 %v2915_v18 }
  0x93   : >> { %2713 = vmatprep.subr.bf16.mxu0 %v2919_v21  ;;  %1904 = vmatprep.mubr.bf16.mxu0 %v2935_v30 }
  0x96   : >> { %2714 = vmatpush3.bf16.msra.mxu0 %v2920_v22 }
  0x97   : >> { %2715 = vmatprep.subr.bf16.mxu0 %v2921_v23 }
  0x9a   : >> { %2716 = vmatpush3.bf16.msra.mxu0 %v2922_v24 }
  0x9b   : >> { %2717 = vmatprep.subr.bf16.mxu0 %v2923_v25 }
  0x9e   : >> { %2718 = vmatpush3.bf16.msra.mxu0 %v2924_v26 }
  0x9f   : >> { %2719 = vmatprep.subr.bf16.mxu0 %v2925_v27 }
  0xa2   : >> { %2720 = vmatpush3.bf16.msra.mxu0 %v2926_v28 }
  0xa3   : >> { %2721 = vmatprep.subr.bf16.mxu0 %v2927_v29 }
  0xa6   : >> { %2722 = vmatpush3.bf16.msra.mxu0 %v2928_v31 }
  0xa7   : >> { %2723 = vmatprep.subr.bf16.mxu0 %v2929_v32 }
  0xaa   : >> { %2724 = vmatpush3.bf16.msra.mxu0 %v2930_v33 }
  0xab   : >> { %2725 = vmatprep.subr.bf16.mxu0 %v2931_v34 }
  0xae   : >> { %2726 = vmatpush3.bf16.msra.mxu0 %v2932_v35 }
  0xb1   : >> { %1905 = vmatmul.mubr.bf16.vlgmr.msra.gmra.mxu0 %v2933_v36 }
  0xf1   : >> { %v2551_v37 = vpop.f32.mrf.mxu0 }
  0xf2   : >> { %v2573_v38 = vpop.f32.mrf.mxu1 }
  0xf3   : >> { %v2552_v39 = vpop.f32.mrf.mxu0 }
  0xf4   : >> { %v2574_v40 = vpop.f32.mrf.mxu1  ;;  %v2553_v58 = vadd.f32 %v2552_v39, %v2551_v37 }
  0xf5   : >> { %v2554_v41 = vpop.f32.mrf.mxu0  ;;  %v2575_v59 = vadd.f32 %v2574_v40, %v2573_v38 }
  0xf6   : >> { %v2576_v42 = vpop.f32.mrf.mxu1 }
  0xf7   : >> { %v2555_v43 = vpop.f32.mrf.mxu0  ;;  %v593_v1 = vadd.f32 %v2575_v59, %v2553_v58 }
  0xf8   : >> { %v2577_v45 = vpop.f32.mrf.mxu1  ;;  %v2556_v2 = vadd.f32 %v2555_v43, %v2554_v41 }
  0xf9   : >> { %v2578_v3 = vadd.f32 %v2577_v45, %v2576_v42 }
  0xfb   : >> { %v596_v10 = vadd.f32 %v2578_v3, %v2556_v2 }
 0x111   : >> { %v2595_v44 = vpop.f32.mrf.mxu0 }
 0x112   : >> { %v2617_v47 = vpop.f32.mrf.mxu1 }
 0x113   : >> { %v2596_v46 = vpop.f32.mrf.mxu0 }
 0x114   : >> { %v2618_v49 = vpop.f32.mrf.mxu1  ;;  %v2597_v62 = vadd.f32 %v2596_v46, %v2595_v44 }
 0x115   : >> { %v2598_v48 = vpop.f32.mrf.mxu0  ;;  %v2619_v6 = vadd.f32 %v2618_v49, %v2617_v47 }
 0x116   : >> { %v2620_v51 = vpop.f32.mrf.mxu1  ;;  %v785_v5 = vadd.f32 %v2597_v62, %v593_v1 }
 0x117   : >> { %v2599_v50 = vpop.f32.mrf.mxu0 }
 0x118   : >> { %v2621_v53 = vpop.f32.mrf.mxu1  ;;  %v2600_v7 = vadd.f32 %v2599_v50, %v2598_v48  ;;  %v973_v12 = vadd.f32 %v2619_v6, %v785_v5 }
 0x119   : >> { %v2622_v14 = vadd.f32 %v2621_v53, %v2620_v51 }
 0x11a   : >> { %v786_v13 = vadd.f32 %v2600_v7, %v596_v10 }
 0x11c   : >> { %v974_v20 = vadd.f32 %v2622_v14, %v786_v13 }
 0x131   : >> { %v2639_v52 = vpop.f32.mrf.mxu0 }
 0x132   : >> { %v2661_v55 = vpop.f32.mrf.mxu1 }
 0x133   : >> { %v2640_v54 = vpop.f32.mrf.mxu0 }
 0x134   : >> { %v2662_v57 = vpop.f32.mrf.mxu1  ;;  %v2641_v11 = vadd.f32 %v2640_v54, %v2639_v52 }
 0x135   : >> { %v2642_v56 = vpop.f32.mrf.mxu0  ;;  %v2663_v18 = vadd.f32 %v2662_v57, %v2661_v55 }
 0x136   : >> { %v2664_v61 = vpop.f32.mrf.mxu1  ;;  %v1161_v17 = vadd.f32 %v2641_v11, %v973_v12 }
 0x137   : >> { %v2643_v60 = vpop.f32.mrf.mxu0 }
 0x138   : >> { %v2665_v4 = vpop.f32.mrf.mxu1  ;;  %v2644_v19 = vadd.f32 %v2643_v60, %v2642_v56  ;;  %v1349_v24 = vadd.f32 %v2663_v18, %v1161_v17 }
 0x139   : >> { %v2666_v26 = vadd.f32 %v2665_v4, %v2664_v61 }
 0x13a   : >> { %v1162_v25 = vadd.f32 %v2644_v19, %v974_v20 }
 0x13c   : >> { %v1350_v32 = vadd.f32 %v2666_v26, %v1162_v25 }
 0x151   : >> { %v2683_v63 = vpop.f32.mrf.mxu0 }
 0x152   : >> { %v2705_v9 = vpop.f32.mrf.mxu1 }
 0x153   : >> { %v2684_v8 = vpop.f32.mrf.mxu0 }
 0x154   : >> { %v2706_v16 = vpop.f32.mrf.mxu1  ;;  %v2685_v21 = vadd.f32 %v2684_v8, %v2683_v63 }
 0x155   : >> { %v2686_v15 = vpop.f32.mrf.mxu0  ;;  %v2707_v28 = vadd.f32 %v2706_v16, %v2705_v9 }
 0x156   : >> { %v2708_v23 = vpop.f32.mrf.mxu1  ;;  %v1537_v27 = vadd.f32 %v2685_v21, %v1349_v24 }
 0x157   : >> { %v2687_v22 = vpop.f32.mrf.mxu0 }
 0x158   : >> { %v2688_v29 = vadd.f32 %v2687_v22, %v2686_v15  ;;  %v2709_v30 = vpop.f32.mrf.mxu1  ;;  %v1725_v34 = vadd.f32 %v2707_v28, %v1537_v27 }
 0x159   : >> { %v2710_v36 = vadd.f32 %v2709_v30, %v2708_v23 }
 0x15a   : >> { %v1538_v35 = vadd.f32 %v2688_v29, %v1350_v32 }
 0x15c   : >> { %v1726_v41 = vadd.f32 %v2710_v36, %v1538_v35 }
 0x171   : >> { %v2727_v31 = vpop.f32.mrf.mxu0 }
 0x173   : >> { %v2728_v33 = vpop.f32.mrf.mxu0 }
 0x174   : >> { %v2729_v37 = vadd.f32 %v2728_v33, %v2727_v31 }
 0x175   : >> { %v2730_v38 = vpop.f32.mrf.mxu0 }
 0x176   : >> { %v1913_v39 = vadd.f32 %v2729_v37, %v1725_v34 }
 0x177   : >> { %v2731_v40 = vpop.f32.mrf.mxu0 }
 0x178   : >> { %v2732_v42 = vadd.f32 %v2731_v40, %v2730_v38  ;;  %v1921_v43 = vadd.f32 %v3009_v0, %v1913_v39 }
 0x17a   : >> { %v1914_v44 = vadd.f32 %v2732_v42, %v1726_v41  ;;  %v1923_v46 = vmax.f32 %v1921_v43, 0.0 }
 0x17c   : >> { %v1922_v45 = vadd.f32 %v3009_v0, %v1914_v44 }
 0x17e   : >> { %v1924_v47 = vmax.f32 %v1922_v45, 0.0  ;;  %227 = sbr.rel (!%p225_p6) target bundleno = 15 (0xf), region = 87 }
 0x180   : >> { %v2533_v48 = vpack.c.bf16 %v1924_v47, %v1923_v46 }
 0x182   : >> { %2534 = vst [vmem:[%s1935_s9] sm:$0xff] %v2533_v48  }
 0x183 PF: > { %s13_s14 = sadd.s32 1, %s2962_s14   ;;  %s3500_s12 = smov %s2958_s13 }
 0x184   : > { %p10_p7 = scmp.ge.s32.totalorder %s13_s14, 4   ;;  %s3501_s13 = smov %s3503_s15 }
 0x186   :  { %12 = sbr.rel (!%p10_p7) target bundleno = 2 (0x2), region = 98 }

// kernel: rfpose_forward.26
= control target key start
LH: loop header
LB: loop body
LE: loop exit
PB: predicated region body
PF: predicated region fallthrough
CT: control target
= control target key end

     0   :  { %s5421_s12 = smov 0   ;;  %s5423_s13 = smov 0   ;;  %s6385_s0 = inlined_call_operand.vmem [shape: bf16[24,16,512], index: 0, kind: input, shape index: {}]   ;;  %s6386_s1 = inlined_call_operand.vmem [shape: bf16[9,512,128], index: 1, kind: input, shape index: {}]   ;;  %s6387_s2 = inlined_call_operand.vmem [shape: f32[1,128], index: 2, kind: input, shape index: {}]   ;;  %s6388_s3 = inlined_call_operand.vmem [shape: bf16[8,16,128], index: 3, kind: output, shape index: {}]  }
   0x1   :  { %s5425_s14 = smov 0  }
   0x2 LB: > { %s25_s15 = sadd.s32 1, %s5391_s13  ;;  %p3697_p0 = scmp.ge.s32.totalorder %s5395_s14, 1  ;;  %s5395_s14 = sphi %s5425_s14, %s13_s14   ;;  %s5391_s13 = sphi %s5423_s13, %s6397_s13   ;;  %s5387_s12 = sphi %s5421_s12, %s6396_s12  }
   0x3   : > { %p27_p1 = scmp.ge.s32.totalorder %s25_s15, 2  ;;  %p161_p2 = scmp.lt.s32.totalorder %s5395_s14, 3 }
   0x5   : > { %s6399_s15 = smov (%p27_p1, %s25_s15), 0  ;;  %p162_p3 = pnand %p3697_p0, %p161_p2 }
   0x6   : > { %s196_s16 = smul.u32 (!%p162_p3), 12, %s5387_s12  ;;  %s3700_s17 = sshll.u32 (!%p162_p3), %s5387_s12, 2 }
   0x7   : > { %165 = sbr.rel (%p162_p3) target bundleno = 518 (0x206), region = 32  ;;  %p211_p4 = scmp.lt.s32.totalorder (!%p162_p3), %s3700_s17, 7 }
   0x8   : > { %p198_p5 = scmp.lt.s32.totalorder (!%p162_p3), %s196_s16, 23  ;;  %s5454_s28 = smov (!%p162_p3), 0  }
   0xc   : > { %v5442_v0 = vld [vmem:[%s6387_s2] ss:$0 sm:$0xff]  ;;  %s6401_s17 = smov (!%p211_p4, %s3700_s17), 7  ;;  %s6403_s16 = smov (!%p198_p5, %s196_s16), 23 }
   0xd   : > { %6390 = vst [vmem:[#allocation2_spill] sm:$0xff] %v5442_v0  ;;  %s4589_s20 = sshll.u32 %s6401_s17, 3  ;;  %s4588_s21 = sshll.u32 %s6403_s16, 5 }
   0xe   : > { %s5447_s24 = scalar_lea.vmem %s6388_s3, %s4589_s20  ;;  %s5452_s27 = scalar_lea.vmem %s6385_s0, %s4588_s21 }
   0xf LB: >> { %v5027_v1 = vld [vmem:[%s6386_s1 + $0x178] sm:$0xff]   ;;  %v5031_v5 = vld [vmem:[%s6386_s1 + $0x170] sm:$0xff]   ;;  %v5035_v9 = vld [vmem:[%s6386_s1 + $0x168] sm:$0xff]   ;;  %s4590_s17 = sshll.u32 %s5399_s28, 5  ;;  %s5399_s28 = sphi %s5454_s28, %s228_s28  }
  0x10   : >> { %v5028_v2 = vld [vmem:[%s6386_s1 + $0x1f8] sm:$0xff]   ;;  %4599 = vmatprep.subr.bf16.mxu0 %v5027_v1  ;;  %v5032_v6 = vld [vmem:[%s6386_s1 + $0x1f0] sm:$0xff]   ;;  %v5036_v10 = vld [vmem:[%s6386_s1 + $0x1e8] sm:$0xff]   ;;  %s5551_s25 = scalar_lea.vmem %s5452_s27, %s4590_s17 }
  0x11   : >> { %v5029_v3 = vld [vmem:[%s6386_s1 + $0x138] sm:$0xff]   ;;  %4621 = vmatprep.subr.bf16.mxu1 %v5028_v2  ;;  %v5033_v7 = vld [vmem:[%s6386_s1 + $0x130] sm:$0xff]   ;;  %v5037_v11 = vld [vmem:[%s6386_s1 + $0x128] sm:$0xff]  }
  0x12   : >> { %v5030_v4 = vld [vmem:[%s6386_s1 + $0x1b8] sm:$0xff]   ;;  %4600 = vmatpush3.bf16.msra.mxu0 %v5029_v3  ;;  %v5034_v8 = vld [vmem:[%s6386_s1 + $0x1b0] sm:$0xff]   ;;  %v5038_v12 = vld [vmem:[%s6386_s1 + $0x1a8] sm:$0xff]  }
  0x13   : >> { %4622 = vmatpush3.bf16.msra.mxu1 %v5030_v4  ;;  %4601 = vmatprep.subr.bf16.mxu0 %v5031_v5  ;;  %v5039_v13 = vld [vmem:[%s6386_s1 + $0x160] sm:$0xff]   ;;  %v5043_v17 = vld [vmem:[%s6386_s1 + $0x158] sm:$0xff]   ;;  %v5047_v21 = vld [vmem:[%s6386_s1 + $0x150] sm:$0xff]  }
  0x14   : >> { %4623 = vmatprep.subr.bf16.mxu1 %v5032_v6  ;;  %v5040_v14 = vld [vmem:[%s6386_s1 + $0x1e0] sm:$0xff]   ;;  %v5044_v18 = vld [vmem:[%s6386_s1 + $0x1d8] sm:$0xff]   ;;  %v5048_v22 = vld [vmem:[%s6386_s1 + $0x1d0] sm:$0xff]  }
  0x15   : >> { %v5041_v15 = vld [vmem:[%s6386_s1 + $0x120] sm:$0xff]   ;;  %v5045_v19 = vld [vmem:[%s6386_s1 + $0x118] sm:$0xff]   ;;  %v5049_v23 = vld [vmem:[%s6386_s1 + $0x110] sm:$0xff]  }
  0x16   : >> { %4602 = vmatpush3.bf16.msra.mxu0 %v5033_v7  ;;  %v5042_v16 = vld [vmem:[%s6386_s1 + $0x1a0] sm:$0xff]   ;;  %v5046_v20 = vld [vmem:[%s6386_s1 + $0x198] sm:$0xff]   ;;  %v5050_v24 = vld [vmem:[%s6386_s1 + $0x190] sm:$0xff]  }
  0x17   : >> { %4624 = vmatpush3.bf16.msra.mxu1 %v5034_v8  ;;  %4603 = vmatprep.subr.bf16.mxu0 %v5035_v9  ;;  %v5051_v25 = vld [vmem:[%s6386_s1 + $0x148] sm:$0xff]   ;;  %v5055_v29 = vld [vmem:[%s6386_s1 + $0x140] sm:$0xff]   ;;  %v5065_v37 = vld [vmem:[%s6386_s1 + $0x78] sm:$0xff]  }
  0x18   : >> { %4625 = vmatprep.subr.bf16.mxu1 %v5036_v10  ;;  %v5052_v26 = vld [vmem:[%s6386_s1 + $0x1c8] sm:$0xff]   ;;  %v5056_v30 = vld [vmem:[%s6386_s1 + $0x1c0] sm:$0xff]   ;;  %v5066_v38 = vld [vmem:[%s6386_s1 + $0xf8] sm:$0xff]  }
  0x19   : >> { %v5053_v27 = vld [vmem:[%s6386_s1 + $0x108] sm:$0xff]   ;;  %v5057_v31 = vld [vmem:[%s6386_s1 + $0x100] sm:$0xff]   ;;  %v5067_v39 = vld [vmem:[%s6386_s1 + $0x38] sm:$0xff]  }
  0x1a   : >> { %4604 = vmatpush3.bf16.msra.mxu0 %v5037_v11  ;;  %v5054_v28 = vld [vmem:[%s6386_s1 + $0x188] sm:$0xff]   ;;  %v5058_v32 = vld [vmem:[%s6386_s1 + $0x180] sm:$0xff]   ;;  %v5068_v40 = vld [vmem:[%s6386_s1 + $0xb8] sm:$0xff]  }
  0x1b   : >> { %4626 = vmatpush3.bf16.msra.mxu1 %v5038_v12  ;;  %4605 = vmatprep.subr.bf16.mxu0 %v5039_v13  ;;  %v5059_v33 = vld [vmem:[%s5551_s25 + $0x20] ss:$16 sps:$4 sm:$0xff]   ;;  %v5061_v34 = vld [vmem:[%s5551_s25 + $0x24] ss:$16 sps:$4 sm:$0xff]   ;;  %v5062_v35 = vld [vmem:[%s5551_s25 + $0x28] ss:$16 sps:$4 sm:$0xff]  }
  0x1c   : >> { %4627 = vmatprep.subr.bf16.mxu1 %v5040_v14  ;;  %v5064_v36 = vld [vmem:[%s5551_s25 + $0x2c] ss:$16 sps:$4 sm:$0xff]   ;;  %617 = vmatprep.mubr.bf16.mxu0 %v5061_v34  ;;  %v5069_v41 = vld [vmem:[%s6386_s1 + $0x70] sm:$0xff]   ;;  %v5077_v49 = vld [vmem:[%s6386_s1 + $0x60] sm:$0xff]  }
  0x1d   : >> { %658 = vmatprep.mubr.bf16.mxu1 %v5064_v36  ;;  %v5070_v42 = vld [vmem:[%s6386_s1 + $0xf0] sm:$0xff]   ;;  %v5073_v45 = vld [vmem:[%s6386_s1 + $0x68] sm:$0xff]   ;;  %v5078_v50 = vld [vmem:[%s6386_s1 + $0xe0] sm:$0xff]  }
  0x1e   : >> { %4606 = vmatpush3.bf16.msra.mxu0 %v5041_v15  ;;  %v5071_v43 = vld [vmem:[%s6386_s1 + $0x30] sm:$0xff]   ;;  %v5074_v46 = vld [vmem:[%s6386_s1 + $0xe8] sm:$0xff]   ;;  %v5079_v51 = vld [vmem:[%s6386_s1 + $0x20] sm:$0xff]  }
  0x1f   : >> { %4628 = vmatpush3.bf16.msra.mxu1 %v5042_v16  ;;  %4607 = vmatprep.subr.bf16.mxu0 %v5043_v17  ;;  %v5072_v44 = vld [vmem:[%s6386_s1 + $0xb0] sm:$0xff]   ;;  %v5075_v47 = vld [vmem:[%s6386_s1 + $0x28] sm:$0xff]   ;;  %v5080_v52 = vld [vmem:[%s6386_s1 + $0xa0] sm:$0xff]  }
  0x20   : >> { %4629 = vmatprep.subr.bf16.mxu1 %v5044_v18  ;;  %v5076_v48 = vld [vmem:[%s6386_s1 + $0xa8] sm:$0xff]   ;;  %v5081_v53 = vld [vmem:[%s6386_s1 + $0x58] sm:$0xff]   ;;  %v5085_v57 = vld [vmem:[%s6386_s1 + $0x50] sm:$0xff]  }
  0x21   : >> { %v5082_v54 = vld [vmem:[%s6386_s1 + $0xd8] sm:$0xff]   ;;  %v5086_v58 = vld [vmem:[%s6386_s1 + $0xd0] sm:$0xff]   ;;  %v5089_v61 = vld [vmem:[%s6386_s1 + $0x48] sm:$0xff]  }
  0x22   : >> { %4608 = vmatpush3.bf16.msra.mxu0 %v5045_v19  ;;  %v5083_v55 = vld [vmem:[%s6386_s1 + $0x18] sm:$0xff]   ;;  %v5087_v59 = vld [vmem:[%s6386_s1 + $0x10] sm:$0xff]   ;;  %v5090_v62 = vld [vmem:[%s6386_s1 + $0xc8] sm:$0xff]  }
  0x23   : >> { %4630 = vmatpush3.bf16.msra.mxu1 %v5046_v20  ;;  %4609 = vmatprep.subr.bf16.mxu0 %v5047_v21  ;;  %v5084_v56 = vld [vmem:[%s6386_s1 + $0x98] sm:$0xff]   ;;  %v5088_v60 = vld [vmem:[%s6386_s1 + $0x90] sm:$0xff]   ;;  %v5091_v63 = vld [vmem:[%s6386_s1 + $0x8] sm:$0xff]  }
  0x24   : >> { %4631 = vmatprep.subr.bf16.mxu1 %v5048_v22  ;;  %v5092_v1 = vld [vmem:[%s6386_s1 + $0x88] sm:$0xff]   ;;  %v5093_v2 = vld [vmem:[%s6386_s1 + $0x40] sm:$0xff]   ;;  %v5103_v10 = vld [vmem:[%s6386_s1 + $0x278] sm:$0xff]  }
  0x25   : >> { %v5094_v3 = vld [vmem:[%s6386_s1 + $0xc0] sm:$0xff]   ;;  %v5100_v8 = vld [vmem:[%s5551_s25 + $0x8] ss:$16 sps:$4 sm:$0xff]   ;;  %v5102_v9 = vld [vmem:[%s5551_s25 + $0xc] ss:$16 sps:$4 sm:$0xff]  }
  0x26   : >> { %4610 = vmatpush3.bf16.msra.mxu0 %v5049_v23  ;;  %v5095_v4 = vld [vmem:[%s6386_s1] sm:$0xff]   ;;  %v5104_v11 = vld [vmem:[%s6386_s1 + $0x2f8] sm:$0xff]   ;;  %v5107_v14 = vld [vmem:[%s6386_s1 + $0x270] sm:$0xff]  }
  0x27   : >> { %4632 = vmatpush3.bf16.msra.mxu1 %v5050_v24  ;;  %4611 = vmatprep.subr.bf16.mxu0 %v5051_v25  ;;  %v5096_v5 = vld [vmem:[%s6386_s1 + $0x80] sm:$0xff]   ;;  %v5105_v12 = vld [vmem:[%s6386_s1 + $0x238] sm:$0xff]   ;;  %v5108_v15 = vld [vmem:[%s6386_s1 + $0x2f0] sm:$0xff]  }
  0x28   : >> { %4633 = vmatprep.subr.bf16.mxu1 %v5052_v26  ;;  %v5097_v6 = vld [vmem:[%s5551_s25] ss:$16 sps:$4 sm:$0xff]   ;;  %v5099_v7 = vld [vmem:[%s5551_s25 + $0x4] ss:$16 sps:$4 sm:$0xff]   ;;  %v5106_v13 = vld [vmem:[%s6386_s1 + $0x2b8] sm:$0xff]  }
  0x29   : >> { %v5109_v16 = vld [vmem:[%s6386_s1 + $0x230] sm:$0xff]   ;;  %v5111_v18 = vld [vmem:[%s6386_s1 + $0x268] sm:$0xff]   ;;  %v5115_v22 = vld [vmem:[%s6386_s1 + $0x260] sm:$0xff]  }
  0x2a   : >> { %4612 = vmatpush3.bf16.msra.mxu0 %v5053_v27  ;;  %v5110_v17 = vld [vmem:[%s6386_s1 + $0x2b0] sm:$0xff]   ;;  %v5112_v19 = vld [vmem:[%s6386_s1 + $0x2e8] sm:$0xff]   ;;  %v5116_v23 = vld [vmem:[%s6386_s1 + $0x2e0] sm:$0xff]  }
  0x2b   : >> { %4634 = vmatpush3.bf16.msra.mxu1 %v5054_v28  ;;  %4613 = vmatprep.subr.bf16.mxu0 %v5055_v29  ;;  %v5113_v20 = vld [vmem:[%s6386_s1 + $0x228] sm:$0xff]   ;;  %v5117_v24 = vld [vmem:[%s6386_s1 + $0x220] sm:$0xff]   ;;  %v5119_v26 = vld [vmem:[%s6386_s1 + $0x258] sm:$0xff]  }
  0x2c   : >> { %4635 = vmatprep.subr.bf16.mxu1 %v5056_v30  ;;  %v5114_v21 = vld [vmem:[%s6386_s1 + $0x2a8] sm:$0xff]   ;;  %v5118_v25 = vld [vmem:[%s6386_s1 + $0x2a0] sm:$0xff]   ;;  %v5120_v27 = vld [vmem:[%s6386_s1 + $0x2d8] sm:$0xff]  }
  0x2d   : >> { %v5121_v28 = vld [vmem:[%s6386_s1 + $0x218] sm:$0xff]   ;;  %v5123_v30 = vld [vmem:[%s6386_s1 + $0x250] sm:$0xff]   ;;  %v5127_v34 = vld [vmem:[%s6386_s1 + $0x248] sm:$0xff]  }
  0x2e   : >> { %4614 = vmatpush3.bf16.msra.mxu0 %v5057_v31  ;;  %v5122_v29 = vld [vmem:[%s6386_s1 + $0x298] sm:$0xff]   ;;  %v5124_v31 = vld [vmem:[%s6386_s1 + $0x2d0] sm:$0xff]   ;;  %v5129_v36 = vld [vmem:[%s6386_s1 + $0x208] sm:$0xff]  }
  0x2f   : >> { %4636 = vmatpush3.bf16.msra.mxu1 %v5058_v32  ;;  %4643 = vmatprep.subr.bf16.mxu0 %v5065_v37  ;;  %v5125_v32 = vld [vmem:[%s6386_s1 + $0x210] sm:$0xff]   ;;  %v5130_v37 = vld [vmem:[%s6386_s1 + $0x288] sm:$0xff]  }
  0x30   : >> { %4665 = vmatprep.subr.bf16.mxu1 %v5066_v38  ;;  %v5131_v38 = vld [vmem:[%s6386_s1 + $0x240] sm:$0xff]  }
  0x31   : >> { %618 = vmatmul.mubr.bf16.vlgmr.msra.gmra.mxu0 %v5059_v33  ;;  %v5126_v33 = vld [vmem:[%s6386_s1 + $0x290] sm:$0xff]  }
  0x32   : >> { %659 = vmatmul.mubr.bf16.vlgmr.msra.gmra.mxu1 %v5062_v35  ;;  %4644 = vmatpush3.bf16.msra.mxu0 %v5067_v39  ;;  %v5128_v35 = vld [vmem:[%s6386_s1 + $0x2c8] sm:$0xff]   ;;  %v5132_v39 = vld [vmem:[%s6386_s1 + $0x2c0] sm:$0xff]  }
  0x33   : >> { %4666 = vmatpush3.bf16.msra.mxu1 %v5068_v40  ;;  %4645 = vmatprep.subr.bf16.mxu0 %v5069_v41  ;;  %v5133_v40 = vld [vmem:[%s6386_s1 + $0x200] sm:$0xff]  }
  0x34   : >> { %4667 = vmatprep.subr.bf16.mxu1 %v5070_v42  ;;  %911 = vmatprep.mubr.bf16.mxu0 %v5099_v7  ;;  %v5134_v41 = vld [vmem:[%s6386_s1 + $0x280] sm:$0xff]   ;;  %v5165_v7 = vld [vmem:[%s6386_s1 + $0x348] sm:$0xff]  }
  0x35   : >> { %952 = vmatprep.mubr.bf16.mxu1 %v5102_v9  ;;  %v5135_v42 = vld [vmem:[%s5551_s25 + $0x40] ss:$16 sps:$4 sm:$0xff]   ;;  %v5167_v9 = vld [vmem:[%s6386_s1 + $0x308] sm:$0xff]  }
  0x36   : >> { %4646 = vmatpush3.bf16.msra.mxu0 %v5071_v43  ;;  %v5137_v43 = vld [vmem:[%s5551_s25 + $0x44] ss:$16 sps:$4 sm:$0xff]  }
  0x37   : >> { %4668 = vmatpush3.bf16.msra.mxu1 %v5072_v44  ;;  %4647 = vmatprep.subr.bf16.mxu0 %v5073_v45  ;;  %v5138_v44 = vld [vmem:[%s5551_s25 + $0x48] ss:$16 sps:$4 sm:$0xff]   ;;  %v5140_v45 = vld [vmem:[%s5551_s25 + $0x4c] ss:$16 sps:$4 sm:$0xff]  }
  0x38   : >> { %4669 = vmatprep.subr.bf16.mxu1 %v5074_v46  ;;  %v5141_v46 = vld [vmem:[%s6386_s1 + $0x378] sm:$0xff]  }
  0x3a   : >> { %4648 = vmatpush3.bf16.msra.mxu0 %v5075_v47  ;;  %v5142_v47 = vld [vmem:[%s6386_s1 + $0x3f8] sm:$0xff]  }
  0x3b   : >> { %4670 = vmatpush3.bf16.msra.mxu1 %v5076_v48  ;;  %4649 = vmatprep.subr.bf16.mxu0 %v5077_v49  ;;  %v5143_v48 = vld [vmem:[%s6386_s1 + $0x338] sm:$0xff]  }
  0x3c   : >> { %4671 = vmatprep.subr.bf16.mxu1 %v5078_v50  ;;  %v5144_v49 = vld [vmem:[%s6386_s1 + $0x3b8] sm:$0xff]   ;;  %v5145_v50 = vld [vmem:[%s6386_s1 + $0x370] sm:$0xff]  }
  0x3e   : >> { %4650 = vmatpush3.bf16.msra.mxu0 %v5079_v51  ;;  %v5146_v51 = vld [vmem:[%s6386_s1 + $0x3f0] sm:$0xff]  }
  0x3f   : >> { %4672 = vmatpush3.bf16.msra.mxu1 %v5080_v52  ;;  %4651 = vmatprep.subr.bf16.mxu0 %v5081_v53  ;;  %v5147_v52 = vld [vmem:[%s6386_s1 + $0x330] sm:$0xff]  }
  0x40   : >> { %4673 = vmatprep.subr.bf16.mxu1 %v5082_v54  ;;  %v5148_v53 = vld [vmem:[%s6386_s1 + $0x3b0] sm:$0xff]   ;;  %v5149_v54 = vld [vmem:[%s6386_s1 + $0x368] sm:$0xff]  }
  0x42   : >> { %4652 = vmatpush3.bf16.msra.mxu0 %v5083_v55  ;;  %v5150_v55 = vld [vmem:[%s6386_s1 + $0x3e8] sm:$0xff]  }
  0x43   : >> { %4674 = vmatpush3.bf16.msra.mxu1 %v5084_v56  ;;  %4653 = vmatprep.subr.bf16.mxu0 %v5085_v57  ;;  %v5151_v56 = vld [vmem:[%s6386_s1 + $0x328] sm:$0xff]  }
  0x44   : >> { %4675 = vmatprep.subr.bf16.mxu1 %v5086_v58  ;;  %v5152_v57 = vld [vmem:[%s6386_s1 + $0x3a8] sm:$0xff]   ;;  %v5153_v58 = vld [vmem:[%s6386_s1 + $0x360] sm:$0xff]  }
  0x46   : >> { %4654 = vmatpush3.bf16.msra.mxu0 %v5087_v59  ;;  %v5154_v59 = vld [vmem:[%s6386_s1 + $0x3e0] sm:$0xff]  }
  0x47   : >> { %4676 = vmatpush3.bf16.msra.mxu1 %v5088_v60  ;;  %4655 = vmatprep.subr.bf16.mxu0 %v5089_v61  ;;  %v5155_v60 = vld [vmem:[%s6386_s1 + $0x320] sm:$0xff]  }
  0x48   : >> { %4677 = vmatprep.subr.bf16.mxu1 %v5090_v62  ;;  %v5156_v61 = vld [vmem:[%s6386_s1 + $0x3a0] sm:$0xff]   ;;  %v5157_v62 = vld [vmem:[%s6386_s1 + $0x358] sm:$0xff]  }
  0x4a   : >> { %4656 = vmatpush3.bf16.msra.mxu0 %v5091_v63  ;;  %v5158_v63 = vld [vmem:[%s6386_s1 + $0x3d8] sm:$0xff]  }
  0x4b   : >> { %4678 = vmatpush3.bf16.msra.mxu1 %v5092_v1  ;;  %4657 = vmatprep.subr.bf16.mxu0 %v5093_v2  ;;  %v5159_v1 = vld [vmem:[%s6386_s1 + $0x318] sm:$0xff]  }
  0x4c   : >> { %4679 = vmatprep.subr.bf16.mxu1 %v5094_v3  ;;  %v5160_v2 = vld [vmem:[%s6386_s1 + $0x398] sm:$0xff]   ;;  %v5161_v3 = vld [vmem:[%s6386_s1 + $0x350] sm:$0xff]  }
  0x4e   : >> { %4658 = vmatpush3.bf16.msra.mxu0 %v5095_v4  ;;  %v5162_v4 = vld [vmem:[%s6386_s1 + $0x3d0] sm:$0xff]  }
  0x4f   : >> { %4680 = vmatpush3.bf16.msra.mxu1 %v5096_v5  ;;  %4687 = vmatprep.subr.bf16.mxu0 %v5103_v10  ;;  %v5163_v5 = vld [vmem:[%s6386_s1 + $0x310] sm:$0xff]   ;;  %v5168_v10 = vld [vmem:[%s6386_s1 + $0x388] sm:$0xff]  }
  0x50   : >> { %4709 = vmatprep.subr.bf16.mxu1 %v5104_v11  ;;  %v5169_v11 = vld [vmem:[%s6386_s1 + $0x340] sm:$0xff]  }
  0x51   : >> { %912 = vmatmul.mubr.bf16.vlgmr.msra.gmra.mxu0 %v5097_v6  ;;  %v5164_v6 = vld [vmem:[%s6386_s1 + $0x390] sm:$0xff]  }
  0x52   : >> { %953 = vmatmul.mubr.bf16.vlgmr.msra.gmra.mxu1 %v5100_v8  ;;  %4688 = vmatpush3.bf16.msra.mxu0 %v5105_v12  ;;  %v5166_v8 = vld [vmem:[%s6386_s1 + $0x3c8] sm:$0xff]   ;;  %v5170_v12 = vld [vmem:[%s6386_s1 + $0x3c0] sm:$0xff]  }
  0x53   : >> { %4710 = vmatpush3.bf16.msra.mxu1 %v5106_v13  ;;  %4689 = vmatprep.subr.bf16.mxu0 %v5107_v14  ;;  %v5171_v13 = vld [vmem:[%s6386_s1 + $0x300] sm:$0xff]  }
  0x54   : >> { %4711 = vmatprep.subr.bf16.mxu1 %v5108_v15  ;;  %1278 = vmatprep.mubr.bf16.mxu0 %v5137_v43  ;;  %v5172_v14 = vld [vmem:[%s6386_s1 + $0x380] sm:$0xff]   ;;  %v5203_v43 = vld [vmem:[%s6386_s1 + $0x448] sm:$0xff]  }
  0x55   : >> { %1319 = vmatprep.mubr.bf16.mxu1 %v5140_v45  ;;  %v5173_v15 = vld [vmem:[%s5551_s25 + $0x60] ss:$16 sps:$4 sm:$0xff]   ;;  %v5205_v45 = vld [vmem:[%s6386_s1 + $0x408] sm:$0xff]  }
  0x56   : >> { %4690 = vmatpush3.bf16.msra.mxu0 %v5109_v16  ;;  %v5175_v16 = vld [vmem:[%s5551_s25 + $0x64] ss:$16 sps:$4 sm:$0xff]  }
  0x57   : >> { %4712 = vmatpush3.bf16.msra.mxu1 %v5110_v17  ;;  %4691 = vmatprep.subr.bf16.mxu0 %v5111_v18  ;;  %v5176_v17 = vld [vmem:[%s5551_s25 + $0x68] ss:$16 sps:$4 sm:$0xff]   ;;  %v5178_v18 = vld [vmem:[%s5551_s25 + $0x6c] ss:$16 sps:$4 sm:$0xff]  }
  0x58   : >> { %4713 = vmatprep.subr.bf16.mxu1 %v5112_v19  ;;  %v5179_v19 = vld [vmem:[%s6386_s1 + $0x478] sm:$0xff]  }
  0x5a   : >> { %4692 = vmatpush3.bf16.msra.mxu0 %v5113_v20  ;;  %v5180_v20 = vld [vmem:[%s6386_s1 + $0x4f8] sm:$0xff]  }
  0x5b   : >> { %4714 = vmatpush3.bf16.msra.mxu1 %v5114_v21  ;;  %4693 = vmatprep.subr.bf16.mxu0 %v5115_v22  ;;  %v5181_v21 = vld [vmem:[%s6386_s1 + $0x438] sm:$0xff]  }
  0x5c   : >> { %4715 = vmatprep.subr.bf16.mxu1 %v5116_v23  ;;  %v5182_v22 = vld [vmem:[%s6386_s1 + $0x4b8] sm:$0xff]   ;;  %v5183_v23 = vld [vmem:[%s6386_s1 + $0x470] sm:$0xff]  }
  0x5e   : >> { %4694 = vmatpush3.bf16.msra.mxu0 %v5117_v24  ;;  %v5184_v24 = vld [vmem:[%s6386_s1 + $0x4f0] sm:$0xff]  }
  0x5f   : >> { %4716 = vmatpush3.bf16.msra.mxu1 %v5118_v25  ;;  %4695 = vmatprep.subr.bf16.mxu0 %v5119_v26  ;;  %v5185_v25 = vld [vmem:[%s6386_s1 + $0x430] sm:$0xff]  }
  0x60   : >> { %4717 = vmatprep.subr.bf16.mxu1 %v5120_v27  ;;  %v5186_v26 = vld [vmem:[%s6386_s1 + $0x4b0] sm:$0xff]   ;;  %v5187_v27 = vld [vmem:[%s6386_s1 + $0x468] sm:$0xff]  }
  0x62   : >> { %4696 = vmatpush3.bf16.msra.mxu0 %v5121_v28  ;;  %v5188_v28 = vld [vmem:[%s6386_s1 + $0x4e8] sm:$0xff]  }
  0x63   : >> { %4718 = vmatpush3.bf16.msra.mxu1 %v5122_v29  ;;  %4697 = vmatprep.subr.bf16.mxu0 %v5123_v30  ;;  %v5189_v29 = vld [vmem:[%s6386_s1 + $0x428] sm:$0xff]  }
  0x64   : >> { %4719 = vmatprep.subr.bf16.mxu1 %v5124_v31  ;;  %v5190_v30 = vld [vmem:[%s6386_s1 + $0x4a8] sm:$0xff]   ;;  %v5191_v31 = vld [vmem:[%s6386_s1 + $0x460] sm:$0xff]  }
  0x66   : >> { %4698 = vmatpush3.bf16.msra.mxu0 %v5125_v32  ;;  %v5192_v32 = vld [vmem:[%s6386_s1 + $0x4e0] sm:$0xff]  }
  0x67   : >> { %4720 = vmatpush3.bf16.msra.mxu1 %v5126_v33  ;;  %4699 = vmatprep.subr.bf16.mxu0 %v5127_v34  ;;  %v5193_v33 = vld [vmem:[%s6386_s1 + $0x420] sm:$0xff]  }
  0x68   : >> { %4721 = vmatprep.subr.bf16.mxu1 %v5128_v35  ;;  %v5194_v34 = vld [vmem:[%s6386_s1 + $0x4a0] sm:$0xff]   ;;  %v5195_v35 = vld [vmem:[%s6386_s1 + $0x458] sm:$0xff]  }
  0x6a   : >> { %4700 = vmatpush3.bf16.msra.mxu0 %v5129_v36  ;;  %v5196_v36 = vld [vmem:[%s6386_s1 + $0x4d8] sm:$0xff]  }
  0x6b   : >> { %4722 = vmatpush3.bf16.msra.mxu1 %v5130_v37  ;;  %4701 = vmatprep.subr.bf16.mxu0 %v5131_v38  ;;  %v5197_v37 = vld [vmem:[%s6386_s1 + $0x418] sm:$0xff]  }
  0x6c   : >> { %4723 = vmatprep.subr.bf16.mxu1 %v5132_v39  ;;  %v5198_v38 = vld [vmem:[%s6386_s1 + $0x498] sm:$0xff]   ;;  %v5199_v39 = vld [vmem:[%s6386_s1 + $0x450] sm:$0xff]  }
  0x6e   : >> { %4702 = vmatpush3.bf16.msra.mxu0 %v5133_v40  ;;  %v5200_v40 = vld [vmem:[%s6386_s1 + $0x4d0] sm:$0xff]  }
  0x6f   : >> { %4724 = vmatpush3.bf16.msra.mxu1 %v5134_v41  ;;  %4731 = vmatprep.subr.bf16.mxu0 %v5141_v46  ;;  %v5201_v41 = vld [vmem:[%s6386_s1 + $0x410] sm:$0xff]   ;;  %v5206_v46 = vld [vmem:[%s6386_s1 + $0x488] sm:$0xff]  }
  0x70   : >> { %4753 = vmatprep.subr.bf16.mxu1 %v5142_v47  ;;  %v5207_v47 = vld [vmem:[%s6386_s1 + $0x440] sm:$0xff]  }
  0x71   : >> { %1279 = vmatmul.mubr.bf16.vlgmr.msra.gmra.mxu0 %v5135_v42  ;;  %v5202_v42 = vld [vmem:[%s6386_s1 + $0x490] sm:$0xff]  }
  0x72   : >> { %1320 = vmatmul.mubr.bf16.vlgmr.msra.gmra.mxu1 %v5138_v44  ;;  %4732 = vmatpush3.bf16.msra.mxu0 %v5143_v48  ;;  %v5204_v44 = vld [vmem:[%s6386_s1 + $0x4c8] sm:$0xff]   ;;  %v5208_v48 = vld [vmem:[%s6386_s1 + $0x4c0] sm:$0xff]  }
  0x73   : >> { %4754 = vmatpush3.bf16.msra.mxu1 %v5144_v49  ;;  %4733 = vmatprep.subr.bf16.mxu0 %v5145_v50  ;;  %v5209_v49 = vld [vmem:[%s6386_s1 + $0x400] sm:$0xff]  }
  0x74   : >> { %4755 = vmatprep.subr.bf16.mxu1 %v5146_v51  ;;  %1647 = vmatprep.mubr.bf16.mxu0 %v5175_v16  ;;  %v5210_v50 = vld [vmem:[%s6386_s1 + $0x480] sm:$0xff]   ;;  %v5241_v16 = vld [vmem:[%s6386_s1 + $0x548] sm:$0xff]  }
  0x75   : >> { %1688 = vmatprep.mubr.bf16.mxu1 %v5178_v18  ;;  %v5211_v51 = vld [vmem:[%s5551_s25 + $0x80] ss:$16 sps:$4 sm:$0xff]   ;;  %v5243_v18 = vld [vmem:[%s6386_s1 + $0x508] sm:$0xff]  }
  0x76   : >> { %4734 = vmatpush3.bf16.msra.mxu0 %v5147_v52  ;;  %v5213_v52 = vld [vmem:[%s5551_s25 + $0x84] ss:$16 sps:$4 sm:$0xff]  }
  0x77   : >> { %4756 = vmatpush3.bf16.msra.mxu1 %v5148_v53  ;;  %4735 = vmatprep.subr.bf16.mxu0 %v5149_v54  ;;  %v5214_v53 = vld [vmem:[%s5551_s25 + $0x88] ss:$16 sps:$4 sm:$0xff]   ;;  %v5216_v54 = vld [vmem:[%s5551_s25 + $0x8c] ss:$16 sps:$4 sm:$0xff]  }
  0x78   : >> { %4757 = vmatprep.subr.bf16.mxu1 %v5150_v55  ;;  %v5217_v55 = vld [vmem:[%s6386_s1 + $0x578] sm:$0xff]  }
  0x7a   : >> { %4736 = vmatpush3.bf16.msra.mxu0 %v5151_v56  ;;  %v5218_v56 = vld [vmem:[%s6386_s1 + $0x5f8] sm:$0xff]  }
  0x7b   : >> { %4758 = vmatpush3.bf16.msra.mxu1 %v5152_v57  ;;  %4737 = vmatprep.subr.bf16.mxu0 %v5153_v58  ;;  %v5219_v57 = vld [vmem:[%s6386_s1 + $0x538] sm:$0xff]  }
  0x7c   : >> { %4759 = vmatprep.subr.bf16.mxu1 %v5154_v59  ;;  %v5220_v58 = vld [vmem:[%s6386_s1 + $0x5b8] sm:$0xff]   ;;  %v5221_v59 = vld [vmem:[%s6386_s1 + $0x570] sm:$0xff]  }
  0x7e   : >> { %4738 = vmatpush3.bf16.msra.mxu0 %v5155_v60  ;;  %v5222_v60 = vld [vmem:[%s6386_s1 + $0x5f0] sm:$0xff]  }
  0x7f   : >> { %4760 = vmatpush3.bf16.msra.mxu1 %v5156_v61  ;;  %4739 = vmatprep.subr.bf16.mxu0 %v5157_v62  ;;  %v5223_v61 = vld [vmem:[%s6386_s1 + $0x530] sm:$0xff]  }
  0x80   : >> { %4761 = vmatprep.subr.bf16.mxu1 %v5158_v63  ;;  %v5224_v62 = vld [vmem:[%s6386_s1 + $0x5b0] sm:$0xff]   ;;  %v5225_v63 = vld [vmem:[%s6386_s1 + $0x568] sm:$0xff]  }
  0x82   : >> { %4740 = vmatpush3.bf16.msra.mxu0 %v5159_v1  ;;  %v5226_v1 = vld [vmem:[%s6386_s1 + $0x5e8] sm:$0xff]  }
  0x83   : >> { %4762 = vmatpush3.bf16.msra.mxu1 %v5160_v2  ;;  %4741 = vmatprep.subr.bf16.mxu0 %v5161_v3  ;;  %v5227_v2 = vld [vmem:[%s6386_s1 + $0x528] sm:$0xff]  }
  0x84   : >> { %4763 = vmatprep.subr.bf16.mxu1 %v5162_v4  ;;  %v5228_v3 = vld [vmem:[%s6386_s1 + $0x5a8] sm:$0xff]   ;;  %v5229_v4 = vld [vmem:[%s6386_s1 + $0x560] sm:$0xff]  }
  0x86   : >> { %4742 = vmatpush3.bf16.msra.mxu0 %v5163_v5  ;;  %v5230_v5 = vld [vmem:[%s6386_s1 + $0x5e0] sm:$0xff]  }
  0x87   : >> { %4764 = vmatpush3.bf16.msra.mxu1 %v5164_v6  ;;  %4743 = vmatprep.subr.bf16.mxu0 %v5165_v7  ;;  %v5231_v6 = vld [vmem:[%s6386_s1 + $0x520] sm:$0xff]  }
  0x88   : >> { %4765 = vmatprep.subr.bf16.mxu1 %v5166_v8  ;;  %v5232_v7 = vld [vmem:[%s6386_s1 + $0x5a0] sm:$0xff]   ;;  %v5233_v8 = vld [vmem:[%s6386_s1 + $0x558] sm:$0xff]  }
  0x8a   : >> { %4744 = vmatpush3.bf16.msra.mxu0 %v5167_v9  ;;  %v5234_v9 = vld [vmem:[%s6386_s1 + $0x5d8] sm:$0xff]  }
  0x8b   : >> { %4766 = vmatpush3.bf16.msra.mxu1 %v5168_v10  ;;  %4745 = vmatprep.subr.bf16.mxu0 %v5169_v11  ;;  %v5235_v10 = vld [vmem:[%s6386_s1 + $0x518] sm:$0xff]  }
  0x8c   : >> { %4767 = vmatprep.subr.bf16.mxu1 %v5170_v12  ;;  %v5236_v11 = vld [vmem:[%s6386_s1 + $0x598] sm:$0xff]   ;;  %v5237_v12 = vld [vmem:[%s6386_s1 + $0x550] sm:$0xff]  }
  0x8e   : >> { %4746 = vmatpush3.bf16.msra.mxu0 %v5171_v13  ;;  %v5238_v13 = vld [vmem:[%s6386_s1 + $0x5d0] sm:$0xff]  }
  0x8f   : >> { %4768 = vmatpush3.bf16.msra.mxu1 %v5172_v14  ;;  %4775 = vmatprep.subr.bf16.mxu0 %v5179_v19  ;;  %v5239_v14 = vld [vmem:[%s6386_s1 + $0x510] sm:$0xff]   ;;  %v5244_v19 = vld [vmem:[%s6386_s1 + $0x588] sm:$0xff]  }
  0x90   : >> { %4797 = vmatprep.subr.bf16.mxu1 %v5180_v20  ;;  %v5245_v20 = vld [vmem:[%s6386_s1 + $0x540] sm:$0xff]  }
  0x91   : >> { %1648 = vmatmul.mubr.bf16.vlgmr.msra.gmra.mxu0 %v5173_v15  ;;  %v5240_v15 = vld [vmem:[%s6386_s1 + $0x590] sm:$0xff]  }
  0x92   : >> { %1689 = vmatmul.mubr.bf16.vlgmr.msra.gmra.mxu1 %v5176_v17  ;;  %4776 = vmatpush3.bf16.msra.mxu0 %v5181_v21  ;;  %v5242_v17 = vld [vmem:[%s6386_s1 + $0x5c8] sm:$0xff]   ;;  %v5246_v21 = vld [vmem:[%s6386_s1 + $0x5c0] sm:$0xff]  }
  0x93   : >> { %4798 = vmatpush3.bf16.msra.mxu1 %v5182_v22  ;;  %4777 = vmatprep.subr.bf16.mxu0 %v5183_v23  ;;  %v5247_v22 = vld [vmem:[%s6386_s1 + $0x500] sm:$0xff]  }
  0x94   : >> { %4799 = vmatprep.subr.bf16.mxu1 %v5184_v24  ;;  %2016 = vmatprep.mubr.bf16.mxu0 %v5213_v52  ;;  %v5248_v23 = vld [vmem:[%s6386_s1 + $0x580] sm:$0xff]   ;;  %v5279_v52 = vld [vmem:[%s6386_s1 + $0x648] sm:$0xff]  }
  0x95   : >> { %2057 = vmatprep.mubr.bf16.mxu1 %v5216_v54  ;;  %v5249_v24 = vld [vmem:[%s5551_s25 + $0xa0] ss:$16 sps:$4 sm:$0xff]   ;;  %v5281_v54 = vld [vmem:[%s6386_s1 + $0x608] sm:$0xff]  }
  0x96   : >> { %4778 = vmatpush3.bf16.msra.mxu0 %v5185_v25  ;;  %v5251_v25 = vld [vmem:[%s5551_s25 + $0xa4] ss:$16 sps:$4 sm:$0xff]  }
  0x97   : >> { %4800 = vmatpush3.bf16.msra.mxu1 %v5186_v26  ;;  %4779 = vmatprep.subr.bf16.mxu0 %v5187_v27  ;;  %v5252_v26 = vld [vmem:[%s5551_s25 + $0xa8] ss:$16 sps:$4 sm:$0xff]   ;;  %v5254_v27 = vld [vmem:[%s5551_s25 + $0xac] ss:$16 sps:$4 sm:$0xff]  }
  0x98   : >> { %4801 = vmatprep.subr.bf16.mxu1 %v5188_v28  ;;  %v5255_v28 = vld [vmem:[%s6386_s1 + $0x678] sm:$0xff]  }
  0x9a   : >> { %4780 = vmatpush3.bf16.msra.mxu0 %v5189_v29  ;;  %v5256_v29 = vld [vmem:[%s6386_s1 + $0x6f8] sm:$0xff]  }
  0x9b   : >> { %4802 = vmatpush3.bf16.msra.mxu1 %v5190_v30  ;;  %4781 = vmatprep.subr.bf16.mxu0 %v5191_v31  ;;  %v5257_v30 = vld [vmem:[%s6386_s1 + $0x638] sm:$0xff]  }
  0x9c   : >> { %4803 = vmatprep.subr.bf16.mxu1 %v5192_v32  ;;  %v5258_v31 = vld [vmem:[%s6386_s1 + $0x6b8] sm:$0xff]   ;;  %v5259_v32 = vld [vmem:[%s6386_s1 + $0x670] sm:$0xff]  }
  0x9e   : >> { %4782 = vmatpush3.bf16.msra.mxu0 %v5193_v33  ;;  %v5260_v33 = vld [vmem:[%s6386_s1 + $0x6f0] sm:$0xff]  }
  0x9f   : >> { %4804 = vmatpush3.bf16.msra.mxu1 %v5194_v34  ;;  %4783 = vmatprep.subr.bf16.mxu0 %v5195_v35  ;;  %v5261_v34 = vld [vmem:[%s6386_s1 + $0x630] sm:$0xff]  }
  0xa0   : >> { %4805 = vmatprep.subr.bf16.mxu1 %v5196_v36  ;;  %v5262_v35 = vld [vmem:[%s6386_s1 + $0x6b0] sm:$0xff]   ;;  %v5263_v36 = vld [vmem:[%s6386_s1 + $0x668] sm:$0xff]  }
  0xa2   : >> { %4784 = vmatpush3.bf16.msra.mxu0 %v5197_v37  ;;  %v5264_v37 = vld [vmem:[%s6386_s1 + $0x6e8] sm:$0xff]  }
  0xa3   : >> { %4806 = vmatpush3.bf16.msra.mxu1 %v5198_v38  ;;  %4785 = vmatprep.subr.bf16.mxu0 %v5199_v39  ;;  %v5265_v38 = vld [vmem:[%s6386_s1 + $0x628] sm:$0xff]  }
  0xa4   : >> { %4807 = vmatprep.subr.bf16.mxu1 %v5200_v40  ;;  %v5266_v39 = vld [vmem:[%s6386_s1 + $0x6a8] sm:$0xff]   ;;  %v5267_v40 = vld [vmem:[%s6386_s1 + $0x660] sm:$0xff]  }
  0xa6   : >> { %4786 = vmatpush3.bf16.msra.mxu0 %v5201_v41  ;;  %v5268_v41 = vld [vmem:[%s6386_s1 + $0x6e0] sm:$0xff]  }
  0xa7   : >> { %4808 = vmatpush3.bf16.msra.mxu1 %v5202_v42  ;;  %4787 = vmatprep.subr.bf16.mxu0 %v5203_v43  ;;  %v5269_v42 = vld [vmem:[%s6386_s1 + $0x620] sm:$0xff]  }
  0xa8   : >> { %4809 = vmatprep.subr.bf16.mxu1 %v5204_v44  ;;  %v5270_v43 = vld [vmem:[%s6386_s1 + $0x6a0] sm:$0xff]   ;;  %v5271_v44 = vld [vmem:[%s6386_s1 + $0x658] sm:$0xff]  }
  0xaa   : >> { %4788 = vmatpush3.bf16.msra.mxu0 %v5205_v45  ;;  %v5272_v45 = vld [vmem:[%s6386_s1 + $0x6d8] sm:$0xff]  }
  0xab   : >> { %4810 = vmatpush3.bf16.msra.mxu1 %v5206_v46  ;;  %4789 = vmatprep.subr.bf16.mxu0 %v5207_v47  ;;  %v5273_v46 = vld [vmem:[%s6386_s1 + $0x618] sm:$0xff]  }
  0xac   : >> { %4811 = vmatprep.subr.bf16.mxu1 %v5208_v48  ;;  %v5274_v47 = vld [vmem:[%s6386_s1 + $0x698] sm:$0xff]   ;;  %v5275_v48 = vld [vmem:[%s6386_s1 + $0x650] sm:$0xff]  }
  0xae   : >> { %4790 = vmatpush3.bf16.msra.mxu0 %v5209_v49  ;;  %v5276_v49 = vld [vmem:[%s6386_s1 + $0x6d0] sm:$0xff]  }
  0xaf   : >> { %4812 = vmatpush3.bf16.msra.mxu1 %v5210_v50  ;;  %4819 = vmatprep.subr.bf16.mxu0 %v5217_v55  ;;  %v5277_v50 = vld [vmem:[%s6386_s1 + $0x610] sm:$0xff]   ;;  %v5282_v55 = vld [vmem:[%s6386_s1 + $0x688] sm:$0xff]  }
  0xb0   : >> { %4841 = vmatprep.subr.bf16.mxu1 %v5218_v56  ;;  %v5283_v56 = vld [vmem:[%s6386_s1 + $0x640] sm:$0xff]  }
  0xb1   : >> { %2017 = vmatmul.mubr.bf16.vlgmr.msra.gmra.mxu0 %v5211_v51  ;;  %v5278_v51 = vld [vmem:[%s6386_s1 + $0x690] sm:$0xff]  }
  0xb2   : >> { %2058 = vmatmul.mubr.bf16.vlgmr.msra.gmra.mxu1 %v5214_v53  ;;  %4820 = vmatpush3.bf16.msra.mxu0 %v5219_v57  ;;  %v5280_v53 = vld [vmem:[%s6386_s1 + $0x6c8] sm:$0xff]   ;;  %v5284_v57 = vld [vmem:[%s6386_s1 + $0x6c0] sm:$0xff]  }
  0xb3   : >> { %4842 = vmatpush3.bf16.msra.mxu1 %v5220_v58  ;;  %4821 = vmatprep.subr.bf16.mxu0 %v5221_v59  ;;  %v5285_v58 = vld [vmem:[%s6386_s1 + $0x600] sm:$0xff]  }
  0xb4   : >> { %4843 = vmatprep.subr.bf16.mxu1 %v5222_v60  ;;  %2385 = vmatprep.mubr.bf16.mxu0 %v5251_v25  ;;  %v5286_v59 = vld [vmem:[%s6386_s1 + $0x680] sm:$0xff]   ;;  %v5317_v25 = vld [vmem:[%s6386_s1 + $0x748] sm:$0xff]  }
  0xb5   : >> { %2426 = vmatprep.mubr.bf16.mxu1 %v5254_v27  ;;  %v5287_v60 = vld [vmem:[%s5551_s25 + $0xc0] ss:$16 sps:$4 sm:$0xff]   ;;  %v5319_v27 = vld [vmem:[%s6386_s1 + $0x708] sm:$0xff]  }
  0xb6   : >> { %4822 = vmatpush3.bf16.msra.mxu0 %v5223_v61  ;;  %v5289_v61 = vld [vmem:[%s5551_s25 + $0xc4] ss:$16 sps:$4 sm:$0xff]  }
  0xb7   : >> { %4844 = vmatpush3.bf16.msra.mxu1 %v5224_v62  ;;  %4823 = vmatprep.subr.bf16.mxu0 %v5225_v63  ;;  %v5290_v62 = vld [vmem:[%s5551_s25 + $0xc8] ss:$16 sps:$4 sm:$0xff]   ;;  %v5292_v63 = vld [vmem:[%s5551_s25 + $0xcc] ss:$16 sps:$4 sm:$0xff]  }
  0xb8   : >> { %4845 = vmatprep.subr.bf16.mxu1 %v5226_v1  ;;  %v5293_v1 = vld [vmem:[%s6386_s1 + $0x778] sm:$0xff]  }
  0xba   : >> { %4824 = vmatpush3.bf16.msra.mxu0 %v5227_v2  ;;  %v5294_v2 = vld [vmem:[%s6386_s1 + $0x7f8] sm:$0xff]  }
  0xbb   : >> { %4846 = vmatpush3.bf16.msra.mxu1 %v5228_v3  ;;  %4825 = vmatprep.subr.bf16.mxu0 %v5229_v4  ;;  %v5295_v3 = vld [vmem:[%s6386_s1 + $0x738] sm:$0xff]  }
  0xbc   : >> { %4847 = vmatprep.subr.bf16.mxu1 %v5230_v5  ;;  %v5296_v4 = vld [vmem:[%s6386_s1 + $0x7b8] sm:$0xff]   ;;  %v5297_v5 = vld [vmem:[%s6386_s1 + $0x770] sm:$0xff]  }
  0xbe   : >> { %4826 = vmatpush3.bf16.msra.mxu0 %v5231_v6  ;;  %v5298_v6 = vld [vmem:[%s6386_s1 + $0x7f0] sm:$0xff]  }
  0xbf   : >> { %4848 = vmatpush3.bf16.msra.mxu1 %v5232_v7  ;;  %4827 = vmatprep.subr.bf16.mxu0 %v5233_v8  ;;  %v5299_v7 = vld [vmem:[%s6386_s1 + $0x730] sm:$0xff]  }
  0xc0   : >> { %4849 = vmatprep.subr.bf16.mxu1 %v5234_v9  ;;  %v5300_v8 = vld [vmem:[%s6386_s1 + $0x7b0] sm:$0xff]   ;;  %v5301_v9 = vld [vmem:[%s6386_s1 + $0x768] sm:$0xff]  }
  0xc2   : >> { %4828 = vmatpush3.bf16.msra.mxu0 %v5235_v10  ;;  %v5302_v10 = vld [vmem:[%s6386_s1 + $0x7e8] sm:$0xff]  }
  0xc3   : >> { %4850 = vmatpush3.bf16.msra.mxu1 %v5236_v11  ;;  %4829 = vmatprep.subr.bf16.mxu0 %v5237_v12  ;;  %v5303_v11 = vld [vmem:[%s6386_s1 + $0x728] sm:$0xff]  }
  0xc4   : >> { %4851 = vmatprep.subr.bf16.mxu1 %v5238_v13  ;;  %v5304_v12 = vld [vmem:[%s6386_s1 + $0x7a8] sm:$0xff]   ;;  %v5305_v13 = vld [vmem:[%s6386_s1 + $0x760] sm:$0xff]  }
  0xc6   : >> { %4830 = vmatpush3.bf16.msra.mxu0 %v5239_v14  ;;  %v5306_v14 = vld [vmem:[%s6386_s1 + $0x7e0] sm:$0xff]  }
  0xc7   : >> { %4852 = vmatpush3.bf16.msra.mxu1 %v5240_v15  ;;  %4831 = vmatprep.subr.bf16.mxu0 %v5241_v16  ;;  %v5307_v15 = vld [vmem:[%s6386_s1 + $0x720] sm:$0xff]  }
  0xc8   : >> { %4853 = vmatprep.subr.bf16.mxu1 %v5242_v17  ;;  %v5308_v16 = vld [vmem:[%s6386_s1 + $0x7a0] sm:$0xff]   ;;  %v5309_v17 = vld [vmem:[%s6386_s1 + $0x758] sm:$0xff]  }
  0xca   : >> { %4832 = vmatpush3.bf16.msra.mxu0 %v5243_v18  ;;  %v5310_v18 = vld [vmem:[%s6386_s1 + $0x7d8] sm:$0xff]  }
  0xcb   : >> { %4854 = vmatpush3.bf16.msra.mxu1 %v5244_v19  ;;  %4833 = vmatprep.subr.bf16.mxu0 %v5245_v20  ;;  %v5311_v19 = vld [vmem:[%s6386_s1 + $0x718] sm:$0xff]  }
  0xcc   : >> { %4855 = vmatprep.subr.bf16.mxu1 %v5246_v21  ;;  %v5312_v20 = vld [vmem:[%s6386_s1 + $0x798] sm:$0xff]   ;;  %v5313_v21 = vld [vmem:[%s6386_s1 + $0x750] sm:$0xff]  }
  0xce   : >> { %4834 = vmatpush3.bf16.msra.mxu0 %v5247_v22  ;;  %v5314_v22 = vld [vmem:[%s6386_s1 + $0x7d0] sm:$0xff]  }
  0xcf   : >> { %4856 = vmatpush3.bf16.msra.mxu1 %v5248_v23  ;;  %4863 = vmatprep.subr.bf16.mxu0 %v5255_v28  ;;  %v5315_v23 = vld [vmem:[%s6386_s1 + $0x710] sm:$0xff]   ;;  %v5320_v28 = vld [vmem:[%s6386_s1 + $0x788] sm:$0xff]  }
  0xd0   : >> { %4885 = vmatprep.subr.bf16.mxu1 %v5256_v29  ;;  %v5321_v29 = vld [vmem:[%s6386_s1 + $0x740] sm:$0xff]  }
  0xd1   : >> { %2386 = vmatmul.mubr.bf16.vlgmr.msra.gmra.mxu0 %v5249_v24  ;;  %v5316_v24 = vld [vmem:[%s6386_s1 + $0x790] sm:$0xff]  }
  0xd2   : >> { %2427 = vmatmul.mubr.bf16.vlgmr.msra.gmra.mxu1 %v5252_v26  ;;  %4864 = vmatpush3.bf16.msra.mxu0 %v5257_v30  ;;  %v5318_v26 = vld [vmem:[%s6386_s1 + $0x7c8] sm:$0xff]   ;;  %v5322_v30 = vld [vmem:[%s6386_s1 + $0x7c0] sm:$0xff]  }
  0xd3   : >> { %4886 = vmatpush3.bf16.msra.mxu1 %v5258_v31  ;;  %4865 = vmatprep.subr.bf16.mxu0 %v5259_v32  ;;  %v5323_v31 = vld [vmem:[%s6386_s1 + $0x700] sm:$0xff]  }
  0xd4   : >> { %4887 = vmatprep.subr.bf16.mxu1 %v5260_v33  ;;  %2754 = vmatprep.mubr.bf16.mxu0 %v5289_v61  ;;  %v5324_v32 = vld [vmem:[%s6386_s1 + $0x780] sm:$0xff]   ;;  %v5355_v61 = vld [vmem:[%s6386_s1 + $0x848] sm:$0xff]  }
  0xd5   : >> { %2795 = vmatprep.mubr.bf16.mxu1 %v5292_v63  ;;  %v5325_v33 = vld [vmem:[%s5551_s25 + $0xe0] ss:$16 sps:$4 sm:$0xff]   ;;  %v5357_v63 = vld [vmem:[%s6386_s1 + $0x808] sm:$0xff]  }
  0xd6   : >> { %4866 = vmatpush3.bf16.msra.mxu0 %v5261_v34  ;;  %v5327_v34 = vld [vmem:[%s5551_s25 + $0xe4] ss:$16 sps:$4 sm:$0xff]  }
  0xd7   : >> { %4888 = vmatpush3.bf16.msra.mxu1 %v5262_v35  ;;  %4867 = vmatprep.subr.bf16.mxu0 %v5263_v36  ;;  %v5328_v35 = vld [vmem:[%s5551_s25 + $0xe8] ss:$16 sps:$4 sm:$0xff]   ;;  %v5330_v36 = vld [vmem:[%s5551_s25 + $0xec] ss:$16 sps:$4 sm:$0xff]  }
  0xd8   : >> { %4889 = vmatprep.subr.bf16.mxu1 %v5264_v37  ;;  %v5331_v37 = vld [vmem:[%s6386_s1 + $0x878] sm:$0xff]  }
  0xda   : >> { %4868 = vmatpush3.bf16.msra.mxu0 %v5265_v38  ;;  %v5332_v38 = vld [vmem:[%s6386_s1 + $0x8f8] sm:$0xff]  }
  0xdb   : >> { %4890 = vmatpush3.bf16.msra.mxu1 %v5266_v39  ;;  %4869 = vmatprep.subr.bf16.mxu0 %v5267_v40  ;;  %v5333_v39 = vld [vmem:[%s6386_s1 + $0x838] sm:$0xff]  }
  0xdc   : >> { %4891 = vmatprep.subr.bf16.mxu1 %v5268_v41  ;;  %v5334_v40 = vld [vmem:[%s6386_s1 + $0x8b8] sm:$0xff]   ;;  %v5335_v41 = vld [vmem:[%s6386_s1 + $0x870] sm:$0xff]  }
  0xde   : >> { %4870 = vmatpush3.bf16.msra.mxu0 %v5269_v42  ;;  %v5336_v42 = vld [vmem:[%s6386_s1 + $0x8f0] sm:$0xff]  }
  0xdf   : >> { %4892 = vmatpush3.bf16.msra.mxu1 %v5270_v43  ;;  %4871 = vmatprep.subr.bf16.mxu0 %v5271_v44  ;;  %v5337_v43 = vld [vmem:[%s6386_s1 + $0x830] sm:$0xff]  }
  0xe0   : >> { %4893 = vmatprep.subr.bf16.mxu1 %v5272_v45  ;;  %v5338_v44 = vld [vmem:[%s6386_s1 + $0x8b0] sm:$0xff]   ;;  %v5339_v45 = vld [vmem:[%s6386_s1 + $0x868] sm:$0xff]  }
  0xe2   : >> { %4872 = vmatpush3.bf16.msra.mxu0 %v5273_v46  ;;  %v5340_v46 = vld [vmem:[%s6386_s1 + $0x8e8] sm:$0xff]  }
  0xe3   : >> { %4894 = vmatpush3.bf16.msra.mxu1 %v5274_v47  ;;  %4873 = vmatprep.subr.bf16.mxu0 %v5275_v48  ;;  %v5341_v47 = vld [vmem:[%s6386_s1 + $0x828] sm:$0xff]  }
  0xe4   : >> { %4895 = vmatprep.subr.bf16.mxu1 %v5276_v49  ;;  %v5342_v48 = vld [vmem:[%s6386_s1 + $0x8a8] sm:$0xff]   ;;  %v5343_v49 = vld [vmem:[%s6386_s1 + $0x860] sm:$0xff]  }
  0xe6   : >> { %4874 = vmatpush3.bf16.msra.mxu0 %v5277_v50  ;;  %v5344_v50 = vld [vmem:[%s6386_s1 + $0x8e0] sm:$0xff]  }
  0xe7   : >> { %4896 = vmatpush3.bf16.msra.mxu1 %v5278_v51  ;;  %4875 = vmatprep.subr.bf16.mxu0 %v5279_v52  ;;  %v5345_v51 = vld [vmem:[%s6386_s1 + $0x820] sm:$0xff]  }
  0xe8   : >> { %4897 = vmatprep.subr.bf16.mxu1 %v5280_v53  ;;  %v5346_v52 = vld [vmem:[%s6386_s1 + $0x8a0] sm:$0xff]   ;;  %v5347_v53 = vld [vmem:[%s6386_s1 + $0x858] sm:$0xff]  }
  0xea   : >> { %4876 = vmatpush3.bf16.msra.mxu0 %v5281_v54  ;;  %v5348_v54 = vld [vmem:[%s6386_s1 + $0x8d8] sm:$0xff]  }
  0xeb   : >> { %4898 = vmatpush3.bf16.msra.mxu1 %v5282_v55  ;;  %4877 = vmatprep.subr.bf16.mxu0 %v5283_v56  ;;  %v5349_v55 = vld [vmem:[%s6386_s1 + $0x818] sm:$0xff]  }
  0xec   : >> { %4899 = vmatprep.subr.bf16.mxu1 %v5284_v57  ;;  %v5350_v56 = vld [vmem:[%s6386_s1 + $0x898] sm:$0xff]   ;;  %v5351_v57 = vld [vmem:[%s6386_s1 + $0x850] sm:$0xff]  }
  0xee   : >> { %4878 = vmatpush3.bf16.msra.mxu0 %v5285_v58  ;;  %v5352_v58 = vld [vmem:[%s6386_s1 + $0x8d0] sm:$0xff]  }
  0xef   : >> { %4900 = vmatpush3.bf16.msra.mxu1 %v5286_v59  ;;  %4907 = vmatprep.subr.bf16.mxu0 %v5293_v1  ;;  %v5353_v59 = vld [vmem:[%s6386_s1 + $0x810] sm:$0xff]   ;;  %v5358_v1 = vld [vmem:[%s6386_s1 + $0x888] sm:$0xff]  }
  0xf0   : >> { %4929 = vmatprep.subr.bf16.mxu1 %v5294_v2  ;;  %v5359_v2 = vld [vmem:[%s6386_s1 + $0x840] sm:$0xff]  }
  0xf1   : >> { %2755 = vmatmul.mubr.bf16.vlgmr.msra.gmra.mxu0 %v5287_v60  ;;  %v5354_v60 = vld [vmem:[%s6386_s1 + $0x890] sm:$0xff]  }
  0xf2   : >> { %2796 = vmatmul.mubr.bf16.vlgmr.msra.gmra.mxu1 %v5290_v62  ;;  %4908 = vmatpush3.bf16.msra.mxu0 %v5295_v3  ;;  %v5356_v62 = vld [vmem:[%s6386_s1 + $0x8c8] sm:$0xff]   ;;  %v5360_v3 = vld [vmem:[%s6386_s1 + $0x8c0] sm:$0xff]  }
  0xf3   : >> { %4930 = vmatpush3.bf16.msra.mxu1 %v5296_v4  ;;  %4909 = vmatprep.subr.bf16.mxu0 %v5297_v5  ;;  %v5361_v4 = vld [vmem:[%s6386_s1 + $0x800] sm:$0xff]  }
  0xf4   : >> { %4931 = vmatprep.subr.bf16.mxu1 %v5298_v6  ;;  %3123 = vmatprep.mubr.bf16.mxu0 %v5327_v34  ;;  %v5362_v5 = vld [vmem:[%s6386_s1 + $0x880] sm:$0xff]  }
  0xf5   : >> { %3164 = vmatprep.mubr.bf16.mxu1 %v5330_v36  ;;  %v5363_v6 = vld [vmem:[%s5551_s25 + $0x100] ss:$16 sps:$4 sm:$0xff]  }
  0xf6   : >> { %4910 = vmatpush3.bf16.msra.mxu0 %v5299_v7  ;;  %v5365_v7 = vld [vmem:[%s5551_s25 + $0x104] ss:$16 sps:$4 sm:$0xff]  }
  0xf7   : >> { %4932 = vmatpush3.bf16.msra.mxu1 %v5300_v8  ;;  %4911 = vmatprep.subr.bf16.mxu0 %v5301_v9  ;;  %v5366_v8 = vld [vmem:[%s5551_s25 + $0x108] ss:$16 sps:$4 sm:$0xff]   ;;  %v5368_v9 = vld [vmem:[%s5551_s25 + $0x10c] ss:$16 sps:$4 sm:$0xff]   ;;  %s4593_s25 = sshll.u32 %s5399_s28, 3  ;;  %s228_s28 = sadd.s32 1, %s5399_s28  }
  0xf8   : >> { %4933 = vmatprep.subr.bf16.mxu1 %v5302_v10  ;;  %v4615_v10 = vpop.f32.mrf.mxu0  ;;  %s3564_s20 = scalar_lea.vmem %s5447_s24, %s4593_s25  ;;  %p225_p6 = scmp.ge.s32.totalorder %s228_s28, 4  }
  0xfa   : >> { %4912 = vmatpush3.bf16.msra.mxu0 %v5303_v11  ;;  %v4637_v11 = vpop.f32.mrf.mxu1 }
  0xfb   : >> { %4934 = vmatpush3.bf16.msra.mxu1 %v5304_v12  ;;  %4913 = vmatprep.subr.bf16.mxu0 %v5305_v13  ;;  %v4616_v12 = vpop.f32.mrf.mxu0 }
  0xfc   : >> { %4935 = vmatprep.subr.bf16.mxu1 %v5306_v14  ;;  %v4638_v13 = vpop.f32.mrf.mxu1 }
  0xfd   : >> { %v4618_v14 = vpop.f32.mrf.mxu0 }
  0xfe   : >> { %4914 = vmatpush3.bf16.msra.mxu0 %v5307_v15  ;;  %v4640_v15 = vpop.f32.mrf.mxu1 }
  0xff   : >> { %4936 = vmatpush3.bf16.msra.mxu1 %v5308_v16  ;;  %4915 = vmatprep.subr.bf16.mxu0 %v5309_v17  ;;  %v4619_v16 = vpop.f32.mrf.mxu0 }
 0x100   : >> { %4937 = vmatprep.subr.bf16.mxu1 %v5310_v18  ;;  %v4641_v17 = vpop.f32.mrf.mxu1 }
 0x102   : >> { %4916 = vmatpush3.bf16.msra.mxu0 %v5311_v19 }
 0x103   : >> { %4938 = vmatpush3.bf16.msra.mxu1 %v5312_v20  ;;  %4917 = vmatprep.subr.bf16.mxu0 %v5313_v21 }
 0x104   : >> { %4939 = vmatprep.subr.bf16.mxu1 %v5314_v22 }
 0x106   : >> { %4918 = vmatpush3.bf16.msra.mxu0 %v5315_v23 }
 0x107   : >> { %4940 = vmatpush3.bf16.msra.mxu1 %v5316_v24  ;;  %4919 = vmatprep.subr.bf16.mxu0 %v5317_v25 }
 0x108   : >> { %4941 = vmatprep.subr.bf16.mxu1 %v5318_v26 }
 0x10a   : >> { %4920 = vmatpush3.bf16.msra.mxu0 %v5319_v27 }
 0x10b   : >> { %4942 = vmatpush3.bf16.msra.mxu1 %v5320_v28  ;;  %4921 = vmatprep.subr.bf16.mxu0 %v5321_v29 }
 0x10c   : >> { %4943 = vmatprep.subr.bf16.mxu1 %v5322_v30 }
 0x10e   : >> { %4922 = vmatpush3.bf16.msra.mxu0 %v5323_v31 }
 0x10f   : >> { %4944 = vmatpush3.bf16.msra.mxu1 %v5324_v32  ;;  %4951 = vmatprep.subr.bf16.mxu0 %v5331_v37 }
 0x110   : >> { %4973 = vmatprep.subr.bf16.mxu1 %v5332_v38 }
 0x111   : >> { %3124 = vmatmul.mubr.bf16.vlgmr.msra.gmra.mxu0 %v5325_v33  ;;  %v4659_v18 = vpop.f32.mrf.mxu0 }
 0x112   : >> { %3165 = vmatmul.mubr.bf16.vlgmr.msra.gmra.mxu1 %v5328_v35  ;;  %4952 = vmatpush3.bf16.msra.mxu0 %v5333_v39  ;;  %v4681_v19 = vpop.f32.mrf.mxu1 }
 0x113   : >> { %4974 = vmatpush3.bf16.msra.mxu1 %v5334_v40  ;;  %4953 = vmatprep.subr.bf16.mxu0 %v5335_v41  ;;  %v4660_v20 = vpop.f32.mrf.mxu0 }
 0x114   : >> { %4975 = vmatprep.subr.bf16.mxu1 %v5336_v42  ;;  %3492 = vmatprep.mubr.bf16.mxu0 %v5365_v7  ;;  %v4682_v21 = vpop.f32.mrf.mxu1  ;;  %v4620_v7 = vadd.f32 %v4619_v16, %v4618_v14 }
 0x115   : >> { %3533 = vmatprep.mubr.bf16.mxu1 %v5368_v9  ;;  %v4662_v22 = vpop.f32.mrf.mxu0 }
 0x116   : >> { %4954 = vmatpush3.bf16.msra.mxu0 %v5337_v43  ;;  %v6363_v23 = vpop.f32.mrf.mxu1 }
 0x117   : >> { %4976 = vmatpush3.bf16.msra.mxu1 %v5338_v44  ;;  %4955 = vmatprep.subr.bf16.mxu0 %v5339_v45  ;;  %6391 = vst [vmem:[#allocation3_spill] sm:$0xff] %v6363_v23  ;;  %v4663_v24 = vpop.f32.mrf.mxu0 }
 0x118   : >> { %4977 = vmatprep.subr.bf16.mxu1 %v5340_v46  ;;  %v6365_v25 = vpop.f32.mrf.mxu1 }
 0x119   : >> { %6392 = vst [vmem:[#allocation4_spill] sm:$0xff] %v6365_v25 }
 0x11a   : >> { %4956 = vmatpush3.bf16.msra.mxu0 %v5341_v47 }
 0x11b   : >> { %4978 = vmatpush3.bf16.msra.mxu1 %v5342_v48  ;;  %4957 = vmatprep.subr.bf16.mxu0 %v5343_v49 }
 0x11c   : >> { %4979 = vmatprep.subr.bf16.mxu1 %v5344_v50 }
 0x11e   : >> { %4958 = vmatpush3.bf16.msra.mxu0 %v5345_v51 }
 0x11f   : >> { %4980 = vmatpush3.bf16.msra.mxu1 %v5346_v52  ;;  %4959 = vmatprep.subr.bf16.mxu0 %v5347_v53 }
 0x120   : >> { %4981 = vmatprep.subr.bf16.mxu1 %v5348_v54 }
 0x122   : >> { %4960 = vmatpush3.bf16.msra.mxu0 %v5349_v55 }
 0x123   : >> { %4982 = vmatpush3.bf16.msra.mxu1 %v5350_v56  ;;  %4961 = vmatprep.subr.bf16.mxu0 %v5351_v57 }
 0x124   : >> { %4983 = vmatprep.subr.bf16.mxu1 %v5352_v58 }
 0x126   : >> { %4962 = vmatpush3.bf16.msra.mxu0 %v5353_v59 }
 0x127   : >> { %4984 = vmatpush3.bf16.msra.mxu1 %v5354_v60  ;;  %4963 = vmatprep.subr.bf16.mxu0 %v5355_v61 }
 0x128   : >> { %4985 = vmatprep.subr.bf16.mxu1 %v5356_v62 }
 0x12a   : >> { %4964 = vmatpush3.bf16.msra.mxu0 %v5357_v63  ;;  %v4617_v63 = vadd.f32 %v4616_v12, %v4615_v10  ;;  %v4664_v12 = vadd.f32 %v4663_v24, %v4662_v22 }
 0x12b   : >> { %4986 = vmatpush3.bf16.msra.mxu1 %v5358_v1  ;;  %4965 = vmatprep.subr.bf16.mxu0 %v5359_v2  ;;  %v4639_v1 = vadd.f32 %v4638_v13, %v4637_v11 }
 0x12c   : >> { %4987 = vmatprep.subr.bf16.mxu1 %v5360_v3  ;;  %v4661_v3 = vadd.f32 %v4660_v20, %v4659_v18  ;;  %v4683_v20 = vadd.f32 %v4682_v21, %v4681_v19 }
 0x12e   : >> { %4966 = vmatpush3.bf16.msra.mxu0 %v5361_v4 }
 0x12f   : >> { %4988 = vmatpush3.bf16.msra.mxu1 %v5362_v5  ;;  %v661_v5 = vadd.f32 %v4639_v1, %v4617_v63 }
 0x131   : >> { %3493 = vmatmul.mubr.bf16.vlgmr.msra.gmra.mxu0 %v5363_v6  ;;  %v4703_v26 = vpop.f32.mrf.mxu0  ;;  %v914_v10 = vadd.f32 %v4661_v3, %v661_v5 }
 0x132   : >> { %3534 = vmatmul.mubr.bf16.vlgmr.msra.gmra.mxu1 %v5366_v8  ;;  %v4725_v27 = vpop.f32.mrf.mxu1  ;;  %v4642_v8 = vadd.f32 %v4641_v17, %v4640_v15 }
 0x133   : >> { %v4704_v28 = vpop.f32.mrf.mxu0 }
 0x134   : >> { %v4726_v29 = vpop.f32.mrf.mxu1  ;;  %v4705_v9 = vadd.f32 %v4704_v28, %v4703_v26  ;;  %v664_v18 = vadd.f32 %v4642_v8, %v4620_v7  ;;  %v955_v28 = vadd.f32 %v4683_v20, %v914_v10 }
 0x135   : >> { %v4706_v30 = vpop.f32.mrf.mxu0  ;;  %v4727_v0 = vadd.f32 %v4726_v29, %v4725_v27 }
 0x136   : >> { %v4728_v31 = vpop.f32.mrf.mxu1  ;;  %v917_v27 = vadd.f32 %v4664_v12, %v664_v18 }
 0x137   : >> { %v4707_v32 = vpop.f32.mrf.mxu0  ;;  %v1322_v1 = vadd.f32 %v4727_v0, %v4705_v9 }
 0x138   : >> { %v4729_v33 = vpop.f32.mrf.mxu1  ;;  %v4708_v14 = vadd.f32 %v4707_v32, %v4706_v30 }
 0x139   : >> { %v4730_v16 = vadd.f32 %v4729_v33, %v4728_v31  ;;  %v1328_v7 = vadd.f32 %v1322_v1, %v955_v28  ;;  %v6395_v28 = vld [vmem:[#allocation2_spill] sm:$0xff] }
 0x13b   : >> { %v1325_v19 = vadd.f32 %v4730_v16, %v4708_v14 }
 0x151   : >> { %v4747_v34 = vpop.f32.mrf.mxu0 }
 0x152   : >> { %v4769_v35 = vpop.f32.mrf.mxu1 }
 0x153   : >> { %v4748_v36 = vpop.f32.mrf.mxu0 }
 0x154   : >> { %v4770_v37 = vpop.f32.mrf.mxu1  ;;  %v4749_v11 = vadd.f32 %v4748_v36, %v4747_v34  ;;  %v6393_v36 = vld [vmem:[#allocation3_spill] sm:$0xff] }
 0x155   : >> { %v4750_v38 = vpop.f32.mrf.mxu0  ;;  %v4771_v13 = vadd.f32 %v4770_v37, %v4769_v35  ;;  %v6394_v35 = vld [vmem:[#allocation4_spill] sm:$0xff] }
 0x156   : >> { %v4772_v39 = vpop.f32.mrf.mxu1  ;;  %v4686_v37 = vadd.f32 %v6394_v35, %v6393_v36 }
 0x157   : >> { %v4751_v40 = vpop.f32.mrf.mxu0  ;;  %v1691_v29 = vadd.f32 %v4771_v13, %v4749_v11 }
 0x158   : >> { %v4773_v41 = vpop.f32.mrf.mxu1  ;;  %v4752_v3 = vadd.f32 %v4751_v40, %v4750_v38 }
 0x159   : >> { %v4774_v5 = vadd.f32 %v4773_v41, %v4772_v39 }
 0x171   : >> { %v4791_v42 = vpop.f32.mrf.mxu0 }
 0x172   : >> { %v4813_v43 = vpop.f32.mrf.mxu1 }
 0x173   : >> { %v4792_v44 = vpop.f32.mrf.mxu0 }
 0x174   : >> { %v4814_v45 = vpop.f32.mrf.mxu1  ;;  %v4793_v15 = vadd.f32 %v4792_v44, %v4791_v42  ;;  %v958_v42 = vadd.f32 %v4686_v37, %v917_v27  ;;  %v1694_v44 = vadd.f32 %v4774_v5, %v4752_v3 }
 0x175   : >> { %v4794_v46 = vpop.f32.mrf.mxu0  ;;  %v4815_v17 = vadd.f32 %v4814_v45, %v4813_v43  ;;  %v1697_v43 = vadd.f32 %v1691_v29, %v1328_v7 }
 0x176   : >> { %v4816_v47 = vpop.f32.mrf.mxu1 }
 0x177   : >> { %v4795_v48 = vpop.f32.mrf.mxu0  ;;  %v2060_v0 = vadd.f32 %v4815_v17, %v4793_v15 }
 0x178   : >> { %v4817_v49 = vpop.f32.mrf.mxu1  ;;  %v4796_v30 = vadd.f32 %v4795_v48, %v4794_v46 }
 0x179   : >> { %v4818_v31 = vadd.f32 %v4817_v49, %v4816_v47 }
 0x17b   : >> { %v2063_v8 = vadd.f32 %v4818_v31, %v4796_v30 }
 0x191   : >> { %v4835_v50 = vpop.f32.mrf.mxu0 }
 0x192   : >> { %v4857_v51 = vpop.f32.mrf.mxu1 }
 0x193   : >> { %v4836_v52 = vpop.f32.mrf.mxu0 }
 0x194   : >> { %v4858_v53 = vpop.f32.mrf.mxu1  ;;  %v4837_v22 = vadd.f32 %v4836_v52, %v4835_v50  ;;  %v2066_v52 = vadd.f32 %v2060_v0, %v1697_v43 }
 0x195   : >> { %v4838_v54 = vpop.f32.mrf.mxu0  ;;  %v4859_v24 = vadd.f32 %v4858_v53, %v4857_v51  ;;  %v1329_v51 = vadd.f32 %v1325_v19, %v958_v42 }
 0x196   : >> { %v4860_v55 = vpop.f32.mrf.mxu1 }
 0x197   : >> { %v4839_v56 = vpop.f32.mrf.mxu0  ;;  %v2429_v45 = vadd.f32 %v4859_v24, %v4837_v22  ;;  %v1698_v47 = vadd.f32 %v1694_v44, %v1329_v51 }
 0x198   : >> { %v4861_v57 = vpop.f32.mrf.mxu1  ;;  %v4840_v38 = vadd.f32 %v4839_v56, %v4838_v54 }
 0x199   : >> { %v4862_v39 = vadd.f32 %v4861_v57, %v4860_v55  ;;  %v2435_v48 = vadd.f32 %v2429_v45, %v2066_v52 }
 0x1b1   : >> { %v4879_v58 = vpop.f32.mrf.mxu0 }
 0x1b2   : >> { %v4901_v59 = vpop.f32.mrf.mxu1 }
 0x1b3   : >> { %v4880_v60 = vpop.f32.mrf.mxu0 }
 0x1b4   : >> { %v4902_v61 = vpop.f32.mrf.mxu1  ;;  %v4881_v32 = vadd.f32 %v4880_v60, %v4879_v58  ;;  %v2432_v58 = vadd.f32 %v4862_v39, %v4840_v38 }
 0x1b5   : >> { %v4882_v62 = vpop.f32.mrf.mxu0  ;;  %v4903_v33 = vadd.f32 %v4902_v61, %v4901_v59 }
 0x1b6   : >> { %v4904_v2 = vpop.f32.mrf.mxu1 }
 0x1b7   : >> { %v4883_v4 = vpop.f32.mrf.mxu0  ;;  %v2798_v9 = vadd.f32 %v4903_v33, %v4881_v32 }
 0x1b8   : >> { %v4905_v6 = vpop.f32.mrf.mxu1  ;;  %v4884_v10 = vadd.f32 %v4883_v4, %v4882_v62 }
 0x1b9   : >> { %v4906_v12 = vadd.f32 %v4905_v6, %v4904_v2  ;;  %v2804_v56 = vadd.f32 %v2798_v9, %v2435_v48 }
 0x1bb   : >> { %v2801_v57 = vadd.f32 %v4906_v12, %v4884_v10 }
 0x1d1   : >> { %v4923_v25 = vpop.f32.mrf.mxu0 }
 0x1d2   : >> { %v4945_v23 = vpop.f32.mrf.mxu1 }
 0x1d3   : >> { %v4924_v63 = vpop.f32.mrf.mxu0 }
 0x1d4   : >> { %v4946_v26 = vpop.f32.mrf.mxu1  ;;  %v4925_v40 = vadd.f32 %v4924_v63, %v4923_v25 }
 0x1d5   : >> { %v4926_v34 = vpop.f32.mrf.mxu0  ;;  %v4947_v41 = vadd.f32 %v4946_v26, %v4945_v23  ;;  %v2067_v23 = vadd.f32 %v2063_v8, %v1698_v47 }
 0x1d6   : >> { %v4948_v21 = vpop.f32.mrf.mxu1 }
 0x1d7   : >> { %v4927_v50 = vpop.f32.mrf.mxu0  ;;  %v3167_v59 = vadd.f32 %v4947_v41, %v4925_v40  ;;  %v2436_v62 = vadd.f32 %v2432_v58, %v2067_v23 }
 0x1d8   : >> { %v4949_v53 = vpop.f32.mrf.mxu1  ;;  %v4928_v60 = vadd.f32 %v4927_v50, %v4926_v34 }
 0x1d9   : >> { %v4950_v61 = vadd.f32 %v4949_v53, %v4948_v21  ;;  %v3173_v2 = vadd.f32 %v3167_v59, %v2804_v56  ;;  %v2805_v14 = vadd.f32 %v2801_v57, %v2436_v62 }
 0x1db   : >> { %v3170_v4 = vadd.f32 %v4950_v61, %v4928_v60 }
 0x1dd   : >> { %v3174_v17 = vadd.f32 %v3170_v4, %v2805_v14 }
 0x1f1   : >> { %v4967_v46 = vpop.f32.mrf.mxu0 }
 0x1f2   : >> { %v4989_v49 = vpop.f32.mrf.mxu1 }
 0x1f3   : >> { %v4968_v54 = vpop.f32.mrf.mxu0 }
 0x1f4   : >> { %v4969_v55 = vadd.f32 %v4968_v54, %v4967_v46  ;;  %v4990_v25 = vpop.f32.mrf.mxu1 }
 0x1f5   : >> { %v4991_v11 = vadd.f32 %v4990_v25, %v4989_v49  ;;  %v4970_v13 = vpop.f32.mrf.mxu0 }
 0x1f6   : >> { %v4992_v18 = vpop.f32.mrf.mxu1 }
 0x1f7   : >> { %v3536_v6 = vadd.f32 %v4991_v11, %v4969_v55  ;;  %v4971_v20 = vpop.f32.mrf.mxu0 }
 0x1f8   : >> { %v4972_v1 = vadd.f32 %v4971_v20, %v4970_v13  ;;  %v4993_v63 = vpop.f32.mrf.mxu1 }
 0x1f9   : >> { %v3542_v16 = vadd.f32 %v3536_v6, %v3173_v2  ;;  %v4994_v15 = vadd.f32 %v4993_v63, %v4992_v18 }
 0x1fb   : >> { %v3539_v26 = vadd.f32 %v4994_v15, %v4972_v1  ;;  %v3550_v27 = vadd.f32 %v6395_v28, %v3542_v16 }
 0x1fd   : >> { %v3543_v29 = vadd.f32 %v3539_v26, %v3174_v17  ;;  %v3552_v5 = vmax.f32 %v3550_v27, 0.0 }
 0x1ff   : >> { %v3551_v3 = vadd.f32 %v6395_v28, %v3543_v29 }
 0x201   : >> { %v3553_v22 = vmax.f32 %v3551_v3, 0.0  ;;  %227 = sbr.rel (!%p225_p6) target bundleno = 15 (0xf), region = 87 }
 0x203   : >> { %v4597_v24 = vpack.c.bf16 %v3553_v22, %v3552_v5 }
 0x205   : >> { %4598 = vst [vmem:[%s3564_s20] sm:$0xff] %v4597_v24  }
 0x206 PF: > { %s13_s14 = sadd.s32 1, %s5395_s14   ;;  %s6396_s12 = smov %s5391_s13 }
 0x207   : > { %p10_p7 = scmp.ge.s32.totalorder %s13_s14, 4   ;;  %s6397_s13 = smov %s6399_s15 }
 0x209   :  { %12 = sbr.rel (!%p10_p7) target bundleno = 2 (0x2), region = 98 }

// kernel: rfpose_forward.27
= control target key start
LH: loop header
LB: loop body
LE: loop exit
PB: predicated region body
PF: predicated region fallthrough
CT: control target
= control target key end

     0   :  { %s4567_s12 = smov 0   ;;  %s4569_s13 = smov 0   ;;  %s5396_s0 = inlined_call_operand.vmem [shape: bf16[24,16,384], index: 0, kind: input, shape index: {}]   ;;  %s5397_s1 = inlined_call_operand.vmem [shape: bf16[9,384,128], index: 1, kind: input, shape index: {}]   ;;  %s5398_s2 = inlined_call_operand.vmem [shape: f32[1,128], index: 2, kind: input, shape index: {}]   ;;  %s5399_s3 = inlined_call_operand.vmem [shape: bf16[8,16,128], index: 3, kind: output, shape index: {}]  }
   0x1   :  { %s4571_s14 = smov 0  }
   0x2 LB: > { %s25_s15 = sadd.s32 1, %s4535_s13  ;;  %p3085_p0 = scmp.ge.s32.totalorder %s4539_s14, 1  ;;  %s4539_s14 = sphi %s4571_s14, %s13_s14   ;;  %s4535_s13 = sphi %s4569_s13, %s5401_s13   ;;  %s4531_s12 = sphi %s4567_s12, %s5400_s12  }
   0x3   : > { %p27_p1 = scmp.ge.s32.totalorder %s25_s15, 2  ;;  %p161_p2 = scmp.lt.s32.totalorder %s4539_s14, 3 }
   0x5   : > { %s5403_s15 = smov (%p27_p1, %s25_s15), 0  ;;  %p162_p3 = pnand %p3085_p0, %p161_p2 }
   0x6   : > { %s196_s16 = smul.u32 (!%p162_p3), 12, %s4531_s12  ;;  %s3087_s17 = sshll.u32 (!%p162_p3), %s4531_s12, 2 }
   0x7   : > { %165 = sbr.rel (%p162_p3) target bundleno = 518 (0x206), region = 32  ;;  %p211_p4 = scmp.lt.s32.totalorder (!%p162_p3), %s3087_s17, 7 }
   0x8   : > { %p198_p5 = scmp.lt.s32.totalorder (!%p162_p3), %s196_s16, 23  ;;  %s4600_s28 = smov (!%p162_p3), 0  }
   0xc   : > { %v4588_v0 = vld [vmem:[%s5398_s2] ss:$0 sm:$0xff]  ;;  %s5405_s17 = smov (!%p211_p4, %s3087_s17), 7  ;;  %s5407_s16 = smov (!%p198_p5, %s196_s16), 23 }
   0xd   : > { %s3757_s20 = sshll.u32 %s5405_s17, 3  ;;  %s4226_s21 = smul.u32 24, %s5407_s16 }
   0xe   : > { %s4593_s24 = scalar_lea.vmem %s5399_s3, %s3757_s20 }
   0xf   : > { %s4598_s27 = scalar_lea.vmem %s5396_s0, %s4226_s21 }
  0x10 LB: >> { %v4261_v1 = vld [vmem:[%s5397_s1 + $0x138] sm:$0xff]   ;;  %v4545_v2 = vmov 0.0   ;;  %vm4546_vm0 = vmmov 0   ;;  %v4264_v5 = vld [vmem:[%s5397_s1 + $0x130] sm:$0xff]   ;;  %v4267_v8 = vld [vmem:[%s5397_s1 + $0x128] sm:$0xff]   ;;  %s3758_s16 = smul.u32 24, %s4543_s28  ;;  %s4543_s28 = sphi %s4600_s28, %s228_s28  }
  0x11   : >> { %4046 = vmatprep.subr.bf16.mxu1 %v4545_v2  ;;  %v4262_v3 = vld [vmem:[%s5397_s1 + $0x178] sm:$0xff]   ;;  %3767 = vmatprep.subr.bf16.mxu0 %v4261_v1  ;;  %v4265_v6 = vld [vmem:[%s5397_s1 + $0x170] sm:$0xff]   ;;  %v4268_v9 = vld [vmem:[%s5397_s1 + $0x168] sm:$0xff]  }
  0x12   : >> { %v4263_v4 = vld [vmem:[%s5397_s1 + $0xf8] sm:$0xff]   ;;  %4062 = vmatprep.mubr.msk.bf16.mxu1 %vm4546_vm0, %v4545_v2  ;;  %4047 = vmatpush3.bf16.msra.mxu1 %v4262_v3  ;;  %v4266_v7 = vld [vmem:[%s5397_s1 + $0xf0] sm:$0xff]   ;;  %v4269_v10 = vld [vmem:[%s5397_s1 + $0xe8] sm:$0xff]   ;;  %s4675_s26 = scalar_lea.vmem %s4598_s27, %s3758_s16 }
  0x13   : >> { %3768 = vmatpush3.bf16.msra.mxu0 %v4263_v4  ;;  %4048 = vmatprep.subr.bf16.mxu1 %v4545_v2  ;;  %v4270_v11 = vld [vmem:[%s5397_s1 + $0x120] sm:$0xff]   ;;  %v4273_v14 = vld [vmem:[%s5397_s1 + $0x118] sm:$0xff]   ;;  %v4276_v17 = vld [vmem:[%s5397_s1 + $0x110] sm:$0xff]  }
  0x14   : >> { %3769 = vmatprep.subr.bf16.mxu0 %v4264_v5  ;;  %v4271_v12 = vld [vmem:[%s5397_s1 + $0x160] sm:$0xff]   ;;  %v4274_v15 = vld [vmem:[%s5397_s1 + $0x158] sm:$0xff]   ;;  %v4277_v18 = vld [vmem:[%s5397_s1 + $0x150] sm:$0xff]  }
  0x15   : >> { %v4272_v13 = vld [vmem:[%s5397_s1 + $0xe0] sm:$0xff]   ;;  %v4275_v16 = vld [vmem:[%s5397_s1 + $0xd8] sm:$0xff]   ;;  %v4278_v19 = vld [vmem:[%s5397_s1 + $0xd0] sm:$0xff]  }
  0x16   : >> { %4049 = vmatpush3.bf16.msra.mxu1 %v4265_v6  ;;  %v4279_v20 = vld [vmem:[%s5397_s1 + $0x108] sm:$0xff]   ;;  %v4282_v23 = vld [vmem:[%s5397_s1 + $0x100] sm:$0xff]   ;;  %v4289_v28 = vld [vmem:[%s5397_s1 + $0x78] sm:$0xff]  }
  0x17   : >> { %3770 = vmatpush3.bf16.msra.mxu0 %v4266_v7  ;;  %4050 = vmatprep.subr.bf16.mxu1 %v4545_v2  ;;  %v4280_v21 = vld [vmem:[%s5397_s1 + $0x148] sm:$0xff]   ;;  %v4283_v25 = vld [vmem:[%s5397_s1 + $0x140] sm:$0xff]   ;;  %v4290_v30 = vld [vmem:[%s5397_s1 + $0xb8] sm:$0xff]  }
  0x18   : >> { %3771 = vmatprep.subr.bf16.mxu0 %v4267_v8  ;;  %v4281_v22 = vld [vmem:[%s5397_s1 + $0xc8] sm:$0xff]   ;;  %v4284_v26 = vld [vmem:[%s5397_s1 + $0xc0] sm:$0xff]   ;;  %v4291_v31 = vld [vmem:[%s5397_s1 + $0x38] sm:$0xff]  }
  0x19   : >> { %v4287_v24 = vld [vmem:[%s4675_s26 + $0x1c] ss:$12 sps:$4 sm:$0xff]   ;;  %v4285_v27 = vld [vmem:[%s4675_s26 + $0x18] ss:$12 sps:$4 sm:$0xff]   ;;  %v4288_v29 = vld [vmem:[%s4675_s26 + $0x20] ss:$12 sps:$4 sm:$0xff]  }
  0x1a   : >> { %4051 = vmatpush3.bf16.msra.mxu1 %v4268_v9  ;;  %533 = vmatprep.mubr.bf16.mxu0 %v4287_v24  ;;  %v4292_v32 = vld [vmem:[%s5397_s1 + $0x70] sm:$0xff]   ;;  %v4295_v35 = vld [vmem:[%s5397_s1 + $0x68] sm:$0xff]   ;;  %v4298_v38 = vld [vmem:[%s5397_s1 + $0x60] sm:$0xff]  }
  0x1b   : >> { %3772 = vmatpush3.bf16.msra.mxu0 %v4269_v10  ;;  %4052 = vmatprep.subr.bf16.mxu1 %v4545_v2  ;;  %v4293_v33 = vld [vmem:[%s5397_s1 + $0xb0] sm:$0xff]   ;;  %v4296_v36 = vld [vmem:[%s5397_s1 + $0xa8] sm:$0xff]   ;;  %v4299_v39 = vld [vmem:[%s5397_s1 + $0xa0] sm:$0xff]  }
  0x1c   : >> { %3773 = vmatprep.subr.bf16.mxu0 %v4270_v11  ;;  %v4294_v34 = vld [vmem:[%s5397_s1 + $0x30] sm:$0xff]   ;;  %v4297_v37 = vld [vmem:[%s5397_s1 + $0x28] sm:$0xff]   ;;  %v4300_v40 = vld [vmem:[%s5397_s1 + $0x20] sm:$0xff]  }
  0x1d   : >> { %v4301_v41 = vld [vmem:[%s5397_s1 + $0x58] sm:$0xff]   ;;  %v4304_v44 = vld [vmem:[%s5397_s1 + $0x50] sm:$0xff]   ;;  %v4307_v48 = vld [vmem:[%s5397_s1 + $0x48] sm:$0xff]  }
  0x1e   : >> { %4053 = vmatpush3.bf16.msra.mxu1 %v4271_v12  ;;  %v4302_v42 = vld [vmem:[%s5397_s1 + $0x98] sm:$0xff]   ;;  %v4305_v45 = vld [vmem:[%s5397_s1 + $0x90] sm:$0xff]   ;;  %v4308_v49 = vld [vmem:[%s5397_s1 + $0x88] sm:$0xff]  }
  0x1f   : >> { %3774 = vmatpush3.bf16.msra.mxu0 %v4272_v13  ;;  %4054 = vmatprep.subr.bf16.mxu1 %v4545_v2  ;;  %v4303_v43 = vld [vmem:[%s5397_s1 + $0x18] sm:$0xff]   ;;  %v4315_v46 = vld [vmem:[%s4675_s26 + $0x4] ss:$12 sps:$4 sm:$0xff]   ;;  %v4309_v50 = vld [vmem:[%s5397_s1 + $0x8] sm:$0xff]  }
  0x20   : >> { %3775 = vmatprep.subr.bf16.mxu0 %v4273_v14  ;;  %v4306_v47 = vld [vmem:[%s5397_s1 + $0x10] sm:$0xff]   ;;  %v4310_v51 = vld [vmem:[%s5397_s1 + $0x40] sm:$0xff]   ;;  %v4317_v55 = vld [vmem:[%s5397_s1 + $0x1f8] sm:$0xff]  }
  0x21   : >> { %v4311_v52 = vld [vmem:[%s5397_s1 + $0x80] sm:$0xff]   ;;  %v4316_v56 = vld [vmem:[%s4675_s26 + $0x8] ss:$12 sps:$4 sm:$0xff]   ;;  %v4318_v57 = vld [vmem:[%s5397_s1 + $0x238] sm:$0xff]  }
  0x22   : >> { %4055 = vmatpush3.bf16.msra.mxu1 %v4274_v15  ;;  %v4312_v53 = vld [vmem:[%s5397_s1] sm:$0xff]   ;;  %v4319_v58 = vld [vmem:[%s5397_s1 + $0x1b8] sm:$0xff]   ;;  %v4320_v59 = vld [vmem:[%s5397_s1 + $0x1f0] sm:$0xff]  }
  0x23   : >> { %3776 = vmatpush3.bf16.msra.mxu0 %v4275_v16  ;;  %4056 = vmatprep.subr.bf16.mxu1 %v4545_v2  ;;  %v4313_v54 = vld [vmem:[%s4675_s26] ss:$12 sps:$4 sm:$0xff]   ;;  %v4321_v60 = vld [vmem:[%s5397_s1 + $0x230] sm:$0xff]   ;;  %v4329_v6 = vld [vmem:[%s5397_s1 + $0x1d8] sm:$0xff]  }
  0x24   : >> { %3777 = vmatprep.subr.bf16.mxu0 %v4276_v17  ;;  %v4322_v61 = vld [vmem:[%s5397_s1 + $0x1b0] sm:$0xff]   ;;  %v4323_v62 = vld [vmem:[%s5397_s1 + $0x1e8] sm:$0xff]   ;;  %v4326_v3 = vld [vmem:[%s5397_s1 + $0x1e0] sm:$0xff]  }
  0x25   : >> { %v4324_v63 = vld [vmem:[%s5397_s1 + $0x228] sm:$0xff]   ;;  %v4327_v4 = vld [vmem:[%s5397_s1 + $0x220] sm:$0xff]   ;;  %v4330_v8 = vld [vmem:[%s5397_s1 + $0x218] sm:$0xff]  }
  0x26   : >> { %4057 = vmatpush3.bf16.msra.mxu1 %v4277_v18  ;;  %v4325_v1 = vld [vmem:[%s5397_s1 + $0x1a8] sm:$0xff]   ;;  %v4328_v5 = vld [vmem:[%s5397_s1 + $0x1a0] sm:$0xff]   ;;  %v4331_v9 = vld [vmem:[%s5397_s1 + $0x198] sm:$0xff]  }
  0x27   : >> { %3778 = vmatpush3.bf16.msra.mxu0 %v4278_v19  ;;  %4058 = vmatprep.subr.bf16.mxu1 %v4545_v2  ;;  %v4343_v7 = vld [vmem:[%s4675_s26 + $0x34] ss:$12 sps:$4 sm:$0xff]   ;;  %v4335_v13 = vld [vmem:[%s5397_s1 + $0x1c8] sm:$0xff]   ;;  %v4341_v19 = vld [vmem:[%s4675_s26 + $0x30] ss:$12 sps:$4 sm:$0xff]  }
  0x28   : >> { %3779 = vmatprep.subr.bf16.mxu0 %v4279_v20  ;;  %v4332_v10 = vld [vmem:[%s5397_s1 + $0x1d0] sm:$0xff]   ;;  %v4336_v14 = vld [vmem:[%s5397_s1 + $0x208] sm:$0xff]   ;;  %v4338_v16 = vld [vmem:[%s5397_s1 + $0x1c0] sm:$0xff]  }
  0x29   : >> { %v4333_v11 = vld [vmem:[%s5397_s1 + $0x210] sm:$0xff]   ;;  %v4337_v15 = vld [vmem:[%s5397_s1 + $0x188] sm:$0xff]   ;;  %v4339_v17 = vld [vmem:[%s5397_s1 + $0x200] sm:$0xff]  }
  0x2a   : >> { %4059 = vmatpush3.bf16.msra.mxu1 %v4280_v21  ;;  %v4334_v12 = vld [vmem:[%s5397_s1 + $0x190] sm:$0xff]   ;;  %v4340_v18 = vld [vmem:[%s5397_s1 + $0x180] sm:$0xff]   ;;  %v4345_v20 = vld [vmem:[%s5397_s1 + $0x2b8] sm:$0xff]  }
  0x2b   : >> { %3780 = vmatpush3.bf16.msra.mxu0 %v4281_v22  ;;  %4060 = vmatprep.subr.bf16.mxu1 %v4545_v2  ;;  %v4344_v21 = vld [vmem:[%s4675_s26 + $0x38] ss:$12 sps:$4 sm:$0xff]   ;;  %v4348_v24 = vld [vmem:[%s5397_s1 + $0x2b0] sm:$0xff]  }
  0x2c   : >> { %3781 = vmatprep.subr.bf16.mxu0 %v4282_v23  ;;  %v4346_v22 = vld [vmem:[%s5397_s1 + $0x2f8] sm:$0xff]  }
  0x2d   : >> { %v4347_v23 = vld [vmem:[%s5397_s1 + $0x278] sm:$0xff]  }
  0x2e   : >> { %4061 = vmatpush3.bf16.msra.mxu1 %v4283_v25  ;;  %v4349_v25 = vld [vmem:[%s5397_s1 + $0x2f0] sm:$0xff]  }
  0x2f   : >> { %3782 = vmatpush3.bf16.msra.mxu0 %v4284_v26  ;;  %4066 = vmatprep.subr.bf16.mxu1 %v4545_v2  ;;  %v4350_v26 = vld [vmem:[%s5397_s1 + $0x270] sm:$0xff]  }
  0x30   : >> { %3798 = vmatprep.subr.bf16.mxu0 %v4289_v28  ;;  %v4352_v28 = vld [vmem:[%s5397_s1 + $0x2e8] sm:$0xff]  }
  0x31   : >> { %4063 = vmatmul.mubr.bf16.vlgmr.msra.gmra.mxu1 %v4288_v29  ;;  %v4353_v29 = vld [vmem:[%s5397_s1 + $0x268] sm:$0xff]  }
  0x32   : >> { %534 = vmatmul.mubr.bf16.vlgmr.msra.gmra.mxu0 %v4285_v27  ;;  %4067 = vmatpush3.bf16.msra.mxu1 %v4290_v30  ;;  %v4351_v27 = vld [vmem:[%s5397_s1 + $0x2a8] sm:$0xff]  }
  0x33   : >> { %3799 = vmatpush3.bf16.msra.mxu0 %v4291_v31  ;;  %4068 = vmatprep.subr.bf16.mxu1 %v4545_v2  ;;  %v4371_v30 = vld [vmem:[%s4675_s26 + $0x4c] ss:$12 sps:$4 sm:$0xff]   ;;  %v4354_v31 = vld [vmem:[%s5397_s1 + $0x2a0] sm:$0xff]  }
  0x34   : >> { %3800 = vmatprep.subr.bf16.mxu0 %v4292_v32  ;;  %4082 = vmatprep.mubr.msk.bf16.mxu1 %vm4546_vm0, %v4545_v2  ;;  %v4355_v32 = vld [vmem:[%s5397_s1 + $0x2e0] sm:$0xff]  }
  0x35   : >> { %775 = vmatprep.mubr.bf16.mxu0 %v4315_v46  ;;  %v4369_v46 = vld [vmem:[%s4675_s26 + $0x48] ss:$12 sps:$4 sm:$0xff]  }
  0x36   : >> { %4069 = vmatpush3.bf16.msra.mxu1 %v4293_v33  ;;  %v4356_v33 = vld [vmem:[%s5397_s1 + $0x260] sm:$0xff]  }
  0x37   : >> { %3801 = vmatpush3.bf16.msra.mxu0 %v4294_v34  ;;  %4070 = vmatprep.subr.bf16.mxu1 %v4545_v2  ;;  %v4357_v34 = vld [vmem:[%s5397_s1 + $0x298] sm:$0xff]  }
  0x38   : >> { %3802 = vmatprep.subr.bf16.mxu0 %v4295_v35  ;;  %v4358_v35 = vld [vmem:[%s5397_s1 + $0x2d8] sm:$0xff]  }
  0x3a   : >> { %4071 = vmatpush3.bf16.msra.mxu1 %v4296_v36  ;;  %v4359_v36 = vld [vmem:[%s5397_s1 + $0x258] sm:$0xff]  }
  0x3b   : >> { %3803 = vmatpush3.bf16.msra.mxu0 %v4297_v37  ;;  %4072 = vmatprep.subr.bf16.mxu1 %v4545_v2  ;;  %v4360_v37 = vld [vmem:[%s5397_s1 + $0x290] sm:$0xff]  }
  0x3c   : >> { %3804 = vmatprep.subr.bf16.mxu0 %v4298_v38  ;;  %v4361_v38 = vld [vmem:[%s5397_s1 + $0x2d0] sm:$0xff]  }
  0x3e   : >> { %4073 = vmatpush3.bf16.msra.mxu1 %v4299_v39  ;;  %v4362_v39 = vld [vmem:[%s5397_s1 + $0x250] sm:$0xff]  }
  0x3f   : >> { %3805 = vmatpush3.bf16.msra.mxu0 %v4300_v40  ;;  %4074 = vmatprep.subr.bf16.mxu1 %v4545_v2  ;;  %v4363_v40 = vld [vmem:[%s5397_s1 + $0x288] sm:$0xff]  }
  0x40   : >> { %3806 = vmatprep.subr.bf16.mxu0 %v4301_v41  ;;  %v4364_v41 = vld [vmem:[%s5397_s1 + $0x2c8] sm:$0xff]  }
  0x42   : >> { %4075 = vmatpush3.bf16.msra.mxu1 %v4302_v42  ;;  %v4365_v42 = vld [vmem:[%s5397_s1 + $0x248] sm:$0xff]  }
  0x43   : >> { %3807 = vmatpush3.bf16.msra.mxu0 %v4303_v43  ;;  %4076 = vmatprep.subr.bf16.mxu1 %v4545_v2  ;;  %v4366_v43 = vld [vmem:[%s5397_s1 + $0x280] sm:$0xff]  }
  0x44   : >> { %3808 = vmatprep.subr.bf16.mxu0 %v4304_v44  ;;  %v4367_v44 = vld [vmem:[%s5397_s1 + $0x2c0] sm:$0xff]  }
  0x46   : >> { %4077 = vmatpush3.bf16.msra.mxu1 %v4305_v45  ;;  %v4368_v45 = vld [vmem:[%s5397_s1 + $0x240] sm:$0xff]  }
  0x47   : >> { %3809 = vmatpush3.bf16.msra.mxu0 %v4306_v47  ;;  %4078 = vmatprep.subr.bf16.mxu1 %v4545_v2  ;;  %v4373_v47 = vld [vmem:[%s5397_s1 + $0x378] sm:$0xff]  }
  0x48   : >> { %3810 = vmatprep.subr.bf16.mxu0 %v4307_v48  ;;  %v4372_v48 = vld [vmem:[%s4675_s26 + $0x50] ss:$12 sps:$4 sm:$0xff]  }
  0x4a   : >> { %4079 = vmatpush3.bf16.msra.mxu1 %v4308_v49  ;;  %v4374_v49 = vld [vmem:[%s5397_s1 + $0x3b8] sm:$0xff]  }
  0x4b   : >> { %3811 = vmatpush3.bf16.msra.mxu0 %v4309_v50  ;;  %4080 = vmatprep.subr.bf16.mxu1 %v4545_v2  ;;  %v4375_v50 = vld [vmem:[%s5397_s1 + $0x338] sm:$0xff]  }
  0x4c   : >> { %3812 = vmatprep.subr.bf16.mxu0 %v4310_v51  ;;  %v4376_v51 = vld [vmem:[%s5397_s1 + $0x370] sm:$0xff]  }
  0x4e   : >> { %4081 = vmatpush3.bf16.msra.mxu1 %v4311_v52  ;;  %v4399_v52 = vld [vmem:[%s4675_s26 + $0x64] ss:$12 sps:$4 sm:$0xff]  }
  0x4f   : >> { %3813 = vmatpush3.bf16.msra.mxu0 %v4312_v53  ;;  %4086 = vmatprep.subr.bf16.mxu1 %v4545_v2  ;;  %v4377_v53 = vld [vmem:[%s5397_s1 + $0x3b0] sm:$0xff]  }
  0x50   : >> { %3829 = vmatprep.subr.bf16.mxu0 %v4317_v55  ;;  %v4379_v55 = vld [vmem:[%s5397_s1 + $0x368] sm:$0xff]  }
  0x51   : >> { %4083 = vmatmul.mubr.bf16.vlgmr.msra.gmra.mxu1 %v4316_v56  ;;  %v4380_v56 = vld [vmem:[%s5397_s1 + $0x3a8] sm:$0xff]  }
  0x52   : >> { %776 = vmatmul.mubr.bf16.vlgmr.msra.gmra.mxu0 %v4313_v54  ;;  %4087 = vmatpush3.bf16.msra.mxu1 %v4318_v57  ;;  %v4378_v54 = vld [vmem:[%s5397_s1 + $0x330] sm:$0xff]   ;;  %v4381_v57 = vld [vmem:[%s5397_s1 + $0x328] sm:$0xff]  }
  0x53   : >> { %3830 = vmatpush3.bf16.msra.mxu0 %v4319_v58  ;;  %4088 = vmatprep.subr.bf16.mxu1 %v4545_v2  ;;  %v4382_v58 = vld [vmem:[%s5397_s1 + $0x360] sm:$0xff]  }
  0x54   : >> { %3831 = vmatprep.subr.bf16.mxu0 %v4320_v59  ;;  %4102 = vmatprep.mubr.msk.bf16.mxu1 %vm4546_vm0, %v4545_v2  ;;  %v4383_v59 = vld [vmem:[%s5397_s1 + $0x3a0] sm:$0xff]  }
  0x55   : >> { %1074 = vmatprep.mubr.bf16.mxu0 %v4343_v7  ;;  %v4393_v7 = vld [vmem:[%s5397_s1 + $0x308] sm:$0xff]  }
  0x56   : >> { %4089 = vmatpush3.bf16.msra.mxu1 %v4321_v60  ;;  %v4384_v60 = vld [vmem:[%s5397_s1 + $0x320] sm:$0xff]  }
  0x57   : >> { %3832 = vmatpush3.bf16.msra.mxu0 %v4322_v61  ;;  %4090 = vmatprep.subr.bf16.mxu1 %v4545_v2  ;;  %v4385_v61 = vld [vmem:[%s5397_s1 + $0x358] sm:$0xff]  }
  0x58   : >> { %3833 = vmatprep.subr.bf16.mxu0 %v4323_v62  ;;  %v4386_v62 = vld [vmem:[%s5397_s1 + $0x398] sm:$0xff]  }
  0x5a   : >> { %4091 = vmatpush3.bf16.msra.mxu1 %v4324_v63  ;;  %v4387_v63 = vld [vmem:[%s5397_s1 + $0x318] sm:$0xff]  }
  0x5b   : >> { %3834 = vmatpush3.bf16.msra.mxu0 %v4325_v1  ;;  %4092 = vmatprep.subr.bf16.mxu1 %v4545_v2  ;;  %v4388_v1 = vld [vmem:[%s5397_s1 + $0x350] sm:$0xff]  }
  0x5c   : >> { %3835 = vmatprep.subr.bf16.mxu0 %v4326_v3  ;;  %v4389_v3 = vld [vmem:[%s5397_s1 + $0x390] sm:$0xff]  }
  0x5e   : >> { %4093 = vmatpush3.bf16.msra.mxu1 %v4327_v4  ;;  %v4390_v4 = vld [vmem:[%s5397_s1 + $0x310] sm:$0xff]  }
  0x5f   : >> { %3836 = vmatpush3.bf16.msra.mxu0 %v4328_v5  ;;  %4094 = vmatprep.subr.bf16.mxu1 %v4545_v2  ;;  %v4391_v5 = vld [vmem:[%s5397_s1 + $0x348] sm:$0xff]  }
  0x60   : >> { %3837 = vmatprep.subr.bf16.mxu0 %v4329_v6  ;;  %v4392_v6 = vld [vmem:[%s5397_s1 + $0x388] sm:$0xff]  }
  0x62   : >> { %4095 = vmatpush3.bf16.msra.mxu1 %v4330_v8  ;;  %v4394_v8 = vld [vmem:[%s5397_s1 + $0x340] sm:$0xff]  }
  0x63   : >> { %3838 = vmatpush3.bf16.msra.mxu0 %v4331_v9  ;;  %4096 = vmatprep.subr.bf16.mxu1 %v4545_v2  ;;  %v4395_v9 = vld [vmem:[%s5397_s1 + $0x380] sm:$0xff]  }
  0x64   : >> { %3839 = vmatprep.subr.bf16.mxu0 %v4332_v10  ;;  %v4396_v10 = vld [vmem:[%s5397_s1 + $0x300] sm:$0xff]  }
  0x66   : >> { %4097 = vmatpush3.bf16.msra.mxu1 %v4333_v11  ;;  %v4397_v11 = vld [vmem:[%s4675_s26 + $0x60] ss:$12 sps:$4 sm:$0xff]  }
  0x67   : >> { %3840 = vmatpush3.bf16.msra.mxu0 %v4334_v12  ;;  %4098 = vmatprep.subr.bf16.mxu1 %v4545_v2  ;;  %v4401_v12 = vld [vmem:[%s5397_s1 + $0x438] sm:$0xff]  }
  0x68   : >> { %3841 = vmatprep.subr.bf16.mxu0 %v4335_v13  ;;  %v4400_v13 = vld [vmem:[%s4675_s26 + $0x68] ss:$12 sps:$4 sm:$0xff]  }
  0x6a   : >> { %4099 = vmatpush3.bf16.msra.mxu1 %v4336_v14  ;;  %v4402_v14 = vld [vmem:[%s5397_s1 + $0x478] sm:$0xff]  }
  0x6b   : >> { %3842 = vmatpush3.bf16.msra.mxu0 %v4337_v15  ;;  %4100 = vmatprep.subr.bf16.mxu1 %v4545_v2  ;;  %v4403_v15 = vld [vmem:[%s5397_s1 + $0x3f8] sm:$0xff]  }
  0x6c   : >> { %3843 = vmatprep.subr.bf16.mxu0 %v4338_v16  ;;  %v4404_v16 = vld [vmem:[%s5397_s1 + $0x430] sm:$0xff]  }
  0x6e   : >> { %4101 = vmatpush3.bf16.msra.mxu1 %v4339_v17  ;;  %v4427_v17 = vld [vmem:[%s4675_s26 + $0x7c] ss:$12 sps:$4 sm:$0xff]  }
  0x6f   : >> { %3844 = vmatpush3.bf16.msra.mxu0 %v4340_v18  ;;  %4106 = vmatprep.subr.bf16.mxu1 %v4545_v2  ;;  %v4405_v18 = vld [vmem:[%s5397_s1 + $0x470] sm:$0xff]  }
  0x70   : >> { %3860 = vmatprep.subr.bf16.mxu0 %v4345_v20  ;;  %v4407_v20 = vld [vmem:[%s5397_s1 + $0x428] sm:$0xff]  }
  0x71   : >> { %4103 = vmatmul.mubr.bf16.vlgmr.msra.gmra.mxu1 %v4344_v21  ;;  %v4408_v21 = vld [vmem:[%s5397_s1 + $0x468] sm:$0xff]  }
  0x72   : >> { %1075 = vmatmul.mubr.bf16.vlgmr.msra.gmra.mxu0 %v4341_v19  ;;  %4107 = vmatpush3.bf16.msra.mxu1 %v4346_v22  ;;  %v4406_v19 = vld [vmem:[%s5397_s1 + $0x3f0] sm:$0xff]   ;;  %v4409_v22 = vld [vmem:[%s5397_s1 + $0x3e8] sm:$0xff]  }
  0x73   : >> { %3861 = vmatpush3.bf16.msra.mxu0 %v4347_v23  ;;  %4108 = vmatprep.subr.bf16.mxu1 %v4545_v2  ;;  %v4410_v23 = vld [vmem:[%s5397_s1 + $0x420] sm:$0xff]  }
  0x74   : >> { %3862 = vmatprep.subr.bf16.mxu0 %v4348_v24  ;;  %4122 = vmatprep.mubr.msk.bf16.mxu1 %vm4546_vm0, %v4545_v2  ;;  %v4411_v24 = vld [vmem:[%s5397_s1 + $0x460] sm:$0xff]  }
  0x75   : >> { %1375 = vmatprep.mubr.bf16.mxu0 %v4371_v30  ;;  %v4417_v30 = vld [vmem:[%s5397_s1 + $0x450] sm:$0xff]  }
  0x76   : >> { %4109 = vmatpush3.bf16.msra.mxu1 %v4349_v25  ;;  %v4412_v25 = vld [vmem:[%s5397_s1 + $0x3e0] sm:$0xff]  }
  0x77   : >> { %3863 = vmatpush3.bf16.msra.mxu0 %v4350_v26  ;;  %4110 = vmatprep.subr.bf16.mxu1 %v4545_v2  ;;  %v4413_v26 = vld [vmem:[%s5397_s1 + $0x418] sm:$0xff]  }
  0x78   : >> { %3864 = vmatprep.subr.bf16.mxu0 %v4351_v27  ;;  %v4414_v27 = vld [vmem:[%s5397_s1 + $0x458] sm:$0xff]  }
  0x7a   : >> { %4111 = vmatpush3.bf16.msra.mxu1 %v4352_v28  ;;  %v4415_v28 = vld [vmem:[%s5397_s1 + $0x3d8] sm:$0xff]  }
  0x7b   : >> { %3865 = vmatpush3.bf16.msra.mxu0 %v4353_v29  ;;  %4112 = vmatprep.subr.bf16.mxu1 %v4545_v2  ;;  %v4416_v29 = vld [vmem:[%s5397_s1 + $0x410] sm:$0xff]  }
  0x7c   : >> { %3866 = vmatprep.subr.bf16.mxu0 %v4354_v31  ;;  %v4418_v31 = vld [vmem:[%s5397_s1 + $0x3d0] sm:$0xff]  }
  0x7e   : >> { %4113 = vmatpush3.bf16.msra.mxu1 %v4355_v32  ;;  %v4419_v32 = vld [vmem:[%s5397_s1 + $0x408] sm:$0xff]  }
  0x7f   : >> { %3867 = vmatpush3.bf16.msra.mxu0 %v4356_v33  ;;  %4114 = vmatprep.subr.bf16.mxu1 %v4545_v2  ;;  %v4420_v33 = vld [vmem:[%s5397_s1 + $0x448] sm:$0xff]  }
  0x80   : >> { %3868 = vmatprep.subr.bf16.mxu0 %v4357_v34  ;;  %v4421_v34 = vld [vmem:[%s5397_s1 + $0x3c8] sm:$0xff]  }
  0x82   : >> { %4115 = vmatpush3.bf16.msra.mxu1 %v4358_v35  ;;  %v4422_v35 = vld [vmem:[%s5397_s1 + $0x400] sm:$0xff]  }
  0x83   : >> { %3869 = vmatpush3.bf16.msra.mxu0 %v4359_v36  ;;  %4116 = vmatprep.subr.bf16.mxu1 %v4545_v2  ;;  %v4423_v36 = vld [vmem:[%s5397_s1 + $0x440] sm:$0xff]  }
  0x84   : >> { %3870 = vmatprep.subr.bf16.mxu0 %v4360_v37  ;;  %v4424_v37 = vld [vmem:[%s5397_s1 + $0x3c0] sm:$0xff]  }
  0x86   : >> { %4117 = vmatpush3.bf16.msra.mxu1 %v4361_v38  ;;  %v4425_v38 = vld [vmem:[%s4675_s26 + $0x78] ss:$12 sps:$4 sm:$0xff]  }
  0x87   : >> { %3871 = vmatpush3.bf16.msra.mxu0 %v4362_v39  ;;  %4118 = vmatprep.subr.bf16.mxu1 %v4545_v2  ;;  %v4429_v39 = vld [vmem:[%s5397_s1 + $0x4f8] sm:$0xff]  }
  0x88   : >> { %3872 = vmatprep.subr.bf16.mxu0 %v4363_v40  ;;  %v4428_v40 = vld [vmem:[%s4675_s26 + $0x80] ss:$12 sps:$4 sm:$0xff]  }
  0x8a   : >> { %4119 = vmatpush3.bf16.msra.mxu1 %v4364_v41  ;;  %v4430_v41 = vld [vmem:[%s5397_s1 + $0x538] sm:$0xff]  }
  0x8b   : >> { %3873 = vmatpush3.bf16.msra.mxu0 %v4365_v42  ;;  %4120 = vmatprep.subr.bf16.mxu1 %v4545_v2  ;;  %v4431_v42 = vld [vmem:[%s5397_s1 + $0x4b8] sm:$0xff]  }
  0x8c   : >> { %3874 = vmatprep.subr.bf16.mxu0 %v4366_v43  ;;  %v4432_v43 = vld [vmem:[%s5397_s1 + $0x4f0] sm:$0xff]  }
  0x8e   : >> { %4121 = vmatpush3.bf16.msra.mxu1 %v4367_v44  ;;  %v4455_v44 = vld [vmem:[%s4675_s26 + $0x94] ss:$12 sps:$4 sm:$0xff]  }
  0x8f   : >> { %3875 = vmatpush3.bf16.msra.mxu0 %v4368_v45  ;;  %4126 = vmatprep.subr.bf16.mxu1 %v4545_v2  ;;  %v4433_v45 = vld [vmem:[%s5397_s1 + $0x530] sm:$0xff]  }
  0x90   : >> { %3891 = vmatprep.subr.bf16.mxu0 %v4373_v47  ;;  %v4435_v47 = vld [vmem:[%s5397_s1 + $0x4e8] sm:$0xff]  }
  0x91   : >> { %4123 = vmatmul.mubr.bf16.vlgmr.msra.gmra.mxu1 %v4372_v48  ;;  %v4436_v48 = vld [vmem:[%s5397_s1 + $0x528] sm:$0xff]  }
  0x92   : >> { %1376 = vmatmul.mubr.bf16.vlgmr.msra.gmra.mxu0 %v4369_v46  ;;  %4127 = vmatpush3.bf16.msra.mxu1 %v4374_v49  ;;  %v4434_v46 = vld [vmem:[%s5397_s1 + $0x4b0] sm:$0xff]   ;;  %v4437_v49 = vld [vmem:[%s5397_s1 + $0x4a8] sm:$0xff]  }
  0x93   : >> { %3892 = vmatpush3.bf16.msra.mxu0 %v4375_v50  ;;  %4128 = vmatprep.subr.bf16.mxu1 %v4545_v2  ;;  %v4438_v50 = vld [vmem:[%s5397_s1 + $0x4e0] sm:$0xff]  }
  0x94   : >> { %3893 = vmatprep.subr.bf16.mxu0 %v4376_v51  ;;  %4142 = vmatprep.mubr.msk.bf16.mxu1 %vm4546_vm0, %v4545_v2  ;;  %v4439_v51 = vld [vmem:[%s5397_s1 + $0x520] sm:$0xff]  }
  0x95   : >> { %1676 = vmatprep.mubr.bf16.mxu0 %v4399_v52  ;;  %v4440_v52 = vld [vmem:[%s5397_s1 + $0x4a0] sm:$0xff]  }
  0x96   : >> { %4129 = vmatpush3.bf16.msra.mxu1 %v4377_v53  ;;  %v4441_v53 = vld [vmem:[%s5397_s1 + $0x4d8] sm:$0xff]  }
  0x97   : >> { %3894 = vmatpush3.bf16.msra.mxu0 %v4378_v54  ;;  %4130 = vmatprep.subr.bf16.mxu1 %v4545_v2  ;;  %v4442_v54 = vld [vmem:[%s5397_s1 + $0x518] sm:$0xff]  }
  0x98   : >> { %3895 = vmatprep.subr.bf16.mxu0 %v4379_v55  ;;  %v4443_v55 = vld [vmem:[%s5397_s1 + $0x498] sm:$0xff]  }
  0x9a   : >> { %4131 = vmatpush3.bf16.msra.mxu1 %v4380_v56  ;;  %v4444_v56 = vld [vmem:[%s5397_s1 + $0x4d0] sm:$0xff]  }
  0x9b   : >> { %3896 = vmatpush3.bf16.msra.mxu0 %v4381_v57  ;;  %4132 = vmatprep.subr.bf16.mxu1 %v4545_v2  ;;  %v4445_v57 = vld [vmem:[%s5397_s1 + $0x510] sm:$0xff]  }
  0x9c   : >> { %3897 = vmatprep.subr.bf16.mxu0 %v4382_v58  ;;  %v4446_v58 = vld [vmem:[%s5397_s1 + $0x490] sm:$0xff]  }
  0x9e   : >> { %4133 = vmatpush3.bf16.msra.mxu1 %v4383_v59  ;;  %v4447_v59 = vld [vmem:[%s5397_s1 + $0x4c8] sm:$0xff]  }
  0x9f   : >> { %3898 = vmatpush3.bf16.msra.mxu0 %v4384_v60  ;;  %4134 = vmatprep.subr.bf16.mxu1 %v4545_v2  ;;  %v4448_v60 = vld [vmem:[%s5397_s1 + $0x508] sm:$0xff]  }
  0xa0   : >> { %3899 = vmatprep.subr.bf16.mxu0 %v4385_v61  ;;  %v4449_v61 = vld [vmem:[%s5397_s1 + $0x488] sm:$0xff]  }
  0xa2   : >> { %4135 = vmatpush3.bf16.msra.mxu1 %v4386_v62  ;;  %v4450_v62 = vld [vmem:[%s5397_s1 + $0x4c0] sm:$0xff]  }
  0xa3   : >> { %3900 = vmatpush3.bf16.msra.mxu0 %v4387_v63  ;;  %4136 = vmatprep.subr.bf16.mxu1 %v4545_v2  ;;  %v4451_v63 = vld [vmem:[%s5397_s1 + $0x500] sm:$0xff]  }
  0xa4   : >> { %3901 = vmatprep.subr.bf16.mxu0 %v4388_v1  ;;  %v4452_v1 = vld [vmem:[%s5397_s1 + $0x480] sm:$0xff]  }
  0xa6   : >> { %4137 = vmatpush3.bf16.msra.mxu1 %v4389_v3  ;;  %v4453_v3 = vld [vmem:[%s4675_s26 + $0x90] ss:$12 sps:$4 sm:$0xff]  }
  0xa7   : >> { %3902 = vmatpush3.bf16.msra.mxu0 %v4390_v4  ;;  %4138 = vmatprep.subr.bf16.mxu1 %v4545_v2  ;;  %v4457_v4 = vld [vmem:[%s5397_s1 + $0x5b8] sm:$0xff]  }
  0xa8   : >> { %3903 = vmatprep.subr.bf16.mxu0 %v4391_v5  ;;  %v4456_v5 = vld [vmem:[%s4675_s26 + $0x98] ss:$12 sps:$4 sm:$0xff]  }
  0xaa   : >> { %4139 = vmatpush3.bf16.msra.mxu1 %v4392_v6  ;;  %v4458_v6 = vld [vmem:[%s5397_s1 + $0x5f8] sm:$0xff]  }
  0xab   : >> { %3904 = vmatpush3.bf16.msra.mxu0 %v4393_v7  ;;  %4140 = vmatprep.subr.bf16.mxu1 %v4545_v2  ;;  %v4459_v7 = vld [vmem:[%s5397_s1 + $0x578] sm:$0xff]  }
  0xac   : >> { %3905 = vmatprep.subr.bf16.mxu0 %v4394_v8  ;;  %v4460_v8 = vld [vmem:[%s5397_s1 + $0x5b0] sm:$0xff]  }
  0xae   : >> { %4141 = vmatpush3.bf16.msra.mxu1 %v4395_v9 }
  0xaf   : >> { %3906 = vmatpush3.bf16.msra.mxu0 %v4396_v10  ;;  %4146 = vmatprep.subr.bf16.mxu1 %v4545_v2  ;;  %v4483_v10 = vld [vmem:[%s4675_s26 + $0xac] ss:$12 sps:$4 sm:$0xff]  }
  0xb0   : >> { %3922 = vmatprep.subr.bf16.mxu0 %v4401_v12 }
  0xb1   : >> { %4143 = vmatmul.mubr.bf16.vlgmr.msra.gmra.mxu1 %v4400_v13  ;;  %v4462_v13 = vld [vmem:[%s5397_s1 + $0x570] sm:$0xff]  }
  0xb2   : >> { %1677 = vmatmul.mubr.bf16.vlgmr.msra.gmra.mxu0 %v4397_v11  ;;  %4147 = vmatpush3.bf16.msra.mxu1 %v4402_v14  ;;  %v4461_v11 = vld [vmem:[%s5397_s1 + $0x5f0] sm:$0xff]   ;;  %v4463_v14 = vld [vmem:[%s5397_s1 + $0x5a8] sm:$0xff]  }
  0xb3   : >> { %3923 = vmatpush3.bf16.msra.mxu0 %v4403_v15  ;;  %4148 = vmatprep.subr.bf16.mxu1 %v4545_v2 }
  0xb4   : >> { %3924 = vmatprep.subr.bf16.mxu0 %v4404_v16  ;;  %4162 = vmatprep.mubr.msk.bf16.mxu1 %vm4546_vm0, %v4545_v2  ;;  %v4464_v16 = vld [vmem:[%s5397_s1 + $0x5e8] sm:$0xff]  }
  0xb5   : >> { %1977 = vmatprep.mubr.bf16.mxu0 %v4427_v17 }
  0xb6   : >> { %4149 = vmatpush3.bf16.msra.mxu1 %v4405_v18  ;;  %v4465_v18 = vld [vmem:[%s5397_s1 + $0x568] sm:$0xff]  }
  0xb7   : >> { %3925 = vmatpush3.bf16.msra.mxu0 %v4406_v19  ;;  %4150 = vmatprep.subr.bf16.mxu1 %v4545_v2  ;;  %v4466_v19 = vld [vmem:[%s5397_s1 + $0x5a0] sm:$0xff]  }
  0xb8   : >> { %3926 = vmatprep.subr.bf16.mxu0 %v4407_v20  ;;  %v4467_v20 = vld [vmem:[%s5397_s1 + $0x5e0] sm:$0xff]  }
  0xba   : >> { %4151 = vmatpush3.bf16.msra.mxu1 %v4408_v21  ;;  %v4468_v21 = vld [vmem:[%s5397_s1 + $0x560] sm:$0xff]  }
  0xbb   : >> { %3927 = vmatpush3.bf16.msra.mxu0 %v4409_v22  ;;  %4152 = vmatprep.subr.bf16.mxu1 %v4545_v2  ;;  %v4469_v22 = vld [vmem:[%s5397_s1 + $0x598] sm:$0xff]  }
  0xbc   : >> { %3928 = vmatprep.subr.bf16.mxu0 %v4410_v23  ;;  %v4470_v23 = vld [vmem:[%s5397_s1 + $0x5d8] sm:$0xff]  }
  0xbe   : >> { %4153 = vmatpush3.bf16.msra.mxu1 %v4411_v24  ;;  %v4471_v24 = vld [vmem:[%s5397_s1 + $0x558] sm:$0xff]  }
  0xbf   : >> { %3929 = vmatpush3.bf16.msra.mxu0 %v4412_v25  ;;  %4154 = vmatprep.subr.bf16.mxu1 %v4545_v2  ;;  %v4472_v25 = vld [vmem:[%s5397_s1 + $0x590] sm:$0xff]  }
  0xc0   : >> { %3930 = vmatprep.subr.bf16.mxu0 %v4413_v26  ;;  %v4473_v26 = vld [vmem:[%s5397_s1 + $0x5d0] sm:$0xff]  }
  0xc2   : >> { %4155 = vmatpush3.bf16.msra.mxu1 %v4414_v27  ;;  %v4474_v27 = vld [vmem:[%s5397_s1 + $0x550] sm:$0xff]  }
  0xc3   : >> { %3931 = vmatpush3.bf16.msra.mxu0 %v4415_v28  ;;  %4156 = vmatprep.subr.bf16.mxu1 %v4545_v2 }
  0xc4   : >> { %3932 = vmatprep.subr.bf16.mxu0 %v4416_v29  ;;  %v4475_v29 = vld [vmem:[%s5397_s1 + $0x588] sm:$0xff]  }
  0xc6   : >> { %4157 = vmatpush3.bf16.msra.mxu1 %v4417_v30  ;;  %v4476_v30 = vld [vmem:[%s5397_s1 + $0x5c8] sm:$0xff]  }
  0xc7   : >> { %3933 = vmatpush3.bf16.msra.mxu0 %v4418_v31  ;;  %4158 = vmatprep.subr.bf16.mxu1 %v4545_v2  ;;  %v4477_v31 = vld [vmem:[%s5397_s1 + $0x548] sm:$0xff]  }
  0xc8   : >> { %3934 = vmatprep.subr.bf16.mxu0 %v4419_v32 }
  0xca   : >> { %4159 = vmatpush3.bf16.msra.mxu1 %v4420_v33  ;;  %v4478_v33 = vld [vmem:[%s5397_s1 + $0x580] sm:$0xff]  }
  0xcb   : >> { %3935 = vmatpush3.bf16.msra.mxu0 %v4421_v34  ;;  %4160 = vmatprep.subr.bf16.mxu1 %v4545_v2  ;;  %v4479_v34 = vld [vmem:[%s5397_s1 + $0x5c0] sm:$0xff]  }
  0xcc   : >> { %3936 = vmatprep.subr.bf16.mxu0 %v4422_v35  ;;  %v4480_v35 = vld [vmem:[%s5397_s1 + $0x540] sm:$0xff]  }
  0xce   : >> { %4161 = vmatpush3.bf16.msra.mxu1 %v4423_v36 }
  0xcf   : >> { %3937 = vmatpush3.bf16.msra.mxu0 %v4424_v37  ;;  %4166 = vmatprep.subr.bf16.mxu1 %v4545_v2  ;;  %v4485_v37 = vld [vmem:[%s5397_s1 + $0x678] sm:$0xff]  }
  0xd0   : >> { %3953 = vmatprep.subr.bf16.mxu0 %v4429_v39  ;;  %v4481_v39 = vld [vmem:[%s4675_s26 + $0xa8] ss:$12 sps:$4 sm:$0xff]  }
  0xd1   : >> { %4163 = vmatmul.mubr.bf16.vlgmr.msra.gmra.mxu1 %v4428_v40  ;;  %v4486_v40 = vld [vmem:[%s5397_s1 + $0x6b8] sm:$0xff]  }
  0xd2   : >> { %1978 = vmatmul.mubr.bf16.vlgmr.msra.gmra.mxu0 %v4425_v38  ;;  %4167 = vmatpush3.bf16.msra.mxu1 %v4430_v41  ;;  %v4484_v38 = vld [vmem:[%s4675_s26 + $0xb0] ss:$12 sps:$4 sm:$0xff]  }
  0xd3   : >> { %3954 = vmatpush3.bf16.msra.mxu0 %v4431_v42  ;;  %4168 = vmatprep.subr.bf16.mxu1 %v4545_v2  ;;  %v4487_v41 = vld [vmem:[%s5397_s1 + $0x638] sm:$0xff]  }
  0xd4   : >> { %3955 = vmatprep.subr.bf16.mxu0 %v4432_v43  ;;  %4182 = vmatprep.mubr.msk.bf16.mxu1 %vm4546_vm0, %v4545_v2  ;;  %v4488_v43 = vld [vmem:[%s5397_s1 + $0x670] sm:$0xff]  }
  0xd5   : >> { %2278 = vmatprep.mubr.bf16.mxu0 %v4455_v44 }
  0xd6   : >> { %4169 = vmatpush3.bf16.msra.mxu1 %v4433_v45 }
  0xd7   : >> { %3956 = vmatpush3.bf16.msra.mxu0 %v4434_v46  ;;  %4170 = vmatprep.subr.bf16.mxu1 %v4545_v2  ;;  %v4511_v46 = vld [vmem:[%s4675_s26 + $0xc4] ss:$12 sps:$4 sm:$0xff]  }
  0xd8   : >> { %3957 = vmatprep.subr.bf16.mxu0 %v4435_v47 }
  0xda   : >> { %4171 = vmatpush3.bf16.msra.mxu1 %v4436_v48  ;;  %v4489_v48 = vld [vmem:[%s5397_s1 + $0x6b0] sm:$0xff]  }
  0xdb   : >> { %3958 = vmatpush3.bf16.msra.mxu0 %v4437_v49  ;;  %4172 = vmatprep.subr.bf16.mxu1 %v4545_v2 }
  0xdc   : >> { %3959 = vmatprep.subr.bf16.mxu0 %v4438_v50  ;;  %v4490_v50 = vld [vmem:[%s5397_s1 + $0x630] sm:$0xff]  }
  0xde   : >> { %4173 = vmatpush3.bf16.msra.mxu1 %v4439_v51 }
  0xdf   : >> { %3960 = vmatpush3.bf16.msra.mxu0 %v4440_v52  ;;  %4174 = vmatprep.subr.bf16.mxu1 %v4545_v2  ;;  %v4491_v52 = vld [vmem:[%s5397_s1 + $0x668] sm:$0xff]  }
  0xe0   : >> { %3961 = vmatprep.subr.bf16.mxu0 %v4441_v53 }
  0xe2   : >> { %4175 = vmatpush3.bf16.msra.mxu1 %v4442_v54 }
  0xe3   : >> { %3962 = vmatpush3.bf16.msra.mxu0 %v4443_v55  ;;  %4176 = vmatprep.subr.bf16.mxu1 %v4545_v2 }
  0xe4   : >> { %3963 = vmatprep.subr.bf16.mxu0 %v4444_v56 }
  0xe6   : >> { %4177 = vmatpush3.bf16.msra.mxu1 %v4445_v57 }
  0xe7   : >> { %3964 = vmatpush3.bf16.msra.mxu0 %v4446_v58  ;;  %4178 = vmatprep.subr.bf16.mxu1 %v4545_v2  ;;  %v4492_v58 = vld [vmem:[%s5397_s1 + $0x6a8] sm:$0xff]  }
  0xe8   : >> { %3965 = vmatprep.subr.bf16.mxu0 %v4447_v59 }
  0xea   : >> { %4179 = vmatpush3.bf16.msra.mxu1 %v4448_v60 }
  0xeb   : >> { %3966 = vmatpush3.bf16.msra.mxu0 %v4449_v61  ;;  %4180 = vmatprep.subr.bf16.mxu1 %v4545_v2  ;;  %v4493_v61 = vld [vmem:[%s5397_s1 + $0x628] sm:$0xff]  }
  0xec   : >> { %3967 = vmatprep.subr.bf16.mxu0 %v4450_v62 }
  0xee   : >> { %4181 = vmatpush3.bf16.msra.mxu1 %v4451_v63  ;;  %v4494_v63 = vld [vmem:[%s5397_s1 + $0x660] sm:$0xff]  }
  0xef   : >> { %3968 = vmatpush3.bf16.msra.mxu0 %v4452_v1  ;;  %4186 = vmatprep.subr.bf16.mxu1 %v4545_v2 }
  0xf0   : >> { %3984 = vmatprep.subr.bf16.mxu0 %v4457_v4 }
  0xf1   : >> { %v5217_v9 = vpop.f32.mrf.mxu1  ;;  %4183 = vmatmul.mubr.bf16.vlgmr.msra.gmra.mxu1 %v4456_v5  ;;  %v4495_v5 = vld [vmem:[%s5397_s1 + $0x6a0] sm:$0xff]  }
  0xf2   : >> { %2279 = vmatmul.mubr.bf16.vlgmr.msra.gmra.mxu0 %v4453_v3  ;;  %4187 = vmatpush3.bf16.msra.mxu1 %v4458_v6  ;;  %v3783_v28 = vpop.f32.mrf.mxu0 }
  0xf3   : >> { %v4064_v12 = vpop.f32.mrf.mxu1  ;;  %3985 = vmatpush3.bf16.msra.mxu0 %v4459_v7  ;;  %4188 = vmatprep.subr.bf16.mxu1 %v4545_v2  ;;  %v4496_v7 = vld [vmem:[%s5397_s1 + $0x620] sm:$0xff]  }
  0xf4   : >> { %3986 = vmatprep.subr.bf16.mxu0 %v4460_v8  ;;  %4202 = vmatprep.mubr.msk.bf16.mxu1 %vm4546_vm0, %v4545_v2  ;;  %v3784_v32 = vpop.f32.mrf.mxu0  ;;  %v4497_v8 = vld [vmem:[%s5397_s1 + $0x658] sm:$0xff]   ;;  %v4500_v12 = vld [vmem:[%s5397_s1 + $0x650] sm:$0xff]  }
  0xf5   : >> { %v5232_v15 = vpop.f32.mrf.mxu1  ;;  %2579 = vmatprep.mubr.bf16.mxu0 %v4483_v10  ;;  %v3785_v44 = vadd.f32 %v3784_v32, %v3783_v28  ;;  %v4498_v10 = vld [vmem:[%s5397_s1 + $0x698] sm:$0xff]  }
  0xf6   : >> { %4189 = vmatpush3.bf16.msra.mxu1 %v4461_v11  ;;  %v3786_v36 = vpop.f32.mrf.mxu0  ;;  %v4499_v11 = vld [vmem:[%s5397_s1 + $0x618] sm:$0xff]  }
  0xf7   : >> { %v4065_v17 = vpop.f32.mrf.mxu1  ;;  %3987 = vmatpush3.bf16.msra.mxu0 %v4462_v13  ;;  %4190 = vmatprep.subr.bf16.mxu1 %v4545_v2  ;;  %v577_v53 = vadd.f32 %v3785_v44, %v5217_v9  ;;  %v4501_v13 = vld [vmem:[%s5397_s1 + $0x690] sm:$0xff]  }
  0xf8   : >> { %3988 = vmatprep.subr.bf16.mxu0 %v4463_v14  ;;  %v3787_v42 = vpop.f32.mrf.mxu0  ;;  %v4502_v14 = vld [vmem:[%s5397_s1 + $0x610] sm:$0xff]   ;;  %v4505_v17 = vld [vmem:[%s5397_s1 + $0x608] sm:$0xff]  }
  0xf9   : >> { %v3788_v54 = vadd.f32 %v3787_v42, %v3786_v36 }
  0xfa   : >> { %4191 = vmatpush3.bf16.msra.mxu1 %v4464_v16  ;;  %v4504_v16 = vld [vmem:[%s5397_s1 + $0x688] sm:$0xff]  }
  0xfb   : >> { %3989 = vmatpush3.bf16.msra.mxu0 %v4465_v18  ;;  %4192 = vmatprep.subr.bf16.mxu1 %v4545_v2  ;;  %v580_v1 = vadd.f32 %v3788_v54, %v5232_v15  ;;  %v4503_v15 = vld [vmem:[%s5397_s1 + $0x648] sm:$0xff]   ;;  %v4506_v18 = vld [vmem:[%s5397_s1 + $0x640] sm:$0xff]  }
  0xfc   : >> { %3990 = vmatprep.subr.bf16.mxu0 %v4466_v19  ;;  %v4507_v19 = vld [vmem:[%s5397_s1 + $0x680] sm:$0xff]  }
  0xfe   : >> { %4193 = vmatpush3.bf16.msra.mxu1 %v4467_v20  ;;  %v4508_v20 = vld [vmem:[%s5397_s1 + $0x600] sm:$0xff]  }
  0xff   : >> { %3991 = vmatpush3.bf16.msra.mxu0 %v4468_v21  ;;  %4194 = vmatprep.subr.bf16.mxu1 %v4545_v2  ;;  %v4512_v21 = vld [vmem:[%s4675_s26 + $0xc8] ss:$12 sps:$4 sm:$0xff]  }
 0x100   : >> { %3992 = vmatprep.subr.bf16.mxu0 %v4469_v22  ;;  %v4509_v22 = vld [vmem:[%s4675_s26 + $0xc0] ss:$12 sps:$4 sm:$0xff]   ;;  %s3761_s26 = sshll.u32 %s4543_s28, 3  ;;  %s228_s28 = sadd.s32 1, %s4543_s28  }
 0x101   : >> { %s2952_s17 = scalar_lea.vmem %s4593_s24, %s3761_s26  ;;  %p225_p6 = scmp.ge.s32.totalorder %s228_s28, 4  }
 0x102   : >> { %4195 = vmatpush3.bf16.msra.mxu1 %v4470_v23 }
 0x103   : >> { %3993 = vmatpush3.bf16.msra.mxu0 %v4471_v24  ;;  %4196 = vmatprep.subr.bf16.mxu1 %v4545_v2 }
 0x104   : >> { %3994 = vmatprep.subr.bf16.mxu0 %v4472_v25 }
 0x106   : >> { %4197 = vmatpush3.bf16.msra.mxu1 %v4473_v26 }
 0x107   : >> { %3995 = vmatpush3.bf16.msra.mxu0 %v4474_v27  ;;  %4198 = vmatprep.subr.bf16.mxu1 %v4545_v2 }
 0x108   : >> { %3996 = vmatprep.subr.bf16.mxu0 %v4475_v29 }
 0x10a   : >> { %4199 = vmatpush3.bf16.msra.mxu1 %v4476_v30 }
 0x10b   : >> { %3997 = vmatpush3.bf16.msra.mxu0 %v4477_v31  ;;  %4200 = vmatprep.subr.bf16.mxu1 %v4545_v2 }
 0x10c   : >> { %3998 = vmatprep.subr.bf16.mxu0 %v4478_v33 }
 0x10e   : >> { %4201 = vmatpush3.bf16.msra.mxu1 %v4479_v34 }
 0x10f   : >> { %3999 = vmatpush3.bf16.msra.mxu0 %v4480_v35  ;;  %4206 = vmatprep.subr.bf16.mxu1 %v4545_v2 }
 0x110   : >> { %4015 = vmatprep.subr.bf16.mxu0 %v4485_v37 }
 0x111   : >> { %v818_v45 = vpop.f32.mrf.mxu1  ;;  %4203 = vmatmul.mubr.bf16.vlgmr.msra.gmra.mxu1 %v4484_v38 }
 0x112   : >> { %v3814_v47 = vpop.f32.mrf.mxu0  ;;  %2580 = vmatmul.mubr.bf16.vlgmr.msra.gmra.mxu0 %v4481_v39  ;;  %4207 = vmatpush3.bf16.msra.mxu1 %v4486_v40 }
 0x113   : >> { %v4084_v49 = vpop.f32.mrf.mxu1  ;;  %4016 = vmatpush3.bf16.msra.mxu0 %v4487_v41  ;;  %4208 = vmatprep.subr.bf16.mxu1 %v4545_v2 }
 0x114   : >> { %v3815_v51 = vpop.f32.mrf.mxu0  ;;  %4017 = vmatprep.subr.bf16.mxu0 %v4488_v43  ;;  %4222 = vmatprep.mubr.msk.bf16.mxu1 %vm4546_vm0, %v4545_v2 }
 0x115   : >> { %v3816_v55 = vadd.f32 %v3815_v51, %v3814_v47  ;;  %v821_v56 = vpop.f32.mrf.mxu1  ;;  %2880 = vmatprep.mubr.bf16.mxu0 %v4511_v46 }
 0x116   : >> { %v3817_v57 = vpop.f32.mrf.mxu0  ;;  %4209 = vmatpush3.bf16.msra.mxu1 %v4489_v48 }
 0x117   : >> { %v778_v59 = vadd.f32 %v3816_v55, %v577_v53  ;;  %v4085_v60 = vpop.f32.mrf.mxu1  ;;  %4018 = vmatpush3.bf16.msra.mxu0 %v4490_v50  ;;  %4210 = vmatprep.subr.bf16.mxu1 %v4545_v2 }
 0x118   : >> { %v3818_v62 = vpop.f32.mrf.mxu0  ;;  %4019 = vmatprep.subr.bf16.mxu0 %v4491_v52 }
 0x119   : >> { %v819_v3 = vadd.f32 %v818_v45, %v778_v59  ;;  %v3819_v4 = vadd.f32 %v3818_v62, %v3817_v57 }
 0x11a   : >> { %4211 = vmatpush3.bf16.msra.mxu1 %v4492_v58 }
 0x11b   : >> { %v781_v6 = vadd.f32 %v3819_v4, %v580_v1  ;;  %4020 = vmatpush3.bf16.msra.mxu0 %v4493_v61  ;;  %4212 = vmatprep.subr.bf16.mxu1 %v4545_v2 }
 0x11c   : >> { %4021 = vmatprep.subr.bf16.mxu0 %v4494_v63 }
 0x11d   : >> { %v822_v9 = vadd.f32 %v821_v56, %v781_v6 }
 0x11e   : >> { %4213 = vmatpush3.bf16.msra.mxu1 %v4495_v5 }
 0x11f   : >> { %4022 = vmatpush3.bf16.msra.mxu0 %v4496_v7  ;;  %4214 = vmatprep.subr.bf16.mxu1 %v4545_v2 }
 0x120   : >> { %4023 = vmatprep.subr.bf16.mxu0 %v4497_v8 }
 0x122   : >> { %4215 = vmatpush3.bf16.msra.mxu1 %v4498_v10 }
 0x123   : >> { %4024 = vmatpush3.bf16.msra.mxu0 %v4499_v11  ;;  %4216 = vmatprep.subr.bf16.mxu1 %v4545_v2 }
 0x124   : >> { %4025 = vmatprep.subr.bf16.mxu0 %v4500_v12 }
 0x126   : >> { %4217 = vmatpush3.bf16.msra.mxu1 %v4501_v13 }
 0x127   : >> { %4026 = vmatpush3.bf16.msra.mxu0 %v4502_v14  ;;  %4218 = vmatprep.subr.bf16.mxu1 %v4545_v2 }
 0x128   : >> { %4027 = vmatprep.subr.bf16.mxu0 %v4503_v15 }
 0x12a   : >> { %4219 = vmatpush3.bf16.msra.mxu1 %v4504_v16 }
 0x12b   : >> { %4028 = vmatpush3.bf16.msra.mxu0 %v4505_v17  ;;  %4220 = vmatprep.subr.bf16.mxu1 %v4545_v2 }
 0x12c   : >> { %4029 = vmatprep.subr.bf16.mxu0 %v4506_v18 }
 0x12e   : >> { %4221 = vmatpush3.bf16.msra.mxu1 %v4507_v19 }
 0x12f   : >> { %4030 = vmatpush3.bf16.msra.mxu0 %v4508_v20 }
 0x131   : >> { %v1117_v23 = vpop.f32.mrf.mxu1  ;;  %4223 = vmatmul.mubr.bf16.vlgmr.msra.gmra.mxu1 %v4512_v21 }
 0x132   : >> { %v3845_v24 = vpop.f32.mrf.mxu0  ;;  %2881 = vmatmul.mubr.bf16.vlgmr.msra.gmra.mxu0 %v4509_v22 }
 0x133   : >> { %v4104_v25 = vpop.f32.mrf.mxu1 }
 0x134   : >> { %v3846_v26 = vpop.f32.mrf.mxu0 }
 0x135   : >> { %v3847_v27 = vadd.f32 %v3846_v26, %v3845_v24  ;;  %v1120_v28 = vpop.f32.mrf.mxu1 }
 0x136   : >> { %v3848_v29 = vpop.f32.mrf.mxu0 }
 0x137   : >> { %v1118_v30 = vadd.f32 %v3847_v27, %v1117_v23  ;;  %v4105_v2 = vpop.f32.mrf.mxu1 }
 0x138   : >> { %v3849_v31 = vpop.f32.mrf.mxu0 }
 0x139   : >> { %v1124_v32 = vadd.f32 %v1118_v30, %v819_v3  ;;  %v3850_v33 = vadd.f32 %v3849_v31, %v3848_v29 }
 0x13b   : >> { %v1121_v34 = vadd.f32 %v3850_v33, %v1120_v28 }
 0x13d   : >> { %v1125_v35 = vadd.f32 %v1121_v34, %v822_v9 }
 0x151   : >> { %v1418_v36 = vpop.f32.mrf.mxu1 }
 0x152   : >> { %v3876_v37 = vpop.f32.mrf.mxu0 }
 0x153   : >> { %v4124_v38 = vpop.f32.mrf.mxu1 }
 0x154   : >> { %v3877_v39 = vpop.f32.mrf.mxu0 }
 0x155   : >> { %v3878_v40 = vadd.f32 %v3877_v39, %v3876_v37  ;;  %v1421_v41 = vpop.f32.mrf.mxu1 }
 0x156   : >> { %v3879_v42 = vpop.f32.mrf.mxu0 }
 0x157   : >> { %v1419_v43 = vadd.f32 %v3878_v40, %v1418_v36  ;;  %v4125_v44 = vpop.f32.mrf.mxu1 }
 0x158   : >> { %v3880_v45 = vpop.f32.mrf.mxu0 }
 0x159   : >> { %v1425_v46 = vadd.f32 %v1419_v43, %v1124_v32  ;;  %v3881_v47 = vadd.f32 %v3880_v45, %v3879_v42 }
 0x15b   : >> { %v1422_v48 = vadd.f32 %v3881_v47, %v1421_v41 }
 0x15d   : >> { %v1426_v49 = vadd.f32 %v1422_v48, %v1125_v35 }
 0x171   : >> { %v1719_v50 = vpop.f32.mrf.mxu1 }
 0x172   : >> { %v3907_v51 = vpop.f32.mrf.mxu0 }
 0x173   : >> { %v4144_v52 = vpop.f32.mrf.mxu1 }
 0x174   : >> { %v3908_v53 = vpop.f32.mrf.mxu0 }
 0x175   : >> { %v3909_v54 = vadd.f32 %v3908_v53, %v3907_v51  ;;  %v1722_v55 = vpop.f32.mrf.mxu1 }
 0x176   : >> { %v3910_v56 = vpop.f32.mrf.mxu0 }
 0x177   : >> { %v1720_v57 = vadd.f32 %v3909_v54, %v1719_v50  ;;  %v4145_v58 = vpop.f32.mrf.mxu1 }
 0x178   : >> { %v3911_v59 = vpop.f32.mrf.mxu0 }
 0x179   : >> { %v1726_v60 = vadd.f32 %v1720_v57, %v1425_v46  ;;  %v3912_v61 = vadd.f32 %v3911_v59, %v3910_v56 }
 0x17b   : >> { %v1723_v62 = vadd.f32 %v3912_v61, %v1722_v55 }
 0x17d   : >> { %v1727_v63 = vadd.f32 %v1723_v62, %v1426_v49 }
 0x191   : >> { %v2020_v1 = vpop.f32.mrf.mxu1 }
 0x192   : >> { %v3938_v3 = vpop.f32.mrf.mxu0 }
 0x193   : >> { %v4164_v4 = vpop.f32.mrf.mxu1 }
 0x194   : >> { %v3939_v5 = vpop.f32.mrf.mxu0 }
 0x195   : >> { %v3940_v6 = vadd.f32 %v3939_v5, %v3938_v3  ;;  %v2023_v7 = vpop.f32.mrf.mxu1 }
 0x196   : >> { %v3941_v8 = vpop.f32.mrf.mxu0 }
 0x197   : >> { %v2021_v9 = vadd.f32 %v3940_v6, %v2020_v1  ;;  %v4165_v10 = vpop.f32.mrf.mxu1 }
 0x198   : >> { %v3942_v11 = vpop.f32.mrf.mxu0 }
 0x199   : >> { %v2027_v12 = vadd.f32 %v2021_v9, %v1726_v60  ;;  %v3943_v13 = vadd.f32 %v3942_v11, %v3941_v8 }
 0x19b   : >> { %v2024_v14 = vadd.f32 %v3943_v13, %v2023_v7 }
 0x19d   : >> { %v2028_v15 = vadd.f32 %v2024_v14, %v1727_v63 }
 0x1b1   : >> { %v2321_v16 = vpop.f32.mrf.mxu1 }
 0x1b2   : >> { %v3969_v17 = vpop.f32.mrf.mxu0 }
 0x1b3   : >> { %v4184_v18 = vpop.f32.mrf.mxu1 }
 0x1b4   : >> { %v3970_v19 = vpop.f32.mrf.mxu0 }
 0x1b5   : >> { %v3971_v20 = vadd.f32 %v3970_v19, %v3969_v17  ;;  %v2324_v21 = vpop.f32.mrf.mxu1 }
 0x1b6   : >> { %v3972_v22 = vpop.f32.mrf.mxu0 }
 0x1b7   : >> { %v2322_v23 = vadd.f32 %v3971_v20, %v2321_v16  ;;  %v4185_v24 = vpop.f32.mrf.mxu1 }
 0x1b8   : >> { %v3973_v25 = vpop.f32.mrf.mxu0 }
 0x1b9   : >> { %v2328_v26 = vadd.f32 %v2322_v23, %v2027_v12  ;;  %v3974_v27 = vadd.f32 %v3973_v25, %v3972_v22 }
 0x1bb   : >> { %v2325_v28 = vadd.f32 %v3974_v27, %v2324_v21 }
 0x1bd   : >> { %v2329_v29 = vadd.f32 %v2325_v28, %v2028_v15 }
 0x1d1   : >> { %v2622_v30 = vpop.f32.mrf.mxu1 }
 0x1d2   : >> { %v4000_v33 = vpop.f32.mrf.mxu0 }
 0x1d3   : >> { %v4204_v2 = vpop.f32.mrf.mxu1 }
 0x1d4   : >> { %v4001_v34 = vpop.f32.mrf.mxu0 }
 0x1d5   : >> { %v2625_v31 = vpop.f32.mrf.mxu1  ;;  %v4002_v36 = vadd.f32 %v4001_v34, %v4000_v33 }
 0x1d6   : >> { %v4003_v35 = vpop.f32.mrf.mxu0 }
 0x1d7   : >> { %v4205_v32 = vpop.f32.mrf.mxu1  ;;  %v2623_v40 = vadd.f32 %v4002_v36, %v2622_v30 }
 0x1d8   : >> { %v4004_v37 = vpop.f32.mrf.mxu0 }
 0x1d9   : >> { %v4005_v41 = vadd.f32 %v4004_v37, %v4003_v35  ;;  %v2629_v47 = vadd.f32 %v2623_v40, %v2328_v26 }
 0x1db   : >> { %v2626_v48 = vadd.f32 %v4005_v41, %v2625_v31 }
 0x1dd   : >> { %v2630_v54 = vadd.f32 %v2626_v48, %v2329_v29 }
 0x1f1   : >> { %v2923_v38 = vpop.f32.mrf.mxu1 }
 0x1f2   : >> { %v4031_v39 = vpop.f32.mrf.mxu0 }
 0x1f3   : >> { %v4224_v42 = vpop.f32.mrf.mxu1 }
 0x1f4   : >> { %v4032_v43 = vpop.f32.mrf.mxu0 }
 0x1f5   : >> { %v4033_v44 = vadd.f32 %v4032_v43, %v4031_v39  ;;  %v2926_v45 = vpop.f32.mrf.mxu1 }
 0x1f6   : >> { %v4034_v46 = vpop.f32.mrf.mxu0 }
 0x1f7   : >> { %v2924_v49 = vadd.f32 %v4033_v44, %v2923_v38  ;;  %v4225_v50 = vpop.f32.mrf.mxu1 }
 0x1f8   : >> { %v4035_v51 = vpop.f32.mrf.mxu0 }
 0x1f9   : >> { %v2930_v52 = vadd.f32 %v2924_v49, %v2629_v47  ;;  %v4036_v53 = vadd.f32 %v4035_v51, %v4034_v46 }
 0x1fb   : >> { %v2927_v55 = vadd.f32 %v4036_v53, %v2926_v45  ;;  %v2938_v56 = vadd.f32 %v4588_v0, %v2930_v52 }
 0x1fd   : >> { %v2931_v57 = vadd.f32 %v2927_v55, %v2630_v54  ;;  %v2940_v59 = vmax.f32 %v2938_v56, 0.0 }
 0x1ff   : >> { %v2939_v58 = vadd.f32 %v4588_v0, %v2931_v57 }
 0x201   : >> { %v2941_v60 = vmax.f32 %v2939_v58, 0.0  ;;  %227 = sbr.rel (!%p225_p6) target bundleno = 16 (0x10), region = 87 }
 0x203   : >> { %v3765_v61 = vpack.c.bf16 %v2941_v60, %v2940_v59 }
 0x205   : >> { %3766 = vst [vmem:[%s2952_s17] sm:$0xff] %v3765_v61  }
 0x206 PF: > { %s13_s14 = sadd.s32 1, %s4539_s14   ;;  %s5400_s12 = smov %s4535_s13 }
 0x207   : > { %p10_p7 = scmp.ge.s32.totalorder %s13_s14, 4   ;;  %s5401_s13 = smov %s5403_s15 }
 0x209   :  { %12 = sbr.rel (!%p10_p7) target bundleno = 2 (0x2), region = 98 }

// kernel: rfpose_forward.36
= control target key start
LH: loop header
LB: loop body
LE: loop exit
PB: predicated region body
PF: predicated region fallthrough
CT: control target
= control target key end

     0   :  { %s2587_s12 = smov 0   ;;  %s2589_s13 = smov 0   ;;  %s3050_s0 = inlined_call_operand.vmem [shape: bf16[16,16,640], index: 0, kind: input, shape index: {}]   ;;  %s3051_s1 = inlined_call_operand.vmem [shape: bf16[3,640,128], index: 1, kind: input, shape index: {}]   ;;  %s3052_s2 = inlined_call_operand.vmem [shape: f32[1,128], index: 2, kind: input, shape index: {}]   ;;  %s3053_s3 = inlined_call_operand.vmem [shape: bf16[12,16,128], index: 3, kind: output, shape index: {}]  }
   0x1   :  { %s2591_s14 = smov 0  }
   0x2 LB: > { %s25_s15 = sadd.s32 1, %s2555_s13  ;;  %p1808_p0 = scmp.ge.s32.totalorder %s2559_s14, 1  ;;  %s2559_s14 = sphi %s2591_s14, %s13_s14   ;;  %s2555_s13 = sphi %s2589_s13, %s3055_s13   ;;  %s2551_s12 = sphi %s2587_s12, %s3054_s12  }
   0x3   : > { %p27_p1 = scmp.ge.s32.totalorder %s25_s15, 2  ;;  %p161_p2 = scmp.lt.s32.totalorder %s2559_s14, 3 }
   0x5   : > { %s3057_s15 = smov (%p27_p1, %s25_s15), 0  ;;  %p162_p3 = pnand %p1808_p0, %p161_p2 }
   0x6   : > { %s1809_s16 = sshll.u32 (!%p162_p3), %s2551_s12, 3  ;;  %s209_s17 = smul.u32 (!%p162_p3), 6, %s2551_s12 }
   0x7   : > { %165 = sbr.rel (%p162_p3) target bundleno = 387 (0x183), region = 32  ;;  %p198_p4 = scmp.lt.s32.totalorder (!%p162_p3), %s1809_s16, 15 }
   0x8   : > { %p211_p5 = scmp.lt.s32.totalorder (!%p162_p3), %s209_s17, 11  ;;  %s2620_s28 = smov (!%p162_p3), 0  }
   0xc   : > { %v2608_v0 = vld [vmem:[%s3052_s2] ss:$0 sm:$0xff]  ;;  %s3059_s16 = smov (!%p198_p4, %s1809_s16), 15  ;;  %s3061_s17 = smov (!%p211_p5, %s209_s17), 11 }
   0xd   : > { %s2357_s20 = smul.u32 40, %s3059_s16  ;;  %s2128_s21 = sshll.u32 %s3061_s17, 3 }
   0xe   : > { %s2618_s27 = scalar_lea.vmem %s3053_s3, %s2128_s21 }
   0xf   : > { %s2613_s24 = scalar_lea.vmem %s3050_s0, %s2357_s20 }
  0x10 LB: >> { %v2392_v1 = vld [vmem:[%s3051_s1 + $0x1b8] sm:$0xff]   ;;  %v2396_v5 = vld [vmem:[%s3051_s1 + $0x1b0] sm:$0xff]   ;;  %v2400_v9 = vld [vmem:[%s3051_s1 + $0x1a8] sm:$0xff]   ;;  %s2129_s12 = smul.u32 40, %s2563_s28  ;;  %v2565_v35 = vmov 0.0   ;;  %vm2566_vm0 = vmmov 0   ;;  %s2563_s28 = sphi %s2620_s28, %s228_s28  }
  0x11   : >> { %v2393_v2 = vld [vmem:[%s3051_s1 + $0x238] sm:$0xff]   ;;  %2138 = vmatprep.subr.bf16.mxu0 %v2392_v1  ;;  %v2397_v6 = vld [vmem:[%s3051_s1 + $0x230] sm:$0xff]   ;;  %v2401_v10 = vld [vmem:[%s3051_s1 + $0x228] sm:$0xff]  }
  0x12   : >> { %v2394_v3 = vld [vmem:[%s3051_s1 + $0x178] sm:$0xff]   ;;  %2160 = vmatprep.subr.bf16.mxu1 %v2393_v2  ;;  %v2398_v7 = vld [vmem:[%s3051_s1 + $0x170] sm:$0xff]   ;;  %v2402_v11 = vld [vmem:[%s3051_s1 + $0x168] sm:$0xff]   ;;  %s2717_s25 = scalar_lea.vmem %s2613_s24, %s2129_s12 }
  0x13   : >> { %v2395_v4 = vld [vmem:[%s3051_s1 + $0x1f8] sm:$0xff]   ;;  %2139 = vmatpush3.bf16.msra.mxu0 %v2394_v3  ;;  %v2399_v8 = vld [vmem:[%s3051_s1 + $0x1f0] sm:$0xff]   ;;  %v2403_v12 = vld [vmem:[%s3051_s1 + $0x1e8] sm:$0xff]  }
  0x14   : >> { %2161 = vmatpush3.bf16.msra.mxu1 %v2395_v4  ;;  %2140 = vmatprep.subr.bf16.mxu0 %v2396_v5  ;;  %v2404_v13 = vld [vmem:[%s3051_s1 + $0x1a0] sm:$0xff]   ;;  %v2408_v17 = vld [vmem:[%s3051_s1 + $0x198] sm:$0xff]   ;;  %v2412_v21 = vld [vmem:[%s3051_s1 + $0x190] sm:$0xff]  }
  0x15   : >> { %2162 = vmatprep.subr.bf16.mxu1 %v2397_v6  ;;  %v2405_v14 = vld [vmem:[%s3051_s1 + $0x220] sm:$0xff]   ;;  %v2409_v18 = vld [vmem:[%s3051_s1 + $0x218] sm:$0xff]   ;;  %v2413_v22 = vld [vmem:[%s3051_s1 + $0x210] sm:$0xff]  }
  0x16   : >> { %v2406_v15 = vld [vmem:[%s3051_s1 + $0x160] sm:$0xff]   ;;  %v2410_v19 = vld [vmem:[%s3051_s1 + $0x158] sm:$0xff]   ;;  %v2414_v23 = vld [vmem:[%s3051_s1 + $0x150] sm:$0xff]  }
  0x17   : >> { %2141 = vmatpush3.bf16.msra.mxu0 %v2398_v7  ;;  %v2407_v16 = vld [vmem:[%s3051_s1 + $0x1e0] sm:$0xff]   ;;  %v2411_v20 = vld [vmem:[%s3051_s1 + $0x1d8] sm:$0xff]   ;;  %v2415_v24 = vld [vmem:[%s3051_s1 + $0x1d0] sm:$0xff]  }
  0x18   : >> { %2163 = vmatpush3.bf16.msra.mxu1 %v2399_v8  ;;  %2142 = vmatprep.subr.bf16.mxu0 %v2400_v9  ;;  %v2416_v25 = vld [vmem:[%s3051_s1 + $0x188] sm:$0xff]   ;;  %v2420_v29 = vld [vmem:[%s3051_s1 + $0x180] sm:$0xff]   ;;  %v2430_v38 = vld [vmem:[%s3051_s1 + $0x78] sm:$0xff]  }
  0x19   : >> { %2164 = vmatprep.subr.bf16.mxu1 %v2401_v10  ;;  %v2417_v26 = vld [vmem:[%s3051_s1 + $0x208] sm:$0xff]   ;;  %v2421_v30 = vld [vmem:[%s3051_s1 + $0x200] sm:$0xff]   ;;  %v2431_v39 = vld [vmem:[%s3051_s1 + $0x278] sm:$0xff]  }
  0x1a   : >> { %v2418_v27 = vld [vmem:[%s3051_s1 + $0x148] sm:$0xff]   ;;  %v2422_v31 = vld [vmem:[%s3051_s1 + $0x140] sm:$0xff]   ;;  %v2432_v40 = vld [vmem:[%s3051_s1 + $0x38] sm:$0xff]  }
  0x1b   : >> { %2143 = vmatpush3.bf16.msra.mxu0 %v2402_v11  ;;  %v2419_v28 = vld [vmem:[%s3051_s1 + $0x1c8] sm:$0xff]   ;;  %v2423_v32 = vld [vmem:[%s3051_s1 + $0x1c0] sm:$0xff]   ;;  %v2433_v41 = vld [vmem:[%s3051_s1 + $0x70] sm:$0xff]  }
  0x1c   : >> { %2165 = vmatpush3.bf16.msra.mxu1 %v2403_v12  ;;  %2144 = vmatprep.subr.bf16.mxu0 %v2404_v13  ;;  %v2424_v33 = vld [vmem:[%s2717_s25 + $0x28] ss:$20 sps:$4 sm:$0xff]   ;;  %v2426_v34 = vld [vmem:[%s2717_s25 + $0x2c] ss:$20 sps:$4 sm:$0xff]   ;;  %v2427_v36 = vld [vmem:[%s2717_s25 + $0x30] ss:$20 sps:$4 sm:$0xff]  }
  0x1d   : >> { %2166 = vmatprep.subr.bf16.mxu1 %v2405_v14  ;;  %v2429_v37 = vld [vmem:[%s2717_s25 + $0x34] ss:$20 sps:$4 sm:$0xff]   ;;  %707 = vmatprep.mubr.bf16.mxu0 %v2426_v34  ;;  %v2439_v47 = vld [vmem:[%s3051_s1 + $0x60] sm:$0xff]   ;;  %v2442_v50 = vld [vmem:[%s3051_s1 + $0x58] sm:$0xff]  }
  0x1e   : >> { %748 = vmatprep.mubr.bf16.mxu1 %v2429_v37  ;;  %v2434_v42 = vld [vmem:[%s3051_s1 + $0x270] sm:$0xff]   ;;  %v2436_v44 = vld [vmem:[%s3051_s1 + $0x68] sm:$0xff]   ;;  %v2440_v48 = vld [vmem:[%s3051_s1 + $0x260] sm:$0xff]  }
  0x1f   : >> { %2145 = vmatpush3.bf16.msra.mxu0 %v2406_v15  ;;  %v2435_v43 = vld [vmem:[%s3051_s1 + $0x30] sm:$0xff]   ;;  %v2437_v45 = vld [vmem:[%s3051_s1 + $0x268] sm:$0xff]   ;;  %v2441_v49 = vld [vmem:[%s3051_s1 + $0x20] sm:$0xff]  }
  0x20   : >> { %2167 = vmatpush3.bf16.msra.mxu1 %v2407_v16  ;;  %2146 = vmatprep.subr.bf16.mxu0 %v2408_v17  ;;  %v2438_v46 = vld [vmem:[%s3051_s1 + $0x28] sm:$0xff]   ;;  %v2443_v51 = vld [vmem:[%s3051_s1 + $0x258] sm:$0xff]   ;;  %v2445_v53 = vld [vmem:[%s3051_s1 + $0x50] sm:$0xff]  }
  0x21   : >> { %2168 = vmatprep.subr.bf16.mxu1 %v2409_v18  ;;  %v2444_v52 = vld [vmem:[%s3051_s1 + $0x18] sm:$0xff]   ;;  %v2446_v54 = vld [vmem:[%s3051_s1 + $0x250] sm:$0xff]   ;;  %v2448_v56 = vld [vmem:[%s3051_s1 + $0x48] sm:$0xff]  }
  0x22   : >> { %v2447_v55 = vld [vmem:[%s3051_s1 + $0x10] sm:$0xff]   ;;  %v2449_v57 = vld [vmem:[%s3051_s1 + $0x248] sm:$0xff]   ;;  %v2456_v59 = vld [vmem:[%s2717_s25 + $0x4] ss:$20 sps:$4 sm:$0xff]  }
  0x23   : >> { %2147 = vmatpush3.bf16.msra.mxu0 %v2410_v19  ;;  %v2450_v58 = vld [vmem:[%s3051_s1 + $0x8] sm:$0xff]   ;;  %v2451_v60 = vld [vmem:[%s3051_s1 + $0x40] sm:$0xff]   ;;  %v2458_v63 = vld [vmem:[%s3051_s1 + $0xf8] sm:$0xff]  }
  0x24   : >> { %2169 = vmatpush3.bf16.msra.mxu1 %v2411_v20  ;;  %2148 = vmatprep.subr.bf16.mxu0 %v2412_v21  ;;  %v2452_v61 = vld [vmem:[%s3051_s1 + $0x240] sm:$0xff]   ;;  %v2457_v2 = vld [vmem:[%s2717_s25 + $0x38] ss:$20 sps:$4 sm:$0xff]   ;;  %v2461_v5 = vld [vmem:[%s3051_s1 + $0xf0] sm:$0xff]  }
  0x25   : >> { %2170 = vmatprep.subr.bf16.mxu1 %v2413_v22  ;;  %v2453_v62 = vld [vmem:[%s3051_s1] sm:$0xff]   ;;  %v2459_v3 = vld [vmem:[%s3051_s1 + $0xb8] sm:$0xff]   ;;  %v2462_v6 = vld [vmem:[%s3051_s1 + $0xb0] sm:$0xff]  }
  0x26   : >> { %v2454_v1 = vld [vmem:[%s2717_s25] ss:$20 sps:$4 sm:$0xff]   ;;  %v2460_v4 = vld [vmem:[%s3051_s1 + $0x138] sm:$0xff]   ;;  %v2464_v8 = vld [vmem:[%s3051_s1 + $0xe8] sm:$0xff]  }
  0x27   : >> { %2149 = vmatpush3.bf16.msra.mxu0 %v2414_v23  ;;  %v2463_v7 = vld [vmem:[%s3051_s1 + $0x130] sm:$0xff]   ;;  %v2465_v9 = vld [vmem:[%s3051_s1 + $0xa8] sm:$0xff]   ;;  %v2467_v11 = vld [vmem:[%s3051_s1 + $0xe0] sm:$0xff]  }
  0x28   : >> { %2171 = vmatpush3.bf16.msra.mxu1 %v2415_v24  ;;  %2150 = vmatprep.subr.bf16.mxu0 %v2416_v25  ;;  %v2466_v10 = vld [vmem:[%s3051_s1 + $0x128] sm:$0xff]   ;;  %v2468_v12 = vld [vmem:[%s3051_s1 + $0xa0] sm:$0xff]   ;;  %v2470_v14 = vld [vmem:[%s3051_s1 + $0xd8] sm:$0xff]  }
  0x29   : >> { %2172 = vmatprep.subr.bf16.mxu1 %v2417_v26  ;;  %v2469_v13 = vld [vmem:[%s3051_s1 + $0x120] sm:$0xff]   ;;  %v2471_v15 = vld [vmem:[%s3051_s1 + $0x98] sm:$0xff]   ;;  %v2473_v17 = vld [vmem:[%s3051_s1 + $0xd0] sm:$0xff]  }
  0x2a   : >> { %v2472_v16 = vld [vmem:[%s3051_s1 + $0x118] sm:$0xff]   ;;  %v2474_v18 = vld [vmem:[%s3051_s1 + $0x90] sm:$0xff]   ;;  %v2484_v20 = vld [vmem:[%s2717_s25 + $0xc] ss:$20 sps:$4 sm:$0xff]  }
  0x2b   : >> { %2151 = vmatpush3.bf16.msra.mxu0 %v2418_v27  ;;  %v2475_v19 = vld [vmem:[%s3051_s1 + $0x110] sm:$0xff]   ;;  %v2476_v21 = vld [vmem:[%s3051_s1 + $0xc8] sm:$0xff]   ;;  %v2479_v24 = vld [vmem:[%s3051_s1 + $0xc0] sm:$0xff]  }
  0x2c   : >> { %2173 = vmatpush3.bf16.msra.mxu1 %v2419_v28  ;;  %2152 = vmatprep.subr.bf16.mxu0 %v2420_v29  ;;  %v2477_v22 = vld [vmem:[%s3051_s1 + $0x88] sm:$0xff]   ;;  %v2480_v25 = vld [vmem:[%s3051_s1 + $0x80] sm:$0xff]   ;;  %v2485_v27 = vld [vmem:[%s3051_s1 + $0x2f8] sm:$0xff]  }
  0x2d   : >> { %2174 = vmatprep.subr.bf16.mxu1 %v2421_v30  ;;  %v2478_v23 = vld [vmem:[%s3051_s1 + $0x108] sm:$0xff]   ;;  %v2481_v26 = vld [vmem:[%s3051_s1 + $0x100] sm:$0xff]   ;;  %v2486_v29 = vld [vmem:[%s3051_s1 + $0x378] sm:$0xff]  }
  0x2e   : >> { %v2482_v28 = vld [vmem:[%s2717_s25 + $0x8] ss:$20 sps:$4 sm:$0xff]   ;;  %v2487_v30 = vld [vmem:[%s2717_s25 + $0x10] ss:$20 sps:$4 sm:$0xff]  }
  0x2f   : >> { %2153 = vmatpush3.bf16.msra.mxu0 %v2422_v31  ;;  %v2488_v31 = vld [vmem:[%s3051_s1 + $0x2b8] sm:$0xff]   ;;  %v2491_v34 = vld [vmem:[%s3051_s1 + $0x370] sm:$0xff]  }
  0x30   : >> { %2175 = vmatpush3.bf16.msra.mxu1 %v2423_v32  ;;  %2297 = vmatprep.subr.bf16.mxu0 %v2565_v35  ;;  %v2489_v32 = vld [vmem:[%s3051_s1 + $0x338] sm:$0xff]   ;;  %v2493_v37 = vld [vmem:[%s3051_s1 + $0x330] sm:$0xff]  }
  0x31   : >> { %2191 = vmatprep.subr.bf16.mxu1 %v2430_v38  ;;  %v2494_v38 = vld [vmem:[%s3051_s1 + $0x2e8] sm:$0xff]  }
  0x32   : >> { %708 = vmatmul.mubr.bf16.vlgmr.msra.gmra.mxu0 %v2424_v33  ;;  %v2490_v33 = vld [vmem:[%s3051_s1 + $0x2f0] sm:$0xff]  }
  0x33   : >> { %749 = vmatmul.mubr.bf16.vlgmr.msra.gmra.mxu1 %v2427_v36  ;;  %2298 = vmatpush3.bf16.msra.mxu0 %v2431_v39  ;;  %v2492_v36 = vld [vmem:[%s3051_s1 + $0x2b0] sm:$0xff]   ;;  %v2495_v39 = vld [vmem:[%s3051_s1 + $0x368] sm:$0xff]  }
  0x34   : >> { %2313 = vmatprep.mubr.msk.bf16.mxu0 %vm2566_vm0, %v2565_v35  ;;  %2192 = vmatpush3.bf16.msra.mxu1 %v2432_v40  ;;  %v2496_v40 = vld [vmem:[%s3051_s1 + $0x2a8] sm:$0xff]  }
  0x35   : >> { %2299 = vmatprep.subr.bf16.mxu0 %v2565_v35  ;;  %2193 = vmatprep.subr.bf16.mxu1 %v2433_v41  ;;  %v2497_v41 = vld [vmem:[%s3051_s1 + $0x328] sm:$0xff]  }
  0x36   : >> { %1096 = vmatprep.mubr.bf16.mxu1 %v2456_v59  ;;  %v2513_v59 = vld [vmem:[%s3051_s1 + $0x308] sm:$0xff]  }
  0x37   : >> { %2300 = vmatpush3.bf16.msra.mxu0 %v2434_v42  ;;  %v2498_v42 = vld [vmem:[%s3051_s1 + $0x2e0] sm:$0xff]  }
  0x38   : >> { %2194 = vmatpush3.bf16.msra.mxu1 %v2435_v43  ;;  %2301 = vmatprep.subr.bf16.mxu0 %v2565_v35  ;;  %v2499_v43 = vld [vmem:[%s3051_s1 + $0x360] sm:$0xff]  }
  0x39   : >> { %2195 = vmatprep.subr.bf16.mxu1 %v2436_v44  ;;  %v2500_v44 = vld [vmem:[%s3051_s1 + $0x2a0] sm:$0xff]  }
  0x3b   : >> { %2302 = vmatpush3.bf16.msra.mxu0 %v2437_v45  ;;  %v2501_v45 = vld [vmem:[%s3051_s1 + $0x320] sm:$0xff]  }
  0x3c   : >> { %2196 = vmatpush3.bf16.msra.mxu1 %v2438_v46  ;;  %2303 = vmatprep.subr.bf16.mxu0 %v2565_v35  ;;  %v2502_v46 = vld [vmem:[%s3051_s1 + $0x2d8] sm:$0xff]  }
  0x3d   : >> { %2197 = vmatprep.subr.bf16.mxu1 %v2439_v47  ;;  %v2503_v47 = vld [vmem:[%s3051_s1 + $0x358] sm:$0xff]  }
  0x3f   : >> { %2304 = vmatpush3.bf16.msra.mxu0 %v2440_v48  ;;  %v2504_v48 = vld [vmem:[%s3051_s1 + $0x298] sm:$0xff]  }
  0x40   : >> { %2198 = vmatpush3.bf16.msra.mxu1 %v2441_v49  ;;  %2305 = vmatprep.subr.bf16.mxu0 %v2565_v35  ;;  %v2505_v49 = vld [vmem:[%s3051_s1 + $0x318] sm:$0xff]  }
  0x41   : >> { %2199 = vmatprep.subr.bf16.mxu1 %v2442_v50  ;;  %v2506_v50 = vld [vmem:[%s3051_s1 + $0x2d0] sm:$0xff]  }
  0x43   : >> { %2306 = vmatpush3.bf16.msra.mxu0 %v2443_v51  ;;  %v2507_v51 = vld [vmem:[%s3051_s1 + $0x350] sm:$0xff]  }
  0x44   : >> { %2200 = vmatpush3.bf16.msra.mxu1 %v2444_v52  ;;  %2307 = vmatprep.subr.bf16.mxu0 %v2565_v35  ;;  %v2508_v52 = vld [vmem:[%s3051_s1 + $0x290] sm:$0xff]  }
  0x45   : >> { %2201 = vmatprep.subr.bf16.mxu1 %v2445_v53  ;;  %v2509_v53 = vld [vmem:[%s3051_s1 + $0x310] sm:$0xff]  }
  0x47   : >> { %2308 = vmatpush3.bf16.msra.mxu0 %v2446_v54  ;;  %v2510_v54 = vld [vmem:[%s3051_s1 + $0x2c8] sm:$0xff]  }
  0x48   : >> { %2202 = vmatpush3.bf16.msra.mxu1 %v2447_v55  ;;  %2309 = vmatprep.subr.bf16.mxu0 %v2565_v35  ;;  %v2511_v55 = vld [vmem:[%s3051_s1 + $0x348] sm:$0xff]  }
  0x49   : >> { %2203 = vmatprep.subr.bf16.mxu1 %v2448_v56  ;;  %v2520_v56 = vld [vmem:[%s2717_s25 + $0x54] ss:$20 sps:$4 sm:$0xff]  }
  0x4b   : >> { %2310 = vmatpush3.bf16.msra.mxu0 %v2449_v57  ;;  %v2512_v57 = vld [vmem:[%s3051_s1 + $0x288] sm:$0xff]  }
  0x4c   : >> { %2204 = vmatpush3.bf16.msra.mxu1 %v2450_v58  ;;  %2311 = vmatprep.subr.bf16.mxu0 %v2565_v35  ;;  %v2523_v58 = vld [vmem:[%s2717_s25 + $0x5c] ss:$20 sps:$4 sm:$0xff]  }
  0x4d   : >> { %2205 = vmatprep.subr.bf16.mxu1 %v2451_v60  ;;  %v2514_v60 = vld [vmem:[%s3051_s1 + $0x2c0] sm:$0xff]  }
  0x4f   : >> { %2312 = vmatpush3.bf16.msra.mxu0 %v2452_v61  ;;  %v2515_v61 = vld [vmem:[%s3051_s1 + $0x340] sm:$0xff]  }
  0x50   : >> { %2206 = vmatpush3.bf16.msra.mxu1 %v2453_v62  ;;  %2213 = vmatprep.subr.bf16.mxu0 %v2458_v63  ;;  %v2516_v62 = vld [vmem:[%s3051_s1 + $0x280] sm:$0xff]  }
  0x51   : >> { %2317 = vmatprep.subr.bf16.mxu1 %v2565_v35  ;;  %v2517_v63 = vld [vmem:[%s3051_s1 + $0x300] sm:$0xff]  }
  0x52   : >> { %2314 = vmatmul.mubr.bf16.vlgmr.msra.gmra.mxu0 %v2457_v2  ;;  %v2521_v2 = vld [vmem:[%s2717_s25 + $0x58] ss:$20 sps:$4 sm:$0xff]  }
  0x53   : >> { %1097 = vmatmul.mubr.bf16.vlgmr.msra.gmra.mxu1 %v2454_v1  ;;  %2214 = vmatpush3.bf16.msra.mxu0 %v2459_v3  ;;  %v2518_v1 = vld [vmem:[%s2717_s25 + $0x50] ss:$20 sps:$4 sm:$0xff]   ;;  %v2524_v3 = vld [vmem:[%s3051_s1 + $0x3b8] sm:$0xff]  }
  0x54   : >> { %2318 = vmatpush3.bf16.msra.mxu1 %v2460_v4  ;;  %2215 = vmatprep.subr.bf16.mxu0 %v2461_v5  ;;  %v2525_v4 = vld [vmem:[%s3051_s1 + $0x3b0] sm:$0xff]   ;;  %v2526_v5 = vld [vmem:[%s3051_s1 + $0x3a8] sm:$0xff]  }
  0x55   : >> { %2319 = vmatprep.subr.bf16.mxu1 %v2565_v35  ;;  %2333 = vmatprep.mubr.msk.bf16.mxu1 %vm2566_vm0, %v2565_v35 }
  0x56   : >> { %1137 = vmatprep.mubr.bf16.mxu0 %v2484_v20 }
  0x57   : >> { %2216 = vmatpush3.bf16.msra.mxu0 %v2462_v6  ;;  %v2527_v6 = vld [vmem:[%s3051_s1 + $0x3a0] sm:$0xff]  }
  0x58   : >> { %2320 = vmatpush3.bf16.msra.mxu1 %v2463_v7  ;;  %2217 = vmatprep.subr.bf16.mxu0 %v2464_v8  ;;  %v2528_v7 = vld [vmem:[%s3051_s1 + $0x398] sm:$0xff]   ;;  %v2529_v8 = vld [vmem:[%s3051_s1 + $0x390] sm:$0xff]  }
  0x59   : >> { %2321 = vmatprep.subr.bf16.mxu1 %v2565_v35 }
  0x5b   : >> { %2218 = vmatpush3.bf16.msra.mxu0 %v2465_v9  ;;  %v2530_v9 = vld [vmem:[%s3051_s1 + $0x388] sm:$0xff]  }
  0x5c   : >> { %2322 = vmatpush3.bf16.msra.mxu1 %v2466_v10  ;;  %2219 = vmatprep.subr.bf16.mxu0 %v2467_v11  ;;  %v2531_v10 = vld [vmem:[%s3051_s1 + $0x380] sm:$0xff]  }
  0x5d   : >> { %2323 = vmatprep.subr.bf16.mxu1 %v2565_v35  ;;  %v2532_v11 = vld [vmem:[%s2717_s25 + $0x60] ss:$20 sps:$4 sm:$0xff]   ;;  %s2132_s25 = sshll.u32 %s2563_s28, 3  ;;  %s228_s28 = sadd.s32 1, %s2563_s28  }
  0x5e   : >> { %s1693_s26 = scalar_lea.vmem %s2618_s27, %s2132_s25  ;;  %p225_p6 = scmp.ge.s32.totalorder %s228_s28, 6  }
  0x5f   : >> { %2220 = vmatpush3.bf16.msra.mxu0 %v2468_v12 }
  0x60   : >> { %2324 = vmatpush3.bf16.msra.mxu1 %v2469_v13  ;;  %2221 = vmatprep.subr.bf16.mxu0 %v2470_v14 }
  0x61   : >> { %2325 = vmatprep.subr.bf16.mxu1 %v2565_v35 }
  0x63   : >> { %2222 = vmatpush3.bf16.msra.mxu0 %v2471_v15 }
  0x64   : >> { %2326 = vmatpush3.bf16.msra.mxu1 %v2472_v16  ;;  %2223 = vmatprep.subr.bf16.mxu0 %v2473_v17 }
  0x65   : >> { %2327 = vmatprep.subr.bf16.mxu1 %v2565_v35 }
  0x67   : >> { %2224 = vmatpush3.bf16.msra.mxu0 %v2474_v18 }
  0x68   : >> { %2328 = vmatpush3.bf16.msra.mxu1 %v2475_v19  ;;  %2225 = vmatprep.subr.bf16.mxu0 %v2476_v21 }
  0x69   : >> { %2329 = vmatprep.subr.bf16.mxu1 %v2565_v35 }
  0x6b   : >> { %2226 = vmatpush3.bf16.msra.mxu0 %v2477_v22 }
  0x6c   : >> { %2330 = vmatpush3.bf16.msra.mxu1 %v2478_v23  ;;  %2227 = vmatprep.subr.bf16.mxu0 %v2479_v24 }
  0x6d   : >> { %2331 = vmatprep.subr.bf16.mxu1 %v2565_v35 }
  0x6f   : >> { %2228 = vmatpush3.bf16.msra.mxu0 %v2480_v25 }
  0x70   : >> { %2332 = vmatpush3.bf16.msra.mxu1 %v2481_v26  ;;  %2244 = vmatprep.subr.bf16.mxu0 %v2485_v27 }
  0x71   : >> { %2266 = vmatprep.subr.bf16.mxu1 %v2486_v29 }
  0x72   : >> { %1138 = vmatmul.mubr.bf16.vlgmr.msra.gmra.mxu0 %v2482_v28 }
  0x73   : >> { %2334 = vmatmul.mubr.bf16.vlgmr.msra.gmra.mxu1 %v2487_v30  ;;  %2245 = vmatpush3.bf16.msra.mxu0 %v2488_v31 }
  0x74   : >> { %2267 = vmatpush3.bf16.msra.mxu1 %v2489_v32  ;;  %2246 = vmatprep.subr.bf16.mxu0 %v2490_v33 }
  0x75   : >> { %2268 = vmatprep.subr.bf16.mxu1 %v2491_v34  ;;  %1576 = vmatprep.mubr.bf16.mxu0 %v2520_v56 }
  0x76   : >> { %1617 = vmatprep.mubr.bf16.mxu1 %v2523_v58 }
  0x77   : >> { %2247 = vmatpush3.bf16.msra.mxu0 %v2492_v36 }
  0x78   : >> { %2269 = vmatpush3.bf16.msra.mxu1 %v2493_v37  ;;  %2248 = vmatprep.subr.bf16.mxu0 %v2494_v38 }
  0x79   : >> { %2270 = vmatprep.subr.bf16.mxu1 %v2495_v39 }
  0x7b   : >> { %2249 = vmatpush3.bf16.msra.mxu0 %v2496_v40 }
  0x7c   : >> { %2271 = vmatpush3.bf16.msra.mxu1 %v2497_v41  ;;  %2250 = vmatprep.subr.bf16.mxu0 %v2498_v42 }
  0x7d   : >> { %2272 = vmatprep.subr.bf16.mxu1 %v2499_v43 }
  0x7f   : >> { %2251 = vmatpush3.bf16.msra.mxu0 %v2500_v44 }
  0x80   : >> { %2273 = vmatpush3.bf16.msra.mxu1 %v2501_v45  ;;  %2252 = vmatprep.subr.bf16.mxu0 %v2502_v46 }
  0x81   : >> { %2274 = vmatprep.subr.bf16.mxu1 %v2503_v47 }
  0x83   : >> { %2253 = vmatpush3.bf16.msra.mxu0 %v2504_v48 }
  0x84   : >> { %2275 = vmatpush3.bf16.msra.mxu1 %v2505_v49  ;;  %2254 = vmatprep.subr.bf16.mxu0 %v2506_v50 }
  0x85   : >> { %2276 = vmatprep.subr.bf16.mxu1 %v2507_v51 }
  0x87   : >> { %2255 = vmatpush3.bf16.msra.mxu0 %v2508_v52 }
  0x88   : >> { %2277 = vmatpush3.bf16.msra.mxu1 %v2509_v53  ;;  %2256 = vmatprep.subr.bf16.mxu0 %v2510_v54 }
  0x89   : >> { %2278 = vmatprep.subr.bf16.mxu1 %v2511_v55 }
  0x8b   : >> { %2257 = vmatpush3.bf16.msra.mxu0 %v2512_v57 }
  0x8c   : >> { %2279 = vmatpush3.bf16.msra.mxu1 %v2513_v59  ;;  %2258 = vmatprep.subr.bf16.mxu0 %v2514_v60 }
  0x8d   : >> { %2280 = vmatprep.subr.bf16.mxu1 %v2515_v61 }
  0x8f   : >> { %2259 = vmatpush3.bf16.msra.mxu0 %v2516_v62 }
  0x90   : >> { %2281 = vmatpush3.bf16.msra.mxu1 %v2517_v63  ;;  %2337 = vmatprep.subr.bf16.mxu0 %v2565_v35 }
  0x92   : >> { %1577 = vmatmul.mubr.bf16.vlgmr.msra.gmra.mxu0 %v2518_v1 }
  0x93   : >> { %1618 = vmatmul.mubr.bf16.vlgmr.msra.gmra.mxu1 %v2521_v2  ;;  %2338 = vmatpush3.bf16.msra.mxu0 %v2524_v3 }
  0x94   : >> { %2339 = vmatprep.subr.bf16.mxu0 %v2565_v35  ;;  %2353 = vmatprep.mubr.msk.bf16.mxu0 %vm2566_vm0, %v2565_v35 }
  0x97   : >> { %2340 = vmatpush3.bf16.msra.mxu0 %v2525_v4 }
  0x98   : >> { %2341 = vmatprep.subr.bf16.mxu0 %v2565_v35 }
  0x9b   : >> { %2342 = vmatpush3.bf16.msra.mxu0 %v2526_v5 }
  0x9c   : >> { %2343 = vmatprep.subr.bf16.mxu0 %v2565_v35 }
  0x9f   : >> { %2344 = vmatpush3.bf16.msra.mxu0 %v2527_v6 }
  0xa0   : >> { %2345 = vmatprep.subr.bf16.mxu0 %v2565_v35 }
  0xa3   : >> { %2346 = vmatpush3.bf16.msra.mxu0 %v2528_v7 }
  0xa4   : >> { %2347 = vmatprep.subr.bf16.mxu0 %v2565_v35 }
  0xa7   : >> { %2348 = vmatpush3.bf16.msra.mxu0 %v2529_v8 }
  0xa8   : >> { %2349 = vmatprep.subr.bf16.mxu0 %v2565_v35 }
  0xab   : >> { %2350 = vmatpush3.bf16.msra.mxu0 %v2530_v9 }
  0xac   : >> { %2351 = vmatprep.subr.bf16.mxu0 %v2565_v35 }
  0xaf   : >> { %2352 = vmatpush3.bf16.msra.mxu0 %v2531_v10 }
  0xb2   : >> { %2354 = vmatmul.mubr.bf16.vlgmr.msra.gmra.mxu0 %v2532_v11 }
  0xf2   : >> { %v2154_v12 = vpop.f32.mrf.mxu0 }
  0xf3   : >> { %v2176_v13 = vpop.f32.mrf.mxu1 }
  0xf4   : >> { %v2155_v14 = vpop.f32.mrf.mxu0 }
  0xf5   : >> { %v2156_v15 = vadd.f32 %v2155_v14, %v2154_v12  ;;  %v2177_v16 = vpop.f32.mrf.mxu1 }
  0xf6   : >> { %v2178_v17 = vadd.f32 %v2177_v16, %v2176_v13  ;;  %v2157_v18 = vpop.f32.mrf.mxu0 }
  0xf7   : >> { %v2179_v19 = vpop.f32.mrf.mxu1 }
  0xf8   : >> { %v2158_v20 = vpop.f32.mrf.mxu0  ;;  %v751_v21 = vadd.f32 %v2178_v17, %v2156_v15 }
  0xf9   : >> { %v2159_v22 = vadd.f32 %v2158_v20, %v2157_v18  ;;  %v2180_v23 = vpop.f32.mrf.mxu1 }
  0xfa   : >> { %v2181_v24 = vadd.f32 %v2180_v23, %v2179_v19 }
  0xfc   : >> { %v754_v25 = vadd.f32 %v2181_v24, %v2159_v22 }
 0x112   : >> { %v791_v26 = vpop.f32.mrf.mxu0 }
 0x113   : >> { %v792_v27 = vadd.f32 %v791_v26, %v751_v21  ;;  %v2207_v35 = vpop.f32.mrf.mxu1 }
 0x114   : >> { %v2315_v28 = vpop.f32.mrf.mxu0 }
 0x115   : >> { %v2208_v29 = vpop.f32.mrf.mxu1 }
 0x116   : >> { %v2209_v30 = vadd.f32 %v2208_v29, %v2207_v35  ;;  %v794_v31 = vpop.f32.mrf.mxu0 }
 0x117   : >> { %v795_v32 = vadd.f32 %v794_v31, %v754_v25  ;;  %v2210_v33 = vpop.f32.mrf.mxu1 }
 0x118   : >> { %v1099_v34 = vadd.f32 %v2209_v30, %v792_v27  ;;  %v2316_v36 = vpop.f32.mrf.mxu0 }
 0x119   : >> { %v2211_v37 = vpop.f32.mrf.mxu1 }
 0x11a   : >> { %v2212_v38 = vadd.f32 %v2211_v37, %v2210_v33 }
 0x11c   : >> { %v1102_v39 = vadd.f32 %v2212_v38, %v795_v32 }
 0x132   : >> { %v2229_v40 = vpop.f32.mrf.mxu0 }
 0x133   : >> { %v1180_v41 = vpop.f32.mrf.mxu1 }
 0x134   : >> { %v2230_v42 = vpop.f32.mrf.mxu0 }
 0x135   : >> { %v2231_v43 = vadd.f32 %v2230_v42, %v2229_v40  ;;  %v2335_v44 = vpop.f32.mrf.mxu1 }
 0x136   : >> { %v2232_v49 = vpop.f32.mrf.mxu0 }
 0x137   : >> { %v1140_v45 = vadd.f32 %v2231_v43, %v1099_v34  ;;  %v1183_v46 = vpop.f32.mrf.mxu1 }
 0x138   : >> { %v2233_v50 = vpop.f32.mrf.mxu0 }
 0x139   : >> { %v1181_v47 = vadd.f32 %v1180_v41, %v1140_v45  ;;  %v2336_v48 = vpop.f32.mrf.mxu1  ;;  %v2234_v61 = vadd.f32 %v2233_v50, %v2232_v49 }
 0x13b   : >> { %v1143_v3 = vadd.f32 %v2234_v61, %v1102_v39 }
 0x13d   : >> { %v1184_v9 = vadd.f32 %v1183_v46, %v1143_v3 }
 0x152   : >> { %v2260_v51 = vpop.f32.mrf.mxu0 }
 0x153   : >> { %v2282_v52 = vpop.f32.mrf.mxu1 }
 0x154   : >> { %v2261_v53 = vpop.f32.mrf.mxu0 }
 0x155   : >> { %v2283_v54 = vpop.f32.mrf.mxu1  ;;  %v2262_v57 = vadd.f32 %v2261_v53, %v2260_v51 }
 0x156   : >> { %v2263_v55 = vpop.f32.mrf.mxu0  ;;  %v2284_v58 = vadd.f32 %v2283_v54, %v2282_v52 }
 0x157   : >> { %v2285_v56 = vpop.f32.mrf.mxu1 }
 0x158   : >> { %v2264_v59 = vpop.f32.mrf.mxu0  ;;  %v1620_v1 = vadd.f32 %v2284_v58, %v2262_v57 }
 0x159   : >> { %v2286_v60 = vpop.f32.mrf.mxu1  ;;  %v2265_v62 = vadd.f32 %v2264_v59, %v2263_v55 }
 0x15a   : >> { %v2287_v63 = vadd.f32 %v2286_v60, %v2285_v56 }
 0x15c   : >> { %v1623_v7 = vadd.f32 %v2287_v63, %v2265_v62 }
 0x172   : >> { %v1660_v2 = vpop.f32.mrf.mxu0 }
 0x173   : >> { %v1661_v4 = vadd.f32 %v1660_v2, %v1620_v1 }
 0x174   : >> { %v2355_v5 = vpop.f32.mrf.mxu0 }
 0x175   : >> { %v1667_v6 = vadd.f32 %v1661_v4, %v1181_v47 }
 0x176   : >> { %v1663_v8 = vpop.f32.mrf.mxu0 }
 0x177   : >> { %v1675_v10 = vadd.f32 %v2608_v0, %v1667_v6  ;;  %v1664_v11 = vadd.f32 %v1663_v8, %v1623_v7 }
 0x178   : >> { %v2356_v12 = vpop.f32.mrf.mxu0 }
 0x179   : >> { %v1668_v13 = vadd.f32 %v1664_v11, %v1184_v9  ;;  %v1679_v14 = vmul.f32 0.25, %v1675_v10  ;;  %vm1677_vm1 = vcmp.ge.f32.partialorder %v1675_v10, 0.0 }
 0x17b   : >> { %v1676_v15 = vadd.f32 %v2608_v0, %v1668_v13  ;;  %v1681_v17 = vsel %vm1677_vm1, %v1675_v10, %v1679_v14 }
 0x17d   : >> { %vm1678_vm2 = vcmp.ge.f32.partialorder %v1676_v15, 0.0  ;;  %v1680_v16 = vmul.f32 0.25, %v1676_v15 }
 0x17e   : > { %227 = sbr.rel (!%p225_p6) target bundleno = 16 (0x10), region = 75 }
 0x17f   : >> { %v1682_v18 = vsel %vm1678_vm2, %v1676_v15, %v1680_v16 }
 0x180   : >> { %v2136_v19 = vpack.c.bf16 %v1682_v18, %v1681_v17 }
 0x182   : >> { %2137 = vst [vmem:[%s1693_s26] sm:$0xff] %v2136_v19  }
 0x183 PF: > { %s13_s14 = sadd.s32 1, %s2559_s14   ;;  %s3054_s12 = smov %s2555_s13 }
 0x184   : > { %p10_p7 = scmp.ge.s32.totalorder %s13_s14, 4   ;;  %s3055_s13 = smov %s3057_s15 }
 0x186   :  { %12 = sbr.rel (!%p10_p7) target bundleno = 2 (0x2), region = 86 }

// kernel: rfpose_forward.37
= control target key start
LH: loop header
LB: loop body
LE: loop exit
PB: predicated region body
PF: predicated region fallthrough
CT: control target
= control target key end

     0   :  { %s1283_s12 = smov 0   ;;  %s1285_s13 = smov 0   ;;  %s1491_s0 = inlined_call_operand.vmem [shape: bf16[20,16,256], index: 0, kind: input, shape index: {}]   ;;  %s1492_s1 = inlined_call_operand.vmem [shape: bf16[3,256,128], index: 1, kind: input, shape index: {}]   ;;  %s1493_s2 = inlined_call_operand.vmem [shape: f32[1,128], index: 2, kind: input, shape index: {}]   ;;  %s1494_s3 = inlined_call_operand.vmem [shape: bf16[16,16,128], index: 3, kind: output, shape index: {}]  }
   0x1   :  { %s1287_s14 = smov 0  }
   0x2 LB: > { %s25_s15 = sadd.s32 1, %s1253_s13  ;;  %p926_p0 = scmp.ge.s32.totalorder %s1257_s14, 1  ;;  %s1257_s14 = sphi %s1287_s14, %s13_s14   ;;  %s1253_s13 = sphi %s1285_s13, %s1496_s13   ;;  %s1249_s12 = sphi %s1283_s12, %s1495_s12  }
   0x3   : > { %p27_p1 = scmp.ge.s32.totalorder %s25_s15, 2  ;;  %p161_p2 = scmp.lt.s32.totalorder %s1257_s14, 3 }
   0x5   : > { %s1498_s15 = smov (%p27_p1, %s25_s15), 0  ;;  %p162_p3 = pnand %p926_p0, %p161_p2 }
   0x6   : > { %s196_s16 = smul.u32 (!%p162_p3), 10, %s1249_s12  ;;  %s929_s17 = sshll.u32 (!%p162_p3), %s1249_s12, 3 }
   0x7   : > { %165 = sbr.rel (%p162_p3) target bundleno = 292 (0x124), region = 32  ;;  %p211_p4 = scmp.lt.s32.totalorder (!%p162_p3), %s929_s17, 15 }
   0x8   : > { %p198_p5 = scmp.lt.s32.totalorder (!%p162_p3), %s196_s16, 19  ;;  %s1316_s28 = smov (!%p162_p3), 0  }
   0xc   : > { %v1304_v0 = vld [vmem:[%s1493_s2] ss:$0 sm:$0xff]  ;;  %s1500_s17 = smov (!%p211_p4, %s929_s17), 15  ;;  %s1502_s16 = smov (!%p198_p5, %s196_s16), 19 }
   0xd   : > { %s1066_s20 = sshll.u32 %s1500_s17, 3  ;;  %s1065_s21 = sshll.u32 %s1502_s16, 4 }
   0xe   : > { %s1309_s24 = scalar_lea.vmem %s1494_s3, %s1066_s20  ;;  %s1314_s27 = scalar_lea.vmem %s1491_s0, %s1065_s21 }
   0xf LB: >> { %v1174_v1 = vld [vmem:[%s1492_s1 + $0xf8] sm:$0xff]   ;;  %v1178_v5 = vld [vmem:[%s1492_s1 + $0xf0] sm:$0xff]   ;;  %v1182_v9 = vld [vmem:[%s1492_s1 + $0xe8] sm:$0xff]   ;;  %s1067_s17 = sshll.u32 %s1261_s28, 4  ;;  %s1261_s28 = sphi %s1316_s28, %s228_s28  }
  0x10   : >> { %v1175_v2 = vld [vmem:[%s1492_s1 + $0x78] sm:$0xff]   ;;  %1076 = vmatprep.subr.bf16.mxu0 %v1174_v1  ;;  %v1179_v6 = vld [vmem:[%s1492_s1 + $0x70] sm:$0xff]   ;;  %v1183_v10 = vld [vmem:[%s1492_s1 + $0x68] sm:$0xff]   ;;  %s1413_s25 = scalar_lea.vmem %s1314_s27, %s1067_s17 }
  0x11   : >> { %v1176_v3 = vld [vmem:[%s1492_s1 + $0xb8] sm:$0xff]   ;;  %1098 = vmatprep.subr.bf16.mxu1 %v1175_v2  ;;  %v1180_v7 = vld [vmem:[%s1492_s1 + $0xb0] sm:$0xff]   ;;  %v1184_v11 = vld [vmem:[%s1492_s1 + $0xa8] sm:$0xff]  }
  0x12   : >> { %v1177_v4 = vld [vmem:[%s1492_s1 + $0x38] sm:$0xff]   ;;  %1077 = vmatpush3.bf16.msra.mxu0 %v1176_v3  ;;  %v1181_v8 = vld [vmem:[%s1492_s1 + $0x30] sm:$0xff]   ;;  %v1185_v12 = vld [vmem:[%s1492_s1 + $0x28] sm:$0xff]  }
  0x13   : >> { %1099 = vmatpush3.bf16.msra.mxu1 %v1177_v4  ;;  %1078 = vmatprep.subr.bf16.mxu0 %v1178_v5  ;;  %v1186_v13 = vld [vmem:[%s1492_s1 + $0xe0] sm:$0xff]   ;;  %v1190_v17 = vld [vmem:[%s1492_s1 + $0xd8] sm:$0xff]   ;;  %v1194_v21 = vld [vmem:[%s1492_s1 + $0xd0] sm:$0xff]  }
  0x14   : >> { %1100 = vmatprep.subr.bf16.mxu1 %v1179_v6  ;;  %v1187_v14 = vld [vmem:[%s1492_s1 + $0x60] sm:$0xff]   ;;  %v1191_v18 = vld [vmem:[%s1492_s1 + $0x58] sm:$0xff]   ;;  %v1195_v22 = vld [vmem:[%s1492_s1 + $0x50] sm:$0xff]  }
  0x15   : >> { %v1188_v15 = vld [vmem:[%s1492_s1 + $0xa0] sm:$0xff]   ;;  %v1192_v19 = vld [vmem:[%s1492_s1 + $0x98] sm:$0xff]   ;;  %v1196_v23 = vld [vmem:[%s1492_s1 + $0x90] sm:$0xff]  }
  0x16   : >> { %1079 = vmatpush3.bf16.msra.mxu0 %v1180_v7  ;;  %v1189_v16 = vld [vmem:[%s1492_s1 + $0x20] sm:$0xff]   ;;  %v1193_v20 = vld [vmem:[%s1492_s1 + $0x18] sm:$0xff]   ;;  %v1197_v24 = vld [vmem:[%s1492_s1 + $0x10] sm:$0xff]  }
  0x17   : >> { %1101 = vmatpush3.bf16.msra.mxu1 %v1181_v8  ;;  %1080 = vmatprep.subr.bf16.mxu0 %v1182_v9  ;;  %v1198_v25 = vld [vmem:[%s1492_s1 + $0xc8] sm:$0xff]   ;;  %v1202_v29 = vld [vmem:[%s1492_s1 + $0xc0] sm:$0xff]   ;;  %v1206_v33 = vld [vmem:[%s1413_s25 + $0x10] ss:$8 sps:$4 sm:$0xff]  }
  0x18   : >> { %1102 = vmatprep.subr.bf16.mxu1 %v1183_v10  ;;  %v1199_v26 = vld [vmem:[%s1492_s1 + $0x48] sm:$0xff]   ;;  %v1203_v30 = vld [vmem:[%s1492_s1 + $0x40] sm:$0xff]   ;;  %v1208_v34 = vld [vmem:[%s1413_s25 + $0x14] ss:$8 sps:$4 sm:$0xff]  }
  0x19   : >> { %v1200_v27 = vld [vmem:[%s1492_s1 + $0x88] sm:$0xff]   ;;  %v1204_v31 = vld [vmem:[%s1492_s1 + $0x80] sm:$0xff]   ;;  %443 = vmatprep.mubr.bf16.mxu0 %v1208_v34  ;;  %v1212_v37 = vld [vmem:[%s1492_s1 + $0x178] sm:$0xff]  }
  0x1a   : >> { %1081 = vmatpush3.bf16.msra.mxu0 %v1184_v11  ;;  %v1201_v28 = vld [vmem:[%s1492_s1 + $0x8] sm:$0xff]   ;;  %v1205_v32 = vld [vmem:[%s1492_s1] sm:$0xff]   ;;  %v1213_v38 = vld [vmem:[%s1492_s1 + $0x138] sm:$0xff]  }
  0x1b   : >> { %1103 = vmatpush3.bf16.msra.mxu1 %v1185_v12  ;;  %1082 = vmatprep.subr.bf16.mxu0 %v1186_v13  ;;  %v1209_v35 = vld [vmem:[%s1413_s25] ss:$8 sps:$4 sm:$0xff]   ;;  %v1211_v36 = vld [vmem:[%s1413_s25 + $0x4] ss:$8 sps:$4 sm:$0xff]   ;;  %v1214_v39 = vld [vmem:[%s1492_s1 + $0x170] sm:$0xff]  }
  0x1c   : >> { %1104 = vmatprep.subr.bf16.mxu1 %v1187_v14  ;;  %590 = vmatprep.mubr.bf16.mxu1 %v1211_v36  ;;  %v1215_v40 = vld [vmem:[%s1492_s1 + $0x130] sm:$0xff]   ;;  %v1216_v41 = vld [vmem:[%s1492_s1 + $0x168] sm:$0xff]   ;;  %v1218_v43 = vld [vmem:[%s1492_s1 + $0x160] sm:$0xff]  }
  0x1d   : >> { %v1217_v42 = vld [vmem:[%s1492_s1 + $0x128] sm:$0xff]   ;;  %v1219_v44 = vld [vmem:[%s1492_s1 + $0x120] sm:$0xff]   ;;  %v1220_v45 = vld [vmem:[%s1492_s1 + $0x158] sm:$0xff]  }
  0x1e   : >> { %1083 = vmatpush3.bf16.msra.mxu0 %v1188_v15  ;;  %v1221_v46 = vld [vmem:[%s1492_s1 + $0x118] sm:$0xff]   ;;  %v1222_v47 = vld [vmem:[%s1492_s1 + $0x150] sm:$0xff]   ;;  %v1230_v48 = vld [vmem:[%s1413_s25 + $0x24] ss:$8 sps:$4 sm:$0xff]  }
  0x1f   : >> { %1105 = vmatpush3.bf16.msra.mxu1 %v1189_v16  ;;  %1084 = vmatprep.subr.bf16.mxu0 %v1190_v17  ;;  %v1223_v49 = vld [vmem:[%s1492_s1 + $0x110] sm:$0xff]   ;;  %v1224_v50 = vld [vmem:[%s1492_s1 + $0x148] sm:$0xff]   ;;  %v1226_v52 = vld [vmem:[%s1492_s1 + $0x140] sm:$0xff]  }
  0x20   : >> { %1106 = vmatprep.subr.bf16.mxu1 %v1191_v18  ;;  %v1225_v51 = vld [vmem:[%s1492_s1 + $0x108] sm:$0xff]   ;;  %v1227_v53 = vld [vmem:[%s1492_s1 + $0x100] sm:$0xff]  }
  0x21   : >> { %v1228_v54 = vld [vmem:[%s1413_s25 + $0x20] ss:$8 sps:$4 sm:$0xff]   ;;  %s1070_s25 = sshll.u32 %s1261_s28, 3  ;;  %s228_s28 = sadd.s32 1, %s1261_s28  }
  0x22   : >> { %1085 = vmatpush3.bf16.msra.mxu0 %v1192_v19  ;;  %s811_s20 = scalar_lea.vmem %s1309_s24, %s1070_s25  ;;  %p225_p6 = scmp.ge.s32.totalorder %s228_s28, 8  }
  0x23   : >> { %1107 = vmatpush3.bf16.msra.mxu1 %v1193_v20  ;;  %1086 = vmatprep.subr.bf16.mxu0 %v1194_v21 }
  0x24   : >> { %1108 = vmatprep.subr.bf16.mxu1 %v1195_v22 }
  0x26   : >> { %1087 = vmatpush3.bf16.msra.mxu0 %v1196_v23 }
  0x27   : >> { %1109 = vmatpush3.bf16.msra.mxu1 %v1197_v24  ;;  %1088 = vmatprep.subr.bf16.mxu0 %v1198_v25 }
  0x28   : >> { %1110 = vmatprep.subr.bf16.mxu1 %v1199_v26 }
  0x2a   : >> { %1089 = vmatpush3.bf16.msra.mxu0 %v1200_v27 }
  0x2b   : >> { %1111 = vmatpush3.bf16.msra.mxu1 %v1201_v28  ;;  %1090 = vmatprep.subr.bf16.mxu0 %v1202_v29 }
  0x2c   : >> { %1112 = vmatprep.subr.bf16.mxu1 %v1203_v30 }
  0x2e   : >> { %1091 = vmatpush3.bf16.msra.mxu0 %v1204_v31 }
  0x2f   : >> { %1113 = vmatpush3.bf16.msra.mxu1 %v1205_v32  ;;  %1120 = vmatprep.subr.bf16.mxu0 %v1212_v37 }
  0x31   : >> { %444 = vmatmul.mubr.bf16.vlgmr.msra.gmra.mxu0 %v1206_v33 }
  0x32   : >> { %591 = vmatmul.mubr.bf16.vlgmr.msra.gmra.mxu1 %v1209_v35  ;;  %1121 = vmatpush3.bf16.msra.mxu0 %v1213_v38 }
  0x33   : >> { %1122 = vmatprep.subr.bf16.mxu0 %v1214_v39  ;;  %776 = vmatprep.mubr.bf16.mxu0 %v1230_v48 }
  0x36   : >> { %1123 = vmatpush3.bf16.msra.mxu0 %v1215_v40 }
  0x37   : >> { %1124 = vmatprep.subr.bf16.mxu0 %v1216_v41 }
  0x3a   : >> { %1125 = vmatpush3.bf16.msra.mxu0 %v1217_v42 }
  0x3b   : >> { %1126 = vmatprep.subr.bf16.mxu0 %v1218_v43 }
  0x3e   : >> { %1127 = vmatpush3.bf16.msra.mxu0 %v1219_v44 }
  0x3f   : >> { %1128 = vmatprep.subr.bf16.mxu0 %v1220_v45 }
  0x42   : >> { %1129 = vmatpush3.bf16.msra.mxu0 %v1221_v46 }
  0x43   : >> { %1130 = vmatprep.subr.bf16.mxu0 %v1222_v47 }
  0x46   : >> { %1131 = vmatpush3.bf16.msra.mxu0 %v1223_v49 }
  0x47   : >> { %1132 = vmatprep.subr.bf16.mxu0 %v1224_v50 }
  0x4a   : >> { %1133 = vmatpush3.bf16.msra.mxu0 %v1225_v51 }
  0x4b   : >> { %1134 = vmatprep.subr.bf16.mxu0 %v1226_v52 }
  0x4e   : >> { %1135 = vmatpush3.bf16.msra.mxu0 %v1227_v53 }
  0x51   : >> { %777 = vmatmul.mubr.bf16.vlgmr.msra.gmra.mxu0 %v1228_v54 }
  0xf1   : >> { %v1092_v55 = vpop.f32.mrf.mxu0 }
  0xf2   : >> { %v1114_v56 = vpop.f32.mrf.mxu1 }
  0xf3   : >> { %v1093_v57 = vpop.f32.mrf.mxu0 }
  0xf4   : >> { %v1115_v58 = vpop.f32.mrf.mxu1  ;;  %v1094_v62 = vadd.f32 %v1093_v57, %v1092_v55 }
  0xf5   : >> { %v1095_v59 = vpop.f32.mrf.mxu0  ;;  %v1116_v63 = vadd.f32 %v1115_v58, %v1114_v56 }
  0xf6   : >> { %v1117_v60 = vpop.f32.mrf.mxu1 }
  0xf7   : >> { %v1096_v61 = vpop.f32.mrf.mxu0  ;;  %v593_v4 = vadd.f32 %v1116_v63, %v1094_v62 }
  0xf8   : >> { %v1118_v1 = vpop.f32.mrf.mxu1  ;;  %v1097_v5 = vadd.f32 %v1096_v61, %v1095_v59 }
  0xf9   : >> { %v1119_v6 = vadd.f32 %v1118_v1, %v1117_v60 }
  0xfb   : >> { %v596_v11 = vadd.f32 %v1119_v6, %v1097_v5 }
 0x111   : >> { %v1136_v2 = vpop.f32.mrf.mxu0 }
 0x113   : >> { %v1137_v3 = vpop.f32.mrf.mxu0 }
 0x114   : >> { %v1138_v7 = vadd.f32 %v1137_v3, %v1136_v2 }
 0x115   : >> { %v1139_v8 = vpop.f32.mrf.mxu0 }
 0x116   : >> { %v785_v9 = vadd.f32 %v1138_v7, %v593_v4 }
 0x117   : >> { %v1140_v10 = vpop.f32.mrf.mxu0 }
 0x118   : >> { %v793_v12 = vadd.f32 %v1304_v0, %v785_v9  ;;  %v1141_v13 = vadd.f32 %v1140_v10, %v1139_v8 }
 0x11a   : >> { %v786_v14 = vadd.f32 %v1141_v13, %v596_v11  ;;  %v797_v15 = vmul.f32 0.25, %v793_v12  ;;  %vm795_vm0 = vcmp.ge.f32.partialorder %v793_v12, 0.0 }
 0x11c   : >> { %v794_v16 = vadd.f32 %v1304_v0, %v786_v14  ;;  %v799_v18 = vsel %vm795_vm0, %v793_v12, %v797_v15 }
 0x11e   : >> { %vm796_vm1 = vcmp.ge.f32.partialorder %v794_v16, 0.0  ;;  %v798_v17 = vmul.f32 0.25, %v794_v16 }
 0x11f   : > { %227 = sbr.rel (!%p225_p6) target bundleno = 15 (0xf), region = 75 }
 0x120   : >> { %v800_v19 = vsel %vm796_vm1, %v794_v16, %v798_v17 }
 0x121   : >> { %v1074_v20 = vpack.c.bf16 %v800_v19, %v799_v18 }
 0x123   : >> { %1075 = vst [vmem:[%s811_s20] sm:$0xff] %v1074_v20  }
 0x124 PF: > { %s13_s14 = sadd.s32 1, %s1257_s14   ;;  %s1495_s12 = smov %s1253_s13 }
 0x125   : > { %p10_p7 = scmp.ge.s32.totalorder %s13_s14, 4   ;;  %s1496_s13 = smov %s1498_s15 }
 0x127   :  { %12 = sbr.rel (!%p10_p7) target bundleno = 2 (0x2), region = 86 }

// kernel: rfpose_forward.38
= control target key start
LH: loop header
LB: loop body
LE: loop exit
PB: predicated region body
PF: predicated region fallthrough
CT: control target
= control target key end

     0   :  { %s1006_s12 = smov 0   ;;  %s1008_s13 = smov 0   ;;  %s1172_s0 = inlined_call_operand.vmem [shape: bf16[24,16,128], index: 0, kind: input, shape index: {}]   ;;  %s1173_s1 = inlined_call_operand.vmem [shape: bf16[3,128,128], index: 1, kind: input, shape index: {}]   ;;  %s1174_s2 = inlined_call_operand.vmem [shape: f32[1,128], index: 2, kind: input, shape index: {}]   ;;  %s1175_s3 = inlined_call_operand.vmem [shape: bf16[20,16,128], index: 3, kind: output, shape index: {}]  }
   0x1   :  { %s1010_s14 = smov 0  }
   0x2 LB: > { %s25_s15 = sadd.s32 1, %s974_s13  ;;  %p715_p0 = scmp.ge.s32.totalorder %s978_s14, 1  ;;  %s978_s14 = sphi %s1010_s14, %s13_s14   ;;  %s974_s13 = sphi %s1008_s13, %s1177_s13   ;;  %s970_s12 = sphi %s1006_s12, %s1176_s12  }
   0x3   : > { %p27_p1 = scmp.ge.s32.totalorder %s25_s15, 2  ;;  %p160_p2 = scmp.lt.s32.totalorder %s978_s14, 3 }
   0x5   : > { %s1179_s15 = smov (%p27_p1, %s25_s15), 0  ;;  %p161_p3 = pnand %p715_p0, %p160_p2 }
   0x6   : > { %s194_s16 = smul.u32 (!%p161_p3), 12, %s970_s12  ;;  %s1039_s28 = smov (!%p161_p3), 0  }
   0x7   : > { %164 = sbr.rel (%p161_p3) target bundleno = 287 (0x11f), region = 32 }
   0x8   : > { %s206_s19 = smul.u32 (!%p161_p3), 10, %s970_s12  ;;  %p196_p4 = scmp.lt.s32.totalorder (!%p161_p3), %s194_s16, 23 }
   0xa   : > { %p208_p5 = scmp.lt.s32.totalorder (!%p161_p3), %s206_s19, 19 }
   0xc   : > { %v1027_v0 = vld [vmem:[%s1174_s2] ss:$0 sm:$0xff]  ;;  %s1181_s16 = smov (!%p196_p4, %s194_s16), 23  ;;  %s1183_s19 = smov (!%p208_p5, %s206_s19), 19 }
   0xd   : > { %s793_s20 = sshll.u32 %s1181_s16, 3  ;;  %s794_s24 = sshll.u32 %s1183_s19, 3 }
   0xe   : > { %s1032_s23 = scalar_lea.vmem %s1172_s0, %s793_s20  ;;  %s1037_s27 = scalar_lea.vmem %s1175_s3, %s794_s24 }
   0xf LB: >> { %v925_v1 = vld [vmem:[%s1173_s1 + $0x78] sm:$0xff]   ;;  %v984_v2 = vmov 0.0   ;;  %v927_v4 = vld [vmem:[%s1173_s1 + $0x70] sm:$0xff]   ;;  %vm985_vm0 = vmmov 0   ;;  %v929_v6 = vld [vmem:[%s1173_s1 + $0x68] sm:$0xff]   ;;  %s795_s21 = sshll.u32 %s982_s28, 3  ;;  %s982_s28 = sphi %s1039_s28, %s225_s28  }
  0x10   : >> { %831 = vmatprep.subr.bf16.mxu0 %v984_v2  ;;  %851 = vmatprep.subr.bf16.mxu1 %v984_v2  ;;  %v926_v3 = vld [vmem:[%s1173_s1 + $0x38] sm:$0xff]   ;;  %v928_v5 = vld [vmem:[%s1173_s1 + $0x30] sm:$0xff]   ;;  %v930_v7 = vld [vmem:[%s1173_s1 + $0x28] sm:$0xff]   ;;  %s1091_s29 = scalar_lea.vmem %s1032_s23, %s795_s21  ;;  %s225_s28 = sadd.s32 1, %s982_s28  }
  0x11   : >> { %832 = vmatpush3.bf16.msra.mxu0 %v925_v1  ;;  %847 = vmatprep.mubr.msk.bf16.mxu0 %vm985_vm0, %v984_v2  ;;  %v931_v8 = vld [vmem:[%s1173_s1 + $0x60] sm:$0xff]   ;;  %v933_v10 = vld [vmem:[%s1173_s1 + $0x58] sm:$0xff]   ;;  %v935_v12 = vld [vmem:[%s1173_s1 + $0x50] sm:$0xff]   ;;  %p222_p6 = scmp.ge.s32.totalorder %s225_s28, 10  }
  0x12   : >> { %852 = vmatpush3.bf16.msra.mxu1 %v926_v3  ;;  %833 = vmatprep.subr.bf16.mxu0 %v984_v2  ;;  %v932_v9 = vld [vmem:[%s1173_s1 + $0x20] sm:$0xff]   ;;  %v934_v11 = vld [vmem:[%s1173_s1 + $0x18] sm:$0xff]   ;;  %v936_v13 = vld [vmem:[%s1173_s1 + $0x10] sm:$0xff]  }
  0x13   : >> { %853 = vmatprep.subr.bf16.mxu1 %v984_v2  ;;  %867 = vmatprep.mubr.msk.bf16.mxu1 %vm985_vm0, %v984_v2  ;;  %v937_v14 = vld [vmem:[%s1173_s1 + $0x48] sm:$0xff]   ;;  %v939_v16 = vld [vmem:[%s1173_s1 + $0x40] sm:$0xff]   ;;  %v943_v20 = vld [vmem:[%s1173_s1 + $0xb8] sm:$0xff]  }
  0x14   : >> { %v938_v15 = vld [vmem:[%s1173_s1 + $0x8] sm:$0xff]   ;;  %v940_v17 = vld [vmem:[%s1173_s1] sm:$0xff]   ;;  %v944_v21 = vld [vmem:[%s1173_s1 + $0xb0] sm:$0xff]  }
  0x15   : >> { %834 = vmatpush3.bf16.msra.mxu0 %v927_v4  ;;  %v941_v18 = vld [vmem:[%s1091_s29 + $0x8] sm:$0xff]   ;;  %v942_v19 = vld [vmem:[%s1091_s29] sm:$0xff]   ;;  %v947_v24 = vld [vmem:[%s1173_s1 + $0x98] sm:$0xff]  }
  0x16   : >> { %854 = vmatpush3.bf16.msra.mxu1 %v928_v5  ;;  %835 = vmatprep.subr.bf16.mxu0 %v984_v2  ;;  %v945_v22 = vld [vmem:[%s1173_s1 + $0xa8] sm:$0xff]   ;;  %v946_v23 = vld [vmem:[%s1173_s1 + $0xa0] sm:$0xff]   ;;  %v948_v25 = vld [vmem:[%s1173_s1 + $0x90] sm:$0xff]  }
  0x17   : >> { %855 = vmatprep.subr.bf16.mxu1 %v984_v2  ;;  %v949_v26 = vld [vmem:[%s1173_s1 + $0x88] sm:$0xff]   ;;  %v950_v27 = vld [vmem:[%s1173_s1 + $0x80] sm:$0xff]   ;;  %v951_v28 = vld [vmem:[%s1091_s29 + $0x10] sm:$0xff]   ;;  %s603_s29 = scalar_lea.vmem %s1037_s27, %s795_s21 }
  0x19   : >> { %836 = vmatpush3.bf16.msra.mxu0 %v929_v6 }
  0x1a   : >> { %856 = vmatpush3.bf16.msra.mxu1 %v930_v7  ;;  %837 = vmatprep.subr.bf16.mxu0 %v984_v2 }
  0x1b   : >> { %857 = vmatprep.subr.bf16.mxu1 %v984_v2 }
  0x1d   : >> { %838 = vmatpush3.bf16.msra.mxu0 %v931_v8 }
  0x1e   : >> { %858 = vmatpush3.bf16.msra.mxu1 %v932_v9  ;;  %839 = vmatprep.subr.bf16.mxu0 %v984_v2 }
  0x1f   : >> { %859 = vmatprep.subr.bf16.mxu1 %v984_v2 }
  0x21   : >> { %840 = vmatpush3.bf16.msra.mxu0 %v933_v10 }
  0x22   : >> { %860 = vmatpush3.bf16.msra.mxu1 %v934_v11  ;;  %841 = vmatprep.subr.bf16.mxu0 %v984_v2 }
  0x23   : >> { %861 = vmatprep.subr.bf16.mxu1 %v984_v2 }
  0x25   : >> { %842 = vmatpush3.bf16.msra.mxu0 %v935_v12 }
  0x26   : >> { %862 = vmatpush3.bf16.msra.mxu1 %v936_v13  ;;  %843 = vmatprep.subr.bf16.mxu0 %v984_v2 }
  0x27   : >> { %863 = vmatprep.subr.bf16.mxu1 %v984_v2 }
  0x29   : >> { %844 = vmatpush3.bf16.msra.mxu0 %v937_v14 }
  0x2a   : >> { %864 = vmatpush3.bf16.msra.mxu1 %v938_v15  ;;  %845 = vmatprep.subr.bf16.mxu0 %v984_v2 }
  0x2b   : >> { %865 = vmatprep.subr.bf16.mxu1 %v984_v2 }
  0x2d   : >> { %846 = vmatpush3.bf16.msra.mxu0 %v939_v16 }
  0x2e   : >> { %866 = vmatpush3.bf16.msra.mxu1 %v940_v17  ;;  %871 = vmatprep.subr.bf16.mxu0 %v984_v2 }
  0x30   : >> { %848 = vmatmul.mubr.bf16.vlgmr.msra.gmra.mxu0 %v941_v18 }
  0x31   : >> { %868 = vmatmul.mubr.bf16.vlgmr.msra.gmra.mxu1 %v942_v19  ;;  %872 = vmatpush3.bf16.msra.mxu0 %v943_v20 }
  0x32   : >> { %873 = vmatprep.subr.bf16.mxu0 %v984_v2  ;;  %887 = vmatprep.mubr.msk.bf16.mxu0 %vm985_vm0, %v984_v2 }
  0x35   : >> { %874 = vmatpush3.bf16.msra.mxu0 %v944_v21 }
  0x36   : >> { %875 = vmatprep.subr.bf16.mxu0 %v984_v2 }
  0x39   : >> { %876 = vmatpush3.bf16.msra.mxu0 %v945_v22 }
  0x3a   : >> { %877 = vmatprep.subr.bf16.mxu0 %v984_v2 }
  0x3d   : >> { %878 = vmatpush3.bf16.msra.mxu0 %v946_v23 }
  0x3e   : >> { %879 = vmatprep.subr.bf16.mxu0 %v984_v2 }
  0x41   : >> { %880 = vmatpush3.bf16.msra.mxu0 %v947_v24 }
  0x42   : >> { %881 = vmatprep.subr.bf16.mxu0 %v984_v2 }
  0x45   : >> { %882 = vmatpush3.bf16.msra.mxu0 %v948_v25 }
  0x46   : >> { %883 = vmatprep.subr.bf16.mxu0 %v984_v2 }
  0x49   : >> { %884 = vmatpush3.bf16.msra.mxu0 %v949_v26 }
  0x4a   : >> { %885 = vmatprep.subr.bf16.mxu0 %v984_v2 }
  0x4d   : >> { %886 = vmatpush3.bf16.msra.mxu0 %v950_v27 }
  0x50   : >> { %888 = vmatmul.mubr.bf16.vlgmr.msra.gmra.mxu0 %v951_v28 }
  0xf0   : >> { %v358_v29 = vpop.f32.mrf.mxu0 }
  0xf1   : >> { %v453_v30 = vpop.f32.mrf.mxu1 }
  0xf2   : >> { %v849_v31 = vpop.f32.mrf.mxu0  ;;  %v454_v37 = vadd.f32 %v453_v30, %v358_v29 }
  0xf3   : >> { %v869_v32 = vpop.f32.mrf.mxu1 }
  0xf4   : >> { %v361_v33 = vpop.f32.mrf.mxu0 }
  0xf5   : >> { %v456_v34 = vpop.f32.mrf.mxu1 }
  0xf6   : >> { %v850_v35 = vpop.f32.mrf.mxu0  ;;  %v457_v41 = vadd.f32 %v456_v34, %v361_v33 }
  0xf7   : >> { %v870_v36 = vpop.f32.mrf.mxu1 }
 0x110   : >> { %v571_v38 = vpop.f32.mrf.mxu0 }
 0x111   : >> { %v578_v39 = vadd.f32 %v571_v38, %v454_v37 }
 0x112   : >> { %v889_v40 = vpop.f32.mrf.mxu0 }
 0x113   : >> { %v586_v42 = vadd.f32 %v1027_v0, %v578_v39 }
 0x114   : >> { %v574_v43 = vpop.f32.mrf.mxu0 }
 0x115   : >> { %v579_v44 = vadd.f32 %v574_v43, %v457_v41  ;;  %v590_v46 = vmul.f32 0.25, %v586_v42  ;;  %vm588_vm1 = vcmp.ge.f32.partialorder %v586_v42, 0.0 }
 0x116   : >> { %v890_v45 = vpop.f32.mrf.mxu0 }
 0x117   : >> { %v587_v47 = vadd.f32 %v1027_v0, %v579_v44  ;;  %v592_v49 = vsel %vm588_vm1, %v586_v42, %v590_v46 }
 0x119   : >> { %vm589_vm2 = vcmp.ge.f32.partialorder %v587_v47, 0.0  ;;  %v591_v48 = vmul.f32 0.25, %v587_v47 }
 0x11a   : > { %224 = sbr.rel (!%p222_p6) target bundleno = 15 (0xf), region = 75 }
 0x11b   : >> { %v593_v50 = vsel %vm589_vm2, %v587_v47, %v591_v48 }
 0x11c   : >> { %v802_v51 = vpack.c.bf16 %v593_v50, %v592_v49 }
 0x11e   : >> { %803 = vst [vmem:[%s603_s29] sm:$0xff] %v802_v51  }
 0x11f PF: > { %s13_s14 = sadd.s32 1, %s978_s14   ;;  %s1176_s12 = smov %s974_s13 }
 0x120   : > { %p10_p7 = scmp.ge.s32.totalorder %s13_s14, 4   ;;  %s1177_s13 = smov %s1179_s15 }
 0x122   :  { %12 = sbr.rel (!%p10_p7) target bundleno = 2 (0x2), region = 86 }

// kernel: rfpose_forward.39
= control target key start
LH: loop header
LB: loop body
LE: loop exit
PB: predicated region body
PF: predicated region fallthrough
CT: control target
= control target key end

     0   :  { %s1287_s12 = smov 0   ;;  %s1289_s13 = smov 0   ;;  %s1435_s0 = inlined_call_operand.vmem [shape: bf16[28,64,128], index: 0, kind: input, shape index: {}]   ;;  %s1436_s1 = inlined_call_operand.vmem [shape: bf16[3,128,128], index: 1, kind: input, shape index: {}]   ;;  %s1437_s2 = inlined_call_operand.vmem [shape: f32[1,128], index: 2, kind: input, shape index: {}]   ;;  %s1438_s3 = inlined_call_operand.vmem [shape: f32[24,64,128], index: 3, kind: output, shape index: {}]  }
   0x1   :  { %s1291_s14 = smov 0  }
   0x2 LB: > { %s25_s15 = sadd.s32 1, %s1257_s13  ;;  %p911_p0 = scmp.ge.s32.totalorder %s1261_s14, 1  ;;  %s1261_s14 = sphi %s1291_s14, %s13_s14   ;;  %s1257_s13 = sphi %s1289_s13, %s1440_s13   ;;  %s1253_s12 = sphi %s1287_s12, %s1439_s12  }
   0x3   : > { %p27_p1 = scmp.ge.s32.totalorder %s25_s15, 2  ;;  %p160_p2 = scmp.lt.s32.totalorder %s1261_s14, 3 }
   0x5   : > { %s1442_s15 = smov (%p27_p1, %s25_s15), 0  ;;  %p161_p3 = pnand %p911_p0, %p160_p2 }
   0x6   : > { %s194_s16 = smul.u32 (!%p161_p3), 14, %s1253_s12  ;;  %s1320_s28 = smov (!%p161_p3), 0  }
   0x7   : > { %164 = sbr.rel (%p161_p3) target bundleno = 319 (0x13f), region = 32 }
   0x8   : > { %s206_s19 = smul.u32 (!%p161_p3), 12, %s1253_s12  ;;  %p196_p4 = scmp.lt.s32.totalorder (!%p161_p3), %s194_s16, 27 }
   0xa   : > { %p208_p5 = scmp.lt.s32.totalorder (!%p161_p3), %s206_s19, 23 }
   0xc   : > { %v1308_v0 = vld [vmem:[%s1437_s2] ss:$0 sm:$0xff]  ;;  %s1444_s16 = smov (!%p196_p4, %s194_s16), 27  ;;  %s1446_s19 = smov (!%p208_p5, %s206_s19), 23 }
   0xd   : > { %s1008_s20 = sshll.u32 %s1444_s16, 5  ;;  %s1009_s24 = sshll.u32 %s1446_s19, 6 }
   0xe   : > { %s1313_s23 = scalar_lea.vmem %s1435_s0, %s1008_s20  ;;  %s1318_s27 = scalar_lea.vmem %s1438_s3, %s1009_s24 }
   0xf LB: >> { %v1167_v1 = vld [vmem:[%s1436_s1 + $0x78] sm:$0xff]   ;;  %v1169_v3 = vld [vmem:[%s1436_s1 + $0x70] sm:$0xff]   ;;  %v1171_v5 = vld [vmem:[%s1436_s1 + $0x68] sm:$0xff]   ;;  %s1010_s21 = sshll.u32 %s1265_s28, 5  ;;  %s1265_s28 = sphi %s1320_s28, %s225_s28  }
  0x10   : >> { %v1168_v2 = vld [vmem:[%s1436_s1 + $0x38] sm:$0xff]   ;;  %1047 = vmatprep.subr.bf16.mxu0 %v1167_v1  ;;  %v1170_v4 = vld [vmem:[%s1436_s1 + $0x30] sm:$0xff]   ;;  %v1172_v6 = vld [vmem:[%s1436_s1 + $0x28] sm:$0xff]   ;;  %s1357_s29 = scalar_lea.vmem %s1313_s23, %s1010_s21 }
  0x11   : >> { %1071 = vmatprep.subr.bf16.mxu1 %v1168_v2  ;;  %1048 = vmatpush3.bf16.msra.mxu0 %v1167_v1  ;;  %v1173_v7 = vld [vmem:[%s1436_s1 + $0x60] sm:$0xff]   ;;  %v1175_v9 = vld [vmem:[%s1436_s1 + $0x58] sm:$0xff]   ;;  %v1177_v11 = vld [vmem:[%s1436_s1 + $0x50] sm:$0xff]  }
  0x12   : >> { %1072 = vmatpush3.bf16.msra.mxu1 %v1168_v2  ;;  %1049 = vmatprep.subr.bf16.mxu0 %v1169_v3  ;;  %v1174_v8 = vld [vmem:[%s1436_s1 + $0x20] sm:$0xff]   ;;  %v1176_v10 = vld [vmem:[%s1436_s1 + $0x18] sm:$0xff]   ;;  %v1178_v12 = vld [vmem:[%s1436_s1 + $0x10] sm:$0xff]  }
  0x13   : >> { %1073 = vmatprep.subr.bf16.mxu1 %v1170_v4  ;;  %v1183_v13 = vld [vmem:[%s1357_s29 + $0x20] sm:$0xff]   ;;  %v1179_v15 = vld [vmem:[%s1436_s1 + $0x48] sm:$0xff]   ;;  %v1187_v19 = vld [vmem:[%s1436_s1 + $0xb8] sm:$0xff]  }
  0x14   : >> { %v1184_v14 = vld [vmem:[%s1357_s29] sm:$0xff]   ;;  %1063 = vmatprep.mubr.bf16.mxu0 %v1183_v13  ;;  %v1180_v16 = vld [vmem:[%s1436_s1 + $0x8] sm:$0xff]   ;;  %v1188_v22 = vld [vmem:[%s1436_s1 + $0xb0] sm:$0xff]  }
  0x15   : >> { %1050 = vmatpush3.bf16.msra.mxu0 %v1169_v3  ;;  %1087 = vmatprep.mubr.bf16.mxu1 %v1184_v14  ;;  %v1181_v17 = vld [vmem:[%s1436_s1 + $0x40] sm:$0xff]   ;;  %v1185_v20 = vld [vmem:[%s1357_s29 + $0x28] sm:$0xff]   ;;  %v1192_v23 = vld [vmem:[%s1357_s29 + $0x30] sm:$0xff]  }
  0x16   : >> { %1074 = vmatpush3.bf16.msra.mxu1 %v1170_v4  ;;  %1051 = vmatprep.subr.bf16.mxu0 %v1171_v5  ;;  %v1182_v18 = vld [vmem:[%s1436_s1] sm:$0xff]   ;;  %v1186_v21 = vld [vmem:[%s1357_s29 + $0x8] sm:$0xff]   ;;  %v1193_v24 = vld [vmem:[%s1357_s29 + $0x10] sm:$0xff]  }
  0x17   : >> { %1075 = vmatprep.subr.bf16.mxu1 %v1172_v6  ;;  %v1189_v25 = vld [vmem:[%s1436_s1 + $0xa8] sm:$0xff]   ;;  %v1194_v26 = vld [vmem:[%s1357_s29 + $0x38] sm:$0xff]   ;;  %v1190_v28 = vld [vmem:[%s1436_s1 + $0xa0] sm:$0xff]  }
  0x18   : >> { %v1195_v27 = vld [vmem:[%s1357_s29 + $0x18] sm:$0xff]   ;;  %v1199_v29 = vld [vmem:[%s1357_s29 + $0x40] sm:$0xff]   ;;  %v1200_v30 = vld [vmem:[%s1357_s29 + $0x50] sm:$0xff]  }
  0x19   : >> { %1052 = vmatpush3.bf16.msra.mxu0 %v1171_v5  ;;  %v1191_v31 = vld [vmem:[%s1436_s1 + $0x98] sm:$0xff]   ;;  %v1196_v32 = vld [vmem:[%s1436_s1 + $0x90] sm:$0xff]   ;;  %v1197_v33 = vld [vmem:[%s1436_s1 + $0x88] sm:$0xff]  }
  0x1a   : >> { %1076 = vmatpush3.bf16.msra.mxu1 %v1172_v6  ;;  %1053 = vmatprep.subr.bf16.mxu0 %v1173_v7  ;;  %v1198_v34 = vld [vmem:[%s1436_s1 + $0x80] sm:$0xff]   ;;  %v1201_v35 = vld [vmem:[%s1357_s29 + $0x48] sm:$0xff]   ;;  %v1202_v36 = vld [vmem:[%s1357_s29 + $0x58] sm:$0xff]   ;;  %s1005_s29 = sshll.u32 %s1265_s28, 6  ;;  %s225_s28 = sadd.s32 1, %s1265_s28  }
  0x1b   : >> { %1077 = vmatprep.subr.bf16.mxu1 %v1174_v8  ;;  %s793_s11 = scalar_lea.vmem %s1318_s27, %s1005_s29  ;;  %p222_p6 = scmp.ge.s32.totalorder %s225_s28, 12  }
  0x1d   : >> { %1054 = vmatpush3.bf16.msra.mxu0 %v1173_v7 }
  0x1e   : >> { %1078 = vmatpush3.bf16.msra.mxu1 %v1174_v8  ;;  %1055 = vmatprep.subr.bf16.mxu0 %v1175_v9 }
  0x1f   : >> { %1079 = vmatprep.subr.bf16.mxu1 %v1176_v10 }
  0x21   : >> { %1056 = vmatpush3.bf16.msra.mxu0 %v1175_v9 }
  0x22   : >> { %1080 = vmatpush3.bf16.msra.mxu1 %v1176_v10  ;;  %1057 = vmatprep.subr.bf16.mxu0 %v1177_v11 }
  0x23   : >> { %1081 = vmatprep.subr.bf16.mxu1 %v1178_v12 }
  0x25   : >> { %1058 = vmatpush3.bf16.msra.mxu0 %v1177_v11 }
  0x26   : >> { %1082 = vmatpush3.bf16.msra.mxu1 %v1178_v12  ;;  %1059 = vmatprep.subr.bf16.mxu0 %v1179_v15 }
  0x27   : >> { %1083 = vmatprep.subr.bf16.mxu1 %v1180_v16 }
  0x29   : >> { %1060 = vmatpush3.bf16.msra.mxu0 %v1179_v15 }
  0x2a   : >> { %1084 = vmatpush3.bf16.msra.mxu1 %v1180_v16  ;;  %1061 = vmatprep.subr.bf16.mxu0 %v1181_v17 }
  0x2b   : >> { %1085 = vmatprep.subr.bf16.mxu1 %v1182_v18 }
  0x2d   : >> { %1062 = vmatpush3.bf16.msra.mxu0 %v1181_v17 }
  0x2e   : >> { %1086 = vmatpush3.bf16.msra.mxu1 %v1182_v18  ;;  %1095 = vmatprep.subr.bf16.mxu0 %v1187_v19 }
  0x2f   : >> { %1119 = vmatprep.subr.bf16.mxu1 %v1187_v19 }
  0x30   : >> { %1064 = vmatmul.mubr.bf16.vlgmr.msra.gmra.mxu0 %v1185_v20 }
  0x31   : >> { %1088 = vmatmul.mubr.bf16.vlgmr.msra.gmra.mxu1 %v1186_v21  ;;  %1096 = vmatpush3.bf16.msra.mxu0 %v1187_v19 }
  0x32   : >> { %1127 = vmatpush3.bf16.msra.mxu1 %v1187_v19  ;;  %1097 = vmatprep.subr.bf16.mxu0 %v1188_v22 }
  0x33   : >> { %1120 = vmatprep.subr.bf16.mxu1 %v1188_v22  ;;  %1067 = vmatprep.mubr.bf16.mxu0 %v1192_v23 }
  0x34   : >> { %1091 = vmatprep.mubr.bf16.mxu1 %v1193_v24 }
  0x35   : >> { %1098 = vmatpush3.bf16.msra.mxu0 %v1188_v22 }
  0x36   : >> { %1128 = vmatpush3.bf16.msra.mxu1 %v1188_v22  ;;  %1099 = vmatprep.subr.bf16.mxu0 %v1189_v25 }
  0x37   : >> { %1121 = vmatprep.subr.bf16.mxu1 %v1189_v25 }
  0x38   : >> { %1068 = vmatmul.mubr.bf16.gmra.mxu0 %v1194_v26 }
  0x39   : >> { %1100 = vmatpush3.bf16.msra.mxu0 %v1189_v25  ;;  %1092 = vmatmul.mubr.bf16.gmra.mxu1 %v1195_v27 }
  0x3a   : >> { %1129 = vmatpush3.bf16.msra.mxu1 %v1189_v25  ;;  %1101 = vmatprep.subr.bf16.mxu0 %v1190_v28 }
  0x3b   : >> { %1122 = vmatprep.subr.bf16.mxu1 %v1190_v28  ;;  %1111 = vmatprep.mubr.bf16.mxu0 %v1199_v29 }
  0x3c   : >> { %1115 = vmatprep.mubr.bf16.mxu1 %v1200_v30 }
  0x3d   : >> { %1102 = vmatpush3.bf16.msra.mxu0 %v1190_v28 }
  0x3e   : >> { %1130 = vmatpush3.bf16.msra.mxu1 %v1190_v28  ;;  %1103 = vmatprep.subr.bf16.mxu0 %v1191_v31 }
  0x3f   : >> { %1123 = vmatprep.subr.bf16.mxu1 %v1191_v31 }
  0x41   : >> { %1104 = vmatpush3.bf16.msra.mxu0 %v1191_v31 }
  0x42   : >> { %1131 = vmatpush3.bf16.msra.mxu1 %v1191_v31  ;;  %1105 = vmatprep.subr.bf16.mxu0 %v1196_v32 }
  0x43   : >> { %1124 = vmatprep.subr.bf16.mxu1 %v1196_v32 }
  0x45   : >> { %1106 = vmatpush3.bf16.msra.mxu0 %v1196_v32 }
  0x46   : >> { %1132 = vmatpush3.bf16.msra.mxu1 %v1196_v32  ;;  %1107 = vmatprep.subr.bf16.mxu0 %v1197_v33 }
  0x47   : >> { %1125 = vmatprep.subr.bf16.mxu1 %v1197_v33 }
  0x49   : >> { %1108 = vmatpush3.bf16.msra.mxu0 %v1197_v33 }
  0x4a   : >> { %1133 = vmatpush3.bf16.msra.mxu1 %v1197_v33  ;;  %1109 = vmatprep.subr.bf16.mxu0 %v1198_v34 }
  0x4b   : >> { %1126 = vmatprep.subr.bf16.mxu1 %v1198_v34 }
  0x4d   : >> { %1110 = vmatpush3.bf16.msra.mxu0 %v1198_v34 }
  0x4e   : >> { %1134 = vmatpush3.bf16.msra.mxu1 %v1198_v34 }
  0x50   : >> { %1112 = vmatmul.mubr.bf16.vlgmr.msra.gmra.mxu0 %v1201_v35 }
  0x51   : >> { %1116 = vmatmul.mubr.bf16.vlgmr.msra.gmra.mxu1 %v1202_v36 }
  0xf0   : >> { %v1065_v37 = vpop.f32.mrf.mxu0 }
  0xf1   : >> { %v1089_v38 = vpop.f32.mrf.mxu1 }
  0xf2   : >> { %v388_v39 = vpop.f32.mrf.mxu0  ;;  %v534_v52 = vadd.f32 %v1089_v38, %v1065_v37 }
  0xf3   : >> { %v525_v40 = vpop.f32.mrf.mxu1 }
  0xf4   : >> { %v1066_v41 = vpop.f32.mrf.mxu0  ;;  %v526_v56 = vadd.f32 %v525_v40, %v388_v39 }
  0xf5   : >> { %v1090_v42 = vpop.f32.mrf.mxu1 }
  0xf6   : >> { %v391_v43 = vpop.f32.mrf.mxu0  ;;  %v537_v62 = vadd.f32 %v1090_v42, %v1066_v41 }
  0xf7   : >> { %v528_v44 = vpop.f32.mrf.mxu1 }
  0xf8   : >> { %v1069_v45 = vpop.f32.mrf.mxu0  ;;  %v529_v7 = vadd.f32 %v528_v44, %v391_v43 }
  0xf9   : >> { %v1093_v46 = vpop.f32.mrf.mxu1 }
  0xfa   : >> { %v404_v47 = vpop.f32.mrf.mxu0  ;;  %v550_v54 = vadd.f32 %v1093_v46, %v1069_v45 }
  0xfb   : >> { %v541_v48 = vpop.f32.mrf.mxu1 }
  0xfc   : >> { %v1070_v49 = vpop.f32.mrf.mxu0  ;;  %v542_v59 = vadd.f32 %v541_v48, %v404_v47 }
  0xfd   : >> { %v1094_v50 = vpop.f32.mrf.mxu1 }
  0xfe   : >> { %v407_v51 = vpop.f32.mrf.mxu0  ;;  %v553_v3 = vadd.f32 %v1094_v50, %v1070_v49 }
  0xff   : >> { %v544_v53 = vpop.f32.mrf.mxu1 }
 0x100   : >> { %v545_v12 = vadd.f32 %v544_v53, %v407_v51 }
 0x110   : >> { %v1113_v55 = vpop.f32.mrf.mxu0 }
 0x111   : >> { %v724_v57 = vadd.f32 %v1113_v55, %v534_v52  ;;  %v1117_v58 = vpop.f32.mrf.mxu1 }
 0x112   : >> { %v728_v60 = vadd.f32 %v1117_v58, %v550_v54  ;;  %v691_v61 = vpop.f32.mrf.mxu0 }
 0x113   : >> { %v738_v63 = vadd.f32 %v1308_v0, %v724_v57  ;;  %v722_v1 = vadd.f32 %v691_v61, %v526_v56  ;;  %v707_v2 = vpop.f32.mrf.mxu1 }
 0x114   : >> { %v742_v4 = vadd.f32 %v1308_v0, %v728_v60  ;;  %v726_v5 = vadd.f32 %v707_v2, %v542_v59  ;;  %v1114_v6 = vpop.f32.mrf.mxu0 }
 0x115   : >> { %v746_v8 = vsub.f32 0.0, %v738_v63  ;;  %v736_v9 = vadd.f32 %v1308_v0, %v722_v1  ;;  %v725_v10 = vadd.f32 %v1114_v6, %v537_v62  ;;  %v1118_v11 = vpop.f32.mrf.mxu1 }
 0x116   : >> { %v750_v13 = vsub.f32 0.0, %v742_v4  ;;  %v740_v14 = vadd.f32 %v1308_v0, %v726_v5  ;;  %v729_v15 = vadd.f32 %v1118_v11, %v553_v3  ;;  %v694_v16 = vpop.f32.mrf.mxu0 }
 0x117   : >> { %v756_v17 = vmul.f32 1.442695, %v746_v8  ;;  %v744_v18 = vsub.f32 0.0, %v736_v9  ;;  %v739_v19 = vadd.f32 %v1308_v0, %v725_v10  ;;  %v723_v20 = vadd.f32 %v694_v16, %v529_v7  ;;  %v710_v21 = vpop.f32.mrf.mxu1 }
 0x118   : >> { %v764_v22 = vmul.f32 1.442695, %v750_v13  ;;  %v748_v23 = vsub.f32 0.0, %v740_v14  ;;  %v743_v24 = vadd.f32 %v1308_v0, %v729_v15  ;;  %v727_v25 = vadd.f32 %v710_v21, %v545_v12 }
 0x119   : >> { %1203 = vpow2.f32 %v756_v17  ;;  %v752_v26 = vmul.f32 1.442695, %v744_v18  ;;  %v747_v27 = vsub.f32 0.0, %v739_v19  ;;  %v737_v28 = vadd.f32 %v1308_v0, %v723_v20 }
 0x11a   : >> { %1205 = vpow2.f32 %v764_v22  ;;  %v760_v29 = vmul.f32 1.442695, %v748_v23  ;;  %v751_v30 = vsub.f32 0.0, %v743_v24  ;;  %v741_v31 = vadd.f32 %v1308_v0, %v727_v25 }
 0x11b   : >> { %1207 = vpow2.f32 %v752_v26  ;;  %v758_v32 = vmul.f32 1.442695, %v747_v27  ;;  %v745_v33 = vsub.f32 0.0, %v737_v28 }
 0x11c   : >> { %1209 = vpow2.f32 %v760_v29  ;;  %v766_v34 = vmul.f32 1.442695, %v751_v30  ;;  %v749_v35 = vsub.f32 0.0, %v741_v31 }
 0x11d   : >> { %1211 = vpow2.f32 %v758_v32  ;;  %v754_v36 = vmul.f32 1.442695, %v745_v33 }
 0x11e   : >> { %1213 = vpow2.f32 %v766_v34  ;;  %v762_v37 = vmul.f32 1.442695, %v749_v35 }
 0x11f   : >> { %1215 = vpow2.f32 %v754_v36 }
 0x120   : >> { %1217 = vpow2.f32 %v762_v37 }
 0x126   : >> { %v1204_v38 = vpop.eup %1203 }
 0x127   : >> { %v1206_v39 = vpop.eup %1205  ;;  %v770_v40 = vadd.f32 1.0, %v1204_v38 }
 0x128   : >> { %v1208_v41 = vpop.eup %1207  ;;  %v774_v42 = vadd.f32 1.0, %v1206_v39 }
 0x129   : >> { %v1210_v43 = vpop.eup %1209  ;;  %1219 = vrcp.f32 %v770_v40  ;;  %v768_v44 = vadd.f32 1.0, %v1208_v41 }
 0x12a   : >> { %v1212_v45 = vpop.eup %1211  ;;  %1221 = vrcp.f32 %v774_v42  ;;  %v772_v46 = vadd.f32 1.0, %v1210_v43 }
 0x12b   : >> { %v1214_v47 = vpop.eup %1213  ;;  %1223 = vrcp.f32 %v768_v44  ;;  %v771_v48 = vadd.f32 1.0, %v1212_v45 }
 0x12c   : >> { %v1216_v49 = vpop.eup %1215  ;;  %1225 = vrcp.f32 %v772_v46  ;;  %v775_v50 = vadd.f32 1.0, %v1214_v47 }
 0x12d   : >> { %v1218_v51 = vpop.eup %1217  ;;  %1227 = vrcp.f32 %v771_v48  ;;  %v769_v52 = vadd.f32 1.0, %v1216_v49 }
 0x12e   : >> { %1229 = vrcp.f32 %v775_v50  ;;  %v773_v53 = vadd.f32 1.0, %v1218_v51 }
 0x12f   : >> { %1231 = vrcp.f32 %v769_v52 }
 0x130   : >> { %1233 = vrcp.f32 %v773_v53 }
 0x136   : >> { %v1220_v54 = vpop.eup %1219 }
 0x137   : >> { %v1222_v55 = vpop.eup %1221  ;;  %796 = vst [vmem:[%s793_s11 + $0x10] sm:$0xff] %v1220_v54 }
 0x138   : >> { %v1224_v56 = vpop.eup %1223  ;;  %800 = vst [vmem:[%s793_s11 + $0x30] sm:$0xff] %v1222_v55 }
 0x139   : >> { %v1226_v57 = vpop.eup %1225  ;;  %794 = vst [vmem:[%s793_s11] sm:$0xff] %v1224_v56 }
 0x13a   : >> { %v1228_v58 = vpop.eup %1227  ;;  %798 = vst [vmem:[%s793_s11 + $0x20] sm:$0xff] %v1226_v57  ;;  %224 = sbr.rel (!%p222_p6) target bundleno = 15 (0xf), region = 75 }
 0x13b   : >> { %v1230_v59 = vpop.eup %1229  ;;  %797 = vst [vmem:[%s793_s11 + $0x18] sm:$0xff] %v1228_v58 }
 0x13c   : >> { %v1232_v60 = vpop.eup %1231  ;;  %801 = vst [vmem:[%s793_s11 + $0x38] sm:$0xff] %v1230_v59 }
 0x13d   : >> { %v1234_v61 = vpop.eup %1233  ;;  %795 = vst [vmem:[%s793_s11 + $0x8] sm:$0xff] %v1232_v60 }
 0x13e   : >> { %799 = vst [vmem:[%s793_s11 + $0x28] sm:$0xff] %v1234_v61 }
 0x13f PF: > { %s13_s14 = sadd.s32 1, %s1261_s14   ;;  %s1439_s12 = smov %s1257_s13 }
 0x140   : > { %p10_p7 = scmp.ge.s32.totalorder %s13_s14, 4   ;;  %s1440_s13 = smov %s1442_s15 }
 0x142   :  { %12 = sbr.rel (!%p10_p7) target bundleno = 2 (0x2), region = 86 }

</bundles_post_ra>
